<compile_context>
chip_gen: v6e
topology: v6e:2x2x1
jax: 0.10.0
libtpu: 0.0.40
codegen_flags: <defaults>
</compile_context>

<pallas_src>
import jax
import jax.numpy as jnp
from jax import lax
from jax.experimental import pallas as pl
from jax.experimental.pallas import tpu as pltpu

_VMEM_LIMIT = 48 * 1024 * 1024  # fits v7x's 64 MiB physical VMEM with headroom


def _pick_block(n):
    """Lane-aligned row/col block for the node dimension."""
    if n % 256 == 0 and n >= 1024:
        return 256
    if n % 128 == 0:
        return 128
    # TODO(synk): pad N to a multiple of 128 for ragged graphs instead of
    # falling back to a single untiled block.
    return n


# ----------------------------- kernel 1: projection ---------------------------
def _gat_project_kernel(h_ref, w_ref, bw_ref, vkt_w_ref, vkt_b_ref,
                        vkr_w_ref, vkr_b_ref, z_ref, t_ref, r_ref):
    # Z = relu(H @ W + b): bf16 MXU inputs, f32 accumulation.
    z = jnp.dot(h_ref[...].astype(jnp.bfloat16), w_ref[...],
                preferred_element_type=jnp.float32)
    z = jnp.maximum(z + bw_ref[...], 0.0)

    # t[j] = vkt(Z[j]) laid out along lanes (1, blk): contract the feature dim
    # directly so no in-kernel transpose of a skinny column is needed.
    t_row = lax.dot_general(vkt_w_ref[...], z, (((1,), (1,)), ((), ())),
                            preferred_element_type=jnp.float32) + vkt_b_ref[...]
    # r[i] = vkr(Z[i]) as a column (blk, 1).
    r_col = jnp.dot(z, vkr_w_ref[...],
                    preferred_element_type=jnp.float32) + vkr_b_ref[...]

    z_ref[...] = z.astype(jnp.bfloat16)   # streamed into the attention kernel
    t_ref[...] = t_row
    r_ref[...] = r_col


def gat_project(h, params):
    w, b_w, vkt_w, vkt_b, vkr_w, vkr_b = params   # PyTorch Linear layouts
    n, in_size = h.shape
    out_size = w.shape[0]
    blk = _pick_block(n)
    nm = n // blk

    w_t = w.T.astype(jnp.bfloat16)          # (in, out), bf16 for the MXU
    bw2 = b_w.reshape(1, out_size)
    vkt_w2 = vkt_w.reshape(1, out_size)
    vkt_b2 = vkt_b.reshape(1, 1)
    vkr_w2 = vkr_w.reshape(out_size, 1)
    vkr_b2 = vkr_b.reshape(1, 1)

    cost = pl.CostEstimate(
        flops=2 * n * in_size * out_size + 6 * n * out_size,
        transcendentals=0,
        bytes_accessed=n * in_size * 4 + in_size * out_size * 2
                       + n * out_size * 2 + 8 * n + out_size * 12)

    grid_spec = pltpu.PrefetchScalarGridSpec(
        num_scalar_prefetch=0,
        grid=(nm,),
        in_specs=[
            pl.BlockSpec((blk, in_size), lambda m: (m, 0)),
            pl.BlockSpec((in_size, out_size), lambda m: (0, 0)),
            pl.BlockSpec((1, out_size), lambda m: (0, 0)),
            pl.BlockSpec((1, out_size), lambda m: (0, 0)),
            pl.BlockSpec((1, 1), lambda m: (0, 0)),
            pl.BlockSpec((out_size, 1), lambda m: (0, 0)),
            pl.BlockSpec((1, 1), lambda m: (0, 0)),
        ],
        out_specs=[
            pl.BlockSpec((blk, out_size), lambda m: (m, 0)),   # Z (bf16)
            pl.BlockSpec((1, blk), lambda m: (0, m)),          # t (lane-dense row)
            pl.BlockSpec((blk, 1), lambda m: (m, 0)),          # r (column)
        ],
    )
    return pl.pallas_call(
        _gat_project_kernel,
        grid_spec=grid_spec,
        out_shape=(jax.ShapeDtypeStruct((n, out_size), jnp.bfloat16),
                   jax.ShapeDtypeStruct((1, n), jnp.float32),
                   jax.ShapeDtypeStruct((n, 1), jnp.float32)),
        compiler_params=pltpu.CompilerParams(
            dimension_semantics=("parallel",),
            vmem_limit_bytes=_VMEM_LIMIT),
        cost_estimate=cost,
    )(h, w_t, bw2, vkt_w2, vkt_b2, vkr_w2, vkr_b2)


# ----------------------------- kernel 2: attention ----------------------------
def _gat_attention_kernel(a_ref, a_swap_ref, t_ref, r_ref, z_ref, out_ref,
                          acc_ref, denom_ref):
    k = pl.program_id(1)

    @pl.when(k == 0)
    def _():
        acc_ref[...] = jnp.zeros_like(acc_ref)
        denom_ref[...] = jnp.zeros_like(denom_ref)

    a = a_ref[...].astype(jnp.float32)
    # A^T tile for (i, k) == transpose of the A tile at (k, i): read via swapped
    # index_map and transpose on the XLU -> no second (N, N) array in HBM.
    a_t = a_swap_ref[...].astype(jnp.float32).T

    # S[i, j] = sigmoid(A[i, j] * t[j] + A[j, i] * r[i])
    s = jax.nn.sigmoid(a * t_ref[...] + a_t * r_ref[...])

    # sigmoid bounds s to [0, 1], so exp cannot overflow: safe to skip the usual
    # softmax max-subtraction (re-add it if the score function ever changes!).
    e = jnp.exp(s)

    denom_ref[...] += jnp.sum(e, axis=-1, keepdims=True)
    acc_ref[...] += jnp.dot(e.astype(jnp.bfloat16), z_ref[...],
                            preferred_element_type=jnp.float32)

    @pl.when(k == pl.num_programs(1) - 1)
    def _():
        out_ref[...] = acc_ref[...] * pl.reciprocal(denom_ref[...], approx=True)


def gat_attention(adj_bf16, z_bf16, t_row, r_col):
    n = adj_bf16.shape[0]
    out_size = z_bf16.shape[1]
    blk = _pick_block(n)
    nb = n // blk

    cost = pl.CostEstimate(
        flops=2 * n * n * out_size + 8 * n * n,
        transcendentals=2 * n * n,
        bytes_accessed=2 * n * n * 2 + nb * n * out_size * 2
                       + n * out_size * 4 + 8 * n)

    grid_spec = pltpu.PrefetchScalarGridSpec(
        num_scalar_prefetch=0,
        grid=(nb, nb),
        in_specs=[
            pl.BlockSpec((blk, blk), lambda i, k: (i, k)),       # A[i-blk, k-blk]
            pl.BlockSpec((blk, blk), lambda i, k: (k, i)),       # A[k-blk, i-blk]
            pl.BlockSpec((1, blk), lambda i, k: (0, k)),         # t over columns
            pl.BlockSpec((blk, 1), lambda i, k: (i, 0)),         # r over rows
            pl.BlockSpec((blk, out_size), lambda i, k: (k, 0)),  # Z rows (k-blk)
        ],
        out_specs=pl.BlockSpec((blk, out_size), lambda i, k: (i, 0)),
        scratch_shapes=[pltpu.VMEM((blk, out_size), jnp.float32),
                        pltpu.VMEM((blk, 1), jnp.float32)],
    )
    return pl.pallas_call(
        _gat_attention_kernel,
        grid_spec=grid_spec,
        out_shape=jax.ShapeDtypeStruct((n, out_size), jnp.float32),
        compiler_params=pltpu.CompilerParams(
            dimension_semantics=("parallel", "arbitrary"),
            vmem_limit_bytes=_VMEM_LIMIT),
        cost_estimate=cost,
    )(adj_bf16, adj_bf16, t_row, r_col, z_bf16)


def gat_layer(h, params, adj_bf16):
    """One graphattention_layer forward (projection kernel + attention kernel)."""
    z_bf16, t_row, r_col = gat_project(h, params)
    return gat_attention(adj_bf16, z_bf16, t_row, r_col)


# ---------------- pure-JAX reference (mirrors the PyTorch code exactly) -------
def gat_layer_ref(h, params, adj):
    w, b_w, vkt_w, vkt_b, vkr_w, vkr_b = params
    z = jax.nn.relu(h @ w.T + b_w)
    t = z @ vkt_w.T + vkt_b            # (N, 1)
    r = z @ vkr_w.T + vkr_b            # (N, 1)
    m_s = adj * t.T
    m_r = (adj * r.T).T
    att = jax.nn.softmax(jax.nn.sigmoid(m_s + m_r), axis=1)
    return att @ z


# ---------------- parameter construction (deterministic, PyTorch-style init) --
def init_linear(key, in_f, out_f):
    kw, kb = jax.random.split(key)
    bound = 1.0 / (in_f ** 0.5)
    w = jax.random.uniform(kw, (out_f, in_f), jnp.float32, -bound, bound)
    b = jax.random.uniform(kb, (out_f,), jnp.float32, -bound, bound)
    return w, b


def init_gat_layer(key, in_size, out_size):
    k1, k2, k3 = jax.random.split(key, 3)
    w, b_w = init_linear(k1, in_size, out_size)
    vkt_w, vkt_b = init_linear(k2, out_size, 1)
    vkr_w, vkr_b = init_linear(k3, out_size, 1)
    return (w, b_w, vkt_w, vkt_b, vkr_w, vkr_b)


def init_decoder(key, reconstruction_embedding, num_genes_nodes):
    k1, k2, k3 = jax.random.split(key, 3)
    # layer3_2 exists in __init__ but is unused in forward — omitted here.
    return {
        "layer1": init_gat_layer(k1, 64, 256),
        "layer2": init_gat_layer(k2, 256, 512),
        "layer3": init_gat_layer(k3, 512, reconstruction_embedding),
    }


# ---------------- decoder forward ---------------------------------------------
def decoder_forward(params, gene_embeddings, H, adjM):
    # decoderPass = cat((gGraph, H.T), dim=1).T -> (N_genes + N_cells, 64)
    decoder_pass = jnp.concatenate([gene_embeddings, H.T], axis=1).T
    adj_bf16 = adjM.astype(jnp.bfloat16)   # 0/1 entries: exact; cast once, reused 3x
    h1 = gat_layer(decoder_pass, params["layer1"], adj_bf16)
    h2 = gat_layer(h1, params["layer2"], adj_bf16)
    h3 = gat_layer(h2, params["layer3"], adj_bf16)
    return h3


def decoder_forward_ref(params, gene_embeddings, H, adjM):
    decoder_pass = jnp.concatenate([gene_embeddings, H.T], axis=1).T
    h1 = gat_layer_ref(decoder_pass, params["layer1"], adjM)
    h2 = gat_layer_ref(h1, params["layer2"], adjM)
    h3 = gat_layer_ref(h2, params["layer3"], adjM)
    return h3


if __name__ == "__main__":
    key = jax.random.PRNGKey(0)
    k_param, k_gene, k_h, k_adj = jax.random.split(key, 4)

    n_genes, n_cells, feat = 128, 128, 64
    n_total = n_genes + n_cells                # total graph nodes after concat
    reconstruction_embedding = n_total         # "H3 would be of size N*N"

    gene_embeddings = jax.random.normal(k_gene, (feat, n_genes), jnp.float32)   # (64, N_genes)
    H = jax.random.normal(k_h, (n_cells, feat), jnp.float32)                    # encoder output (N_cells, 64)
    adjM = jax.random.bernoulli(k_adj, 0.5, (n_total, n_total)).astype(jnp.float32)

    params = init_decoder(k_param, reconstruction_embedding, n_genes)

    fwd = jax.jit(decoder_forward)
    out = jax.block_until_ready(fwd(params, gene_embeddings, H, adjM))

    ref = decoder_forward_ref(params, gene_embeddings, H, adjM)
    assert out.shape == (n_total, reconstruction_embedding)

    # bf16 MXU inputs + approx reciprocal: compare against the f32 reference
    # with a correspondingly loosened tolerance (f32 accumulation keeps drift small).
    err = float(jnp.max(jnp.abs(out - ref)))
    scale = float(jnp.max(jnp.abs(ref))) + 1e-6
    assert err <= 5e-2 * scale, f"mismatch vs. JAX reference: max|err|={err}, max|ref|={scale}"

    print("KERNEL_OK")
</pallas_src>

<mosaic_0001>
module attributes {stable_mosaic.version = 11 : i64} {
  func.func @_gat_attention_kernel(%arg0: i32, %arg1: i32, %arg2: memref<128x128xbf16, #tpu.memory_space<vmem>>, %arg3: memref<128x128xbf16, #tpu.memory_space<vmem>>, %arg4: memref<1x128xf32, #tpu.memory_space<vmem>>, %arg5: memref<128x1xf32, #tpu.memory_space<vmem>>, %arg6: memref<128x256xbf16, #tpu.memory_space<vmem>>, %arg7: memref<128x256xf32, #tpu.memory_space<vmem>>, %arg8: memref<128x256xf32, #tpu.memory_space<vmem>>, %arg9: memref<128x1xf32, #tpu.memory_space<vmem>>) attributes {dimension_semantics = [#tpu.dimension_semantics<parallel>, #tpu.dimension_semantics<arbitrary>], iteration_bounds = array<i64: 2, 2>, scalar_prefetch = 0 : i64, scratch_operands = 2 : i64, tpu.core_type = #tpu.core_type<tc>, window_params = [{transform_indices = @transform_0, window_bounds = array<i64: 128, 128>}, {transform_indices = @transform_1, window_bounds = array<i64: 128, 128>}, {transform_indices = @transform_2, window_bounds = array<i64: 1, 128>}, {transform_indices = @transform_3, window_bounds = array<i64: 128, 1>}, {transform_indices = @transform_4, window_bounds = array<i64: 128, 256>}, {transform_indices = @transform_5, window_bounds = array<i64: 128, 256>}]} {
    %c0_i32 = arith.constant 0 : i32
    %0 = arith.cmpi eq, %arg1, %c0_i32 : i32
    %1 = arith.extui %0 : i1 to i32
    %c0_i32_0 = arith.constant 0 : i32
    %2 = arith.cmpi ne, %1, %c0_i32_0 : i32
    scf.if %2 {
      %cst_21 = arith.constant 0.000000e+00 : f32
      %35 = vector.broadcast %cst_21 : f32 to vector<128x256xf32>
      %c0_22 = arith.constant 0 : index
      %c0_23 = arith.constant 0 : index
      %36 = vector.load %arg8[%c0_22, %c0_23] : memref<128x256xf32, #tpu.memory_space<vmem>>, vector<128x256xf32>
      tpu.vector_store %arg8[%c0_22, %c0_23], %35 {strides = array<i32>} : memref<128x256xf32, #tpu.memory_space<vmem>>, vector<128x256xf32>,
      %cst_24 = arith.constant 0.000000e+00 : f32
      %37 = vector.broadcast %cst_24 : f32 to vector<128x1xf32>
      %c0_25 = arith.constant 0 : index
      %c0_26 = arith.constant 0 : index
      %38 = vector.load %arg9[%c0_25, %c0_26] : memref<128x1xf32, #tpu.memory_space<vmem>>, vector<128x1xf32>
      tpu.vector_store %arg9[%c0_25, %c0_26], %37 {strides = array<i32>} : memref<128x1xf32, #tpu.memory_space<vmem>>, vector<128x1xf32>,
    } else {
    }
    %c0 = arith.constant 0 : index
    %c0_1 = arith.constant 0 : index
    %3 = vector.load %arg2[%c0, %c0_1] : memref<128x128xbf16, #tpu.memory_space<vmem>>, vector<128x128xbf16>
    %4 = arith.extf %3 : vector<128x128xbf16> to vector<128x128xf32>
    %c0_2 = arith.constant 0 : index
    %c0_3 = arith.constant 0 : index
    %5 = vector.load %arg3[%c0_2, %c0_3] : memref<128x128xbf16, #tpu.memory_space<vmem>>, vector<128x128xbf16>
    %6 = arith.extf %5 : vector<128x128xbf16> to vector<128x128xf32>
    %7 = tpu.transpose %6, [1, 0] : vector<128x128xf32> -> vector<128x128xf32>
    %c0_4 = arith.constant 0 : index
    %c0_5 = arith.constant 0 : index
    %8 = vector.load %arg4[%c0_4, %c0_5] : memref<1x128xf32, #tpu.memory_space<vmem>>, vector<1x128xf32>
    %9 = vector.broadcast %8 : vector<1x128xf32> to vector<128x128xf32>
    %10 = arith.mulf %4, %9 : vector<128x128xf32>
    %c0_6 = arith.constant 0 : index
    %c0_7 = arith.constant 0 : index
    %11 = vector.load %arg5[%c0_6, %c0_7] : memref<128x1xf32, #tpu.memory_space<vmem>>, vector<128x1xf32>
    %12 = vector.broadcast %11 : vector<128x1xf32> to vector<128x128xf32>
    %13 = arith.mulf %7, %12 : vector<128x128xf32>
    %14 = arith.addf %10, %13 : vector<128x128xf32>
    %15 = arith.negf %14 : vector<128x128xf32>
    %16 = math.exp %15 : vector<128x128xf32>
    %cst = arith.constant 1.000000e+00 : f32
    %17 = vector.broadcast %cst : f32 to vector<128x128xf32>
    %18 = arith.addf %17, %16 : vector<128x128xf32>
    %19 = arith.divf %17, %18 : vector<128x128xf32>
    %20 = math.exp %19 : vector<128x128xf32>
    %c0_8 = arith.constant 0 : index
    %c0_9 = arith.constant 0 : index
    %21 = vector.load %arg9[%c0_8, %c0_9] : memref<128x1xf32, #tpu.memory_space<vmem>>, vector<128x1xf32>
    %cst_10 = arith.constant dense<0.000000e+00> : vector<128xf32>
    %22 = vector.multi_reduction <add>, %20, %cst_10 [1] : vector<128x128xf32> to vector<128xf32>
    %23 = vector.shape_cast %22 : vector<128xf32> to vector<128x1xf32>
    %24 = arith.addf %21, %23 : vector<128x1xf32>
    %c0_11 = arith.constant 0 : index
    %c0_12 = arith.constant 0 : index
    %25 = vector.load %arg9[%c0_11, %c0_12] : memref<128x1xf32, #tpu.memory_space<vmem>>, vector<128x1xf32>
    tpu.vector_store %arg9[%c0_11, %c0_12], %24 {strides = array<i32>} : memref<128x1xf32, #tpu.memory_space<vmem>>, vector<128x1xf32>,
    %c0_13 = arith.constant 0 : index
    %c0_14 = arith.constant 0 : index
    %26 = vector.load %arg8[%c0_13, %c0_14] : memref<128x256xf32, #tpu.memory_space<vmem>>, vector<128x256xf32>
    %27 = arith.truncf %20 : vector<128x128xf32> to vector<128x128xbf16>
    %c0_15 = arith.constant 0 : index
    %c0_16 = arith.constant 0 : index
    %28 = vector.load %arg6[%c0_15, %c0_16] : memref<128x256xbf16, #tpu.memory_space<vmem>>, vector<128x256xbf16>
    %cst_17 = arith.constant dense<0.000000e+00> : vector<128x256xf32>
    %29 = tpu.matmul %27, %28, %cst_17 {dimension_numbers = #tpu.dot_dimension_numbers<[1], [0], [0], [1], [0, 0, 1, 1], [], []>} : vector<128x128xbf16>, vector<128x256xbf16>, vector<128x256xf32> -> vector<128x256xf32>
    %30 = arith.addf %26, %29 : vector<128x256xf32>
    %c0_18 = arith.constant 0 : index
    %c0_19 = arith.constant 0 : index
    %31 = vector.load %arg8[%c0_18, %c0_19] : memref<128x256xf32, #tpu.memory_space<vmem>>, vector<128x256xf32>
    tpu.vector_store %arg8[%c0_18, %c0_19], %30 {strides = array<i32>} : memref<128x256xf32, #tpu.memory_space<vmem>>, vector<128x256xf32>,
    %c1_i32 = arith.constant 1 : i32
    %32 = arith.cmpi eq, %arg1, %c1_i32 : i32
    %33 = arith.extui %32 : i1 to i32
    %c0_i32_20 = arith.constant 0 : i32
    %34 = arith.cmpi ne, %33, %c0_i32_20 : i32
    scf.if %34 {
      %c0_21 = arith.constant 0 : index
      %c0_22 = arith.constant 0 : index
      %35 = vector.load %arg8[%c0_21, %c0_22] : memref<128x256xf32, #tpu.memory_space<vmem>>, vector<128x256xf32>
      %c0_23 = arith.constant 0 : index
      %c0_24 = arith.constant 0 : index
      %36 = vector.load %arg9[%c0_23, %c0_24] : memref<128x1xf32, #tpu.memory_space<vmem>>, vector<128x1xf32>
      %37 = tpu.reciprocal %36 {approx = true} : vector<128x1xf32> -> vector<128x1xf32>
      %38 = vector.broadcast %37 : vector<128x1xf32> to vector<128x256xf32>
      %39 = arith.mulf %35, %38 : vector<128x256xf32>
      %c0_25 = arith.constant 0 : index
      %c0_26 = arith.constant 0 : index
      %40 = vector.load %arg7[%c0_25, %c0_26] : memref<128x256xf32, #tpu.memory_space<vmem>>, vector<128x256xf32>
      tpu.vector_store %arg7[%c0_25, %c0_26], %39 {strides = array<i32>} : memref<128x256xf32, #tpu.memory_space<vmem>>, vector<128x256xf32>,
    } else {
    }
    return
  }
  func.func @transform_0(%arg0: i32, %arg1: i32) -> (i32, i32) {
    %c0_i32 = arith.constant 0 : i32
    return %arg0, %arg1 : i32, i32
  }
  func.func @transform_1(%arg0: i32, %arg1: i32) -> (i32, i32) {
    %c0_i32 = arith.constant 0 : i32
    return %arg1, %arg0 : i32, i32
  }
  func.func @transform_2(%arg0: i32, %arg1: i32) -> (i32, i32) {
    %c0_i32 = arith.constant 0 : i32
    %c0_i32_0 = arith.constant 0 : i32
    return %c0_i32, %arg1 : i32, i32
  }
  func.func @transform_3(%arg0: i32, %arg1: i32) -> (i32, i32) {
    %c0_i32 = arith.constant 0 : i32
    %c0_i32_0 = arith.constant 0 : i32
    return %arg0, %c0_i32 : i32, i32
  }
  func.func @transform_4(%arg0: i32, %arg1: i32) -> (i32, i32) {
    %c0_i32 = arith.constant 0 : i32
    %c0_i32_0 = arith.constant 0 : i32
    return %arg1, %c0_i32 : i32, i32
  }
  func.func @transform_5(%arg0: i32, %arg1: i32) -> (i32, i32) {
    %c0_i32 = arith.constant 0 : i32
    %c0_i32_0 = arith.constant 0 : i32
    return %arg0, %c0_i32 : i32, i32
  }
}

module attributes {stable_mosaic.version = 11 : i64} {
  func.func @_gat_project_kernel(%arg0: i32, %arg1: memref<128x64xf32, #tpu.memory_space<vmem>>, %arg2: memref<64x256xbf16, #tpu.memory_space<vmem>>, %arg3: memref<1x256xf32, #tpu.memory_space<vmem>>, %arg4: memref<1x256xf32, #tpu.memory_space<vmem>>, %arg5: memref<1x1xf32, #tpu.memory_space<vmem>>, %arg6: memref<256x1xf32, #tpu.memory_space<vmem>>, %arg7: memref<1x1xf32, #tpu.memory_space<vmem>>, %arg8: memref<128x256xbf16, #tpu.memory_space<vmem>>, %arg9: memref<1x128xf32, #tpu.memory_space<vmem>>, %arg10: memref<128x1xf32, #tpu.memory_space<vmem>>) attributes {dimension_semantics = [#tpu.dimension_semantics<parallel>], iteration_bounds = array<i64: 2>, scalar_prefetch = 0 : i64, scratch_operands = 0 : i64, tpu.core_type = #tpu.core_type<tc>, window_params = [{transform_indices = @transform_0, window_bounds = array<i64: 128, 64>}, {pipeline_mode = #tpu.pipeline_mode<synchronous>, transform_indices = @transform_1, window_bounds = array<i64: 64, 256>}, {pipeline_mode = #tpu.pipeline_mode<synchronous>, transform_indices = @transform_2, window_bounds = array<i64: 1, 256>}, {pipeline_mode = #tpu.pipeline_mode<synchronous>, transform_indices = @transform_3, window_bounds = array<i64: 1, 256>}, {pipeline_mode = #tpu.pipeline_mode<synchronous>, transform_indices = @transform_4, window_bounds = array<i64: 1, 1>}, {pipeline_mode = #tpu.pipeline_mode<synchronous>, transform_indices = @transform_5, window_bounds = array<i64: 256, 1>}, {pipeline_mode = #tpu.pipeline_mode<synchronous>, transform_indices = @transform_6, window_bounds = array<i64: 1, 1>}, {transform_indices = @transform_7, window_bounds = array<i64: 128, 256>}, {transform_indices = @transform_8, window_bounds = array<i64: 1, 128>}, {transform_indices = @transform_9, window_bounds = array<i64: 128, 1>}]} {
    %c0 = arith.constant 0 : index
    %c0_0 = arith.constant 0 : index
    %0 = vector.load %arg1[%c0, %c0_0] : memref<128x64xf32, #tpu.memory_space<vmem>>, vector<128x64xf32>
    %1 = arith.truncf %0 : vector<128x64xf32> to vector<128x64xbf16>
    %c0_1 = arith.constant 0 : index
    %c0_2 = arith.constant 0 : index
    %2 = vector.load %arg2[%c0_1, %c0_2] : memref<64x256xbf16, #tpu.memory_space<vmem>>, vector<64x256xbf16>
    %cst = arith.constant dense<0.000000e+00> : vector<128x256xf32>
    %3 = tpu.matmul %1, %2, %cst {dimension_numbers = #tpu.dot_dimension_numbers<[1], [0], [0], [1], [0, 0, 1, 1], [], []>} : vector<128x64xbf16>, vector<64x256xbf16>, vector<128x256xf32> -> vector<128x256xf32>
    %c0_3 = arith.constant 0 : index
    %c0_4 = arith.constant 0 : index
    %4 = vector.load %arg3[%c0_3, %c0_4] : memref<1x256xf32, #tpu.memory_space<vmem>>, vector<1x256xf32>
    %5 = vector.broadcast %4 : vector<1x256xf32> to vector<128x256xf32>
    %6 = arith.addf %3, %5 : vector<128x256xf32>
    %cst_5 = arith.constant 0.000000e+00 : f32
    %7 = vector.broadcast %cst_5 : f32 to vector<128x256xf32>
    %8 = arith.maximumf %6, %7 : vector<128x256xf32>
    %c0_6 = arith.constant 0 : index
    %c0_7 = arith.constant 0 : index
    %9 = vector.load %arg4[%c0_6, %c0_7] : memref<1x256xf32, #tpu.memory_space<vmem>>, vector<1x256xf32>
    %cst_8 = arith.constant dense<0.000000e+00> : vector<1x128xf32>
    %10 = tpu.matmul %9, %8, %cst_8 {dimension_numbers = #tpu.dot_dimension_numbers<[1], [1], [0], [0], [0, 0, 1, 0], [], []>} : vector<1x256xf32>, vector<128x256xf32>, vector<1x128xf32> -> vector<1x128xf32>
    %c0_9 = arith.constant 0 : index
    %c0_10 = arith.constant 0 : index
    %11 = vector.load %arg5[%c0_9, %c0_10] : memref<1x1xf32, #tpu.memory_space<vmem>>, vector<1x1xf32>
    %12 = vector.broadcast %11 : vector<1x1xf32> to vector<1x128xf32>
    %13 = arith.addf %10, %12 : vector<1x128xf32>
    %c0_11 = arith.constant 0 : index
    %c0_12 = arith.constant 0 : index
    %14 = vector.load %arg6[%c0_11, %c0_12] : memref<256x1xf32, #tpu.memory_space<vmem>>, vector<256x1xf32>
    %cst_13 = arith.constant dense<0.000000e+00> : vector<128x1xf32>
    %15 = tpu.matmul %8, %14, %cst_13 {dimension_numbers = #tpu.dot_dimension_numbers<[1], [0], [0], [1], [0, 0, 1, 1], [], []>} : vector<128x256xf32>, vector<256x1xf32>, vector<128x1xf32> -> vector<128x1xf32>
    %c0_14 = arith.constant 0 : index
    %c0_15 = arith.constant 0 : index
    %16 = vector.load %arg7[%c0_14, %c0_15] : memref<1x1xf32, #tpu.memory_space<vmem>>, vector<1x1xf32>
    %17 = vector.broadcast %16 : vector<1x1xf32> to vector<128x1xf32>
    %18 = arith.addf %15, %17 : vector<128x1xf32>
    %19 = arith.truncf %8 : vector<128x256xf32> to vector<128x256xbf16>
    %c0_16 = arith.constant 0 : index
    %c0_17 = arith.constant 0 : index
    %20 = vector.load %arg8[%c0_16, %c0_17] : memref<128x256xbf16, #tpu.memory_space<vmem>>, vector<128x256xbf16>
    tpu.vector_store %arg8[%c0_16, %c0_17], %19 {strides = array<i32>} : memref<128x256xbf16, #tpu.memory_space<vmem>>, vector<128x256xbf16>,
    %c0_18 = arith.constant 0 : index
    %c0_19 = arith.constant 0 : index
    %21 = vector.load %arg9[%c0_18, %c0_19] : memref<1x128xf32, #tpu.memory_space<vmem>>, vector<1x128xf32>
    tpu.vector_store %arg9[%c0_18, %c0_19], %13 {strides = array<i32>} : memref<1x128xf32, #tpu.memory_space<vmem>>, vector<1x128xf32>,
    %c0_20 = arith.constant 0 : index
    %c0_21 = arith.constant 0 : index
    %22 = vector.load %arg10[%c0_20, %c0_21] : memref<128x1xf32, #tpu.memory_space<vmem>>, vector<128x1xf32>
    tpu.vector_store %arg10[%c0_20, %c0_21], %18 {strides = array<i32>} : memref<128x1xf32, #tpu.memory_space<vmem>>, vector<128x1xf32>,
    return
  }
  func.func @transform_0(%arg0: i32) -> (i32, i32) {
    %c0_i32 = arith.constant 0 : i32
    %c0_i32_0 = arith.constant 0 : i32
    return %arg0, %c0_i32 : i32, i32
  }
  func.func @transform_1(%arg0: i32) -> (i32, i32) {
    %c0_i32 = arith.constant 0 : i32
    %c0_i32_0 = arith.constant 0 : i32
    %c0_i32_1 = arith.constant 0 : i32
    return %c0_i32, %c0_i32_0 : i32, i32
  }
  func.func @transform_2(%arg0: i32) -> (i32, i32) {
    %c0_i32 = arith.constant 0 : i32
    %c0_i32_0 = arith.constant 0 : i32
    %c0_i32_1 = arith.constant 0 : i32
    return %c0_i32, %c0_i32_0 : i32, i32
  }
  func.func @transform_3(%arg0: i32) -> (i32, i32) {
    %c0_i32 = arith.constant 0 : i32
    %c0_i32_0 = arith.constant 0 : i32
    %c0_i32_1 = arith.constant 0 : i32
    return %c0_i32, %c0_i32_0 : i32, i32
  }
  func.func @transform_4(%arg0: i32) -> (i32, i32) {
    %c0_i32 = arith.constant 0 : i32
    %c0_i32_0 = arith.constant 0 : i32
    %c0_i32_1 = arith.constant 0 : i32
    return %c0_i32, %c0_i32_0 : i32, i32
  }
  func.func @transform_5(%arg0: i32) -> (i32, i32) {
    %c0_i32 = arith.constant 0 : i32
    %c0_i32_0 = arith.constant 0 : i32
    %c0_i32_1 = arith.constant 0 : i32
    return %c0_i32, %c0_i32_0 : i32, i32
  }
  func.func @transform_6(%arg0: i32) -> (i32, i32) {
    %c0_i32 = arith.constant 0 : i32
    %c0_i32_0 = arith.constant 0 : i32
    %c0_i32_1 = arith.constant 0 : i32
    return %c0_i32, %c0_i32_0 : i32, i32
  }
  func.func @transform_7(%arg0: i32) -> (i32, i32) {
    %c0_i32 = arith.constant 0 : i32
    %c0_i32_0 = arith.constant 0 : i32
    return %arg0, %c0_i32 : i32, i32
  }
  func.func @transform_8(%arg0: i32) -> (i32, i32) {
    %c0_i32 = arith.constant 0 : i32
    %c0_i32_0 = arith.constant 0 : i32
    return %c0_i32, %arg0 : i32, i32
  }
  func.func @transform_9(%arg0: i32) -> (i32, i32) {
    %c0_i32 = arith.constant 0 : i32
    %c0_i32_0 = arith.constant 0 : i32
    return %arg0, %c0_i32 : i32, i32
  }
}

module attributes {stable_mosaic.version = 11 : i64} {
  func.func @_gat_project_kernel(%arg0: i32, %arg1: memref<128x256xf32, #tpu.memory_space<vmem>>, %arg2: memref<256x512xbf16, #tpu.memory_space<vmem>>, %arg3: memref<1x512xf32, #tpu.memory_space<vmem>>, %arg4: memref<1x512xf32, #tpu.memory_space<vmem>>, %arg5: memref<1x1xf32, #tpu.memory_space<vmem>>, %arg6: memref<512x1xf32, #tpu.memory_space<vmem>>, %arg7: memref<1x1xf32, #tpu.memory_space<vmem>>, %arg8: memref<128x512xbf16, #tpu.memory_space<vmem>>, %arg9: memref<1x128xf32, #tpu.memory_space<vmem>>, %arg10: memref<128x1xf32, #tpu.memory_space<vmem>>) attributes {dimension_semantics = [#tpu.dimension_semantics<parallel>], iteration_bounds = array<i64: 2>, scalar_prefetch = 0 : i64, scratch_operands = 0 : i64, tpu.core_type = #tpu.core_type<tc>, window_params = [{transform_indices = @transform_0, window_bounds = array<i64: 128, 256>}, {pipeline_mode = #tpu.pipeline_mode<synchronous>, transform_indices = @transform_1, window_bounds = array<i64: 256, 512>}, {pipeline_mode = #tpu.pipeline_mode<synchronous>, transform_indices = @transform_2, window_bounds = array<i64: 1, 512>}, {pipeline_mode = #tpu.pipeline_mode<synchronous>, transform_indices = @transform_3, window_bounds = array<i64: 1, 512>}, {pipeline_mode = #tpu.pipeline_mode<synchronous>, transform_indices = @transform_4, window_bounds = array<i64: 1, 1>}, {pipeline_mode = #tpu.pipeline_mode<synchronous>, transform_indices = @transform_5, window_bounds = array<i64: 512, 1>}, {pipeline_mode = #tpu.pipeline_mode<synchronous>, transform_indices = @transform_6, window_bounds = array<i64: 1, 1>}, {transform_indices = @transform_7, window_bounds = array<i64: 128, 512>}, {transform_indices = @transform_8, window_bounds = array<i64: 1, 128>}, {transform_indices = @transform_9, window_bounds = array<i64: 128, 1>}]} {
    %c0 = arith.constant 0 : index
    %c0_0 = arith.constant 0 : index
    %0 = vector.load %arg1[%c0, %c0_0] : memref<128x256xf32, #tpu.memory_space<vmem>>, vector<128x256xf32>
    %1 = arith.truncf %0 : vector<128x256xf32> to vector<128x256xbf16>
    %c0_1 = arith.constant 0 : index
    %c0_2 = arith.constant 0 : index
    %2 = vector.load %arg2[%c0_1, %c0_2] : memref<256x512xbf16, #tpu.memory_space<vmem>>, vector<256x512xbf16>
    %cst = arith.constant dense<0.000000e+00> : vector<128x512xf32>
    %3 = tpu.matmul %1, %2, %cst {dimension_numbers = #tpu.dot_dimension_numbers<[1], [0], [0], [1], [0, 0, 1, 1], [], []>} : vector<128x256xbf16>, vector<256x512xbf16>, vector<128x512xf32> -> vector<128x512xf32>
    %c0_3 = arith.constant 0 : index
    %c0_4 = arith.constant 0 : index
    %4 = vector.load %arg3[%c0_3, %c0_4] : memref<1x512xf32, #tpu.memory_space<vmem>>, vector<1x512xf32>
    %5 = vector.broadcast %4 : vector<1x512xf32> to vector<128x512xf32>
    %6 = arith.addf %3, %5 : vector<128x512xf32>
    %cst_5 = arith.constant 0.000000e+00 : f32
    %7 = vector.broadcast %cst_5 : f32 to vector<128x512xf32>
    %8 = arith.maximumf %6, %7 : vector<128x512xf32>
    %c0_6 = arith.constant 0 : index
    %c0_7 = arith.constant 0 : index
    %9 = vector.load %arg4[%c0_6, %c0_7] : memref<1x512xf32, #tpu.memory_space<vmem>>, vector<1x512xf32>
    %cst_8 = arith.constant dense<0.000000e+00> : vector<1x128xf32>
    %10 = tpu.matmul %9, %8, %cst_8 {dimension_numbers = #tpu.dot_dimension_numbers<[1], [1], [0], [0], [0, 0, 1, 0], [], []>} : vector<1x512xf32>, vector<128x512xf32>, vector<1x128xf32> -> vector<1x128xf32>
    %c0_9 = arith.constant 0 : index
    %c0_10 = arith.constant 0 : index
    %11 = vector.load %arg5[%c0_9, %c0_10] : memref<1x1xf32, #tpu.memory_space<vmem>>, vector<1x1xf32>
    %12 = vector.broadcast %11 : vector<1x1xf32> to vector<1x128xf32>
    %13 = arith.addf %10, %12 : vector<1x128xf32>
    %c0_11 = arith.constant 0 : index
    %c0_12 = arith.constant 0 : index
    %14 = vector.load %arg6[%c0_11, %c0_12] : memref<512x1xf32, #tpu.memory_space<vmem>>, vector<512x1xf32>
    %cst_13 = arith.constant dense<0.000000e+00> : vector<128x1xf32>
    %15 = tpu.matmul %8, %14, %cst_13 {dimension_numbers = #tpu.dot_dimension_numbers<[1], [0], [0], [1], [0, 0, 1, 1], [], []>} : vector<128x512xf32>, vector<512x1xf32>, vector<128x1xf32> -> vector<128x1xf32>
    %c0_14 = arith.constant 0 : index
    %c0_15 = arith.constant 0 : index
    %16 = vector.load %arg7[%c0_14, %c0_15] : memref<1x1xf32, #tpu.memory_space<vmem>>, vector<1x1xf32>
    %17 = vector.broadcast %16 : vector<1x1xf32> to vector<128x1xf32>
    %18 = arith.addf %15, %17 : vector<128x1xf32>
    %19 = arith.truncf %8 : vector<128x512xf32> to vector<128x512xbf16>
    %c0_16 = arith.constant 0 : index
    %c0_17 = arith.constant 0 : index
    %20 = vector.load %arg8[%c0_16, %c0_17] : memref<128x512xbf16, #tpu.memory_space<vmem>>, vector<128x512xbf16>
    tpu.vector_store %arg8[%c0_16, %c0_17], %19 {strides = array<i32>} : memref<128x512xbf16, #tpu.memory_space<vmem>>, vector<128x512xbf16>,
    %c0_18 = arith.constant 0 : index
    %c0_19 = arith.constant 0 : index
    %21 = vector.load %arg9[%c0_18, %c0_19] : memref<1x128xf32, #tpu.memory_space<vmem>>, vector<1x128xf32>
    tpu.vector_store %arg9[%c0_18, %c0_19], %13 {strides = array<i32>} : memref<1x128xf32, #tpu.memory_space<vmem>>, vector<1x128xf32>,
    %c0_20 = arith.constant 0 : index
    %c0_21 = arith.constant 0 : index
    %22 = vector.load %arg10[%c0_20, %c0_21] : memref<128x1xf32, #tpu.memory_space<vmem>>, vector<128x1xf32>
    tpu.vector_store %arg10[%c0_20, %c0_21], %18 {strides = array<i32>} : memref<128x1xf32, #tpu.memory_space<vmem>>, vector<128x1xf32>,
    return
  }
  func.func @transform_0(%arg0: i32) -> (i32, i32) {
    %c0_i32 = arith.constant 0 : i32
    %c0_i32_0 = arith.constant 0 : i32
    return %arg0, %c0_i32 : i32, i32
  }
  func.func @transform_1(%arg0: i32) -> (i32, i32) {
    %c0_i32 = arith.constant 0 : i32
    %c0_i32_0 = arith.constant 0 : i32
    %c0_i32_1 = arith.constant 0 : i32
    return %c0_i32, %c0_i32_0 : i32, i32
  }
  func.func @transform_2(%arg0: i32) -> (i32, i32) {
    %c0_i32 = arith.constant 0 : i32
    %c0_i32_0 = arith.constant 0 : i32
    %c0_i32_1 = arith.constant 0 : i32
    return %c0_i32, %c0_i32_0 : i32, i32
  }
  func.func @transform_3(%arg0: i32) -> (i32, i32) {
    %c0_i32 = arith.constant 0 : i32
    %c0_i32_0 = arith.constant 0 : i32
    %c0_i32_1 = arith.constant 0 : i32
    return %c0_i32, %c0_i32_0 : i32, i32
  }
  func.func @transform_4(%arg0: i32) -> (i32, i32) {
    %c0_i32 = arith.constant 0 : i32
    %c0_i32_0 = arith.constant 0 : i32
    %c0_i32_1 = arith.constant 0 : i32
    return %c0_i32, %c0_i32_0 : i32, i32
  }
  func.func @transform_5(%arg0: i32) -> (i32, i32) {
    %c0_i32 = arith.constant 0 : i32
    %c0_i32_0 = arith.constant 0 : i32
    %c0_i32_1 = arith.constant 0 : i32
    return %c0_i32, %c0_i32_0 : i32, i32
  }
  func.func @transform_6(%arg0: i32) -> (i32, i32) {
    %c0_i32 = arith.constant 0 : i32
    %c0_i32_0 = arith.constant 0 : i32
    %c0_i32_1 = arith.constant 0 : i32
    return %c0_i32, %c0_i32_0 : i32, i32
  }
  func.func @transform_7(%arg0: i32) -> (i32, i32) {
    %c0_i32 = arith.constant 0 : i32
    %c0_i32_0 = arith.constant 0 : i32
    return %arg0, %c0_i32 : i32, i32
  }
  func.func @transform_8(%arg0: i32) -> (i32, i32) {
    %c0_i32 = arith.constant 0 : i32
    %c0_i32_0 = arith.constant 0 : i32
    return %c0_i32, %arg0 : i32, i32
  }
  func.func @transform_9(%arg0: i32) -> (i32, i32) {
    %c0_i32 = arith.constant 0 : i32
    %c0_i32_0 = arith.constant 0 : i32
    return %arg0, %c0_i32 : i32, i32
  }
}

module attributes {stable_mosaic.version = 11 : i64} {
  func.func @_gat_attention_kernel(%arg0: i32, %arg1: i32, %arg2: memref<128x128xbf16, #tpu.memory_space<vmem>>, %arg3: memref<128x128xbf16, #tpu.memory_space<vmem>>, %arg4: memref<1x128xf32, #tpu.memory_space<vmem>>, %arg5: memref<128x1xf32, #tpu.memory_space<vmem>>, %arg6: memref<128x512xbf16, #tpu.memory_space<vmem>>, %arg7: memref<128x512xf32, #tpu.memory_space<vmem>>, %arg8: memref<128x512xf32, #tpu.memory_space<vmem>>, %arg9: memref<128x1xf32, #tpu.memory_space<vmem>>) attributes {dimension_semantics = [#tpu.dimension_semantics<parallel>, #tpu.dimension_semantics<arbitrary>], iteration_bounds = array<i64: 2, 2>, scalar_prefetch = 0 : i64, scratch_operands = 2 : i64, tpu.core_type = #tpu.core_type<tc>, window_params = [{transform_indices = @transform_0, window_bounds = array<i64: 128, 128>}, {transform_indices = @transform_1, window_bounds = array<i64: 128, 128>}, {transform_indices = @transform_2, window_bounds = array<i64: 1, 128>}, {transform_indices = @transform_3, window_bounds = array<i64: 128, 1>}, {transform_indices = @transform_4, window_bounds = array<i64: 128, 512>}, {transform_indices = @transform_5, window_bounds = array<i64: 128, 512>}]} {
    %c0_i32 = arith.constant 0 : i32
    %0 = arith.cmpi eq, %arg1, %c0_i32 : i32
    %1 = arith.extui %0 : i1 to i32
    %c0_i32_0 = arith.constant 0 : i32
    %2 = arith.cmpi ne, %1, %c0_i32_0 : i32
    scf.if %2 {
      %cst_21 = arith.constant 0.000000e+00 : f32
      %35 = vector.broadcast %cst_21 : f32 to vector<128x512xf32>
      %c0_22 = arith.constant 0 : index
      %c0_23 = arith.constant 0 : index
      %36 = vector.load %arg8[%c0_22, %c0_23] : memref<128x512xf32, #tpu.memory_space<vmem>>, vector<128x512xf32>
      tpu.vector_store %arg8[%c0_22, %c0_23], %35 {strides = array<i32>} : memref<128x512xf32, #tpu.memory_space<vmem>>, vector<128x512xf32>,
      %cst_24 = arith.constant 0.000000e+00 : f32
      %37 = vector.broadcast %cst_24 : f32 to vector<128x1xf32>
      %c0_25 = arith.constant 0 : index
      %c0_26 = arith.constant 0 : index
      %38 = vector.load %arg9[%c0_25, %c0_26] : memref<128x1xf32, #tpu.memory_space<vmem>>, vector<128x1xf32>
      tpu.vector_store %arg9[%c0_25, %c0_26], %37 {strides = array<i32>} : memref<128x1xf32, #tpu.memory_space<vmem>>, vector<128x1xf32>,
    } else {
    }
    %c0 = arith.constant 0 : index
    %c0_1 = arith.constant 0 : index
    %3 = vector.load %arg2[%c0, %c0_1] : memref<128x128xbf16, #tpu.memory_space<vmem>>, vector<128x128xbf16>
    %4 = arith.extf %3 : vector<128x128xbf16> to vector<128x128xf32>
    %c0_2 = arith.constant 0 : index
    %c0_3 = arith.constant 0 : index
    %5 = vector.load %arg3[%c0_2, %c0_3] : memref<128x128xbf16, #tpu.memory_space<vmem>>, vector<128x128xbf16>
    %6 = arith.extf %5 : vector<128x128xbf16> to vector<128x128xf32>
    %7 = tpu.transpose %6, [1, 0] : vector<128x128xf32> -> vector<128x128xf32>
    %c0_4 = arith.constant 0 : index
    %c0_5 = arith.constant 0 : index
    %8 = vector.load %arg4[%c0_4, %c0_5] : memref<1x128xf32, #tpu.memory_space<vmem>>, vector<1x128xf32>
    %9 = vector.broadcast %8 : vector<1x128xf32> to vector<128x128xf32>
    %10 = arith.mulf %4, %9 : vector<128x128xf32>
    %c0_6 = arith.constant 0 : index
    %c0_7 = arith.constant 0 : index
    %11 = vector.load %arg5[%c0_6, %c0_7] : memref<128x1xf32, #tpu.memory_space<vmem>>, vector<128x1xf32>
    %12 = vector.broadcast %11 : vector<128x1xf32> to vector<128x128xf32>
    %13 = arith.mulf %7, %12 : vector<128x128xf32>
    %14 = arith.addf %10, %13 : vector<128x128xf32>
    %15 = arith.negf %14 : vector<128x128xf32>
    %16 = math.exp %15 : vector<128x128xf32>
    %cst = arith.constant 1.000000e+00 : f32
    %17 = vector.broadcast %cst : f32 to vector<128x128xf32>
    %18 = arith.addf %17, %16 : vector<128x128xf32>
    %19 = arith.divf %17, %18 : vector<128x128xf32>
    %20 = math.exp %19 : vector<128x128xf32>
    %c0_8 = arith.constant 0 : index
    %c0_9 = arith.constant 0 : index
    %21 = vector.load %arg9[%c0_8, %c0_9] : memref<128x1xf32, #tpu.memory_space<vmem>>, vector<128x1xf32>
    %cst_10 = arith.constant dense<0.000000e+00> : vector<128xf32>
    %22 = vector.multi_reduction <add>, %20, %cst_10 [1] : vector<128x128xf32> to vector<128xf32>
    %23 = vector.shape_cast %22 : vector<128xf32> to vector<128x1xf32>
    %24 = arith.addf %21, %23 : vector<128x1xf32>
    %c0_11 = arith.constant 0 : index
    %c0_12 = arith.constant 0 : index
    %25 = vector.load %arg9[%c0_11, %c0_12] : memref<128x1xf32, #tpu.memory_space<vmem>>, vector<128x1xf32>
    tpu.vector_store %arg9[%c0_11, %c0_12], %24 {strides = array<i32>} : memref<128x1xf32, #tpu.memory_space<vmem>>, vector<128x1xf32>,
    %c0_13 = arith.constant 0 : index
    %c0_14 = arith.constant 0 : index
    %26 = vector.load %arg8[%c0_13, %c0_14] : memref<128x512xf32, #tpu.memory_space<vmem>>, vector<128x512xf32>
    %27 = arith.truncf %20 : vector<128x128xf32> to vector<128x128xbf16>
    %c0_15 = arith.constant 0 : index
    %c0_16 = arith.constant 0 : index
    %28 = vector.load %arg6[%c0_15, %c0_16] : memref<128x512xbf16, #tpu.memory_space<vmem>>, vector<128x512xbf16>
    %cst_17 = arith.constant dense<0.000000e+00> : vector<128x512xf32>
    %29 = tpu.matmul %27, %28, %cst_17 {dimension_numbers = #tpu.dot_dimension_numbers<[1], [0], [0], [1], [0, 0, 1, 1], [], []>} : vector<128x128xbf16>, vector<128x512xbf16>, vector<128x512xf32> -> vector<128x512xf32>
    %30 = arith.addf %26, %29 : vector<128x512xf32>
    %c0_18 = arith.constant 0 : index
    %c0_19 = arith.constant 0 : index
    %31 = vector.load %arg8[%c0_18, %c0_19] : memref<128x512xf32, #tpu.memory_space<vmem>>, vector<128x512xf32>
    tpu.vector_store %arg8[%c0_18, %c0_19], %30 {strides = array<i32>} : memref<128x512xf32, #tpu.memory_space<vmem>>, vector<128x512xf32>,
    %c1_i32 = arith.constant 1 : i32
    %32 = arith.cmpi eq, %arg1, %c1_i32 : i32
    %33 = arith.extui %32 : i1 to i32
    %c0_i32_20 = arith.constant 0 : i32
    %34 = arith.cmpi ne, %33, %c0_i32_20 : i32
    scf.if %34 {
      %c0_21 = arith.constant 0 : index
      %c0_22 = arith.constant 0 : index
      %35 = vector.load %arg8[%c0_21, %c0_22] : memref<128x512xf32, #tpu.memory_space<vmem>>, vector<128x512xf32>
      %c0_23 = arith.constant 0 : index
      %c0_24 = arith.constant 0 : index
      %36 = vector.load %arg9[%c0_23, %c0_24] : memref<128x1xf32, #tpu.memory_space<vmem>>, vector<128x1xf32>
      %37 = tpu.reciprocal %36 {approx = true} : vector<128x1xf32> -> vector<128x1xf32>
      %38 = vector.broadcast %37 : vector<128x1xf32> to vector<128x512xf32>
      %39 = arith.mulf %35, %38 : vector<128x512xf32>
      %c0_25 = arith.constant 0 : index
      %c0_26 = arith.constant 0 : index
      %40 = vector.load %arg7[%c0_25, %c0_26] : memref<128x512xf32, #tpu.memory_space<vmem>>, vector<128x512xf32>
      tpu.vector_store %arg7[%c0_25, %c0_26], %39 {strides = array<i32>} : memref<128x512xf32, #tpu.memory_space<vmem>>, vector<128x512xf32>,
    } else {
    }
    return
  }
  func.func @transform_0(%arg0: i32, %arg1: i32) -> (i32, i32) {
    %c0_i32 = arith.constant 0 : i32
    return %arg0, %arg1 : i32, i32
  }
  func.func @transform_1(%arg0: i32, %arg1: i32) -> (i32, i32) {
    %c0_i32 = arith.constant 0 : i32
    return %arg1, %arg0 : i32, i32
  }
  func.func @transform_2(%arg0: i32, %arg1: i32) -> (i32, i32) {
    %c0_i32 = arith.constant 0 : i32
    %c0_i32_0 = arith.constant 0 : i32
    return %c0_i32, %arg1 : i32, i32
  }
  func.func @transform_3(%arg0: i32, %arg1: i32) -> (i32, i32) {
    %c0_i32 = arith.constant 0 : i32
    %c0_i32_0 = arith.constant 0 : i32
    return %arg0, %c0_i32 : i32, i32
  }
  func.func @transform_4(%arg0: i32, %arg1: i32) -> (i32, i32) {
    %c0_i32 = arith.constant 0 : i32
    %c0_i32_0 = arith.constant 0 : i32
    return %arg1, %c0_i32 : i32, i32
  }
  func.func @transform_5(%arg0: i32, %arg1: i32) -> (i32, i32) {
    %c0_i32 = arith.constant 0 : i32
    %c0_i32_0 = arith.constant 0 : i32
    return %arg0, %c0_i32 : i32, i32
  }
}

module attributes {stable_mosaic.version = 11 : i64} {
  func.func @_gat_project_kernel(%arg0: i32, %arg1: memref<128x512xf32, #tpu.memory_space<vmem>>, %arg2: memref<512x256xbf16, #tpu.memory_space<vmem>>, %arg3: memref<1x256xf32, #tpu.memory_space<vmem>>, %arg4: memref<1x256xf32, #tpu.memory_space<vmem>>, %arg5: memref<1x1xf32, #tpu.memory_space<vmem>>, %arg6: memref<256x1xf32, #tpu.memory_space<vmem>>, %arg7: memref<1x1xf32, #tpu.memory_space<vmem>>, %arg8: memref<128x256xbf16, #tpu.memory_space<vmem>>, %arg9: memref<1x128xf32, #tpu.memory_space<vmem>>, %arg10: memref<128x1xf32, #tpu.memory_space<vmem>>) attributes {dimension_semantics = [#tpu.dimension_semantics<parallel>], iteration_bounds = array<i64: 2>, scalar_prefetch = 0 : i64, scratch_operands = 0 : i64, tpu.core_type = #tpu.core_type<tc>, window_params = [{transform_indices = @transform_0, window_bounds = array<i64: 128, 512>}, {pipeline_mode = #tpu.pipeline_mode<synchronous>, transform_indices = @transform_1, window_bounds = array<i64: 512, 256>}, {pipeline_mode = #tpu.pipeline_mode<synchronous>, transform_indices = @transform_2, window_bounds = array<i64: 1, 256>}, {pipeline_mode = #tpu.pipeline_mode<synchronous>, transform_indices = @transform_3, window_bounds = array<i64: 1, 256>}, {pipeline_mode = #tpu.pipeline_mode<synchronous>, transform_indices = @transform_4, window_bounds = array<i64: 1, 1>}, {pipeline_mode = #tpu.pipeline_mode<synchronous>, transform_indices = @transform_5, window_bounds = array<i64: 256, 1>}, {pipeline_mode = #tpu.pipeline_mode<synchronous>, transform_indices = @transform_6, window_bounds = array<i64: 1, 1>}, {transform_indices = @transform_7, window_bounds = array<i64: 128, 256>}, {transform_indices = @transform_8, window_bounds = array<i64: 1, 128>}, {transform_indices = @transform_9, window_bounds = array<i64: 128, 1>}]} {
    %c0 = arith.constant 0 : index
    %c0_0 = arith.constant 0 : index
    %0 = vector.load %arg1[%c0, %c0_0] : memref<128x512xf32, #tpu.memory_space<vmem>>, vector<128x512xf32>
    %1 = arith.truncf %0 : vector<128x512xf32> to vector<128x512xbf16>
    %c0_1 = arith.constant 0 : index
    %c0_2 = arith.constant 0 : index
    %2 = vector.load %arg2[%c0_1, %c0_2] : memref<512x256xbf16, #tpu.memory_space<vmem>>, vector<512x256xbf16>
    %cst = arith.constant dense<0.000000e+00> : vector<128x256xf32>
    %3 = tpu.matmul %1, %2, %cst {dimension_numbers = #tpu.dot_dimension_numbers<[1], [0], [0], [1], [0, 0, 1, 1], [], []>} : vector<128x512xbf16>, vector<512x256xbf16>, vector<128x256xf32> -> vector<128x256xf32>
    %c0_3 = arith.constant 0 : index
    %c0_4 = arith.constant 0 : index
    %4 = vector.load %arg3[%c0_3, %c0_4] : memref<1x256xf32, #tpu.memory_space<vmem>>, vector<1x256xf32>
    %5 = vector.broadcast %4 : vector<1x256xf32> to vector<128x256xf32>
    %6 = arith.addf %3, %5 : vector<128x256xf32>
    %cst_5 = arith.constant 0.000000e+00 : f32
    %7 = vector.broadcast %cst_5 : f32 to vector<128x256xf32>
    %8 = arith.maximumf %6, %7 : vector<128x256xf32>
    %c0_6 = arith.constant 0 : index
    %c0_7 = arith.constant 0 : index
    %9 = vector.load %arg4[%c0_6, %c0_7] : memref<1x256xf32, #tpu.memory_space<vmem>>, vector<1x256xf32>
    %cst_8 = arith.constant dense<0.000000e+00> : vector<1x128xf32>
    %10 = tpu.matmul %9, %8, %cst_8 {dimension_numbers = #tpu.dot_dimension_numbers<[1], [1], [0], [0], [0, 0, 1, 0], [], []>} : vector<1x256xf32>, vector<128x256xf32>, vector<1x128xf32> -> vector<1x128xf32>
    %c0_9 = arith.constant 0 : index
    %c0_10 = arith.constant 0 : index
    %11 = vector.load %arg5[%c0_9, %c0_10] : memref<1x1xf32, #tpu.memory_space<vmem>>, vector<1x1xf32>
    %12 = vector.broadcast %11 : vector<1x1xf32> to vector<1x128xf32>
    %13 = arith.addf %10, %12 : vector<1x128xf32>
    %c0_11 = arith.constant 0 : index
    %c0_12 = arith.constant 0 : index
    %14 = vector.load %arg6[%c0_11, %c0_12] : memref<256x1xf32, #tpu.memory_space<vmem>>, vector<256x1xf32>
    %cst_13 = arith.constant dense<0.000000e+00> : vector<128x1xf32>
    %15 = tpu.matmul %8, %14, %cst_13 {dimension_numbers = #tpu.dot_dimension_numbers<[1], [0], [0], [1], [0, 0, 1, 1], [], []>} : vector<128x256xf32>, vector<256x1xf32>, vector<128x1xf32> -> vector<128x1xf32>
    %c0_14 = arith.constant 0 : index
    %c0_15 = arith.constant 0 : index
    %16 = vector.load %arg7[%c0_14, %c0_15] : memref<1x1xf32, #tpu.memory_space<vmem>>, vector<1x1xf32>
    %17 = vector.broadcast %16 : vector<1x1xf32> to vector<128x1xf32>
    %18 = arith.addf %15, %17 : vector<128x1xf32>
    %19 = arith.truncf %8 : vector<128x256xf32> to vector<128x256xbf16>
    %c0_16 = arith.constant 0 : index
    %c0_17 = arith.constant 0 : index
    %20 = vector.load %arg8[%c0_16, %c0_17] : memref<128x256xbf16, #tpu.memory_space<vmem>>, vector<128x256xbf16>
    tpu.vector_store %arg8[%c0_16, %c0_17], %19 {strides = array<i32>} : memref<128x256xbf16, #tpu.memory_space<vmem>>, vector<128x256xbf16>,
    %c0_18 = arith.constant 0 : index
    %c0_19 = arith.constant 0 : index
    %21 = vector.load %arg9[%c0_18, %c0_19] : memref<1x128xf32, #tpu.memory_space<vmem>>, vector<1x128xf32>
    tpu.vector_store %arg9[%c0_18, %c0_19], %13 {strides = array<i32>} : memref<1x128xf32, #tpu.memory_space<vmem>>, vector<1x128xf32>,
    %c0_20 = arith.constant 0 : index
    %c0_21 = arith.constant 0 : index
    %22 = vector.load %arg10[%c0_20, %c0_21] : memref<128x1xf32, #tpu.memory_space<vmem>>, vector<128x1xf32>
    tpu.vector_store %arg10[%c0_20, %c0_21], %18 {strides = array<i32>} : memref<128x1xf32, #tpu.memory_space<vmem>>, vector<128x1xf32>,
    return
  }
  func.func @transform_0(%arg0: i32) -> (i32, i32) {
    %c0_i32 = arith.constant 0 : i32
    %c0_i32_0 = arith.constant 0 : i32
    return %arg0, %c0_i32 : i32, i32
  }
  func.func @transform_1(%arg0: i32) -> (i32, i32) {
    %c0_i32 = arith.constant 0 : i32
    %c0_i32_0 = arith.constant 0 : i32
    %c0_i32_1 = arith.constant 0 : i32
    return %c0_i32, %c0_i32_0 : i32, i32
  }
  func.func @transform_2(%arg0: i32) -> (i32, i32) {
    %c0_i32 = arith.constant 0 : i32
    %c0_i32_0 = arith.constant 0 : i32
    %c0_i32_1 = arith.constant 0 : i32
    return %c0_i32, %c0_i32_0 : i32, i32
  }
  func.func @transform_3(%arg0: i32) -> (i32, i32) {
    %c0_i32 = arith.constant 0 : i32
    %c0_i32_0 = arith.constant 0 : i32
    %c0_i32_1 = arith.constant 0 : i32
    return %c0_i32, %c0_i32_0 : i32, i32
  }
  func.func @transform_4(%arg0: i32) -> (i32, i32) {
    %c0_i32 = arith.constant 0 : i32
    %c0_i32_0 = arith.constant 0 : i32
    %c0_i32_1 = arith.constant 0 : i32
    return %c0_i32, %c0_i32_0 : i32, i32
  }
  func.func @transform_5(%arg0: i32) -> (i32, i32) {
    %c0_i32 = arith.constant 0 : i32
    %c0_i32_0 = arith.constant 0 : i32
    %c0_i32_1 = arith.constant 0 : i32
    return %c0_i32, %c0_i32_0 : i32, i32
  }
  func.func @transform_6(%arg0: i32) -> (i32, i32) {
    %c0_i32 = arith.constant 0 : i32
    %c0_i32_0 = arith.constant 0 : i32
    %c0_i32_1 = arith.constant 0 : i32
    return %c0_i32, %c0_i32_0 : i32, i32
  }
  func.func @transform_7(%arg0: i32) -> (i32, i32) {
    %c0_i32 = arith.constant 0 : i32
    %c0_i32_0 = arith.constant 0 : i32
    return %arg0, %c0_i32 : i32, i32
  }
  func.func @transform_8(%arg0: i32) -> (i32, i32) {
    %c0_i32 = arith.constant 0 : i32
    %c0_i32_0 = arith.constant 0 : i32
    return %c0_i32, %arg0 : i32, i32
  }
  func.func @transform_9(%arg0: i32) -> (i32, i32) {
    %c0_i32 = arith.constant 0 : i32
    %c0_i32_0 = arith.constant 0 : i32
    return %arg0, %c0_i32 : i32, i32
  }
}

module attributes {stable_mosaic.version = 11 : i64} {
  func.func @_gat_attention_kernel(%arg0: i32, %arg1: i32, %arg2: memref<128x128xbf16, #tpu.memory_space<vmem>>, %arg3: memref<128x128xbf16, #tpu.memory_space<vmem>>, %arg4: memref<1x128xf32, #tpu.memory_space<vmem>>, %arg5: memref<128x1xf32, #tpu.memory_space<vmem>>, %arg6: memref<128x256xbf16, #tpu.memory_space<vmem>>, %arg7: memref<128x256xf32, #tpu.memory_space<vmem>>, %arg8: memref<128x256xf32, #tpu.memory_space<vmem>>, %arg9: memref<128x1xf32, #tpu.memory_space<vmem>>) attributes {dimension_semantics = [#tpu.dimension_semantics<parallel>, #tpu.dimension_semantics<arbitrary>], iteration_bounds = array<i64: 2, 2>, scalar_prefetch = 0 : i64, scratch_operands = 2 : i64, tpu.core_type = #tpu.core_type<tc>, window_params = [{transform_indices = @transform_0, window_bounds = array<i64: 128, 128>}, {transform_indices = @transform_1, window_bounds = array<i64: 128, 128>}, {transform_indices = @transform_2, window_bounds = array<i64: 1, 128>}, {transform_indices = @transform_3, window_bounds = array<i64: 128, 1>}, {transform_indices = @transform_4, window_bounds = array<i64: 128, 256>}, {transform_indices = @transform_5, window_bounds = array<i64: 128, 256>}]} {
    %c0_i32 = arith.constant 0 : i32
    %0 = arith.cmpi eq, %arg1, %c0_i32 : i32
    %1 = arith.extui %0 : i1 to i32
    %c0_i32_0 = arith.constant 0 : i32
    %2 = arith.cmpi ne, %1, %c0_i32_0 : i32
    scf.if %2 {
      %cst_21 = arith.constant 0.000000e+00 : f32
      %35 = vector.broadcast %cst_21 : f32 to vector<128x256xf32>
      %c0_22 = arith.constant 0 : index
      %c0_23 = arith.constant 0 : index
      %36 = vector.load %arg8[%c0_22, %c0_23] : memref<128x256xf32, #tpu.memory_space<vmem>>, vector<128x256xf32>
      tpu.vector_store %arg8[%c0_22, %c0_23], %35 {strides = array<i32>} : memref<128x256xf32, #tpu.memory_space<vmem>>, vector<128x256xf32>,
      %cst_24 = arith.constant 0.000000e+00 : f32
      %37 = vector.broadcast %cst_24 : f32 to vector<128x1xf32>
      %c0_25 = arith.constant 0 : index
      %c0_26 = arith.constant 0 : index
      %38 = vector.load %arg9[%c0_25, %c0_26] : memref<128x1xf32, #tpu.memory_space<vmem>>, vector<128x1xf32>
      tpu.vector_store %arg9[%c0_25, %c0_26], %37 {strides = array<i32>} : memref<128x1xf32, #tpu.memory_space<vmem>>, vector<128x1xf32>,
    } else {
    }
    %c0 = arith.constant 0 : index
    %c0_1 = arith.constant 0 : index
    %3 = vector.load %arg2[%c0, %c0_1] : memref<128x128xbf16, #tpu.memory_space<vmem>>, vector<128x128xbf16>
    %4 = arith.extf %3 : vector<128x128xbf16> to vector<128x128xf32>
    %c0_2 = arith.constant 0 : index
    %c0_3 = arith.constant 0 : index
    %5 = vector.load %arg3[%c0_2, %c0_3] : memref<128x128xbf16, #tpu.memory_space<vmem>>, vector<128x128xbf16>
    %6 = arith.extf %5 : vector<128x128xbf16> to vector<128x128xf32>
    %7 = tpu.transpose %6, [1, 0] : vector<128x128xf32> -> vector<128x128xf32>
    %c0_4 = arith.constant 0 : index
    %c0_5 = arith.constant 0 : index
    %8 = vector.load %arg4[%c0_4, %c0_5] : memref<1x128xf32, #tpu.memory_space<vmem>>, vector<1x128xf32>
    %9 = vector.broadcast %8 : vector<1x128xf32> to vector<128x128xf32>
    %10 = arith.mulf %4, %9 : vector<128x128xf32>
    %c0_6 = arith.constant 0 : index
    %c0_7 = arith.constant 0 : index
    %11 = vector.load %arg5[%c0_6, %c0_7] : memref<128x1xf32, #tpu.memory_space<vmem>>, vector<128x1xf32>
    %12 = vector.broadcast %11 : vector<128x1xf32> to vector<128x128xf32>
    %13 = arith.mulf %7, %12 : vector<128x128xf32>
    %14 = arith.addf %10, %13 : vector<128x128xf32>
    %15 = arith.negf %14 : vector<128x128xf32>
    %16 = math.exp %15 : vector<128x128xf32>
    %cst = arith.constant 1.000000e+00 : f32
    %17 = vector.broadcast %cst : f32 to vector<128x128xf32>
    %18 = arith.addf %17, %16 : vector<128x128xf32>
    %19 = arith.divf %17, %18 : vector<128x128xf32>
    %20 = math.exp %19 : vector<128x128xf32>
    %c0_8 = arith.constant 0 : index
    %c0_9 = arith.constant 0 : index
    %21 = vector.load %arg9[%c0_8, %c0_9] : memref<128x1xf32, #tpu.memory_space<vmem>>, vector<128x1xf32>
    %cst_10 = arith.constant dense<0.000000e+00> : vector<128xf32>
    %22 = vector.multi_reduction <add>, %20, %cst_10 [1] : vector<128x128xf32> to vector<128xf32>
    %23 = vector.shape_cast %22 : vector<128xf32> to vector<128x1xf32>
    %24 = arith.addf %21, %23 : vector<128x1xf32>
    %c0_11 = arith.constant 0 : index
    %c0_12 = arith.constant 0 : index
    %25 = vector.load %arg9[%c0_11, %c0_12] : memref<128x1xf32, #tpu.memory_space<vmem>>, vector<128x1xf32>
    tpu.vector_store %arg9[%c0_11, %c0_12], %24 {strides = array<i32>} : memref<128x1xf32, #tpu.memory_space<vmem>>, vector<128x1xf32>,
    %c0_13 = arith.constant 0 : index
    %c0_14 = arith.constant 0 : index
    %26 = vector.load %arg8[%c0_13, %c0_14] : memref<128x256xf32, #tpu.memory_space<vmem>>, vector<128x256xf32>
    %27 = arith.truncf %20 : vector<128x128xf32> to vector<128x128xbf16>
    %c0_15 = arith.constant 0 : index
    %c0_16 = arith.constant 0 : index
    %28 = vector.load %arg6[%c0_15, %c0_16] : memref<128x256xbf16, #tpu.memory_space<vmem>>, vector<128x256xbf16>
    %cst_17 = arith.constant dense<0.000000e+00> : vector<128x256xf32>
    %29 = tpu.matmul %27, %28, %cst_17 {dimension_numbers = #tpu.dot_dimension_numbers<[1], [0], [0], [1], [0, 0, 1, 1], [], []>} : vector<128x128xbf16>, vector<128x256xbf16>, vector<128x256xf32> -> vector<128x256xf32>
    %30 = arith.addf %26, %29 : vector<128x256xf32>
    %c0_18 = arith.constant 0 : index
    %c0_19 = arith.constant 0 : index
    %31 = vector.load %arg8[%c0_18, %c0_19] : memref<128x256xf32, #tpu.memory_space<vmem>>, vector<128x256xf32>
    tpu.vector_store %arg8[%c0_18, %c0_19], %30 {strides = array<i32>} : memref<128x256xf32, #tpu.memory_space<vmem>>, vector<128x256xf32>,
    %c1_i32 = arith.constant 1 : i32
    %32 = arith.cmpi eq, %arg1, %c1_i32 : i32
    %33 = arith.extui %32 : i1 to i32
    %c0_i32_20 = arith.constant 0 : i32
    %34 = arith.cmpi ne, %33, %c0_i32_20 : i32
    scf.if %34 {
      %c0_21 = arith.constant 0 : index
      %c0_22 = arith.constant 0 : index
      %35 = vector.load %arg8[%c0_21, %c0_22] : memref<128x256xf32, #tpu.memory_space<vmem>>, vector<128x256xf32>
      %c0_23 = arith.constant 0 : index
      %c0_24 = arith.constant 0 : index
      %36 = vector.load %arg9[%c0_23, %c0_24] : memref<128x1xf32, #tpu.memory_space<vmem>>, vector<128x1xf32>
      %37 = tpu.reciprocal %36 {approx = true} : vector<128x1xf32> -> vector<128x1xf32>
      %38 = vector.broadcast %37 : vector<128x1xf32> to vector<128x256xf32>
      %39 = arith.mulf %35, %38 : vector<128x256xf32>
      %c0_25 = arith.constant 0 : index
      %c0_26 = arith.constant 0 : index
      %40 = vector.load %arg7[%c0_25, %c0_26] : memref<128x256xf32, #tpu.memory_space<vmem>>, vector<128x256xf32>
      tpu.vector_store %arg7[%c0_25, %c0_26], %39 {strides = array<i32>} : memref<128x256xf32, #tpu.memory_space<vmem>>, vector<128x256xf32>,
    } else {
    }
    return
  }
  func.func @transform_0(%arg0: i32, %arg1: i32) -> (i32, i32) {
    %c0_i32 = arith.constant 0 : i32
    return %arg0, %arg1 : i32, i32
  }
  func.func @transform_1(%arg0: i32, %arg1: i32) -> (i32, i32) {
    %c0_i32 = arith.constant 0 : i32
    return %arg1, %arg0 : i32, i32
  }
  func.func @transform_2(%arg0: i32, %arg1: i32) -> (i32, i32) {
    %c0_i32 = arith.constant 0 : i32
    %c0_i32_0 = arith.constant 0 : i32
    return %c0_i32, %arg1 : i32, i32
  }
  func.func @transform_3(%arg0: i32, %arg1: i32) -> (i32, i32) {
    %c0_i32 = arith.constant 0 : i32
    %c0_i32_0 = arith.constant 0 : i32
    return %arg0, %c0_i32 : i32, i32
  }
  func.func @transform_4(%arg0: i32, %arg1: i32) -> (i32, i32) {
    %c0_i32 = arith.constant 0 : i32
    %c0_i32_0 = arith.constant 0 : i32
    return %arg1, %c0_i32 : i32, i32
  }
  func.func @transform_5(%arg0: i32, %arg1: i32) -> (i32, i32) {
    %c0_i32 = arith.constant 0 : i32
    %c0_i32_0 = arith.constant 0 : i32
    return %arg0, %c0_i32 : i32, i32
  }
}

</mosaic_0001>

<bundles_post_ra>
// kernel: decoder_forward.6
= control target key start
LH: loop header
LB: loop body
LE: loop exit
PB: predicated region body
PF: predicated region fallthrough
CT: control target
= control target key end

     0   :  { %s1373_s13 = smov 0   ;;  %s1792_s0 = inlined_call_operand.vmem [shape: f32[256,64], index: 0, kind: input, shape index: {}]   ;;  %s1793_s1 = inlined_call_operand.vmem [shape: bf16[64,256], index: 1, kind: input, shape index: {}]   ;;  %s1794_s2 = inlined_call_operand.vmem [shape: f32[1,256], index: 2, kind: input, shape index: {}]   ;;  %s1795_s3 = inlined_call_operand.vmem [shape: f32[1,256], index: 3, kind: input, shape index: {}]   ;;  %s1796_s4 = inlined_call_operand.<no memory space> [shape: f32[1,1], index: 4, kind: input, shape index: {}]   ;;  %s1797_s5 = inlined_call_operand.vmem [shape: f32[256,1], index: 5, kind: input, shape index: {}]   ;;  %s1798_s7 = inlined_call_operand.vmem [shape: bf16[256,256], index: 7, kind: output, shape index: {0}]   ;;  %s1799_s8 = inlined_call_operand.vmem [shape: f32[1,256], index: 8, kind: output, shape index: {1}]   ;;  %s1800_s9 = inlined_call_operand.vmem [shape: f32[256,1], index: 9, kind: output, shape index: {2}]   ;;  %s1801_s6 = inlined_call_operand.<no memory space> [shape: f32[1,1], index: 6, kind: input, shape index: {}]  }
   0x1   :  { %v15_v0 = vstv %s1796_s4  ;;  %v17_v1 = vstv %s1801_s6 }
   0x2   :  { %16 = vst [vmem:[#allocation2] sm:$0x1] %v15_v0  ;;  %18 = vst [vmem:[#allocation3] sm:$0x1] %v17_v1 }
   0x3 LB: > { %s1379_s14 = sadd.s32 4294967295, %s1314_s13   ;;  %p1146_p0 = scmp.ge.s32.totalorder %s1314_s13, 1  ;;  %s1314_s13 = sphi %s1373_s13, %s24_s13  }
   0x4   : > { %p297_p1 = scmp.lt.s32.totalorder %s1314_s13, 3 }
   0x6   : > { %p298_p2 = pnand %p1146_p0, %p297_p1 }
   0x7   : > { %s1147_s15 = sshll.u32 (!%p298_p2), %s1379_s14, 4  ;;  %p355_p4 = scmp.lt.s32.totalorder (!%p298_p2), %s1379_s14, 1 }
   0x8   : > { %301 = sbr.rel (%p298_p2) target bundleno = 550 (0x226), region = 48  ;;  %p343_p3 = scmp.lt.s32.totalorder (!%p298_p2), %s1147_s15, 31 }
   0xd   : > { %v1296_v2 = vld [vmem:[%s1793_s1 + $0x34] ss:$8 sps:$4 sm:$0xff]   ;;  %v1298_v3 = vld [vmem:[%s1793_s1 + $0x30] ss:$8 sps:$4 sm:$0xff]   ;;  %v1316_v4 = vmov 0   ;;  %s1803_s15 = smov (!%p343_p3, %s1147_s15), 31 }
   0xe   : > { %506 = vmatprep.mubr.bf16.mxu1 %v1316_v4  ;;  %1295 = vset.pattern.permute.xlu0 %v1316_v4  ;;  %v1299_v5 = vld [vmem:[%s1793_s1 + $0x24] ss:$8 sps:$4 sm:$0xff]   ;;  %v1301_v6 = vld [vmem:[%s1793_s1 + $0x20] ss:$8 sps:$4 sm:$0xff]   ;;  %v1302_v7 = vld [vmem:[%s1793_s1 + $0x14] ss:$8 sps:$4 sm:$0xff]  }
   0xf   : > { %482 = vmatprep.subr.bf16.mxu1 %v1296_v2  ;;  %s1401_s24 = sshll.u32 %s1803_s15, 3  ;;  %v742_v8 = vld [vmem:[%s1797_s5 + $0xf8] sm:$0xff]  ;;  %v741_v10 = vld [vmem:[%s1797_s5 + $0xf0] sm:$0xff]  ;;  %v740_v13 = vld [vmem:[%s1797_s5 + $0xe8] sm:$0xff]  ;;  %vm449_vm0 = vcmask 523264   ;;  %vm1008_vm1 = vcmask 7168  }
  0x10   : > { %483 = vmatpush1.bf16.msra.mxu1 %v1298_v3  ;;  %v726_v9 = vld [vmem:[%s1797_s5 + $0x78] sm:$0xff]  ;;  %1206 = vmatprep.subr.mxu0 %v742_v8  ;;  %v725_v11 = vld [vmem:[%s1797_s5 + $0x70] sm:$0xff]  ;;  %v1305_v14 = vld [vmem:[%s1793_s1 + $0x4] ss:$8 sps:$4 sm:$0xff]   ;;  %s1428_s20 = scalar_lea.vmem %s1792_s0, %s1401_s24  ;;  %v399_v3 = vlaneseq  ;;  %s1572_s26 = scalar_lea.vmem %s1798_s7, %s1401_s24 }
  0x11   : > { %484 = vmatprep.subr.bf16.mxu1 %v1299_v5  ;;  %v1304_v12 = vld [vmem:[%s1793_s1 + $0x10] ss:$8 sps:$4 sm:$0xff]   ;;  %1207 = vmatpush3.msra.mxu0 %v726_v9  ;;  %v1307_v15 = vld [vmem:[%s1793_s1] ss:$8 sps:$4 sm:$0xff]   ;;  %s1733_s29 = scalar_lea.vmem %s1800_s9, %s1401_s24  ;;  %s1805_s14 = smov (!%p355_p4, %s1379_s14), 1 }
  0x12   : > { %1208 = vmatprep.subr.mxu0 %v741_v10  ;;  %v365_v16 = vld [vmem:[%s1428_s20] sm:$0xff]  ;;  %v366_v17 = vld [vmem:[%s1428_s20 + $0x8] sm:$0xff]  ;;  %v738_v21 = vld [vmem:[%s1797_s5 + $0xd8] sm:$0xff] }
  0x13   : > { %1209 = vmatpush3.msra.mxu0 %v725_v11  ;;  %v724_v18 = vld [vmem:[%s1797_s5 + $0x68] sm:$0xff]  ;;  %v739_v19 = vld [vmem:[%s1797_s5 + $0xe0] sm:$0xff]  ;;  %v381_v22 = vpack.c.bf16 %v366_v17, %v365_v16  ;;  %v722_v23 = vld [vmem:[%s1797_s5 + $0x58] sm:$0xff] }
  0x14   : > { %485 = vmatpush1.bf16.msra.mxu1 %v1301_v6  ;;  %1210 = vmatprep.subr.mxu0 %v740_v13  ;;  %v723_v20 = vld [vmem:[%s1797_s5 + $0x60] sm:$0xff]  ;;  %v737_v24 = vld [vmem:[%s1797_s5 + $0xd0] sm:$0xff]  ;;  %v736_v26 = vld [vmem:[%s1797_s5 + $0xc8] sm:$0xff] }
  0x15   : > { %486 = vmatprep.subr.bf16.mxu1 %v1302_v7  ;;  %1211 = vmatpush3.msra.mxu0 %v724_v18  ;;  %v721_v25 = vld [vmem:[%s1797_s5 + $0x50] sm:$0xff]  ;;  %v720_v27 = vld [vmem:[%s1797_s5 + $0x48] sm:$0xff]  ;;  %v368_v29 = vld [vmem:[%s1428_s20 + $0x18] sm:$0xff] }
  0x16   : > { %1212 = vmatprep.subr.mxu0 %v739_v19  ;;  %v367_v28 = vld [vmem:[%s1428_s20 + $0x10] sm:$0xff]  ;;  %v735_v30 = vld [vmem:[%s1797_s5 + $0xc0] sm:$0xff]  ;;  %v734_v32 = vld [vmem:[%s1797_s5 + $0xb8] sm:$0xff] }
  0x17   : > { %1213 = vmatpush3.msra.mxu0 %v723_v20  ;;  %v719_v31 = vld [vmem:[%s1797_s5 + $0x40] sm:$0xff]  ;;  %v382_v33 = vpack.c.bf16 %v368_v29, %v367_v28  ;;  %v718_v34 = vld [vmem:[%s1797_s5 + $0x38] sm:$0xff]  ;;  %v733_v35 = vld [vmem:[%s1797_s5 + $0xb0] sm:$0xff] }
  0x18   : > { %487 = vmatpush1.bf16.msra.mxu1 %v1304_v12  ;;  %1214 = vmatprep.subr.mxu0 %v738_v21  ;;  %v717_v36 = vld [vmem:[%s1797_s5 + $0x30] sm:$0xff]  ;;  %v732_v37 = vld [vmem:[%s1797_s5 + $0xa8] sm:$0xff]  ;;  %v369_v39 = vld [vmem:[%s1428_s20 + $0x20] sm:$0xff] }
  0x19   : > { %488 = vmatprep.subr.bf16.mxu1 %v1305_v14  ;;  %1215 = vmatpush3.msra.mxu0 %v722_v23  ;;  %v716_v38 = vld [vmem:[%s1797_s5 + $0x28] sm:$0xff]  ;;  %v731_v41 = vld [vmem:[%s1797_s5 + $0xa0] sm:$0xff]  ;;  %v371_v44 = vld [vmem:[%s1428_s20 + $0x30] sm:$0xff] }
  0x1a   : > { %1216 = vmatprep.subr.mxu0 %v737_v24  ;;  %v370_v40 = vld [vmem:[%s1428_s20 + $0x28] sm:$0xff]  ;;  %v715_v42 = vld [vmem:[%s1797_s5 + $0x20] sm:$0xff]  ;;  %v372_v45 = vld [vmem:[%s1428_s20 + $0x38] sm:$0xff] }
  0x1b   : > { %1217 = vmatpush3.msra.mxu0 %v721_v25  ;;  %v383_v43 = vpack.c.bf16 %v370_v40, %v369_v39  ;;  %v384_v46 = vpack.c.bf16 %v372_v45, %v371_v44  ;;  %v373_v47 = vld [vmem:[%s1428_s20 + $0x40] sm:$0xff]  ;;  %v374_v48 = vld [vmem:[%s1428_s20 + $0x48] sm:$0xff]  ;;  %v375_v50 = vld [vmem:[%s1428_s20 + $0x50] sm:$0xff] }
  0x1c   : > { %489 = vmatpush1.bf16.msra.mxu1 %v1307_v15  ;;  %1218 = vmatprep.subr.mxu0 %v736_v26  ;;  %v385_v49 = vpack.c.bf16 %v374_v48, %v373_v47  ;;  %v376_v51 = vld [vmem:[%s1428_s20 + $0x58] sm:$0xff]  ;;  %v377_v53 = vld [vmem:[%s1428_s20 + $0x60] sm:$0xff]  ;;  %v378_v54 = vld [vmem:[%s1428_s20 + $0x68] sm:$0xff] }
  0x1d   : > { %1219 = vmatpush3.msra.mxu0 %v720_v27  ;;  %v386_v52 = vpack.c.bf16 %v376_v51, %v375_v50  ;;  %v387_v55 = vpack.c.bf16 %v378_v54, %v377_v53  ;;  %v379_v56 = vld [vmem:[%s1428_s20 + $0x70] sm:$0xff]  ;;  %v380_v57 = vld [vmem:[%s1428_s20 + $0x78] sm:$0xff]  ;;  %v728_v63 = vld [vmem:[%s1797_s5 + $0x88] sm:$0xff]  ;;  %s357_s20 = scalar_lea.vmem %s1799_s8, %s1805_s14 }
  0x1e   : > { %1220 = vmatprep.subr.mxu0 %v735_v30  ;;  %v388_v58 = vpack.c.bf16 %v380_v57, %v379_v56  ;;  %v730_v59 = vld [vmem:[%s1797_s5 + $0x98] sm:$0xff]  ;;  %v729_v61 = vld [vmem:[%s1797_s5 + $0x90] sm:$0xff]  ;;  %v712_v0 = vld [vmem:[%s1797_s5 + $0x8] sm:$0xff] }
  0x1f   : > { %1162 = vmatmul.mubr.msk.bf16.vlgmr.msra.gmra.mxu1 %vm449_vm0, %v381_v22  ;;  %1221 = vmatpush3.msra.mxu0 %v719_v31  ;;  %v714_v60 = vld [vmem:[%s1797_s5 + $0x18] sm:$0xff]  ;;  %v713_v62 = vld [vmem:[%s1797_s5 + $0x10] sm:$0xff]  ;;  %v727_v1 = vld [vmem:[%s1797_s5 + $0x80] sm:$0xff] }
  0x20   : > { %516 = vmatprep.mubr.bf16.mxu1 %v1316_v4  ;;  %1222 = vmatprep.subr.mxu0 %v734_v32  ;;  %v711_v2 = vld [vmem:[%s1797_s5] sm:$0xff] }
  0x21   : > { %1223 = vmatpush3.msra.mxu0 %v718_v34  ;;  %v397_v6 = vld [vmem:[%s1794_s2] sm:$0x3] }
  0x22   : > { %1224 = vmatprep.subr.mxu0 %v733_v35  ;;  %v1558_v10 = vld [vmem:[%s1795_s3] sm:$0x3] }
  0x23   : > { %1225 = vmatpush3.msra.mxu0 %v717_v36  ;;  %v620_v16 = vld [vmem:[#allocation2] sm:$0x1] }
  0x24   : > { %1226 = vmatprep.subr.mxu0 %v732_v37  ;;  %623 = vperm.xlu0 %1295, %v620_v16  }
  0x25   : > { %1227 = vmatpush3.msra.mxu0 %v716_v38 }
  0x26   : > { %1228 = vmatprep.subr.mxu0 %v731_v41 }
  0x27   : > { %1163 = vmatmul.mubr.msk.bf16.gmra.mxu1 %vm449_vm0, %v382_v33  ;;  %1229 = vmatpush3.msra.mxu0 %v715_v42 }
  0x28   : > { %526 = vmatprep.mubr.bf16.mxu1 %v1316_v4  ;;  %1230 = vmatprep.subr.mxu0 %v730_v59 }
  0x29   : > { %1231 = vmatpush3.msra.mxu0 %v714_v60 }
  0x2a   : > { %1232 = vmatprep.subr.mxu0 %v729_v61 }
  0x2b   : > { %1233 = vmatpush3.msra.mxu0 %v713_v62 }
  0x2c   : > { %1234 = vmatprep.subr.mxu0 %v728_v63 }
  0x2d   : > { %1235 = vmatpush3.msra.mxu0 %v712_v0 }
  0x2e   : > { %1236 = vmatprep.subr.mxu0 %v727_v1 }
  0x2f   : > { %1164 = vmatmul.mubr.msk.bf16.gmra.mxu1 %vm449_vm0, %v383_v43  ;;  %1237 = vmatpush3.msra.mxu0 %v711_v2 }
  0x30   : > { %536 = vmatprep.mubr.bf16.mxu1 %v1316_v4 }
  0x37   : > { %1165 = vmatmul.mubr.msk.bf16.gmra.mxu1 %vm449_vm0, %v384_v46 }
  0x38   : > { %546 = vmatprep.mubr.bf16.mxu1 %v1316_v4 }
  0x3f   : > { %1166 = vmatmul.mubr.msk.bf16.gmra.mxu1 %vm449_vm0, %v385_v49 }
  0x40   : > { %556 = vmatprep.mubr.bf16.mxu1 %v1316_v4 }
  0x47   : > { %1167 = vmatmul.mubr.msk.bf16.gmra.mxu1 %vm449_vm0, %v386_v52 }
  0x48   : > { %566 = vmatprep.mubr.bf16.mxu1 %v1316_v4 }
  0x4f   : > { %1168 = vmatmul.mubr.msk.bf16.gmra.mxu1 %vm449_vm0, %v387_v55 }
  0x50   : > { %576 = vmatprep.mubr.bf16.mxu1 %v1316_v4  ;;  %v400_v4 = vshrl.u32 %v399_v3, 7 }
  0x52   : > { %v1545_v5 = vsub.s32 0, %v400_v4  ;;  %v405_v7 = vsub.s32 1, %v400_v4 }
  0x54   : > { %v1551_v8 = vrot.slane %v397_v6, %v1545_v5  ;;  %v1553_v9 = vrot.slane %v397_v6, %v405_v7  ;;  %v638_v12 = vrot.slane %v1558_v10, %v405_v7 }
  0x57   : > { %1169 = vmatmul.mubr.msk.bf16.gmra.mxu1 %vm449_vm0, %v388_v58 }
  0x58   : > { %705 = vmatprep.mubr.f32.mxu1 %v638_v12 }
  0xdf   : > { %v508_v11 = vpop.f32.mrf.mxu1 }
  0xe0   : > { %v509_v13 = vadd.f32 %v508_v11, %v1551_v8 }
  0xe1   : > { %v510_v14 = vpop.f32.mrf.mxu1 }
  0xe2   : > { %v511_v15 = vadd.f32 %v510_v14, %v1553_v9  ;;  %v1563_v18 = vmax.f32 %v509_v13, 0.0 }
  0xe3   : > { %v512_v17 = vpop.f32.mrf.mxu1 }
  0xe4   : > { %v1565_v19 = vmax.f32 %v511_v15, 0.0  ;;  %v513_v20 = vadd.f32 %v512_v17, %v1551_v8 }
  0xe5   : > { %v514_v21 = vpop.f32.mrf.mxu1 }
  0xe6   : > { %v1190_v22 = vpack.c.bf16 %v1565_v19, %v1563_v18  ;;  %v515_v23 = vadd.f32 %v514_v21, %v1553_v9  ;;  %814 = vmatprep.mubr.f32.mxu0 %v1565_v19  ;;  %v1580_v25 = vmax.f32 %v513_v20, 0.0 }
  0xe7   : > { %v518_v24 = vpop.f32.mrf.mxu1  ;;  %815 = vmatmul.mubr.f32.vlgmr.msra.gmra.mxu0 %v1563_v18 }
  0xe8   : > { %991 = vst [vmem:[%s1572_s26] sm:$0xff] %v1190_v22  ;;  %v1582_v26 = vmax.f32 %v515_v23, 0.0  ;;  %v519_v27 = vadd.f32 %v518_v24, %v1551_v8 }
  0xe9   : > { %v520_v28 = vpop.f32.mrf.mxu1 }
  0xea   : > { %v1191_v29 = vpack.c.bf16 %v1582_v26, %v1580_v25  ;;  %v521_v30 = vadd.f32 %v520_v28, %v1553_v9  ;;  %819 = vmatprep.mubr.f32.mxu0 %v1582_v26  ;;  %v1591_v32 = vmax.f32 %v519_v27, 0.0 }
  0xeb   : > { %v522_v31 = vpop.f32.mrf.mxu1  ;;  %820 = vmatmul.mubr.f32.gmra.mxu0 %v1580_v25 }
  0xec   : > { %992 = vst [vmem:[%s1572_s26 + $0x8] sm:$0xff] %v1191_v29  ;;  %v1593_v33 = vmax.f32 %v521_v30, 0.0  ;;  %v523_v34 = vadd.f32 %v522_v31, %v1551_v8 }
  0xed   : > { %v524_v35 = vpop.f32.mrf.mxu1 }
  0xee   : > { %v1192_v36 = vpack.c.bf16 %v1593_v33, %v1591_v32  ;;  %v525_v37 = vadd.f32 %v524_v35, %v1553_v9  ;;  %824 = vmatprep.mubr.f32.mxu0 %v1593_v33  ;;  %v1602_v39 = vmax.f32 %v523_v34, 0.0 }
  0xef   : > { %v528_v38 = vpop.f32.mrf.mxu1  ;;  %825 = vmatmul.mubr.f32.gmra.mxu0 %v1591_v32 }
  0xf0   : > { %993 = vst [vmem:[%s1572_s26 + $0x10] sm:$0xff] %v1192_v36  ;;  %v1604_v40 = vmax.f32 %v525_v37, 0.0  ;;  %v529_v41 = vadd.f32 %v528_v38, %v1551_v8 }
  0xf1   : > { %v530_v42 = vpop.f32.mrf.mxu1 }
  0xf2   : > { %v1193_v43 = vpack.c.bf16 %v1604_v40, %v1602_v39  ;;  %v531_v44 = vadd.f32 %v530_v42, %v1553_v9  ;;  %829 = vmatprep.mubr.f32.mxu0 %v1604_v40  ;;  %v1613_v46 = vmax.f32 %v529_v41, 0.0 }
  0xf3   : > { %v532_v45 = vpop.f32.mrf.mxu1  ;;  %830 = vmatmul.mubr.f32.gmra.mxu0 %v1602_v39 }
  0xf4   : > { %994 = vst [vmem:[%s1572_s26 + $0x18] sm:$0xff] %v1193_v43  ;;  %v1615_v47 = vmax.f32 %v531_v44, 0.0  ;;  %v533_v48 = vadd.f32 %v532_v45, %v1551_v8 }
  0xf5   : > { %v534_v49 = vpop.f32.mrf.mxu1 }
  0xf6   : > { %v1194_v50 = vpack.c.bf16 %v1615_v47, %v1613_v46  ;;  %v535_v51 = vadd.f32 %v534_v49, %v1553_v9  ;;  %834 = vmatprep.mubr.f32.mxu0 %v1615_v47  ;;  %v1624_v53 = vmax.f32 %v533_v48, 0.0 }
  0xf7   : > { %v538_v52 = vpop.f32.mrf.mxu1  ;;  %835 = vmatmul.mubr.f32.gmra.mxu0 %v1613_v46 }
  0xf8   : > { %995 = vst [vmem:[%s1572_s26 + $0x20] sm:$0xff] %v1194_v50  ;;  %v1626_v54 = vmax.f32 %v535_v51, 0.0  ;;  %v539_v55 = vadd.f32 %v538_v52, %v1551_v8 }
  0xf9   : > { %v540_v56 = vpop.f32.mrf.mxu1 }
  0xfa   : > { %v1195_v57 = vpack.c.bf16 %v1626_v54, %v1624_v53  ;;  %v541_v58 = vadd.f32 %v540_v56, %v1553_v9  ;;  %839 = vmatprep.mubr.f32.mxu0 %v1626_v54  ;;  %v1635_v60 = vmax.f32 %v539_v55, 0.0 }
  0xfb   : > { %v542_v59 = vpop.f32.mrf.mxu1  ;;  %840 = vmatmul.mubr.f32.gmra.mxu0 %v1624_v53 }
  0xfc   : > { %996 = vst [vmem:[%s1572_s26 + $0x28] sm:$0xff] %v1195_v57  ;;  %v1637_v61 = vmax.f32 %v541_v58, 0.0  ;;  %v543_v62 = vadd.f32 %v542_v59, %v1551_v8 }
  0xfd   : > { %v544_v63 = vpop.f32.mrf.mxu1 }
  0xfe   : > { %v1196_v0 = vpack.c.bf16 %v1637_v61, %v1635_v60  ;;  %v545_v1 = vadd.f32 %v544_v63, %v1553_v9  ;;  %844 = vmatprep.mubr.f32.mxu0 %v1637_v61  ;;  %v1646_v3 = vmax.f32 %v543_v62, 0.0 }
  0xff   : > { %v548_v2 = vpop.f32.mrf.mxu1  ;;  %845 = vmatmul.mubr.f32.gmra.mxu0 %v1635_v60 }
 0x100   : > { %997 = vst [vmem:[%s1572_s26 + $0x30] sm:$0xff] %v1196_v0  ;;  %v1648_v4 = vmax.f32 %v545_v1, 0.0  ;;  %v549_v6 = vadd.f32 %v548_v2, %v1551_v8 }
 0x101   : > { %v550_v7 = vpop.f32.mrf.mxu1 }
 0x102   : > { %v1197_v11 = vpack.c.bf16 %v1648_v4, %v1646_v3  ;;  %v551_v12 = vadd.f32 %v550_v7, %v1553_v9  ;;  %849 = vmatprep.mubr.f32.mxu0 %v1648_v4  ;;  %v1657_v14 = vmax.f32 %v549_v6, 0.0 }
 0x103   : > { %v552_v13 = vpop.f32.mrf.mxu1  ;;  %850 = vmatmul.mubr.f32.gmra.mxu0 %v1646_v3 }
 0x104   : > { %998 = vst [vmem:[%s1572_s26 + $0x38] sm:$0xff] %v1197_v11  ;;  %v1659_v15 = vmax.f32 %v551_v12, 0.0  ;;  %v553_v16 = vadd.f32 %v552_v13, %v1551_v8 }
 0x105   : > { %v554_v17 = vpop.f32.mrf.mxu1 }
 0x106   : > { %v1198_v20 = vpack.c.bf16 %v1659_v15, %v1657_v14  ;;  %v555_v21 = vadd.f32 %v554_v17, %v1553_v9  ;;  %854 = vmatprep.mubr.f32.mxu0 %v1659_v15  ;;  %v1668_v23 = vmax.f32 %v553_v16, 0.0 }
 0x107   : > { %v558_v22 = vpop.f32.mrf.mxu1  ;;  %855 = vmatmul.mubr.f32.gmra.mxu0 %v1657_v14 }
 0x108   : > { %999 = vst [vmem:[%s1572_s26 + $0x40] sm:$0xff] %v1198_v20  ;;  %v1670_v24 = vmax.f32 %v555_v21, 0.0  ;;  %v559_v27 = vadd.f32 %v558_v22, %v1551_v8 }
 0x109   : > { %v560_v28 = vpop.f32.mrf.mxu1 }
 0x10a   : > { %v1199_v29 = vpack.c.bf16 %v1670_v24, %v1668_v23  ;;  %v561_v30 = vadd.f32 %v560_v28, %v1553_v9  ;;  %859 = vmatprep.mubr.f32.mxu0 %v1670_v24  ;;  %v1679_v34 = vmax.f32 %v559_v27, 0.0 }
 0x10b   : > { %v562_v31 = vpop.f32.mrf.mxu1  ;;  %860 = vmatmul.mubr.f32.gmra.mxu0 %v1668_v23 }
 0x10c   : > { %1000 = vst [vmem:[%s1572_s26 + $0x48] sm:$0xff] %v1199_v29  ;;  %v1681_v35 = vmax.f32 %v561_v30, 0.0  ;;  %v563_v36 = vadd.f32 %v562_v31, %v1551_v8 }
 0x10d   : > { %v564_v37 = vpop.f32.mrf.mxu1 }
 0x10e   : > { %v1200_v38 = vpack.c.bf16 %v1681_v35, %v1679_v34  ;;  %v565_v41 = vadd.f32 %v564_v37, %v1553_v9  ;;  %864 = vmatprep.mubr.f32.mxu0 %v1681_v35  ;;  %v609_v43 = vmax.f32 %v563_v36, 0.0 }
 0x10f   : > { %v568_v42 = vpop.f32.mrf.mxu1  ;;  %865 = vmatmul.mubr.f32.gmra.mxu0 %v1679_v34 }
 0x110   : > { %1001 = vst [vmem:[%s1572_s26 + $0x50] sm:$0xff] %v1200_v38  ;;  %v610_v44 = vmax.f32 %v565_v41, 0.0  ;;  %v569_v45 = vadd.f32 %v568_v42, %v1551_v8 }
 0x111   : > { %v570_v48 = vpop.f32.mrf.mxu1 }
 0x112   : > { %v1201_v49 = vpack.c.bf16 %v610_v44, %v609_v43  ;;  %v571_v50 = vadd.f32 %v570_v48, %v1553_v9  ;;  %869 = vmatprep.mubr.f32.mxu0 %v610_v44  ;;  %v611_v52 = vmax.f32 %v569_v45, 0.0 }
 0x113   : > { %v572_v51 = vpop.f32.mrf.mxu1  ;;  %870 = vmatmul.mubr.f32.gmra.mxu0 %v609_v43 }
 0x114   : > { %1002 = vst [vmem:[%s1572_s26 + $0x58] sm:$0xff] %v1201_v49  ;;  %v612_v55 = vmax.f32 %v571_v50, 0.0  ;;  %v573_v56 = vadd.f32 %v572_v51, %v1551_v8 }
 0x115   : > { %v574_v57 = vpop.f32.mrf.mxu1 }
 0x116   : > { %v1202_v58 = vpack.c.bf16 %v612_v55, %v611_v52  ;;  %v575_v59 = vadd.f32 %v574_v57, %v1553_v9  ;;  %874 = vmatprep.mubr.f32.mxu0 %v612_v55  ;;  %v613_v63 = vmax.f32 %v573_v56, 0.0 }
 0x117   : > { %v578_v62 = vpop.f32.mrf.mxu1  ;;  %875 = vmatmul.mubr.f32.gmra.mxu0 %v611_v52 }
 0x118   : > { %1003 = vst [vmem:[%s1572_s26 + $0x60] sm:$0xff] %v1202_v58  ;;  %v614_v0 = vmax.f32 %v575_v59, 0.0  ;;  %v579_v1 = vadd.f32 %v578_v62, %v1551_v8 }
 0x119   : > { %v580_v2 = vpop.f32.mrf.mxu1 }
 0x11a   : > { %v1203_v6 = vpack.c.bf16 %v614_v0, %v613_v63  ;;  %v581_v7 = vadd.f32 %v580_v2, %v1553_v9  ;;  %879 = vmatprep.mubr.f32.mxu0 %v614_v0  ;;  %v615_v12 = vmax.f32 %v579_v1, 0.0 }
 0x11b   : > { %v582_v11 = vpop.f32.mrf.mxu1  ;;  %880 = vmatmul.mubr.f32.gmra.mxu0 %v613_v63 }
 0x11c   : > { %1004 = vst [vmem:[%s1572_s26 + $0x68] sm:$0xff] %v1203_v6  ;;  %v616_v13 = vmax.f32 %v581_v7, 0.0  ;;  %v583_v16 = vadd.f32 %v582_v11, %v1551_v8  ;;  %v634_v8 = vrot.slane %v1558_v10, %v1545_v5 }
 0x11d   : > { %v584_v17 = vpop.f32.mrf.mxu1 }
 0x11e   : > { %v1204_v20 = vpack.c.bf16 %v616_v13, %v615_v12  ;;  %v585_v21 = vadd.f32 %v584_v17, %v1553_v9  ;;  %884 = vmatprep.mubr.f32.mxu0 %v616_v13  ;;  %v617_v22 = vmax.f32 %v583_v16, 0.0 }
 0x11f   : > { %885 = vmatmul.mubr.f32.gmra.mxu0 %v615_v12 }
 0x120   : > { %1005 = vst [vmem:[%s1572_s26 + $0x70] sm:$0xff] %v1204_v20  ;;  %v618_v27 = vmax.f32 %v585_v21, 0.0 }
 0x122   : > { %v1205_v28 = vpack.c.bf16 %v618_v27, %v617_v22  ;;  %641 = vmatprep.subr.mxu1 %v618_v27  ;;  %889 = vmatprep.mubr.f32.mxu0 %v618_v27 }
 0x123   : > { %642 = vmatpush1.xpose.msra.mxu1 %v617_v22  ;;  %890 = vmatmul.mubr.f32.gmra.mxu0 %v617_v22 }
 0x124   : > { %1006 = vst [vmem:[%s1572_s26 + $0x78] sm:$0xff] %v1205_v28  ;;  %643 = vmatprep.subr.mxu1 %v616_v13 }
 0x127   : > { %644 = vmatpush1.xpose.msra.mxu1 %v615_v12 }
 0x128   : > { %645 = vmatprep.subr.mxu1 %v614_v0 }
 0x12b   : > { %646 = vmatpush1.xpose.msra.mxu1 %v613_v63 }
 0x12c   : > { %647 = vmatprep.subr.mxu1 %v612_v55 }
 0x12f   : > { %648 = vmatpush1.xpose.msra.mxu1 %v611_v52 }
 0x130   : > { %649 = vmatprep.subr.mxu1 %v610_v44 }
 0x133   : > { %650 = vmatpush1.xpose.msra.mxu1 %v609_v43 }
 0x134   : > { %651 = vmatprep.subr.mxu1 %v1681_v35 }
 0x137   : > { %652 = vmatpush1.xpose.msra.mxu1 %v1679_v34 }
 0x138   : > { %653 = vmatprep.subr.mxu1 %v1670_v24 }
 0x13b   : > { %654 = vmatpush1.xpose.msra.mxu1 %v1668_v23 }
 0x13c   : > { %655 = vmatprep.subr.mxu1 %v1659_v15 }
 0x13f   : > { %656 = vmatpush1.xpose.msra.mxu1 %v1657_v14 }
 0x140   : > { %657 = vmatprep.subr.mxu1 %v1648_v4 }
 0x143   : > { %658 = vmatpush1.xpose.msra.mxu1 %v1646_v3 }
 0x144   : > { %659 = vmatprep.subr.mxu1 %v1637_v61 }
 0x147   : > { %660 = vmatpush1.xpose.msra.mxu1 %v1635_v60 }
 0x148   : > { %661 = vmatprep.subr.mxu1 %v1626_v54 }
 0x14b   : > { %662 = vmatpush1.xpose.msra.mxu1 %v1624_v53 }
 0x14c   : > { %663 = vmatprep.subr.mxu1 %v1615_v47 }
 0x14f   : > { %664 = vmatpush1.xpose.msra.mxu1 %v1613_v46 }
 0x150   : > { %665 = vmatprep.subr.mxu1 %v1604_v40  ;;  %v1727_v40 = vld [vmem:[#allocation3] ss:$0 sm:$0xff] }
 0x153   : > { %666 = vmatpush1.xpose.msra.mxu1 %v1602_v39 }
 0x154   : > { %667 = vmatprep.subr.mxu1 %v1593_v33 }
 0x157   : > { %668 = vmatpush1.xpose.msra.mxu1 %v1591_v32 }
 0x158   : > { %669 = vmatprep.subr.mxu1 %v1582_v26 }
 0x15b   : > { %670 = vmatpush1.xpose.msra.mxu1 %v1580_v25 }
 0x15c   : > { %671 = vmatprep.subr.mxu1 %v1565_v19 }
 0x15f   : > { %672 = vmatpush1.xpose.msra.mxu1 %v1563_v18 }
 0x162   : > { %706 = vmatmul.mubr.f32.vlgmr.msra.gmra.mxu1 %v634_v8 }
 0x1a7   : > { %v1238_v9 = vpop.f32.mrf.mxu0 }
 0x1a9   : > { %v1239_v39 = vpop.f32.mrf.mxu0 }
 0x1aa   : > { %v1240_v46 = vadd.f32 %v1239_v39, %v1238_v9 }
 0x1ab   : > { %v1241_v19 = vpop.f32.mrf.mxu0 }
 0x1ac   : > { %v817_v10 = vadd.f32 %v1240_v46, %v1727_v40  ;;  %v624_v46 = vpop.permute.xlu0 %623 }
 0x1ad   : > { %v1242_v25 = vpop.f32.mrf.mxu0 }
 0x1ae   : > { %1009 = vst.msk [vmem:[%s1733_s29] sm:$0xff] %vm1008_vm1, %v817_v10  ;;  %v1243_v18 = vadd.f32 %v1242_v25, %v1241_v19  ;;  %v629_v19 = vrot.slane %v624_v46, %v1545_v5 }
 0x1af   : > { %v1244_v26 = vpop.f32.mrf.mxu0 }
 0x1b0   : > { %v822_v32 = vadd.f32 %v1243_v18, %v1727_v40 }
 0x1b1   : > { %v1245_v33 = vpop.f32.mrf.mxu0 }
 0x1b2   : > { %1010 = vst.msk [vmem:[%s1733_s29 + $0x8] sm:$0xff] %vm1008_vm1, %v822_v32  ;;  %v1246_v47 = vadd.f32 %v1245_v33, %v1244_v26 }
 0x1b3   : > { %v1247_v53 = vpop.f32.mrf.mxu0 }
 0x1b4   : > { %v827_v54 = vadd.f32 %v1246_v47, %v1727_v40 }
 0x1b5   : > { %v1248_v60 = vpop.f32.mrf.mxu0 }
 0x1b6   : > { %1011 = vst.msk [vmem:[%s1733_s29 + $0x10] sm:$0xff] %vm1008_vm1, %v827_v54  ;;  %v1249_v61 = vadd.f32 %v1248_v60, %v1247_v53 }
 0x1b7   : > { %v1250_v3 = vpop.f32.mrf.mxu0 }
 0x1b8   : > { %v832_v4 = vadd.f32 %v1249_v61, %v1727_v40 }
 0x1b9   : > { %v1251_v14 = vpop.f32.mrf.mxu0 }
 0x1ba   : > { %1012 = vst.msk [vmem:[%s1733_s29 + $0x18] sm:$0xff] %vm1008_vm1, %v832_v4  ;;  %v1252_v15 = vadd.f32 %v1251_v14, %v1250_v3 }
 0x1bb   : > { %v1253_v23 = vpop.f32.mrf.mxu0 }
 0x1bc   : > { %v837_v24 = vadd.f32 %v1252_v15, %v1727_v40 }
 0x1bd   : > { %v1254_v29 = vpop.f32.mrf.mxu0 }
 0x1be   : > { %1013 = vst.msk [vmem:[%s1733_s29 + $0x20] sm:$0xff] %vm1008_vm1, %v837_v24  ;;  %v1255_v30 = vadd.f32 %v1254_v29, %v1253_v23 }
 0x1bf   : > { %v1256_v31 = vpop.f32.mrf.mxu0 }
 0x1c0   : > { %v842_v34 = vadd.f32 %v1255_v30, %v1727_v40 }
 0x1c1   : > { %v1257_v35 = vpop.f32.mrf.mxu0 }
 0x1c2   : > { %1014 = vst.msk [vmem:[%s1733_s29 + $0x28] sm:$0xff] %vm1008_vm1, %v842_v34  ;;  %v1258_v36 = vadd.f32 %v1257_v35, %v1256_v31 }
 0x1c3   : > { %v1259_v37 = vpop.f32.mrf.mxu0 }
 0x1c4   : > { %v847_v38 = vadd.f32 %v1258_v36, %v1727_v40 }
 0x1c5   : > { %v1260_v41 = vpop.f32.mrf.mxu0 }
 0x1c6   : > { %1015 = vst.msk [vmem:[%s1733_s29 + $0x30] sm:$0xff] %vm1008_vm1, %v847_v38  ;;  %v1261_v42 = vadd.f32 %v1260_v41, %v1259_v37 }
 0x1c7   : > { %v1262_v43 = vpop.f32.mrf.mxu0 }
 0x1c8   : > { %v852_v44 = vadd.f32 %v1261_v42, %v1727_v40 }
 0x1c9   : > { %v1263_v45 = vpop.f32.mrf.mxu0 }
 0x1ca   : > { %1016 = vst.msk [vmem:[%s1733_s29 + $0x38] sm:$0xff] %vm1008_vm1, %v852_v44  ;;  %v1264_v48 = vadd.f32 %v1263_v45, %v1262_v43 }
 0x1cb   : > { %v1265_v49 = vpop.f32.mrf.mxu0 }
 0x1cc   : > { %v857_v50 = vadd.f32 %v1264_v48, %v1727_v40 }
 0x1cd   : > { %v1266_v51 = vpop.f32.mrf.mxu0 }
 0x1ce   : > { %1017 = vst.msk [vmem:[%s1733_s29 + $0x40] sm:$0xff] %vm1008_vm1, %v857_v50  ;;  %v1267_v52 = vadd.f32 %v1266_v51, %v1265_v49 }
 0x1cf   : > { %v1268_v55 = vpop.f32.mrf.mxu0 }
 0x1d0   : > { %v862_v56 = vadd.f32 %v1267_v52, %v1727_v40 }
 0x1d1   : > { %v1269_v57 = vpop.f32.mrf.mxu0 }
 0x1d2   : > { %1018 = vst.msk [vmem:[%s1733_s29 + $0x48] sm:$0xff] %vm1008_vm1, %v862_v56  ;;  %v1270_v58 = vadd.f32 %v1269_v57, %v1268_v55 }
 0x1d3   : > { %v1271_v59 = vpop.f32.mrf.mxu0 }
 0x1d4   : > { %v867_v62 = vadd.f32 %v1270_v58, %v1727_v40 }
 0x1d5   : > { %v1272_v63 = vpop.f32.mrf.mxu0 }
 0x1d6   : > { %1019 = vst.msk [vmem:[%s1733_s29 + $0x50] sm:$0xff] %vm1008_vm1, %v867_v62  ;;  %v1273_v0 = vadd.f32 %v1272_v63, %v1271_v59 }
 0x1d7   : > { %v1274_v1 = vpop.f32.mrf.mxu0 }
 0x1d8   : > { %v872_v2 = vadd.f32 %v1273_v0, %v1727_v40 }
 0x1d9   : > { %v1275_v6 = vpop.f32.mrf.mxu0 }
 0x1da   : > { %1020 = vst.msk [vmem:[%s1733_s29 + $0x58] sm:$0xff] %vm1008_vm1, %v872_v2  ;;  %v1276_v7 = vadd.f32 %v1275_v6, %v1274_v1 }
 0x1db   : > { %v1277_v11 = vpop.f32.mrf.mxu0 }
 0x1dc   : > { %v877_v12 = vadd.f32 %v1276_v7, %v1727_v40 }
 0x1dd   : > { %v1278_v13 = vpop.f32.mrf.mxu0 }
 0x1de   : > { %1021 = vst.msk [vmem:[%s1733_s29 + $0x60] sm:$0xff] %vm1008_vm1, %v877_v12  ;;  %v1279_v16 = vadd.f32 %v1278_v13, %v1277_v11 }
 0x1df   : > { %v1280_v17 = vpop.f32.mrf.mxu0 }
 0x1e0   : > { %v882_v20 = vadd.f32 %v1279_v16, %v1727_v40 }
 0x1e1   : > { %v1281_v21 = vpop.f32.mrf.mxu0 }
 0x1e2   : > { %1022 = vst.msk [vmem:[%s1733_s29 + $0x68] sm:$0xff] %vm1008_vm1, %v882_v20  ;;  %v1282_v22 = vadd.f32 %v1281_v21, %v1280_v17 }
 0x1e3   : > { %v1283_v27 = vpop.f32.mrf.mxu0 }
 0x1e4   : > { %v887_v28 = vadd.f32 %v1282_v22, %v1727_v40 }
 0x1e5   : > { %v1284_v8 = vpop.f32.mrf.mxu0 }
 0x1e6   : > { %1023 = vst.msk [vmem:[%s1733_s29 + $0x70] sm:$0xff] %vm1008_vm1, %v887_v28  ;;  %v1285_v9 = vadd.f32 %v1284_v8, %v1283_v27 }
 0x1e8   : > { %v892_v39 = vadd.f32 %v1285_v9, %v1727_v40 }
 0x1ea   : > { %1024 = vst.msk [vmem:[%s1733_s29 + $0x78] sm:$0xff] %vm1008_vm1, %v892_v39 }
 0x222   : > { %v707_v10 = vpop.f32.mrf.mxu1 }
 0x223   : > { %v708_v25 = vadd.f32 %v707_v10, %v629_v19 }
 0x224   : > { %v709_v18 = vpop.f32.mrf.mxu1 }
 0x225   : > { %1007 = vst [vmem:[%s357_s20] sm:$0x1] %v708_v25 }
 0x226 PF: > { %s24_s13 = sadd.s32 1, %s1314_s13  }
 0x227   : > { %p21_p5 = scmp.ge.s32.totalorder %s24_s13, 4  }
 0x229   :  { %23 = sbr.rel (!%p21_p5) target bundleno = 3 (0x3), region = 102 }

// kernel: decoder_forward.7
= control target key start
LH: loop header
LB: loop body
LE: loop exit
PB: predicated region body
PF: predicated region fallthrough
CT: control target
= control target key end

     0   :  { %s2495_s0 = inlined_call_operand.vmem [shape: bf16[256,256], index: 0, kind: input, shape index: {}, may-alias: {0,1}]   ;;  %s2496_s1 = inlined_call_operand.vmem [shape: bf16[256,256], index: 1, kind: input, shape index: {}, may-alias: {0,1}]   ;;  %s2497_s2 = inlined_call_operand.vmem [shape: f32[1,256], index: 2, kind: input, shape index: {}]   ;;  %s2498_s3 = inlined_call_operand.vmem [shape: f32[256,1], index: 3, kind: input, shape index: {}]   ;;  %s2499_s4 = inlined_call_operand.vmem [shape: bf16[256,256], index: 4, kind: input, shape index: {}]   ;;  %s2500_s5 = inlined_call_operand.vmem [shape: f32[256,256], index: 5, kind: output, shape index: {}]  }
   0x1   :  { %2501 = sst [smem:[#allocation6_spill]] %s2495_s0 }
   0x2   :  { %s2167_s18 = smov 0   ;;  %s2169_s19 = smov 0  }
   0x3   :  { %s2171_s20 = smov 0   ;;  %s2173_s21 = smov 0  }
   0x4   :  { %s2175_s22 = smov 0   ;;  %s2177_s23 = smov 0  }
   0x5   :  { %s2179_s24 = smov 0  }
   0x6 LB: > { %s24_s25 = sadd.s32 1, %s2124_s22  ;;  %s27_s26 = sadd.s32 1, %s2128_s23  ;;  %s2132_s24 = sphi %s2179_s24, %s15_s24   ;;  %s2128_s23 = sphi %s2177_s23, %s2510_s23   ;;  %s2124_s22 = sphi %s2175_s22, %s2509_s22   ;;  %s2120_s21 = sphi %s2173_s21, %s2508_s21   ;;  %s2116_s20 = sphi %s2171_s20, %s2507_s20   ;;  %s2112_s19 = sphi %s2169_s19, %s2506_s19   ;;  %s2108_s18 = sphi %s2167_s18, %s2505_s18  }
   0x7   : > { %p25_p0 = scmp.ge.s32.totalorder %s24_s25, 2  ;;  %p43_p1 = scmp.ne.s32.totalorder %s2112_s19, %s2108_s18 }
   0x8   : > { %p44_p2 = scmp.eq.s32.totalorder %s2132_s24, 0  ;;  %s36_s6 = sadd.s32 1, %s2112_s19 }
   0x9   : > { %s2512_s25 = smov (%p25_p0, %s24_s25), 0  ;;  %s2514_s26 = smov (!%p25_p0, %s27_s26), %s2128_s23 }
   0xa   : > { %p2210_p3 = por %p44_p2, %p43_p1  ;;  %p29_p4 = scmp.ge.s32.totalorder %s2514_s26, 2 }
   0xb   : > { %s32_s28 = ssub.s32 %s2124_s22, %s2512_s25  ;;  %p1708_p6 = scmp.ge.s32.totalorder %s2132_s24, 4 }
   0xc   : > { %s2516_s26 = smov (%p29_p4, %s2514_s26), 0 }
   0xd   : > { %s31_s29 = ssub.s32 %s2128_s23, %s2516_s26  ;;  %201 = sbr.rel (%p1708_p6) target bundleno = 54 (0x36), region = 16 }
   0xe   : > { %s33_s30 = sor.u32 %s32_s28, %s31_s29 }
   0xf   : > { %p34_p5 = scmp.eq.s32.totalorder %s33_s30, 0 }
  0x11   : > { %s2222_s7 = scalar_select %p34_p5, %s2112_s19, %s36_s6  }
  0x12   : > { %204 = sbr.rel (!%p2210_p3) target bundleno = 38 (0x26), region = 20  ;;  %s206_s8 = sand.u32 (%p2210_p3), 1, %s2112_s19  }
  0x13   : > { %s1765_s9 = sshll.u32 (%p2210_p3), %s2128_s23, 5  ;;  %s1709_s10 = sshll.u32 (%p2210_p3), %s206_s8, 6 }
  0x14   : > { %s211_s11 = sadd.s32 (%p2210_p3), %s2124_s22, %s1765_s9  ;;  %s2503_s0 = sld [smem:[#allocation6_spill]] (%p2210_p3) }
  0x15   : > { %s1712_s12 = sshll.u32 (%p2210_p3), %s211_s11, 2  ;;  %s208_s16 = scalar_lea.vmem (%p2210_p3), [#allocation4], %s1709_s10 }
  0x1a   : > { %s2233_s15 = scalar_lea.vmem %s2503_s0, %s1712_s12 }
  0x1b   : > { %v230_v0 = vld [vmem:[%s2233_s15] sm:$0xf]  ;;  %v232_v1 = vld [vmem:[%s2233_s15 + $0x8] sm:$0xf]  ;;  %v234_v2 = vld [vmem:[%s2233_s15 + $0x10] sm:$0xf] }
  0x1c   : > { %231 = vst [vmem:[%s208_s16] sm:$0xf] %v230_v0  ;;  %233 = vst [vmem:[%s208_s16 + $0x4] sm:$0xf] %v232_v1  ;;  %v236_v3 = vld [vmem:[%s2233_s15 + $0x18] sm:$0xf] }
  0x1d   : > { %235 = vst [vmem:[%s208_s16 + $0x8] sm:$0xf] %v234_v2  ;;  %v238_v4 = vld [vmem:[%s2233_s15 + $0x20] sm:$0xf]  ;;  %v240_v5 = vld [vmem:[%s2233_s15 + $0x28] sm:$0xf] }
  0x1e   : > { %237 = vst [vmem:[%s208_s16 + $0xc] sm:$0xf] %v236_v3  ;;  %239 = vst [vmem:[%s208_s16 + $0x10] sm:$0xf] %v238_v4  ;;  %v242_v6 = vld [vmem:[%s2233_s15 + $0x30] sm:$0xf] }
  0x1f   : > { %241 = vst [vmem:[%s208_s16 + $0x14] sm:$0xf] %v240_v5  ;;  %v244_v7 = vld [vmem:[%s2233_s15 + $0x38] sm:$0xf]  ;;  %v246_v8 = vld [vmem:[%s2233_s15 + $0x40] sm:$0xf] }
  0x20   : > { %243 = vst [vmem:[%s208_s16 + $0x18] sm:$0xf] %v242_v6  ;;  %245 = vst [vmem:[%s208_s16 + $0x1c] sm:$0xf] %v244_v7  ;;  %v248_v9 = vld [vmem:[%s2233_s15 + $0x48] sm:$0xf] }
  0x21   : > { %247 = vst [vmem:[%s208_s16 + $0x20] sm:$0xf] %v246_v8  ;;  %v250_v10 = vld [vmem:[%s2233_s15 + $0x50] sm:$0xf]  ;;  %v252_v11 = vld [vmem:[%s2233_s15 + $0x58] sm:$0xf] }
  0x22   : > { %249 = vst [vmem:[%s208_s16 + $0x24] sm:$0xf] %v248_v9  ;;  %251 = vst [vmem:[%s208_s16 + $0x28] sm:$0xf] %v250_v10  ;;  %v254_v12 = vld [vmem:[%s2233_s15 + $0x60] sm:$0xf] }
  0x23   : > { %253 = vst [vmem:[%s208_s16 + $0x2c] sm:$0xf] %v252_v11  ;;  %v256_v13 = vld [vmem:[%s2233_s15 + $0x68] sm:$0xf]  ;;  %v258_v14 = vld [vmem:[%s2233_s15 + $0x70] sm:$0xf] }
  0x24   : > { %255 = vst [vmem:[%s208_s16 + $0x30] sm:$0xf] %v254_v12  ;;  %257 = vst [vmem:[%s208_s16 + $0x34] sm:$0xf] %v256_v13  ;;  %v260_v15 = vld [vmem:[%s2233_s15 + $0x78] sm:$0xf] }
  0x25   : > { %259 = vst [vmem:[%s208_s16 + $0x38] sm:$0xf] %v258_v14  ;;  %261 = vst [vmem:[%s208_s16 + $0x3c] sm:$0xf] %v260_v15 }
  0x26 PF: > { %317 = sbr.rel (!%p2210_p3) target bundleno = 54 (0x36), region = 61  ;;  %s319_s17 = sand.u32 (%p2210_p3), 1, %s2112_s19  }
  0x27   : > { %s1766_s28 = sshll.u32 (%p2210_p3), %s2124_s22, 5  ;;  %s1713_s29 = sshll.u32 (%p2210_p3), %s319_s17, 6 }
  0x28   : > { %s324_s30 = sadd.s32 (%p2210_p3), %s2128_s23, %s1766_s28  ;;  %s321_s27 = scalar_lea.vmem (%p2210_p3), [#allocation5], %s1713_s29 }
  0x29   : > { %s1716_s6 = sshll.u32 (%p2210_p3), %s324_s30, 2 }
  0x2a   : > { %s2259_s10 = scalar_lea.vmem (%p2210_p3), %s2496_s1, %s1716_s6 }
  0x2b   : > { %v343_v16 = vld [vmem:[%s2259_s10] sm:$0xf]  ;;  %v345_v17 = vld [vmem:[%s2259_s10 + $0x8] sm:$0xf]  ;;  %v347_v18 = vld [vmem:[%s2259_s10 + $0x10] sm:$0xf] }
  0x2c   : > { %344 = vst [vmem:[%s321_s27] sm:$0xf] %v343_v16  ;;  %346 = vst [vmem:[%s321_s27 + $0x4] sm:$0xf] %v345_v17  ;;  %v349_v19 = vld [vmem:[%s2259_s10 + $0x18] sm:$0xf] }
  0x2d   : > { %348 = vst [vmem:[%s321_s27 + $0x8] sm:$0xf] %v347_v18  ;;  %v351_v20 = vld [vmem:[%s2259_s10 + $0x20] sm:$0xf]  ;;  %v353_v21 = vld [vmem:[%s2259_s10 + $0x28] sm:$0xf] }
  0x2e   : > { %350 = vst [vmem:[%s321_s27 + $0xc] sm:$0xf] %v349_v19  ;;  %352 = vst [vmem:[%s321_s27 + $0x10] sm:$0xf] %v351_v20  ;;  %v355_v22 = vld [vmem:[%s2259_s10 + $0x30] sm:$0xf] }
  0x2f   : > { %354 = vst [vmem:[%s321_s27 + $0x14] sm:$0xf] %v353_v21  ;;  %v357_v23 = vld [vmem:[%s2259_s10 + $0x38] sm:$0xf]  ;;  %v359_v24 = vld [vmem:[%s2259_s10 + $0x40] sm:$0xf] }
  0x30   : > { %356 = vst [vmem:[%s321_s27 + $0x18] sm:$0xf] %v355_v22  ;;  %358 = vst [vmem:[%s321_s27 + $0x1c] sm:$0xf] %v357_v23  ;;  %v361_v25 = vld [vmem:[%s2259_s10 + $0x48] sm:$0xf] }
  0x31   : > { %360 = vst [vmem:[%s321_s27 + $0x20] sm:$0xf] %v359_v24  ;;  %v363_v26 = vld [vmem:[%s2259_s10 + $0x50] sm:$0xf]  ;;  %v365_v27 = vld [vmem:[%s2259_s10 + $0x58] sm:$0xf] }
  0x32   : > { %362 = vst [vmem:[%s321_s27 + $0x24] sm:$0xf] %v361_v25  ;;  %364 = vst [vmem:[%s321_s27 + $0x28] sm:$0xf] %v363_v26  ;;  %v367_v28 = vld [vmem:[%s2259_s10 + $0x60] sm:$0xf] }
  0x33   : > { %366 = vst [vmem:[%s321_s27 + $0x2c] sm:$0xf] %v365_v27  ;;  %v369_v29 = vld [vmem:[%s2259_s10 + $0x68] sm:$0xf]  ;;  %v371_v30 = vld [vmem:[%s2259_s10 + $0x70] sm:$0xf] }
  0x34   : > { %368 = vst [vmem:[%s321_s27 + $0x30] sm:$0xf] %v367_v28  ;;  %370 = vst [vmem:[%s321_s27 + $0x34] sm:$0xf] %v369_v29  ;;  %v373_v31 = vld [vmem:[%s2259_s10 + $0x78] sm:$0xf] }
  0x35   : > { %372 = vst [vmem:[%s321_s27 + $0x38] sm:$0xf] %v371_v30  ;;  %374 = vst [vmem:[%s321_s27 + $0x3c] sm:$0xf] %v373_v31 }
  0x36 PF: > { %p1717_p7 = scmp.ge.s32.totalorder %s2132_s24, 1  ;;  %p454_p8 = scmp.lt.s32.totalorder %s2132_s24, 5 }
  0x38   : > { %p455_p9 = pnand %p1717_p7, %p454_p8 }
  0x39   : > { %s461_s11 = sand.u32 (!%p455_p9), 1, %s2108_s18   ;;  %p516_p10 = scmp.lt.s32.totalorder (!%p455_p9), %s2116_s20, 1 }
  0x3a   : > { %458 = sbr.rel (%p455_p9) target bundleno = 756 (0x2f4), region = 114  ;;  %s1718_s12 = sshll.u32 (!%p455_p9), %s461_s11, 6 }
  0x3b   : > { %s1720_s13 = sshll.u32 (!%p455_p9), %s2120_s21, 4  ;;  %s1722_s15 = sshll.u32 (!%p455_p9), %s2116_s20, 4 }
  0x3c   : > { %p520_p11 = scmp.lt.s32.totalorder (!%p455_p9), %s1720_s13, 31  ;;  %p526_p12 = scmp.lt.s32.totalorder (!%p455_p9), %s1722_s15, 31 }
  0x3d   : > { %s2305_s17 = scalar_lea.vmem (!%p455_p9), [#allocation4], %s1718_s12  ;;  %s2307_s28 = scalar_lea.vmem (!%p455_p9), [#allocation5], %s1718_s12 }
  0x3e   : > { %p1728_p13 = scmp.ne.s32.totalorder (!%p455_p9), %s2116_s20, 0 }
  0x3f   : > { %s2283_s14 = scalar_select %p516_p10, %s2116_s20, 1 }
  0x40   : > { %s2518_s13 = smov (!%p520_p11, %s1720_s13), 31  ;;  %s2520_s15 = smov (!%p526_p12, %s1722_s15), 31 }
  0x41   : > { %s1721_s29 = sshll.u32 %s2518_s13, 3  ;;  %s1768_s30 = sshll.u32 %s2518_s13, 4 }
  0x42   : > { %s2293_s18 = scalar_lea.vmem %s2498_s3, %s1721_s29  ;;  %s1767_s21 = sshll.u32 %s2520_s15, 3 }
  0x43   : > { %s2298_s27 = scalar_lea.vmem %s2499_s4, %s1767_s21  ;;  %s2303_s16 = scalar_lea.vmem %s2500_s5, %s1768_s30 }
  0x44   : > { %543 = sbr.rel (%p1728_p13) target bundleno = 98 (0x62), region = 126 }
  0x49   : > { %vm576_vm0 = vcmask 7168   ;;  %v2134_v32 = vmov 0.0  }
  0x4a   : > { %544 = vst [vmem:[#allocation2 + $0xb0] sm:$0xff] %v2134_v32  ;;  %545 = vst [vmem:[#allocation2] sm:$0xff] %v2134_v32 }
  0x4b   : > { %546 = vst [vmem:[#allocation2 + $0xd8] sm:$0xff] %v2134_v32  ;;  %547 = vst [vmem:[#allocation2 + $0x18] sm:$0xff] %v2134_v32 }
  0x4c   : > { %548 = vst [vmem:[#allocation2 + $0x50] sm:$0xff] %v2134_v32  ;;  %549 = vst [vmem:[#allocation2 + $0x68] sm:$0xff] %v2134_v32 }
  0x4d   : > { %550 = vst [vmem:[#allocation2 + $0x30] sm:$0xff] %v2134_v32  ;;  %551 = vst [vmem:[#allocation2 + $0x48] sm:$0xff] %v2134_v32 }
  0x4e   : > { %552 = vst [vmem:[#allocation2 + $0x80] sm:$0xff] %v2134_v32  ;;  %553 = vst [vmem:[#allocation2 + $0x88] sm:$0xff] %v2134_v32 }
  0x4f   : > { %554 = vst [vmem:[#allocation2 + $0xe8] sm:$0xff] %v2134_v32  ;;  %555 = vst [vmem:[#allocation2 + $0xb8] sm:$0xff] %v2134_v32 }
  0x50   : > { %556 = vst [vmem:[#allocation2 + $0x60] sm:$0xff] %v2134_v32  ;;  %557 = vst [vmem:[#allocation2 + $0xf0] sm:$0xff] %v2134_v32 }
  0x51   : > { %558 = vst [vmem:[#allocation2 + $0x8] sm:$0xff] %v2134_v32  ;;  %559 = vst [vmem:[#allocation2 + $0x78] sm:$0xff] %v2134_v32 }
  0x52   : > { %560 = vst [vmem:[#allocation2 + $0x38] sm:$0xff] %v2134_v32  ;;  %561 = vst [vmem:[#allocation2 + $0x58] sm:$0xff] %v2134_v32 }
  0x53   : > { %562 = vst [vmem:[#allocation2 + $0x40] sm:$0xff] %v2134_v32  ;;  %563 = vst [vmem:[#allocation2 + $0xc8] sm:$0xff] %v2134_v32 }
  0x54   : > { %564 = vst [vmem:[#allocation2 + $0xe0] sm:$0xff] %v2134_v32  ;;  %565 = vst [vmem:[#allocation2 + $0x90] sm:$0xff] %v2134_v32 }
  0x55   : > { %566 = vst [vmem:[#allocation2 + $0x70] sm:$0xff] %v2134_v32  ;;  %567 = vst [vmem:[#allocation2 + $0xc0] sm:$0xff] %v2134_v32 }
  0x56   : > { %568 = vst [vmem:[#allocation2 + $0xa8] sm:$0xff] %v2134_v32  ;;  %569 = vst [vmem:[#allocation2 + $0xd0] sm:$0xff] %v2134_v32 }
  0x57   : > { %570 = vst [vmem:[#allocation2 + $0x10] sm:$0xff] %v2134_v32  ;;  %571 = vst [vmem:[#allocation2 + $0x28] sm:$0xff] %v2134_v32 }
  0x58   : > { %572 = vst [vmem:[#allocation2 + $0xa0] sm:$0xff] %v2134_v32  ;;  %573 = vst [vmem:[#allocation2 + $0xf8] sm:$0xff] %v2134_v32 }
  0x59   : > { %574 = vst [vmem:[#allocation2 + $0x20] sm:$0xff] %v2134_v32  ;;  %575 = vst [vmem:[#allocation2 + $0x98] sm:$0xff] %v2134_v32 }
  0x5a   : > { %577 = vst.msk [vmem:[#allocation3] sm:$0xff] %vm576_vm0, %v2134_v32  ;;  %578 = vst.msk [vmem:[#allocation3 + $0x8] sm:$0xff] %vm576_vm0, %v2134_v32 }
  0x5b   : > { %579 = vst.msk [vmem:[#allocation3 + $0x10] sm:$0xff] %vm576_vm0, %v2134_v32  ;;  %580 = vst.msk [vmem:[#allocation3 + $0x18] sm:$0xff] %vm576_vm0, %v2134_v32 }
  0x5c   : > { %581 = vst.msk [vmem:[#allocation3 + $0x20] sm:$0xff] %vm576_vm0, %v2134_v32  ;;  %582 = vst.msk [vmem:[#allocation3 + $0x28] sm:$0xff] %vm576_vm0, %v2134_v32 }
  0x5d   : > { %583 = vst.msk [vmem:[#allocation3 + $0x30] sm:$0xff] %vm576_vm0, %v2134_v32  ;;  %584 = vst.msk [vmem:[#allocation3 + $0x38] sm:$0xff] %vm576_vm0, %v2134_v32 }
  0x5e   : > { %585 = vst.msk [vmem:[#allocation3 + $0x40] sm:$0xff] %vm576_vm0, %v2134_v32  ;;  %586 = vst.msk [vmem:[#allocation3 + $0x48] sm:$0xff] %vm576_vm0, %v2134_v32 }
  0x5f   : > { %587 = vst.msk [vmem:[#allocation3 + $0x50] sm:$0xff] %vm576_vm0, %v2134_v32  ;;  %588 = vst.msk [vmem:[#allocation3 + $0x58] sm:$0xff] %vm576_vm0, %v2134_v32 }
  0x60   : > { %589 = vst.msk [vmem:[#allocation3 + $0x60] sm:$0xff] %vm576_vm0, %v2134_v32  ;;  %590 = vst.msk [vmem:[#allocation3 + $0x68] sm:$0xff] %vm576_vm0, %v2134_v32 }
  0x61   : > { %591 = vst.msk [vmem:[#allocation3 + $0x70] sm:$0xff] %vm576_vm0, %v2134_v32  ;;  %592 = vst.msk [vmem:[#allocation3 + $0x78] sm:$0xff] %vm576_vm0, %v2134_v32 }
  0x62 PF: > { %v712_v33 = vld [vmem:[%s2293_s18] sm:$0xff]  ;;  %v2135_v34 = vmov 0   ;;  %v713_v36 = vld [vmem:[%s2293_s18 + $0x8] sm:$0xff]  ;;  %v714_v38 = vld [vmem:[%s2293_s18 + $0x10] sm:$0xff]  ;;  %s2504_s13 = scalar_lea.vmem %s2497_s2, %s2283_s14  ;;  %vm1032_vm1 = vcmask 7168   ;;  %p1762_p0 = scmp.ne.s32.totalorder %s2116_s20, 1 }
  0x63   : > { %1922 = vset.pattern.permute.xlu0 %v2135_v34  ;;  %1923 = vset.pattern.permute.xlu1 %v2135_v34  ;;  %v720_v35 = vld [vmem:[%s2293_s18 + $0x40] sm:$0xff]  ;;  %v721_v37 = vld [vmem:[%s2293_s18 + $0x48] sm:$0xff]  ;;  %v715_v39 = vld [vmem:[%s2293_s18 + $0x18] sm:$0xff] }
  0x64   : > { %730 = vperm.xlu0 %1922, %v712_v33   ;;  %770 = vperm.xlu1 %1923, %v720_v35   ;;  %v722_v40 = vld [vmem:[%s2293_s18 + $0x50] sm:$0xff]  ;;  %v723_v41 = vld [vmem:[%s2293_s18 + $0x58] sm:$0xff]  ;;  %v716_v42 = vld [vmem:[%s2293_s18 + $0x20] sm:$0xff] }
  0x65   : > { %1217 = vmatprep.mubr.bf16.mxu0 %v2135_v34  ;;  %1257 = vmatprep.mubr.bf16.mxu1 %v2135_v34  ;;  %v717_v43 = vld [vmem:[%s2293_s18 + $0x28] sm:$0xff]  ;;  %v724_v44 = vld [vmem:[%s2293_s18 + $0x60] sm:$0xff]  ;;  %v718_v46 = vld [vmem:[%s2293_s18 + $0x30] sm:$0xff] }
  0x66   : > { %v725_v45 = vld [vmem:[%s2293_s18 + $0x68] sm:$0xff]  ;;  %v719_v47 = vld [vmem:[%s2293_s18 + $0x38] sm:$0xff]  ;;  %v1802_v48 = vld [vmem:[%s2307_s28] sm:$0xff]  }
  0x67   : > { %v726_v49 = vld [vmem:[%s2293_s18 + $0x70] sm:$0xff]  ;;  %v1803_v50 = vunpack.c.l.bf16 %v1802_v48  ;;  %v727_v51 = vld [vmem:[%s2293_s18 + $0x78] sm:$0xff]  ;;  %v1804_v52 = vunpack.c.h.bf16 %v1802_v48  ;;  %v1840_v53 = vld [vmem:[%s2307_s28 + $0x8] sm:$0xff]  }
  0x68   : > { %735 = vperm.xlu0 %1922, %v713_v36   ;;  %775 = vperm.xlu1 %1923, %v721_v37   ;;  %v1807_v54 = vunpack.c.l.bf16 %v1840_v53  ;;  %v1808_v55 = vunpack.c.h.bf16 %v1840_v53  ;;  %v1841_v56 = vld [vmem:[%s2307_s28 + $0x10] sm:$0xff]   ;;  %v1842_v59 = vld [vmem:[%s2307_s28 + $0x18] sm:$0xff]   ;;  %v1843_v0 = vld [vmem:[%s2307_s28 + $0x20] sm:$0xff]  }
  0x69   : > { %v1811_v57 = vunpack.c.l.bf16 %v1841_v56  ;;  %v1812_v58 = vunpack.c.h.bf16 %v1841_v56  ;;  %v1815_v60 = vunpack.c.l.bf16 %v1842_v59  ;;  %v1924_v61 = vld [vmem:[%s2298_s27 + $0x74] ss:$8 sps:$4 sm:$0xff]   ;;  %v1926_v62 = vld [vmem:[%s2298_s27 + $0x70] ss:$8 sps:$4 sm:$0xff]   ;;  %v1816_v63 = vunpack.c.h.bf16 %v1842_v59  ;;  %v1927_v1 = vld [vmem:[%s2298_s27 + $0x64] ss:$8 sps:$4 sm:$0xff]  }
  0x6a   : > { %1185 = vmatprep.subr.bf16.mxu0 %v1924_v61  ;;  %1847 = vmatprep.subr.bf16.mxu1 %v1924_v61  ;;  %v1929_v2 = vld [vmem:[%s2298_s27 + $0x60] ss:$8 sps:$4 sm:$0xff]   ;;  %v1819_v3 = vunpack.c.l.bf16 %v1843_v0  ;;  %v1930_v4 = vld [vmem:[%s2298_s27 + $0x54] ss:$8 sps:$4 sm:$0xff]   ;;  %v1820_v5 = vunpack.c.h.bf16 %v1843_v0  ;;  %v1932_v6 = vld [vmem:[%s2298_s27 + $0x50] ss:$8 sps:$4 sm:$0xff]  }
  0x6b   : > { %1186 = vmatpush1.bf16.msra.mxu0 %v1926_v62  ;;  %1855 = vmatpush1.bf16.msra.mxu1 %v1926_v62  ;;  %v1844_v7 = vld [vmem:[%s2307_s28 + $0x28] sm:$0xff]   ;;  %v1936_v11 = vld [vmem:[%s2298_s27 + $0x34] ss:$8 sps:$4 sm:$0xff]   ;;  %v1938_v13 = vld [vmem:[%s2298_s27 + $0x30] ss:$8 sps:$4 sm:$0xff]  }
  0x6c   : > { %740 = vperm.xlu0 %1922, %v714_v38   ;;  %745 = vperm.xlu1 %1923, %v715_v39   ;;  %v1933_v8 = vld [vmem:[%s2298_s27 + $0x44] ss:$8 sps:$4 sm:$0xff]   ;;  %v1823_v9 = vunpack.c.l.bf16 %v1844_v7  ;;  %v1935_v10 = vld [vmem:[%s2298_s27 + $0x40] ss:$8 sps:$4 sm:$0xff]   ;;  %v1824_v12 = vunpack.c.h.bf16 %v1844_v7  ;;  %v1845_v14 = vld [vmem:[%s2307_s28 + $0x30] sm:$0xff]  }
  0x6d   : > { %1187 = vmatprep.subr.bf16.mxu0 %v1927_v1  ;;  %1848 = vmatprep.subr.bf16.mxu1 %v1927_v1  ;;  %v1939_v15 = vld [vmem:[%s2298_s27 + $0x24] ss:$8 sps:$4 sm:$0xff]   ;;  %v1827_v16 = vunpack.c.l.bf16 %v1845_v14  ;;  %v1941_v17 = vld [vmem:[%s2298_s27 + $0x20] ss:$8 sps:$4 sm:$0xff]   ;;  %v1942_v18 = vld [vmem:[%s2298_s27 + $0x14] ss:$8 sps:$4 sm:$0xff]   ;;  %v1828_v19 = vunpack.c.h.bf16 %v1845_v14 }
  0x6e   : > { %v1944_v20 = vld [vmem:[%s2298_s27 + $0x10] ss:$8 sps:$4 sm:$0xff]   ;;  %v1945_v22 = vld [vmem:[%s2298_s27 + $0x4] ss:$8 sps:$4 sm:$0xff]   ;;  %v1947_v24 = vld [vmem:[%s2298_s27] ss:$8 sps:$4 sm:$0xff]  }
  0x6f   : > { %1188 = vmatpush1.bf16.msra.mxu0 %v1929_v2  ;;  %1856 = vmatpush1.bf16.msra.mxu1 %v1929_v2  ;;  %v1846_v21 = vld [vmem:[%s2307_s28 + $0x38] sm:$0xff]   ;;  %v1770_v33 = vld [vmem:[%s2305_s17] sm:$0xff]  }
  0x70   : > { %780 = vperm.xlu0 %1922, %v722_v40   ;;  %785 = vperm.xlu1 %1923, %v723_v41   ;;  %v1831_v23 = vunpack.c.l.bf16 %v1846_v21  ;;  %v1832_v25 = vunpack.c.h.bf16 %v1846_v21  ;;  %v1771_v35 = vunpack.c.l.bf16 %v1770_v33  ;;  %v2384_v37 = vld [vmem:[%s2504_s13] ss:$0 sm:$0xff]  ;;  %v1772_v40 = vunpack.c.h.bf16 %v1770_v33 }
  0x71   : > { %1189 = vmatprep.subr.bf16.mxu0 %v1930_v4  ;;  %1849 = vmatprep.subr.bf16.mxu1 %v1930_v4 }
  0x72   : > { %v696_v39 = vmul.f32 %v1771_v35, %v2384_v37 }
  0x73   : > { %1190 = vmatpush1.bf16.msra.mxu0 %v1932_v6  ;;  %1857 = vmatpush1.bf16.msra.mxu1 %v1932_v6  ;;  %v1835_v6 = vld [vmem:[%s2305_s17 + $0x18] sm:$0xff]  }
  0x74   : > { %750 = vperm.xlu1 %1923, %v716_v42   ;;  %1191 = vmatprep.subr.bf16.mxu0 %v1933_v8  ;;  %v1833_v42 = vld [vmem:[%s2305_s17 + $0x8] sm:$0xff]  }
  0x75   : > { %1850 = vmatprep.subr.bf16.mxu1 %v1933_v8  ;;  %v1776_v53 = vunpack.c.h.bf16 %v1833_v42 }
  0x77   : > { %1192 = vmatpush1.bf16.msra.mxu0 %v1935_v10  ;;  %1858 = vmatpush1.bf16.msra.mxu1 %v1935_v10 }
  0x78   : > { %755 = vperm.xlu1 %1923, %v717_v43   ;;  %1193 = vmatprep.subr.bf16.mxu0 %v1936_v11 }
  0x79   : > { %1851 = vmatprep.subr.bf16.mxu1 %v1936_v11  ;;  %v1783_v11 = vunpack.c.l.bf16 %v1835_v6 }
  0x7b   : > { %1194 = vmatpush1.bf16.msra.mxu0 %v1938_v13  ;;  %1859 = vmatpush1.bf16.msra.mxu1 %v1938_v13 }
  0x7c   : > { %790 = vperm.xlu1 %1923, %v724_v44   ;;  %1195 = vmatprep.subr.bf16.mxu0 %v1939_v15 }
  0x7d   : > { %1852 = vmatprep.subr.bf16.mxu1 %v1939_v15 }
  0x7f   : > { %1196 = vmatpush1.bf16.msra.mxu0 %v1941_v17  ;;  %1860 = vmatpush1.bf16.msra.mxu1 %v1941_v17 }
  0x80   : > { %795 = vperm.xlu1 %1923, %v725_v45   ;;  %1197 = vmatprep.subr.bf16.mxu0 %v1942_v18  ;;  %v697_v45 = vmul.f32 %v1772_v40, %v2384_v37 }
  0x81   : > { %1853 = vmatprep.subr.bf16.mxu1 %v1942_v18 }
  0x83   : > { %1198 = vmatpush1.bf16.msra.mxu0 %v1944_v20  ;;  %1861 = vmatpush1.bf16.msra.mxu1 %v1944_v20  ;;  %v1784_v20 = vunpack.c.h.bf16 %v1835_v6 }
  0x84   : > { %760 = vperm.xlu1 %1923, %v718_v46   ;;  %1199 = vmatprep.subr.bf16.mxu0 %v1945_v22  ;;  %v1775_v46 = vunpack.c.l.bf16 %v1833_v42 }
  0x85   : > { %1854 = vmatprep.subr.bf16.mxu1 %v1945_v22 }
  0x87   : > { %1200 = vmatpush1.bf16.msra.mxu0 %v1947_v24  ;;  %1862 = vmatpush1.bf16.msra.mxu1 %v1947_v24 }
  0x88   : > { %765 = vperm.xlu1 %1923, %v719_v47  }
  0x8c   : > { %800 = vperm.xlu1 %1923, %v726_v49  }
  0x8e   : > { %657 = vxpose.xlu0.b32.start [1/16] %v1803_v50, 128 }
  0x90   : > { %805 = vperm.xlu1 %1923, %v727_v51  }
  0x92   : > { %658 = vxpose.xlu0.b32.cont [2/16] %v1804_v52, 128  ;;  %v698_v52 = vmul.f32 %v1775_v46, %v2384_v37 }
  0x96   : > { %659 = vxpose.xlu0.b32.cont [3/16] %v1807_v54, 128 }
  0x9a   : > { %660 = vxpose.xlu0.b32.cont [4/16] %v1808_v55, 128  ;;  %v1834_v55 = vld [vmem:[%s2305_s17 + $0x10] sm:$0xff]  }
  0x9b   : > { %v1779_v61 = vunpack.c.l.bf16 %v1834_v55 }
  0x9d   : > { %v700_v2 = vmul.f32 %v1779_v61, %v2384_v37 }
  0x9e   : > { %661 = vxpose.xlu0.b32.cont [5/16] %v1811_v57, 128 }
  0xa2   : > { %662 = vxpose.xlu0.b32.cont [6/16] %v1812_v58, 128 }
  0xa6   : > { %663 = vxpose.xlu0.b32.cont [7/16] %v1815_v60, 128  ;;  %v699_v60 = vmul.f32 %v1776_v53, %v2384_v37 }
  0xaa   : > { %664 = vxpose.xlu0.b32.cont [8/16] %v1816_v63, 128 }
  0xae   : > { %665 = vxpose.xlu0.b32.cont [9/16] %v1819_v3, 128  ;;  %v1780_v3 = vunpack.c.h.bf16 %v1834_v55 }
  0xb0   : > { %v701_v10 = vmul.f32 %v1780_v3, %v2384_v37 }
  0xb2   : > { %666 = vxpose.xlu0.b32.cont [10/16] %v1820_v5, 128 }
  0xb6   : > { %667 = vxpose.xlu0.b32.cont [11/16] %v1823_v9, 128 }
  0xba   : > { %668 = vxpose.xlu0.b32.cont [12/16] %v1824_v12, 128 }
  0xbe   : > { %669 = vxpose.xlu0.b32.cont [13/16] %v1827_v16, 128 }
  0xc2   : > { %670 = vxpose.xlu0.b32.cont [14/16] %v1828_v19, 128  ;;  %v702_v19 = vmul.f32 %v1783_v11, %v2384_v37 }
  0xc6   : > { %671 = vxpose.xlu0.b32.cont [15/16] %v1831_v23, 128  ;;  %v1836_v23 = vld [vmem:[%s2305_s17 + $0x20] sm:$0xff]  }
  0xca   : > { %672 = vxpose.xlu0.b32.end [16/16] %v1832_v25, 128 }
  0xdf   : > { %v2370_v26 = vpop.permute.xlu1 %770  ;;  %v731_v27 = vpop.permute.xlu0 %730 }
  0xe3   : > { %v2372_v28 = vpop.permute.xlu1 %775  ;;  %v736_v29 = vpop.permute.xlu0 %735 }
  0xe7   : > { %v746_v30 = vpop.permute.xlu1 %745  ;;  %v741_v31 = vpop.permute.xlu0 %740 }
  0xeb   : > { %v2374_v32 = vpop.permute.xlu1 %785  ;;  %v2377_v36 = vpop.permute.xlu0 %780 }
  0xef   : > { %v751_v38 = vpop.permute.xlu1 %750 }
  0xf3   : > { %v756_v47 = vpop.permute.xlu1 %755 }
  0xf7   : > { %v2391_v58 = vpop.permute.xlu1 %790 }
  0xfb   : > { %v2395_v4 = vpop.permute.xlu1 %795 }
  0xff   : > { %v761_v17 = vpop.permute.xlu1 %760 }
 0x103   : > { %v766_v35 = vpop.permute.xlu1 %765 }
 0x10a   : > { %v673_v41 = vpop.trf.xlu0 }
 0x10b   : > { %v808_v43 = vmul.f32 %v731_v27, %v673_v41 }
 0x10d   : > { %v824_v44 = vadd.f32 %v808_v43, %v696_v39 }
 0x10e   : > { %v674_v48 = vpop.trf.xlu0 }
 0x10f   : > { %v1730_v49 = vmul.f32 -1.442695, %v824_v44  ;;  %v809_v50 = vmul.f32 %v736_v29, %v674_v48  ;;  %v1788_v44 = vunpack.c.h.bf16 %v1836_v23 }
 0x111   : > { %1948 = vpow2.f32 %v1730_v49  ;;  %v825_v51 = vadd.f32 %v809_v50, %v697_v45 }
 0x112   : > { %v675_v54 = vpop.trf.xlu0 }
 0x113   : > { %v1731_v56 = vmul.f32 -1.442695, %v825_v51  ;;  %v810_v57 = vmul.f32 %v741_v31, %v675_v54  ;;  %v1787_v31 = vunpack.c.l.bf16 %v1836_v23 }
 0x115   : > { %1950 = vpow2.f32 %v1731_v56  ;;  %v826_v59 = vadd.f32 %v810_v57, %v698_v52  ;;  %v704_v43 = vmul.f32 %v1787_v31, %v2384_v37  ;;  %v705_v52 = vmul.f32 %v1788_v44, %v2384_v37 }
 0x116   : > { %v676_v62 = vpop.trf.xlu0 }
 0x117   : > { %v1732_v63 = vmul.f32 -1.442695, %v826_v59  ;;  %v811_v0 = vmul.f32 %v746_v30, %v676_v62  ;;  %v703_v30 = vmul.f32 %v1784_v20, %v2384_v37  ;;  %v1839_v20 = vld [vmem:[%s2305_s17 + $0x38] sm:$0xff]  }
 0x119   : > { %1952 = vpow2.f32 %v1732_v63  ;;  %v827_v1 = vadd.f32 %v811_v0, %v699_v60 }
 0x11a   : > { %v677_v5 = vpop.trf.xlu0 }
 0x11b   : > { %v1733_v7 = vmul.f32 -1.442695, %v827_v1  ;;  %v812_v8 = vmul.f32 %v751_v38, %v677_v5 }
 0x11d   : > { %1954 = vpow2.f32 %v1733_v7  ;;  %v828_v9 = vadd.f32 %v812_v8, %v700_v2  ;;  %v1838_v2 = vld [vmem:[%s2305_s17 + $0x30] sm:$0xff]  }
 0x11e   : > { %v1949_v12 = vpop.eup %1948  ;;  %v678_v13 = vpop.trf.xlu0 }
 0x11f   : > { %v888_v14 = vadd.f32 1.0, %v1949_v12  ;;  %v1734_v15 = vmul.f32 -1.442695, %v828_v9  ;;  %v813_v16 = vmul.f32 %v756_v47, %v678_v13  ;;  %v1837_v47 = vld [vmem:[%s2305_s17 + $0x28] sm:$0xff]  }
 0x120   : > { %v1791_v53 = vunpack.c.l.bf16 %v1837_v47 }
 0x121   : > { %1956 = vrcp.f32 %v888_v14  ;;  %v829_v18 = vadd.f32 %v813_v16, %v701_v10  ;;  %v1795_v10 = vunpack.c.l.bf16 %v1838_v2 }
 0x122   : > { %v1951_v21 = vpop.eup %1950  ;;  %1958 = vpow2.f32 %v1734_v15  ;;  %v679_v22 = vpop.trf.xlu0  ;;  %v706_v63 = vmul.f32 %v1791_v53, %v2384_v37 }
 0x123   : > { %v889_v24 = vadd.f32 1.0, %v1951_v21  ;;  %v1735_v25 = vmul.f32 -1.442695, %v829_v18  ;;  %v814_v27 = vmul.f32 %v761_v17, %v679_v22 }
 0x125   : > { %1960 = vrcp.f32 %v889_v24  ;;  %v830_v29 = vadd.f32 %v814_v27, %v702_v19  ;;  %v1796_v19 = vunpack.c.h.bf16 %v1838_v2 }
 0x126   : > { %v1953_v33 = vpop.eup %1952  ;;  %1962 = vpow2.f32 %v1735_v25  ;;  %v680_v38 = vpop.trf.xlu0 }
 0x127   : > { %v890_v39 = vadd.f32 1.0, %v1953_v33  ;;  %v1736_v40 = vmul.f32 -1.442695, %v830_v29  ;;  %v815_v41 = vmul.f32 %v766_v35, %v680_v38  ;;  %v709_v31 = vmul.f32 %v1796_v19, %v2384_v37 }
 0x129   : > { %1964 = vrcp.f32 %v890_v39  ;;  %v831_v42 = vadd.f32 %v815_v41, %v703_v30  ;;  %v1799_v30 = vunpack.c.l.bf16 %v1839_v20 }
 0x12a   : > { %v1955_v45 = vpop.eup %1954  ;;  %1966 = vpow2.f32 %v1736_v40  ;;  %v681_v46 = vpop.trf.xlu0 }
 0x12b   : > { %v891_v48 = vadd.f32 1.0, %v1955_v45  ;;  %v1737_v49 = vmul.f32 -1.442695, %v831_v42  ;;  %v816_v50 = vmul.f32 %v2370_v26, %v681_v46  ;;  %v1792_v26 = vunpack.c.h.bf16 %v1837_v47  ;;  %v801_v42 = vpop.permute.xlu1 %800 }
 0x12c   : > { %v1800_v46 = vunpack.c.h.bf16 %v1839_v20 }
 0x12d   : > { %1968 = vrcp.f32 %v891_v48  ;;  %v832_v51 = vadd.f32 %v816_v50, %v704_v43 }
 0x12e   : > { %v1957_v54 = vpop.eup %1956  ;;  %1970 = vpow2.f32 %v1737_v49  ;;  %v682_v55 = vpop.trf.xlu0 }
 0x12f   : > { %v1959_v56 = vpop.eup %1958  ;;  %v936_v57 = vmul.f32 1.442695, %v1957_v54  ;;  %v1738_v59 = vmul.f32 -1.442695, %v832_v51  ;;  %v817_v60 = vmul.f32 %v2372_v28, %v682_v55  ;;  %v707_v28 = vmul.f32 %v1792_v26, %v2384_v37 }
 0x130   : > { %v892_v61 = vadd.f32 1.0, %v1959_v56  ;;  %v711_v56 = vmul.f32 %v1800_v46, %v2384_v37 }
 0x131   : > { %1972 = vpow2.f32 %v936_v57  ;;  %v833_v62 = vadd.f32 %v817_v60, %v705_v52 }
 0x132   : > { %v1961_v0 = vpop.eup %1960  ;;  %1974 = vrcp.f32 %v892_v61  ;;  %v683_v1 = vpop.trf.xlu0 }
 0x133   : > { %v1963_v3 = vpop.eup %1962  ;;  %v938_v5 = vmul.f32 1.442695, %v1961_v0  ;;  %1976 = vpow2.f32 %v1738_v59  ;;  %v1739_v6 = vmul.f32 -1.442695, %v833_v62  ;;  %v818_v7 = vmul.f32 %v2377_v36, %v683_v1  ;;  %v806_v59 = vpop.permute.xlu1 %805 }
 0x134   : > { %v893_v8 = vadd.f32 1.0, %v1963_v3  ;;  %v708_v36 = vmul.f32 %v1795_v10, %v2384_v37 }
 0x135   : > { %1978 = vpow2.f32 %v938_v5  ;;  %v834_v9 = vadd.f32 %v818_v7, %v706_v63 }
 0x136   : > { %v1965_v11 = vpop.eup %1964  ;;  %1980 = vrcp.f32 %v893_v8  ;;  %v684_v12 = vpop.trf.xlu0 }
 0x137   : > { %v1967_v13 = vpop.eup %1966  ;;  %v940_v14 = vmul.f32 1.442695, %v1965_v11  ;;  %1982 = vpow2.f32 %v1739_v6  ;;  %v1740_v15 = vmul.f32 -1.442695, %v834_v9  ;;  %v819_v16 = vmul.f32 %v2374_v32, %v684_v12 }
 0x138   : > { %v894_v17 = vadd.f32 1.0, %v1967_v13 }
 0x139   : > { %1984 = vpow2.f32 %v940_v14  ;;  %v835_v18 = vadd.f32 %v819_v16, %v707_v28 }
 0x13a   : > { %v1969_v21 = vpop.eup %1968  ;;  %1986 = vrcp.f32 %v894_v17  ;;  %v685_v22 = vpop.trf.xlu0 }
 0x13b   : > { %v1971_v23 = vpop.eup %1970  ;;  %v942_v24 = vmul.f32 1.442695, %v1969_v21  ;;  %1988 = vpow2.f32 %v1740_v15  ;;  %v1741_v25 = vmul.f32 -1.442695, %v835_v18  ;;  %v820_v27 = vmul.f32 %v2391_v58, %v685_v22 }
 0x13c   : > { %v895_v29 = vadd.f32 1.0, %v1971_v23  ;;  %v710_v58 = vmul.f32 %v1799_v30, %v2384_v37 }
 0x13d   : > { %1990 = vpow2.f32 %v942_v24  ;;  %v836_v32 = vadd.f32 %v820_v27, %v708_v36 }
 0x13e   : > { %v1973_v33 = vpop.eup %1972  ;;  %1992 = vrcp.f32 %v895_v29  ;;  %v686_v35 = vpop.trf.xlu0 }
 0x13f   : > { %v1975_v38 = vpop.eup %1974  ;;  %1994 = vpow2.f32 %v1741_v25  ;;  %v1742_v39 = vmul.f32 -1.442695, %v836_v32  ;;  %v821_v40 = vmul.f32 %v2395_v4, %v686_v35  ;;  %984 = vadd.xlane.f32.xlu1 %v1973_v33 }
 0x140   : > { %v1977_v41 = vpop.eup %1976  ;;  %v944_v43 = vmul.f32 1.442695, %v1975_v38 }
 0x141   : > { %v896_v44 = vadd.f32 1.0, %v1977_v41  ;;  %1996 = vpow2.f32 %v1742_v39  ;;  %v837_v45 = vadd.f32 %v821_v40, %v709_v31 }
 0x142   : > { %v1979_v47 = vpop.eup %1978  ;;  %1998 = vpow2.f32 %v944_v43  ;;  %v687_v48 = vpop.trf.xlu0 }
 0x143   : > { %v1981_v49 = vpop.eup %1980  ;;  %2000 = vrcp.f32 %v896_v44  ;;  %v1743_v50 = vmul.f32 -1.442695, %v837_v45  ;;  %v822_v51 = vmul.f32 %v801_v42, %v687_v48  ;;  %986 = vadd.xlane.f32.xlu1 %v1979_v47  ;;  %v1081_v52 = vpack.c.bf16 %v1979_v47, %v1973_v33 }
 0x144   : > { %v1983_v4 = vpop.eup %1982  ;;  %v946_v53 = vmul.f32 1.442695, %v1981_v49 }
 0x145   : > { %v897_v54 = vadd.f32 1.0, %v1983_v4  ;;  %2002 = vpow2.f32 %v1743_v50  ;;  %v838_v55 = vadd.f32 %v822_v51, %v710_v58  ;;  %1218 = vmatmul.mubr.bf16.vlgmr.msra.gmra.mxu0 %v1081_v52 }
 0x146   : > { %v1985_v57 = vpop.eup %1984  ;;  %2004 = vpow2.f32 %v946_v53  ;;  %v688_v60 = vpop.trf.xlu0  ;;  %1227 = vmatprep.mubr.bf16.mxu0 %v2135_v34  ;;  %v968_v53 = vld [vmem:[#allocation3] sm:$0xff] }
 0x147   : > { %v1987_v61 = vpop.eup %1986  ;;  %2006 = vrcp.f32 %v897_v54  ;;  %v1744_v62 = vmul.f32 -1.442695, %v838_v55  ;;  %v823_v63 = vmul.f32 %v806_v59, %v688_v60  ;;  %988 = vadd.xlane.f32.xlu1 %v1985_v57  ;;  %v970_v60 = vld [vmem:[#allocation3 + $0x10] sm:$0xff] }
 0x148   : > { %v1989_v26 = vpop.eup %1988  ;;  %v948_v0 = vmul.f32 1.442695, %v1987_v61 }
 0x149   : > { %v898_v1 = vadd.f32 1.0, %v1989_v26  ;;  %2008 = vpow2.f32 %v1744_v62  ;;  %v839_v2 = vadd.f32 %v823_v63, %v711_v56  ;;  %v969_v56 = vld [vmem:[#allocation3 + $0x8] sm:$0xff] }
 0x14a   : > { %v1991_v3 = vpop.eup %1990  ;;  %2010 = vpow2.f32 %v948_v0  ;;  %v972_v0 = vld [vmem:[#allocation3 + $0x20] sm:$0xff] }
 0x14b   : > { %v1993_v5 = vpop.eup %1992  ;;  %2012 = vrcp.f32 %v898_v1  ;;  %v1745_v37 = vmul.f32 -1.442695, %v839_v2  ;;  %990 = vadd.xlane.f32.xlu1 %v1991_v3  ;;  %v1082_v6 = vpack.c.bf16 %v1991_v3, %v1985_v57  ;;  %v973_v3 = vld [vmem:[#allocation3 + $0x28] sm:$0xff] }
 0x14c   : > { %v1995_v7 = vpop.eup %1994  ;;  %v950_v8 = vmul.f32 1.442695, %v1993_v5 }
 0x14d   : > { %v899_v9 = vadd.f32 1.0, %v1995_v7  ;;  %2014 = vpow2.f32 %v1745_v37  ;;  %1228 = vmatmul.mubr.bf16.gmra.mxu0 %v1082_v6  ;;  %v974_v6 = vld [vmem:[#allocation3 + $0x30] sm:$0xff] }
 0x14e   : > { %v1997_v28 = vpop.eup %1996  ;;  %2016 = vpow2.f32 %v950_v8  ;;  %1237 = vmatprep.mubr.bf16.mxu0 %v2135_v34 }
 0x14f   : > { %v1999_v10 = vpop.eup %1998  ;;  %2018 = vrcp.f32 %v899_v9  ;;  %v900_v11 = vadd.f32 1.0, %v1997_v28  ;;  %v975_v9 = vld [vmem:[#allocation3 + $0x38] sm:$0xff] }
 0x150   : > { %v2001_v12 = vpop.eup %2000  ;;  %992 = vadd.xlane.f32.xlu1 %v1999_v10 }
 0x151   : > { %v952_v13 = vmul.f32 1.442695, %v2001_v12  ;;  %2020 = vrcp.f32 %v900_v11  ;;  %v976_v11 = vld [vmem:[#allocation3 + $0x40] sm:$0xff] }
 0x152   : > { %v2003_v14 = vpop.eup %2002 }
 0x153   : > { %v2005_v15 = vpop.eup %2004  ;;  %2022 = vpow2.f32 %v952_v13  ;;  %v901_v16 = vadd.f32 1.0, %v2003_v14  ;;  %v977_v14 = vld [vmem:[#allocation3 + $0x48] sm:$0xff] }
 0x154   : > { %v2007_v17 = vpop.eup %2006  ;;  %994 = vadd.xlane.f32.xlu1 %v2005_v15  ;;  %v1083_v18 = vpack.c.bf16 %v2005_v15, %v1999_v10 }
 0x155   : > { %v954_v36 = vmul.f32 1.442695, %v2007_v17  ;;  %2024 = vrcp.f32 %v901_v16  ;;  %v978_v17 = vld [vmem:[#allocation3 + $0x50] sm:$0xff] }
 0x156   : > { %v2009_v19 = vpop.eup %2008  ;;  %1238 = vmatmul.mubr.bf16.gmra.mxu0 %v1083_v18 }
 0x157   : > { %v2011_v20 = vpop.eup %2010  ;;  %2026 = vpow2.f32 %v954_v36  ;;  %v902_v21 = vadd.f32 1.0, %v2009_v19  ;;  %1247 = vmatprep.mubr.bf16.mxu0 %v2135_v34  ;;  %v979_v19 = vld [vmem:[#allocation3 + $0x58] sm:$0xff] }
 0x158   : > { %v2013_v22 = vpop.eup %2012  ;;  %996 = vadd.xlane.f32.xlu1 %v2011_v20 }
 0x159   : > { %v956_v23 = vmul.f32 1.442695, %v2013_v22  ;;  %2028 = vrcp.f32 %v902_v21  ;;  %v980_v22 = vld [vmem:[#allocation3 + $0x60] sm:$0xff] }
 0x15a   : > { %v2015_v24 = vpop.eup %2014 }
 0x15b   : > { %v2017_v25 = vpop.eup %2016  ;;  %2030 = vpow2.f32 %v956_v23  ;;  %v903_v27 = vadd.f32 1.0, %v2015_v24 }
 0x15c   : > { %v2019_v29 = vpop.eup %2018  ;;  %998 = vadd.xlane.f32.xlu0 %v2017_v25  ;;  %v1084_v30 = vpack.c.bf16 %v2017_v25, %v2011_v20  ;;  %v981_v25 = vld [vmem:[#allocation3 + $0x68] sm:$0xff] }
 0x15d   : > { %v958_v32 = vmul.f32 1.442695, %v2019_v29  ;;  %2032 = vrcp.f32 %v903_v27 }
 0x15e   : > { %v2021_v31 = vpop.eup %2020  ;;  %1248 = vmatmul.mubr.bf16.gmra.mxu0 %v1084_v30  ;;  %v982_v30 = vld [vmem:[#allocation3 + $0x70] sm:$0xff] }
 0x15f   : > { %2034 = vpow2.f32 %v958_v32  ;;  %v960_v33 = vmul.f32 1.442695, %v2021_v31 }
 0x160   : > { %v2023_v35 = vpop.eup %2022 }
 0x161   : > { %2036 = vpow2.f32 %v960_v33  ;;  %1000 = vadd.xlane.f32.xlu1 %v2023_v35  ;;  %v1049_v33 = vld [vmem:[#allocation2 + $0xb0] sm:$0xff] }
 0x162   : > { %v2025_v38 = vpop.eup %2024 }
 0x163   : > { %v962_v39 = vmul.f32 1.442695, %v2025_v38 }
 0x164   : > { %v2027_v40 = vpop.eup %2026 }
 0x165   : > { %2038 = vpow2.f32 %v962_v39  ;;  %1002 = vadd.xlane.f32.xlu1 %v2027_v40  ;;  %v1085_v41 = vpack.c.bf16 %v2027_v40, %v2023_v35  ;;  %v983_v35 = vld [vmem:[#allocation3 + $0x78] sm:$0xff]  ;;  %v1050_v39 = vld [vmem:[#allocation2] sm:$0xff] }
 0x166   : > { %v2029_v42 = vpop.eup %2028 }
 0x167   : > { %v964_v43 = vmul.f32 1.442695, %v2029_v42  ;;  %1258 = vmatmul.mubr.bf16.vlgmr.msra.gmra.mxu1 %v1085_v41 }
 0x168   : > { %v2031_v58 = vpop.eup %2030  ;;  %1267 = vmatprep.mubr.bf16.mxu1 %v2135_v34 }
 0x169   : > { %2040 = vpow2.f32 %v964_v43  ;;  %1004 = vadd.xlane.f32.xlu1 %v2031_v58 }
 0x16a   : > { %v2033_v44 = vpop.eup %2032 }
 0x16b   : > { %v966_v45 = vmul.f32 1.442695, %v2033_v44 }
 0x16c   : > { %v2035_v46 = vpop.eup %2034 }
 0x16d   : > { %2042 = vpow2.f32 %v966_v45  ;;  %1006 = vadd.xlane.f32.xlu1 %v2035_v46  ;;  %v1086_v47 = vpack.c.bf16 %v2035_v46, %v2031_v58  ;;  %v1051_v58 = vld [vmem:[#allocation2 + $0xd8] sm:$0xff] }
 0x16e   : > { %v2037_v48 = vpop.eup %2036  ;;  %v1052_v46 = vld [vmem:[#allocation2 + $0x18] sm:$0xff] }
 0x16f   : > { %1268 = vmatmul.mubr.bf16.gmra.mxu1 %v1086_v47 }
 0x170   : > { %1277 = vmatprep.mubr.bf16.mxu1 %v2135_v34 }
 0x171   : > { %1008 = vadd.xlane.f32.xlu1 %v2037_v48 }
 0x172   : > { %v2039_v49 = vpop.eup %2038 }
 0x173   : > { %v1087_v50 = vpack.c.bf16 %v2039_v49, %v2037_v48 }
 0x175   : > { %1010 = vadd.xlane.f32.xlu1 %v2039_v49  ;;  %v1053_v49 = vld [vmem:[#allocation2 + $0x50] sm:$0xff] }
 0x176   : > { %v2041_v51 = vpop.eup %2040 }
 0x177   : > { %1278 = vmatmul.mubr.bf16.gmra.mxu1 %v1087_v50 }
 0x178   : > { %1287 = vmatprep.mubr.bf16.mxu1 %v2135_v34  ;;  %v971_v34 = vld [vmem:[#allocation3 + $0x18] sm:$0xff] }
 0x179   : > { %1012 = vadd.xlane.f32.xlu1 %v2041_v51 }
 0x17a   : > { %v2043_v52 = vpop.eup %2042 }
 0x17b   : > { %v1088_v4 = vpack.c.bf16 %v2043_v52, %v2041_v51 }
 0x17d   : > { %1014 = vadd.xlane.f32.xlu1 %v2043_v52  ;;  %v1054_v52 = vld [vmem:[#allocation2 + $0x68] sm:$0xff] }
 0x17f   : > { %1288 = vmatmul.mubr.bf16.gmra.mxu1 %v1088_v4 }
 0x1c8   : > { %v985_v54 = vpop.xlane.xlu1 %984 }
 0x1c9   : > { %v1016_v55 = vadd.f32 %v985_v54, %v968_v53  ;;  %v1055_v54 = vld [vmem:[#allocation2 + $0x30] sm:$0xff] }
 0x1cb   : > { %1033 = vst.msk [vmem:[#allocation3] sm:$0xff] %vm1032_vm1, %v1016_v55 }
 0x1cc   : > { %v987_v57 = vpop.xlane.xlu1 %986 }
 0x1cd   : > { %v1017_v59 = vadd.f32 %v987_v57, %v969_v56  ;;  %v1056_v57 = vld [vmem:[#allocation2 + $0x48] sm:$0xff] }
 0x1cf   : > { %1034 = vst.msk [vmem:[#allocation3 + $0x8] sm:$0xff] %vm1032_vm1, %v1017_v59 }
 0x1d0   : > { %v989_v61 = vpop.xlane.xlu1 %988 }
 0x1d1   : > { %v1018_v62 = vadd.f32 %v989_v61, %v970_v60 }
 0x1d3   : > { %1035 = vst.msk [vmem:[#allocation3 + $0x10] sm:$0xff] %vm1032_vm1, %v1018_v62  ;;  %v1057_v62 = vld [vmem:[#allocation2 + $0x80] sm:$0xff] }
 0x1d4   : > { %v991_v63 = vpop.xlane.xlu1 %990 }
 0x1d5   : > { %v1019_v26 = vadd.f32 %v991_v63, %v971_v34  ;;  %v1058_v63 = vld [vmem:[#allocation2 + $0x88] sm:$0xff] }
 0x1d7   : > { %1036 = vst.msk [vmem:[#allocation3 + $0x18] sm:$0xff] %vm1032_vm1, %v1019_v26 }
 0x1d9   : > { %v993_v1 = vpop.xlane.xlu1 %992 }
 0x1da   : > { %v1020_v2 = vadd.f32 %v993_v1, %v972_v0  ;;  %v1059_v1 = vld [vmem:[#allocation2 + $0xe8] sm:$0xff] }
 0x1dc   : > { %1037 = vst.msk [vmem:[#allocation3 + $0x20] sm:$0xff] %vm1032_vm1, %v1020_v2 }
 0x1dd   : > { %v995_v5 = vpop.xlane.xlu1 %994 }
 0x1de   : > { %v1021_v37 = vadd.f32 %v995_v5, %v973_v3  ;;  %v1060_v5 = vld [vmem:[#allocation2 + $0xb8] sm:$0xff] }
 0x1e0   : > { %1038 = vst.msk [vmem:[#allocation3 + $0x28] sm:$0xff] %vm1032_vm1, %v1021_v37 }
 0x1e1   : > { %v997_v7 = vpop.xlane.xlu1 %996 }
 0x1e2   : > { %v1022_v8 = vadd.f32 %v997_v7, %v974_v6  ;;  %v1061_v7 = vld [vmem:[#allocation2 + $0x60] sm:$0xff] }
 0x1e4   : > { %1039 = vst.msk [vmem:[#allocation3 + $0x30] sm:$0xff] %vm1032_vm1, %v1022_v8 }
 0x1e5   : > { %v999_v28 = vpop.xlane.xlu0 %998 }
 0x1e6   : > { %v1023_v10 = vadd.f32 %v999_v28, %v975_v9  ;;  %v1062_v28 = vld [vmem:[#allocation2 + $0xf0] sm:$0xff] }
 0x1e8   : > { %1040 = vst.msk [vmem:[#allocation3 + $0x38] sm:$0xff] %vm1032_vm1, %v1023_v10 }
 0x1ea   : > { %v1001_v12 = vpop.xlane.xlu1 %1000 }
 0x1eb   : > { %v1024_v13 = vadd.f32 %v1001_v12, %v976_v11  ;;  %v1063_v12 = vld [vmem:[#allocation2 + $0x8] sm:$0xff] }
 0x1ed   : > { %1041 = vst.msk [vmem:[#allocation3 + $0x40] sm:$0xff] %vm1032_vm1, %v1024_v13 }
 0x1ee   : > { %v1003_v15 = vpop.xlane.xlu1 %1002 }
 0x1ef   : > { %v1025_v16 = vadd.f32 %v1003_v15, %v977_v14  ;;  %v1064_v15 = vld [vmem:[#allocation2 + $0x78] sm:$0xff] }
 0x1f1   : > { %1042 = vst.msk [vmem:[#allocation3 + $0x48] sm:$0xff] %vm1032_vm1, %v1025_v16 }
 0x1f2   : > { %v1005_v18 = vpop.xlane.xlu1 %1004 }
 0x1f3   : > { %v1026_v36 = vadd.f32 %v1005_v18, %v978_v17 }
 0x1f5   : > { %1043 = vst.msk [vmem:[#allocation3 + $0x50] sm:$0xff] %vm1032_vm1, %v1026_v36  ;;  %v1065_v36 = vld [vmem:[#allocation2 + $0x38] sm:$0xff] }
 0x1f6   : > { %v1007_v20 = vpop.xlane.xlu1 %1006 }
 0x1f7   : > { %v1027_v21 = vadd.f32 %v1007_v20, %v979_v19  ;;  %v1066_v20 = vld [vmem:[#allocation2 + $0x58] sm:$0xff] }
 0x1f9   : > { %1044 = vst.msk [vmem:[#allocation3 + $0x58] sm:$0xff] %vm1032_vm1, %v1027_v21 }
 0x1fa   : > { %v1009_v23 = vpop.xlane.xlu1 %1008 }
 0x1fb   : > { %v1028_v24 = vadd.f32 %v1009_v23, %v980_v22  ;;  %v1067_v23 = vld [vmem:[#allocation2 + $0x40] sm:$0xff] }
 0x1fd   : > { %1045 = vst.msk [vmem:[#allocation3 + $0x60] sm:$0xff] %vm1032_vm1, %v1028_v24 }
 0x1fe   : > { %v1011_v27 = vpop.xlane.xlu1 %1010 }
 0x1ff   : > { %v1029_v29 = vadd.f32 %v1011_v27, %v981_v25  ;;  %v1068_v27 = vld [vmem:[#allocation2 + $0xc8] sm:$0xff] }
 0x201   : > { %1046 = vst.msk [vmem:[#allocation3 + $0x68] sm:$0xff] %vm1032_vm1, %v1029_v29 }
 0x202   : > { %v1013_v32 = vpop.xlane.xlu1 %1012 }
 0x203   : > { %v1030_v31 = vadd.f32 %v1013_v32, %v982_v30  ;;  %v1069_v32 = vld [vmem:[#allocation2 + $0xe0] sm:$0xff] }
 0x205   : > { %1047 = vst.msk [vmem:[#allocation3 + $0x70] sm:$0xff] %vm1032_vm1, %v1030_v31  ;;  %v1219_v38 = vpop.f32.mrf.mxu0 }
 0x206   : > { %v1015_v40 = vpop.xlane.xlu1 %1014  ;;  %v1298_v41 = vadd.f32 %v1219_v38, %v1049_v33 }
 0x207   : > { %v1031_v42 = vadd.f32 %v1015_v40, %v983_v35  ;;  %v1221_v43 = vpop.f32.mrf.mxu0  ;;  %v1070_v35 = vld [vmem:[#allocation2 + $0x90] sm:$0xff] }
 0x208   : > { %1330 = vst [vmem:[#allocation2 + $0xb0] sm:$0xff] %v1298_v41  ;;  %v1299_v44 = vadd.f32 %v1221_v43, %v1050_v39  ;;  %v1071_v40 = vld [vmem:[#allocation2 + $0x70] sm:$0xff]  ;;  %v1072_v43 = vld [vmem:[#allocation2 + $0xc0] sm:$0xff] }
 0x209   : > { %1048 = vst.msk [vmem:[#allocation3 + $0x78] sm:$0xff] %vm1032_vm1, %v1031_v42  ;;  %v1223_v45 = vpop.f32.mrf.mxu0 }
 0x20a   : > { %1331 = vst [vmem:[#allocation2] sm:$0xff] %v1299_v44  ;;  %v1300_v47 = vadd.f32 %v1223_v45, %v1051_v58  ;;  %v1073_v45 = vld [vmem:[#allocation2 + $0xa8] sm:$0xff] }
 0x20b   : > { %v1225_v48 = vpop.f32.mrf.mxu0 }
 0x20c   : > { %1332 = vst [vmem:[#allocation2 + $0xd8] sm:$0xff] %v1300_v47  ;;  %v1301_v50 = vadd.f32 %v1225_v48, %v1052_v46  ;;  %v1074_v48 = vld [vmem:[#allocation2 + $0xd0] sm:$0xff] }
 0x20d   : > { %v1229_v51 = vpop.f32.mrf.mxu0 }
 0x20e   : > { %1333 = vst [vmem:[#allocation2 + $0x18] sm:$0xff] %v1301_v50  ;;  %v1302_v4 = vadd.f32 %v1229_v51, %v1053_v49  ;;  %v1075_v51 = vld [vmem:[#allocation2 + $0x10] sm:$0xff] }
 0x20f   : > { %v1231_v53 = vpop.f32.mrf.mxu0 }
 0x210   : > { %1334 = vst [vmem:[#allocation2 + $0x50] sm:$0xff] %v1302_v4  ;;  %v1303_v55 = vadd.f32 %v1231_v53, %v1054_v52  ;;  %v1076_v53 = vld [vmem:[#allocation2 + $0x28] sm:$0xff] }
 0x211   : > { %v1233_v56 = vpop.f32.mrf.mxu0 }
 0x212   : > { %1335 = vst [vmem:[#allocation2 + $0x68] sm:$0xff] %v1303_v55  ;;  %v1304_v59 = vadd.f32 %v1233_v56, %v1055_v54  ;;  %v1077_v56 = vld [vmem:[#allocation2 + $0xa0] sm:$0xff] }
 0x213   : > { %v1235_v60 = vpop.f32.mrf.mxu0 }
 0x214   : > { %1336 = vst [vmem:[#allocation2 + $0x30] sm:$0xff] %v1304_v59  ;;  %v1305_v61 = vadd.f32 %v1235_v60, %v1056_v57  ;;  %v1078_v60 = vld [vmem:[#allocation2 + $0xf8] sm:$0xff] }
 0x216   : > { %1337 = vst [vmem:[#allocation2 + $0x48] sm:$0xff] %v1305_v61  ;;  %v1239_v34 = vpop.f32.mrf.mxu0 }
 0x217   : > { %v1306_v26 = vadd.f32 %v1239_v34, %v1057_v62  ;;  %v1079_v34 = vld [vmem:[#allocation2 + $0x20] sm:$0xff] }
 0x218   : > { %v1241_v0 = vpop.f32.mrf.mxu0 }
 0x219   : > { %1338 = vst [vmem:[#allocation2 + $0x80] sm:$0xff] %v1306_v26  ;;  %v1307_v2 = vadd.f32 %v1241_v0, %v1058_v63  ;;  %v1080_v0 = vld [vmem:[#allocation2 + $0x98] sm:$0xff] }
 0x21a   : > { %v1243_v3 = vpop.f32.mrf.mxu0 }
 0x21b   : > { %1339 = vst [vmem:[#allocation2 + $0x88] sm:$0xff] %v1307_v2  ;;  %v1308_v37 = vadd.f32 %v1243_v3, %v1059_v1 }
 0x21c   : > { %v1245_v6 = vpop.f32.mrf.mxu0 }
 0x21d   : > { %1340 = vst [vmem:[#allocation2 + $0xe8] sm:$0xff] %v1308_v37  ;;  %v1309_v8 = vadd.f32 %v1245_v6, %v1060_v5 }
 0x21e   : > { %v1249_v9 = vpop.f32.mrf.mxu0 }
 0x21f   : > { %1341 = vst [vmem:[#allocation2 + $0xb8] sm:$0xff] %v1309_v8  ;;  %v1310_v10 = vadd.f32 %v1249_v9, %v1061_v7 }
 0x220   : > { %v1251_v11 = vpop.f32.mrf.mxu0 }
 0x221   : > { %1342 = vst [vmem:[#allocation2 + $0x60] sm:$0xff] %v1310_v10  ;;  %v1311_v13 = vadd.f32 %v1251_v11, %v1062_v28 }
 0x222   : > { %v1253_v14 = vpop.f32.mrf.mxu0 }
 0x223   : > { %1343 = vst [vmem:[#allocation2 + $0xf0] sm:$0xff] %v1311_v13  ;;  %v1312_v16 = vadd.f32 %v1253_v14, %v1063_v12 }
 0x224   : > { %v1255_v17 = vpop.f32.mrf.mxu0 }
 0x225   : > { %1344 = vst [vmem:[#allocation2 + $0x8] sm:$0xff] %v1312_v16  ;;  %v1313_v18 = vadd.f32 %v1255_v17, %v1064_v15 }
 0x227   : > { %1345 = vst [vmem:[#allocation2 + $0x78] sm:$0xff] %v1313_v18  ;;  %v1259_v19 = vpop.f32.mrf.mxu1 }
 0x228   : > { %v1314_v21 = vadd.f32 %v1259_v19, %v1065_v36 }
 0x229   : > { %v1261_v22 = vpop.f32.mrf.mxu1 }
 0x22a   : > { %1346 = vst [vmem:[#allocation2 + $0x38] sm:$0xff] %v1314_v21  ;;  %v1315_v24 = vadd.f32 %v1261_v22, %v1066_v20 }
 0x22b   : > { %v1263_v25 = vpop.f32.mrf.mxu1 }
 0x22c   : > { %1347 = vst [vmem:[#allocation2 + $0x58] sm:$0xff] %v1315_v24  ;;  %v1316_v29 = vadd.f32 %v1263_v25, %v1067_v23 }
 0x22d   : > { %v1265_v30 = vpop.f32.mrf.mxu1 }
 0x22e   : > { %1348 = vst [vmem:[#allocation2 + $0x40] sm:$0xff] %v1316_v29  ;;  %v1317_v31 = vadd.f32 %v1265_v30, %v1068_v27 }
 0x22f   : > { %v1269_v33 = vpop.f32.mrf.mxu1 }
 0x230   : > { %1349 = vst [vmem:[#allocation2 + $0xc8] sm:$0xff] %v1317_v31  ;;  %v1318_v38 = vadd.f32 %v1269_v33, %v1069_v32 }
 0x231   : > { %v1271_v39 = vpop.f32.mrf.mxu1 }
 0x232   : > { %1350 = vst [vmem:[#allocation2 + $0xe0] sm:$0xff] %v1318_v38  ;;  %v1319_v41 = vadd.f32 %v1271_v39, %v1070_v35 }
 0x233   : > { %v1273_v42 = vpop.f32.mrf.mxu1 }
 0x234   : > { %1351 = vst [vmem:[#allocation2 + $0x90] sm:$0xff] %v1319_v41  ;;  %v1320_v58 = vadd.f32 %v1273_v42, %v1071_v40 }
 0x235   : > { %v1275_v44 = vpop.f32.mrf.mxu1 }
 0x236   : > { %1352 = vst [vmem:[#allocation2 + $0x70] sm:$0xff] %v1320_v58  ;;  %v1321_v46 = vadd.f32 %v1275_v44, %v1072_v43 }
 0x237   : > { %v1279_v47 = vpop.f32.mrf.mxu1 }
 0x238   : > { %1353 = vst [vmem:[#allocation2 + $0xc0] sm:$0xff] %v1321_v46  ;;  %v1322_v49 = vadd.f32 %v1279_v47, %v1073_v45 }
 0x239   : > { %v1281_v50 = vpop.f32.mrf.mxu1 }
 0x23a   : > { %1354 = vst [vmem:[#allocation2 + $0xa8] sm:$0xff] %v1322_v49  ;;  %v1323_v52 = vadd.f32 %v1281_v50, %v1074_v48 }
 0x23b   : > { %v1283_v4 = vpop.f32.mrf.mxu1 }
 0x23c   : > { %1355 = vst [vmem:[#allocation2 + $0xd0] sm:$0xff] %v1323_v52  ;;  %v1324_v54 = vadd.f32 %v1283_v4, %v1075_v51 }
 0x23d   : > { %v1285_v55 = vpop.f32.mrf.mxu1 }
 0x23e   : > { %1356 = vst [vmem:[#allocation2 + $0x10] sm:$0xff] %v1324_v54  ;;  %v1325_v57 = vadd.f32 %v1285_v55, %v1076_v53 }
 0x23f   : > { %v1289_v59 = vpop.f32.mrf.mxu1 }
 0x240   : > { %1357 = vst [vmem:[#allocation2 + $0x28] sm:$0xff] %v1325_v57  ;;  %v1326_v61 = vadd.f32 %v1289_v59, %v1077_v56 }
 0x241   : > { %v1291_v62 = vpop.f32.mrf.mxu1 }
 0x242   : > { %1358 = vst [vmem:[#allocation2 + $0xa0] sm:$0xff] %v1326_v61  ;;  %v1327_v63 = vadd.f32 %v1291_v62, %v1078_v60 }
 0x243   : > { %v1293_v26 = vpop.f32.mrf.mxu1 }
 0x244   : > { %1359 = vst [vmem:[#allocation2 + $0xf8] sm:$0xff] %v1327_v63  ;;  %v1328_v1 = vadd.f32 %v1293_v26, %v1079_v34  ;;  %1365 = sbr.rel (%p1762_p0) target bundleno = 756 (0x2f4), region = 130 }
 0x245   : > { %v1295_v2 = vpop.f32.mrf.mxu1 }
 0x246   : > { %1360 = vst [vmem:[#allocation2 + $0x20] sm:$0xff] %v1328_v1  ;;  %v1329_v3 = vadd.f32 %v1295_v2, %v1080_v0 }
 0x248   : > { %1361 = vst [vmem:[#allocation2 + $0x98] sm:$0xff] %v1329_v3 }
 0x249   : > { %v1400_v5 = vld [vmem:[#allocation3 + $0x10] sm:$0xff]  ;;  %v1398_v37 = vld [vmem:[#allocation3] sm:$0xff]  ;;  %v1401_v6 = vld [vmem:[#allocation3 + $0x18] sm:$0xff]  ;;  %v2136_v7 = vmov 0  }
 0x24a   : > { %2045 = vset.pattern.permute.xlu1 %v2136_v7  ;;  %2044 = vset.pattern.permute.xlu0 %v2136_v7  ;;  %2046 = vrcp.f32 %v1400_v5  ;;  %v1399_v8 = vld [vmem:[#allocation3 + $0x8] sm:$0xff]  ;;  %v1402_v28 = vld [vmem:[#allocation3 + $0x20] sm:$0xff]  ;;  %v1405_v10 = vld [vmem:[#allocation3 + $0x38] sm:$0xff] }
 0x24b   : > { %2048 = vrcp.f32 %v1398_v37  ;;  %v1403_v9 = vld [vmem:[#allocation3 + $0x28] sm:$0xff]  ;;  %v1404_v11 = vld [vmem:[#allocation3 + $0x30] sm:$0xff]  ;;  %v1406_v13 = vld [vmem:[#allocation3 + $0x40] sm:$0xff] }
 0x24c   : > { %2050 = vrcp.f32 %v1401_v6  ;;  %v1407_v12 = vld [vmem:[#allocation3 + $0x48] sm:$0xff]  ;;  %v1409_v17 = vld [vmem:[#allocation3 + $0x58] sm:$0xff]  ;;  %v1408_v36 = vld [vmem:[#allocation3 + $0x50] sm:$0xff] }
 0x24d   : > { %2052 = vrcp.f32 %v1399_v8  ;;  %v1411_v20 = vld [vmem:[#allocation3 + $0x68] sm:$0xff]  ;;  %v1410_v22 = vld [vmem:[#allocation3 + $0x60] sm:$0xff]  ;;  %v1413_v24 = vld [vmem:[#allocation3 + $0x78] sm:$0xff] }
 0x24e   : > { %2054 = vrcp.f32 %v1403_v9  ;;  %v1412_v27 = vld [vmem:[#allocation3 + $0x70] sm:$0xff]  ;;  %v1371_v41 = vld [vmem:[#allocation2 + $0x68] sm:$0xff]  ;;  %v1367_v43 = vld [vmem:[#allocation2] sm:$0xff] }
 0x24f   : > { %2056 = vrcp.f32 %v1402_v28  ;;  %v1370_v40 = vld [vmem:[#allocation2 + $0x50] sm:$0xff]  ;;  %v1373_v50 = vld [vmem:[#allocation2 + $0x48] sm:$0xff]  ;;  %v1368_v51 = vld [vmem:[#allocation2 + $0xd8] sm:$0xff] }
 0x250   : > { %2058 = vrcp.f32 %v1405_v10  ;;  %v1366_v42 = vld [vmem:[#allocation2 + $0xb0] sm:$0xff]  ;;  %v1369_v52 = vld [vmem:[#allocation2 + $0x18] sm:$0xff]  ;;  %v1376_v59 = vld [vmem:[#allocation2 + $0xe8] sm:$0xff] }
 0x251   : > { %2060 = vrcp.f32 %v1404_v11  ;;  %v1372_v49 = vld [vmem:[#allocation2 + $0x30] sm:$0xff]  ;;  %v1377_v60 = vld [vmem:[#allocation2 + $0xb8] sm:$0xff]  ;;  %v1374_v61 = vld [vmem:[#allocation2 + $0x80] sm:$0xff] }
 0x252   : > { %2062 = vrcp.f32 %v1407_v12  ;;  %v1375_v62 = vld [vmem:[#allocation2 + $0x88] sm:$0xff]  ;;  %v1381_v5 = vld [vmem:[#allocation2 + $0x78] sm:$0xff]  ;;  %v1378_v37 = vld [vmem:[#allocation2 + $0x60] sm:$0xff] }
 0x253   : > { %2064 = vrcp.f32 %v1406_v13  ;;  %v1380_v3 = vld [vmem:[#allocation2 + $0x8] sm:$0xff]  ;;  %v1379_v6 = vld [vmem:[#allocation2 + $0xf0] sm:$0xff]  ;;  %v1384_v12 = vld [vmem:[#allocation2 + $0x40] sm:$0xff] }
 0x254   : > { %2066 = vrcp.f32 %v1409_v17  ;;  %v1385_v13 = vld [vmem:[#allocation2 + $0xc8] sm:$0xff] }
 0x255   : > { %2068 = vrcp.f32 %v1408_v36 }
 0x256   : > { %2070 = vrcp.f32 %v1411_v20 }
 0x257   : > { %v2047_v14 = vpop.eup %2046  ;;  %2072 = vrcp.f32 %v1410_v22  ;;  %v1389_v22 = vld [vmem:[#allocation2 + $0xc0] sm:$0xff] }
 0x258   : > { %v2049_v15 = vpop.eup %2048  ;;  %1442 = vperm.xlu1 %2045, %v2047_v14   ;;  %2074 = vrcp.f32 %v1413_v24  ;;  %v1382_v14 = vld [vmem:[#allocation2 + $0x38] sm:$0xff]  ;;  %v1387_v24 = vld [vmem:[#allocation2 + $0x90] sm:$0xff] }
 0x259   : > { %v2051_v16 = vpop.eup %2050  ;;  %1432 = vperm.xlu0 %2044, %v2049_v15   ;;  %2076 = vrcp.f32 %v1412_v27  ;;  %v1383_v15 = vld [vmem:[#allocation2 + $0x58] sm:$0xff] }
 0x25a   : > { %v2053_v18 = vpop.eup %2052 }
 0x25b   : > { %v2055_v19 = vpop.eup %2054 }
 0x25c   : > { %1447 = vperm.xlu1 %2045, %v2051_v16   ;;  %v2057_v21 = vpop.eup %2056 }
 0x25d   : > { %1437 = vperm.xlu0 %2044, %v2053_v18   ;;  %v2059_v23 = vpop.eup %2058 }
 0x25e   : > { %v2061_v25 = vpop.eup %2060 }
 0x25f   : > { %v2063_v29 = vpop.eup %2062 }
 0x260   : > { %1457 = vperm.xlu1 %2045, %v2055_v19   ;;  %v2065_v30 = vpop.eup %2064 }
 0x261   : > { %1452 = vperm.xlu0 %2044, %v2057_v21   ;;  %v2067_v32 = vpop.eup %2066  ;;  %v1388_v21 = vld [vmem:[#allocation2 + $0x70] sm:$0xff] }
 0x262   : > { %v2069_v31 = vpop.eup %2068 }
 0x263   : > { %v2071_v33 = vpop.eup %2070 }
 0x264   : > { %1467 = vperm.xlu1 %2045, %v2059_v23   ;;  %v2073_v35 = vpop.eup %2072  ;;  %v1386_v23 = vld [vmem:[#allocation2 + $0xe0] sm:$0xff] }
 0x265   : > { %1462 = vperm.xlu0 %2044, %v2061_v25   ;;  %v2075_v38 = vpop.eup %2074 }
 0x266   : > { %v2077_v39 = vpop.eup %2076 }
 0x268   : > { %1477 = vperm.xlu1 %2045, %v2063_v29  }
 0x269   : > { %1472 = vperm.xlu0 %2044, %v2065_v30  }
 0x26c   : > { %1487 = vperm.xlu1 %2045, %v2067_v32  }
 0x26d   : > { %1482 = vperm.xlu0 %2044, %v2069_v31  }
 0x270   : > { %1497 = vperm.xlu1 %2045, %v2071_v33   ;;  %v1392_v33 = vld [vmem:[#allocation2 + $0x10] sm:$0xff] }
 0x271   : > { %1492 = vperm.xlu0 %2044, %v2073_v35   ;;  %v1393_v35 = vld [vmem:[#allocation2 + $0x28] sm:$0xff] }
 0x274   : > { %1507 = vperm.xlu1 %2045, %v2075_v38   ;;  %v1390_v38 = vld [vmem:[#allocation2 + $0xa8] sm:$0xff] }
 0x275   : > { %1502 = vperm.xlu0 %2044, %v2077_v39   ;;  %v1391_v39 = vld [vmem:[#allocation2 + $0xd0] sm:$0xff] }
 0x2d3   : > { %v1443_v58 = vpop.permute.xlu1 %1442 }
 0x2d4   : > { %v1514_v44 = vmul.f32 %v1443_v58, %v1370_v40  ;;  %v1515_v45 = vmul.f32 %v1443_v58, %v1371_v41  ;;  %v1433_v46 = vpop.permute.xlu0 %1432 }
 0x2d5   : > { %v1510_v47 = vmul.f32 %v1433_v46, %v1366_v42  ;;  %v1511_v48 = vmul.f32 %v1433_v46, %v1367_v43  ;;  %v1397_v46 = vld [vmem:[#allocation2 + $0x98] sm:$0xff] }
 0x2d6   : > { %1546 = vst [vmem:[%s2303_s16 + $0x20] sm:$0xff] %v1514_v44  ;;  %1547 = vst [vmem:[%s2303_s16 + $0x28] sm:$0xff] %v1515_v45  ;;  %v1396_v45 = vld [vmem:[#allocation2 + $0x20] sm:$0xff] }
 0x2d7   : > { %1542 = vst [vmem:[%s2303_s16] sm:$0xff] %v1510_v47  ;;  %1543 = vst [vmem:[%s2303_s16 + $0x8] sm:$0xff] %v1511_v48  ;;  %v1448_v4 = vpop.permute.xlu1 %1447  ;;  %v1394_v47 = vld [vmem:[#allocation2 + $0xa0] sm:$0xff]  ;;  %v1395_v48 = vld [vmem:[#allocation2 + $0xf8] sm:$0xff] }
 0x2d8   : > { %v1516_v53 = vmul.f32 %v1448_v4, %v1372_v49  ;;  %v1517_v54 = vmul.f32 %v1448_v4, %v1373_v50  ;;  %v1438_v55 = vpop.permute.xlu0 %1437 }
 0x2d9   : > { %v1512_v56 = vmul.f32 %v1438_v55, %v1368_v51  ;;  %v1513_v57 = vmul.f32 %v1438_v55, %v1369_v52 }
 0x2da   : > { %1548 = vst [vmem:[%s2303_s16 + $0x30] sm:$0xff] %v1516_v53  ;;  %1549 = vst [vmem:[%s2303_s16 + $0x38] sm:$0xff] %v1517_v54 }
 0x2db   : > { %1544 = vst [vmem:[%s2303_s16 + $0x10] sm:$0xff] %v1512_v56  ;;  %1545 = vst [vmem:[%s2303_s16 + $0x18] sm:$0xff] %v1513_v57  ;;  %v1458_v34 = vpop.permute.xlu1 %1457 }
 0x2dc   : > { %v1520_v63 = vmul.f32 %v1458_v34, %v1376_v59  ;;  %v1521_v26 = vmul.f32 %v1458_v34, %v1377_v60  ;;  %v1453_v0 = vpop.permute.xlu0 %1452 }
 0x2dd   : > { %v1518_v1 = vmul.f32 %v1453_v0, %v1374_v61  ;;  %v1519_v2 = vmul.f32 %v1453_v0, %v1375_v62 }
 0x2de   : > { %1552 = vst [vmem:[%s2303_s16 + $0x50] sm:$0xff] %v1520_v63  ;;  %1553 = vst [vmem:[%s2303_s16 + $0x58] sm:$0xff] %v1521_v26 }
 0x2df   : > { %1550 = vst [vmem:[%s2303_s16 + $0x40] sm:$0xff] %v1518_v1  ;;  %1551 = vst [vmem:[%s2303_s16 + $0x48] sm:$0xff] %v1519_v2  ;;  %v1468_v7 = vpop.permute.xlu1 %1467 }
 0x2e0   : > { %v1524_v8 = vmul.f32 %v1468_v7, %v1380_v3  ;;  %v1525_v9 = vmul.f32 %v1468_v7, %v1381_v5  ;;  %v1463_v28 = vpop.permute.xlu0 %1462 }
 0x2e1   : > { %v1522_v10 = vmul.f32 %v1463_v28, %v1378_v37  ;;  %v1523_v11 = vmul.f32 %v1463_v28, %v1379_v6 }
 0x2e2   : > { %1556 = vst [vmem:[%s2303_s16 + $0x70] sm:$0xff] %v1524_v8  ;;  %1557 = vst [vmem:[%s2303_s16 + $0x78] sm:$0xff] %v1525_v9 }
 0x2e3   : > { %1554 = vst [vmem:[%s2303_s16 + $0x60] sm:$0xff] %v1522_v10  ;;  %1555 = vst [vmem:[%s2303_s16 + $0x68] sm:$0xff] %v1523_v11  ;;  %v1478_v16 = vpop.permute.xlu1 %1477 }
 0x2e4   : > { %v1528_v17 = vmul.f32 %v1478_v16, %v1384_v12  ;;  %v1529_v18 = vmul.f32 %v1478_v16, %v1385_v13  ;;  %v1473_v36 = vpop.permute.xlu0 %1472 }
 0x2e5   : > { %v1526_v19 = vmul.f32 %v1473_v36, %v1382_v14  ;;  %v1527_v20 = vmul.f32 %v1473_v36, %v1383_v15 }
 0x2e6   : > { %1560 = vst [vmem:[%s2303_s16 + $0x90] sm:$0xff] %v1528_v17  ;;  %1561 = vst [vmem:[%s2303_s16 + $0x98] sm:$0xff] %v1529_v18 }
 0x2e7   : > { %1558 = vst [vmem:[%s2303_s16 + $0x80] sm:$0xff] %v1526_v19  ;;  %1559 = vst [vmem:[%s2303_s16 + $0x88] sm:$0xff] %v1527_v20  ;;  %v1488_v25 = vpop.permute.xlu1 %1487 }
 0x2e8   : > { %v1532_v27 = vmul.f32 %v1488_v25, %v1388_v21  ;;  %v1533_v29 = vmul.f32 %v1488_v25, %v1389_v22  ;;  %v1483_v30 = vpop.permute.xlu0 %1482 }
 0x2e9   : > { %v1530_v32 = vmul.f32 %v1483_v30, %v1386_v23  ;;  %v1531_v31 = vmul.f32 %v1483_v30, %v1387_v24 }
 0x2ea   : > { %1564 = vst [vmem:[%s2303_s16 + $0xb0] sm:$0xff] %v1532_v27  ;;  %1565 = vst [vmem:[%s2303_s16 + $0xb8] sm:$0xff] %v1533_v29 }
 0x2eb   : > { %1562 = vst [vmem:[%s2303_s16 + $0xa0] sm:$0xff] %v1530_v32  ;;  %1563 = vst [vmem:[%s2303_s16 + $0xa8] sm:$0xff] %v1531_v31  ;;  %v1498_v40 = vpop.permute.xlu1 %1497 }
 0x2ec   : > { %v1536_v41 = vmul.f32 %v1498_v40, %v1392_v33  ;;  %v1537_v42 = vmul.f32 %v1498_v40, %v1393_v35  ;;  %v1493_v43 = vpop.permute.xlu0 %1492 }
 0x2ed   : > { %v1534_v58 = vmul.f32 %v1493_v43, %v1390_v38  ;;  %v1535_v44 = vmul.f32 %v1493_v43, %v1391_v39 }
 0x2ee   : > { %1568 = vst [vmem:[%s2303_s16 + $0xd0] sm:$0xff] %v1536_v41  ;;  %1569 = vst [vmem:[%s2303_s16 + $0xd8] sm:$0xff] %v1537_v42 }
 0x2ef   : > { %1566 = vst [vmem:[%s2303_s16 + $0xc0] sm:$0xff] %v1534_v58  ;;  %1567 = vst [vmem:[%s2303_s16 + $0xc8] sm:$0xff] %v1535_v44  ;;  %v1508_v49 = vpop.permute.xlu1 %1507 }
 0x2f0   : > { %v1540_v50 = vmul.f32 %v1508_v49, %v1396_v45  ;;  %v1541_v51 = vmul.f32 %v1508_v49, %v1397_v46  ;;  %v1503_v52 = vpop.permute.xlu0 %1502 }
 0x2f1   : > { %v1538_v4 = vmul.f32 %v1503_v52, %v1394_v47  ;;  %v1539_v53 = vmul.f32 %v1503_v52, %v1395_v48 }
 0x2f2   : > { %1572 = vst [vmem:[%s2303_s16 + $0xf0] sm:$0xff] %v1540_v50  ;;  %1573 = vst [vmem:[%s2303_s16 + $0xf8] sm:$0xff] %v1541_v51 }
 0x2f3   : > { %1570 = vst [vmem:[%s2303_s16 + $0xe0] sm:$0xff] %v1538_v4  ;;  %1571 = vst [vmem:[%s2303_s16 + $0xe8] sm:$0xff] %v1539_v53 }
 0x2f4 PF: > { %s15_s24 = sadd.s32 1, %s2132_s24   ;;  %s2505_s18 = smov %s2112_s19 }
 0x2f5   : > { %p12_p1 = scmp.ge.s32.totalorder %s15_s24, 6   ;;  %s2506_s19 = smov %s2222_s7 }
 0x2f6   : > { %s2507_s20 = smov %s2124_s22  ;;  %s2508_s21 = smov %s2128_s23 }
 0x2f7   : > { %s2509_s22 = smov %s2512_s25  ;;  %s2510_s23 = smov %s2516_s26 }
 0x2f8   :  { %14 = sbr.rel (!%p12_p1) target bundleno = 6 (0x6), region = 182 }

// kernel: decoder_forward.8
= control target key start
LH: loop header
LB: loop body
LE: loop exit
PB: predicated region body
PF: predicated region fallthrough
CT: control target
= control target key end

     0   :  { %s2480_s13 = smov 0   ;;  %s3439_s0 = inlined_call_operand.vmem [shape: f32[256,256], index: 0, kind: input, shape index: {}]   ;;  %s3440_s1 = inlined_call_operand.vmem [shape: bf16[256,512], index: 1, kind: input, shape index: {}]   ;;  %s3441_s2 = inlined_call_operand.vmem [shape: f32[1,512], index: 2, kind: input, shape index: {}]   ;;  %s3442_s3 = inlined_call_operand.vmem [shape: f32[1,512], index: 3, kind: input, shape index: {}]   ;;  %s3443_s4 = inlined_call_operand.<no memory space> [shape: f32[1,1], index: 4, kind: input, shape index: {}]   ;;  %s3444_s5 = inlined_call_operand.vmem [shape: f32[512,1], index: 5, kind: input, shape index: {}]   ;;  %s3445_s7 = inlined_call_operand.vmem [shape: bf16[256,512], index: 7, kind: output, shape index: {0}]   ;;  %s3446_s8 = inlined_call_operand.vmem [shape: f32[1,256], index: 8, kind: output, shape index: {1}]   ;;  %s3447_s9 = inlined_call_operand.vmem [shape: f32[256,1], index: 9, kind: output, shape index: {2}]   ;;  %s3448_s6 = inlined_call_operand.<no memory space> [shape: f32[1,1], index: 6, kind: input, shape index: {}]  }
   0x1   :  { %v15_v0 = vstv %s3443_s4  ;;  %v17_v1 = vstv %s3448_s6 }
   0x2   :  { %16 = vst [vmem:[#allocation2] sm:$0x1] %v15_v0  ;;  %18 = vst [vmem:[#allocation3] sm:$0x1] %v17_v1 }
   0x3 LB: > { %s2486_s14 = sadd.s32 4294967295, %s2421_s13   ;;  %p2007_p0 = scmp.ge.s32.totalorder %s2421_s13, 1  ;;  %s2421_s13 = sphi %s2480_s13, %s24_s13  }
   0x4   : > { %p298_p1 = scmp.lt.s32.totalorder %s2421_s13, 3 }
   0x6   : > { %p299_p2 = pnand %p2007_p0, %p298_p1 }
   0x8   : > { %302 = sbr.rel (%p299_p2) target bundleno = 696 (0x2b8), region = 48 }
   0xd   : > { %v2319_v2 = vld [vmem:[%s3440_s1 + $0xe4] ss:$16 sps:$4 sm:$0xff]   ;;  %v2321_v3 = vld [vmem:[%s3440_s1 + $0xec] ss:$16 sps:$4 sm:$0xff]   ;;  %v2323_v4 = vld [vmem:[%s3440_s1 + $0xe0] ss:$16 sps:$4 sm:$0xff]  }
   0xe   : > { %821 = vmatprep.subr.bf16.mxu0 %v2319_v2  ;;  %v2324_v5 = vld [vmem:[%s3440_s1 + $0xe8] ss:$16 sps:$4 sm:$0xff]   ;;  %934 = vmatprep.subr.bf16.mxu1 %v2321_v3  ;;  %v2325_v6 = vld [vmem:[%s3440_s1 + $0xc4] ss:$16 sps:$4 sm:$0xff]   ;;  %v2327_v7 = vld [vmem:[%s3440_s1 + $0xcc] ss:$16 sps:$4 sm:$0xff]  }
   0xf   : > { %822 = vmatpush1.bf16.msra.mxu0 %v2323_v4  ;;  %935 = vmatpush1.bf16.msra.mxu1 %v2324_v5  ;;  %v2329_v8 = vld [vmem:[%s3440_s1 + $0xc0] ss:$16 sps:$4 sm:$0xff]   ;;  %v2330_v9 = vld [vmem:[%s3440_s1 + $0xc8] ss:$16 sps:$4 sm:$0xff]   ;;  %v2331_v10 = vld [vmem:[%s3440_s1 + $0xa4] ss:$16 sps:$4 sm:$0xff]  }
  0x10   : > { %823 = vmatprep.subr.bf16.mxu0 %v2325_v6  ;;  %936 = vmatprep.subr.bf16.mxu1 %v2327_v7  ;;  %v2333_v11 = vld [vmem:[%s3440_s1 + $0xac] ss:$16 sps:$4 sm:$0xff]   ;;  %v2335_v12 = vld [vmem:[%s3440_s1 + $0xa0] ss:$16 sps:$4 sm:$0xff]   ;;  %v2336_v13 = vld [vmem:[%s3440_s1 + $0xa8] ss:$16 sps:$4 sm:$0xff]  }
  0x11   : > { %v2337_v14 = vld [vmem:[%s3440_s1 + $0x84] ss:$16 sps:$4 sm:$0xff]   ;;  %v2339_v15 = vld [vmem:[%s3440_s1 + $0x8c] ss:$16 sps:$4 sm:$0xff]   ;;  %v2341_v16 = vld [vmem:[%s3440_s1 + $0x80] ss:$16 sps:$4 sm:$0xff]  }
  0x12   : > { %v2342_v17 = vld [vmem:[%s3440_s1 + $0x88] ss:$16 sps:$4 sm:$0xff]   ;;  %v2343_v18 = vld [vmem:[%s3440_s1 + $0x64] ss:$16 sps:$4 sm:$0xff]   ;;  %v2345_v19 = vld [vmem:[%s3440_s1 + $0x6c] ss:$16 sps:$4 sm:$0xff]  }
  0x13   : > { %824 = vmatpush1.bf16.msra.mxu0 %v2329_v8  ;;  %937 = vmatpush1.bf16.msra.mxu1 %v2330_v9  ;;  %v2347_v20 = vld [vmem:[%s3440_s1 + $0x60] ss:$16 sps:$4 sm:$0xff]   ;;  %v2348_v21 = vld [vmem:[%s3440_s1 + $0x68] ss:$16 sps:$4 sm:$0xff]   ;;  %v2349_v22 = vld [vmem:[%s3440_s1 + $0x44] ss:$16 sps:$4 sm:$0xff]  }
  0x14   : > { %825 = vmatprep.subr.bf16.mxu0 %v2331_v10  ;;  %938 = vmatprep.subr.bf16.mxu1 %v2333_v11  ;;  %v2351_v23 = vld [vmem:[%s3440_s1 + $0x4c] ss:$16 sps:$4 sm:$0xff]   ;;  %v2353_v24 = vld [vmem:[%s3440_s1 + $0x40] ss:$16 sps:$4 sm:$0xff]   ;;  %v2354_v25 = vld [vmem:[%s3440_s1 + $0x48] ss:$16 sps:$4 sm:$0xff]  }
  0x15   : > { %v2355_v26 = vld [vmem:[%s3440_s1 + $0x24] ss:$16 sps:$4 sm:$0xff]   ;;  %v2357_v27 = vld [vmem:[%s3440_s1 + $0x2c] ss:$16 sps:$4 sm:$0xff]   ;;  %v2359_v28 = vld [vmem:[%s3440_s1 + $0x20] ss:$16 sps:$4 sm:$0xff]  }
  0x16   : > { %v2360_v29 = vld [vmem:[%s3440_s1 + $0x28] ss:$16 sps:$4 sm:$0xff]   ;;  %v2361_v30 = vld [vmem:[%s3440_s1 + $0x4] ss:$16 sps:$4 sm:$0xff]   ;;  %v2363_v31 = vld [vmem:[%s3440_s1 + $0xc] ss:$16 sps:$4 sm:$0xff]  }
  0x17   : > { %826 = vmatpush1.bf16.msra.mxu0 %v2335_v12  ;;  %939 = vmatpush1.bf16.msra.mxu1 %v2336_v13  ;;  %s2008_s10 = sshll.u32 %s2486_s14, 4  ;;  %v2365_v32 = vld [vmem:[%s3440_s1] ss:$16 sps:$4 sm:$0xff]   ;;  %v2366_v33 = vld [vmem:[%s3440_s1 + $0x8] ss:$16 sps:$4 sm:$0xff]   ;;  %p358_p4 = scmp.lt.s32.totalorder %s2486_s14, 1 }
  0x18   : > { %827 = vmatprep.subr.bf16.mxu0 %v2337_v14  ;;  %940 = vmatprep.subr.bf16.mxu1 %v2339_v15  ;;  %v2367_v34 = vld [vmem:[%s3440_s1 + $0x1e4] ss:$16 sps:$4 sm:$0xff]   ;;  %p345_p3 = scmp.lt.s32.totalorder %s2008_s10, 31  ;;  %v2369_v35 = vld [vmem:[%s3440_s1 + $0x1ec] ss:$16 sps:$4 sm:$0xff]   ;;  %vm1869_vm0 = vcmask 7168  }
  0x19   : > { %v2371_v36 = vld [vmem:[%s3440_s1 + $0x1e0] ss:$16 sps:$4 sm:$0xff]   ;;  %v2372_v37 = vld [vmem:[%s3440_s1 + $0x1e8] ss:$16 sps:$4 sm:$0xff]   ;;  %v2373_v38 = vld [vmem:[%s3440_s1 + $0x1c4] ss:$16 sps:$4 sm:$0xff]  }
  0x1a   : > { %s3541_s10 = smov (!%p345_p3, %s2008_s10), 31  ;;  %v2375_v39 = vld [vmem:[%s3440_s1 + $0x1cc] ss:$16 sps:$4 sm:$0xff]   ;;  %v2377_v40 = vld [vmem:[%s3440_s1 + $0x1c0] ss:$16 sps:$4 sm:$0xff]   ;;  %s3543_s14 = smov (!%p358_p4, %s2486_s14), 1 }
  0x1b   : > { %828 = vmatpush1.bf16.msra.mxu0 %v2341_v16  ;;  %941 = vmatpush1.bf16.msra.mxu1 %v2342_v17  ;;  %v2378_v41 = vld [vmem:[%s3440_s1 + $0x1c8] ss:$16 sps:$4 sm:$0xff]   ;;  %v2379_v42 = vld [vmem:[%s3440_s1 + $0x1a4] ss:$16 sps:$4 sm:$0xff]   ;;  %s2115_s4 = sshll.u32 %s3541_s10, 4  ;;  %s360_s24 = scalar_lea.vmem %s3446_s8, %s3543_s14 }
  0x1c   : > { %829 = vmatprep.subr.bf16.mxu0 %v2343_v18  ;;  %942 = vmatprep.subr.bf16.mxu1 %v2345_v19  ;;  %v2381_v43 = vld [vmem:[%s3440_s1 + $0x1ac] ss:$16 sps:$4 sm:$0xff]   ;;  %v2383_v44 = vld [vmem:[%s3440_s1 + $0x1a0] ss:$16 sps:$4 sm:$0xff]   ;;  %v2384_v45 = vld [vmem:[%s3440_s1 + $0x1a8] ss:$16 sps:$4 sm:$0xff]   ;;  %s2631_s22 = scalar_lea.vmem %s3439_s0, %s2115_s4  ;;  %s2771_s12 = scalar_lea.vmem %s3445_s7, %s2115_s4 }
  0x1d   : > { %v2385_v46 = vld [vmem:[%s3440_s1 + $0x184] ss:$16 sps:$4 sm:$0xff]   ;;  %v2387_v47 = vld [vmem:[%s3440_s1 + $0x18c] ss:$16 sps:$4 sm:$0xff]   ;;  %v2389_v50 = vld [vmem:[%s3440_s1 + $0x180] ss:$16 sps:$4 sm:$0xff]  }
  0x1e   : > { %v368_v48 = vld [vmem:[%s2631_s22 + $0x8] sm:$0xff]  ;;  %v370_v49 = vld [vmem:[%s2631_s22 + $0x18] sm:$0xff]  ;;  %v2391_v53 = vld [vmem:[%s3440_s1 + $0x164] ss:$16 sps:$4 sm:$0xff]   ;;  %s2015_s25 = sshll.u32 %s3541_s10, 3 }
  0x1f   : > { %830 = vmatpush1.bf16.msra.mxu0 %v2347_v20  ;;  %943 = vmatpush1.bf16.msra.mxu1 %v2348_v21  ;;  %v2390_v51 = vld [vmem:[%s3440_s1 + $0x188] ss:$16 sps:$4 sm:$0xff]   ;;  %v400_v52 = vpack.c.bf16 %v370_v49, %v368_v48  ;;  %v2393_v54 = vld [vmem:[%s3440_s1 + $0x16c] ss:$16 sps:$4 sm:$0xff]   ;;  %v2395_v55 = vld [vmem:[%s3440_s1 + $0x160] ss:$16 sps:$4 sm:$0xff]   ;;  %s3387_s14 = scalar_lea.vmem %s3447_s9, %s2015_s25 }
  0x20   : > { %831 = vmatprep.subr.bf16.mxu0 %v2349_v22  ;;  %944 = vmatprep.subr.bf16.mxu1 %v2351_v23  ;;  %v2396_v56 = vld [vmem:[%s3440_s1 + $0x168] ss:$16 sps:$4 sm:$0xff]   ;;  %v2397_v57 = vld [vmem:[%s3440_s1 + $0x144] ss:$16 sps:$4 sm:$0xff]   ;;  %v2399_v58 = vld [vmem:[%s3440_s1 + $0x14c] ss:$16 sps:$4 sm:$0xff]  }
  0x21   : > { %853 = vmatprep.mubr.bf16.mxu0 %v400_v52  ;;  %966 = vmatprep.mubr.bf16.mxu1 %v400_v52  ;;  %v2401_v59 = vld [vmem:[%s3440_s1 + $0x140] ss:$16 sps:$4 sm:$0xff]   ;;  %v2402_v60 = vld [vmem:[%s3440_s1 + $0x148] ss:$16 sps:$4 sm:$0xff]   ;;  %v2403_v61 = vld [vmem:[%s3440_s1 + $0x124] ss:$16 sps:$4 sm:$0xff]  }
  0x22   : > { %v2405_v62 = vld [vmem:[%s3440_s1 + $0x12c] ss:$16 sps:$4 sm:$0xff]   ;;  %v2407_v63 = vld [vmem:[%s3440_s1 + $0x120] ss:$16 sps:$4 sm:$0xff]   ;;  %v2408_v0 = vld [vmem:[%s3440_s1 + $0x128] ss:$16 sps:$4 sm:$0xff]  }
  0x23   : > { %832 = vmatpush1.bf16.msra.mxu0 %v2353_v24  ;;  %945 = vmatpush1.bf16.msra.mxu1 %v2354_v25  ;;  %v2409_v1 = vld [vmem:[%s3440_s1 + $0x104] ss:$16 sps:$4 sm:$0xff]   ;;  %v2411_v2 = vld [vmem:[%s3440_s1 + $0x10c] ss:$16 sps:$4 sm:$0xff]   ;;  %v2413_v3 = vld [vmem:[%s3440_s1 + $0x100] ss:$16 sps:$4 sm:$0xff]  }
  0x24   : > { %833 = vmatprep.subr.bf16.mxu0 %v2355_v26  ;;  %946 = vmatprep.subr.bf16.mxu1 %v2357_v27  ;;  %v2414_v4 = vld [vmem:[%s3440_s1 + $0x108] ss:$16 sps:$4 sm:$0xff]   ;;  %v367_v5 = vld [vmem:[%s2631_s22] sm:$0xff]  ;;  %v369_v6 = vld [vmem:[%s2631_s22 + $0x10] sm:$0xff] }
  0x25   : > { %v372_v7 = vld [vmem:[%s2631_s22 + $0x28] sm:$0xff]  ;;  %v374_v8 = vld [vmem:[%s2631_s22 + $0x38] sm:$0xff]  ;;  %v399_v9 = vpack.c.bf16 %v369_v6, %v367_v5  ;;  %v371_v11 = vld [vmem:[%s2631_s22 + $0x20] sm:$0xff] }
  0x26   : > { %v402_v10 = vpack.c.bf16 %v374_v8, %v372_v7  ;;  %v373_v12 = vld [vmem:[%s2631_s22 + $0x30] sm:$0xff]  ;;  %v376_v13 = vld [vmem:[%s2631_s22 + $0x48] sm:$0xff]  ;;  %v378_v14 = vld [vmem:[%s2631_s22 + $0x58] sm:$0xff] }
  0x27   : > { %834 = vmatpush1.bf16.msra.mxu0 %v2359_v28  ;;  %947 = vmatpush1.bf16.msra.mxu1 %v2360_v29  ;;  %v401_v15 = vpack.c.bf16 %v373_v12, %v371_v11  ;;  %v404_v16 = vpack.c.bf16 %v378_v14, %v376_v13  ;;  %v375_v17 = vld [vmem:[%s2631_s22 + $0x40] sm:$0xff]  ;;  %v377_v18 = vld [vmem:[%s2631_s22 + $0x50] sm:$0xff]  ;;  %v380_v19 = vld [vmem:[%s2631_s22 + $0x68] sm:$0xff] }
  0x28   : > { %835 = vmatprep.subr.bf16.mxu0 %v2361_v30  ;;  %948 = vmatprep.subr.bf16.mxu1 %v2363_v31  ;;  %v382_v20 = vld [vmem:[%s2631_s22 + $0x78] sm:$0xff]  ;;  %v403_v21 = vpack.c.bf16 %v377_v18, %v375_v17  ;;  %v379_v23 = vld [vmem:[%s2631_s22 + $0x60] sm:$0xff]  ;;  %v381_v24 = vld [vmem:[%s2631_s22 + $0x70] sm:$0xff] }
  0x29   : > { %v406_v22 = vpack.c.bf16 %v382_v20, %v380_v19  ;;  %v384_v25 = vld [vmem:[%s2631_s22 + $0x88] sm:$0xff]  ;;  %v386_v26 = vld [vmem:[%s2631_s22 + $0x98] sm:$0xff]  ;;  %v405_v27 = vpack.c.bf16 %v381_v24, %v379_v23  ;;  %v383_v29 = vld [vmem:[%s2631_s22 + $0x80] sm:$0xff] }
  0x2a   : > { %v408_v28 = vpack.c.bf16 %v386_v26, %v384_v25  ;;  %v385_v30 = vld [vmem:[%s2631_s22 + $0x90] sm:$0xff]  ;;  %v388_v31 = vld [vmem:[%s2631_s22 + $0xa8] sm:$0xff] }
  0x2b   : > { %836 = vmatpush1.bf16.msra.mxu0 %v2365_v32  ;;  %949 = vmatpush1.bf16.msra.mxu1 %v2366_v33  ;;  %v390_v32 = vld [vmem:[%s2631_s22 + $0xb8] sm:$0xff]  ;;  %v407_v33 = vpack.c.bf16 %v385_v30, %v383_v29  ;;  %v397_v48 = vld [vmem:[%s2631_s22 + $0xf0] sm:$0xff] }
  0x2c   : > { %837 = vmatprep.subr.bf16.mxu0 %v2367_v34  ;;  %950 = vmatprep.subr.bf16.mxu1 %v2369_v35  ;;  %v410_v34 = vpack.c.bf16 %v390_v32, %v388_v31  ;;  %v387_v35 = vld [vmem:[%s2631_s22 + $0xa0] sm:$0xff] }
  0x2f   : > { %838 = vmatpush2.bf16.msra.mxu0 %v2371_v36  ;;  %951 = vmatpush2.bf16.msra.mxu1 %v2372_v37  ;;  %v389_v36 = vld [vmem:[%s2631_s22 + $0xb0] sm:$0xff]  ;;  %v392_v37 = vld [vmem:[%s2631_s22 + $0xc8] sm:$0xff] }
  0x30   : > { %839 = vmatprep.subr.bf16.mxu0 %v2373_v38  ;;  %952 = vmatprep.subr.bf16.mxu1 %v2375_v39  ;;  %v394_v38 = vld [vmem:[%s2631_s22 + $0xd8] sm:$0xff]  ;;  %v409_v39 = vpack.c.bf16 %v389_v36, %v387_v35 }
  0x33   : > { %840 = vmatpush2.bf16.msra.mxu0 %v2377_v40  ;;  %953 = vmatpush2.bf16.msra.mxu1 %v2378_v41  ;;  %v412_v40 = vpack.c.bf16 %v394_v38, %v392_v37  ;;  %v391_v41 = vld [vmem:[%s2631_s22 + $0xc0] sm:$0xff] }
  0x34   : > { %841 = vmatprep.subr.bf16.mxu0 %v2379_v42  ;;  %954 = vmatprep.subr.bf16.mxu1 %v2381_v43  ;;  %v393_v42 = vld [vmem:[%s2631_s22 + $0xd0] sm:$0xff]  ;;  %v396_v43 = vld [vmem:[%s2631_s22 + $0xe8] sm:$0xff] }
  0x37   : > { %842 = vmatpush2.bf16.msra.mxu0 %v2383_v44  ;;  %955 = vmatpush2.bf16.msra.mxu1 %v2384_v45  ;;  %v398_v44 = vld [vmem:[%s2631_s22 + $0xf8] sm:$0xff]  ;;  %v411_v45 = vpack.c.bf16 %v393_v42, %v391_v41 }
  0x38   : > { %843 = vmatprep.subr.bf16.mxu0 %v2385_v46  ;;  %956 = vmatprep.subr.bf16.mxu1 %v2387_v47  ;;  %v414_v46 = vpack.c.bf16 %v398_v44, %v396_v43  ;;  %v395_v47 = vld [vmem:[%s2631_s22 + $0xe0] sm:$0xff] }
  0x39   : > { %v413_v49 = vpack.c.bf16 %v397_v48, %v395_v47 }
  0x3b   : > { %844 = vmatpush2.bf16.msra.mxu0 %v2389_v50  ;;  %957 = vmatpush2.bf16.msra.mxu1 %v2390_v51  ;;  %v481_v50 = vlaneseq }
  0x3c   : > { %845 = vmatprep.subr.bf16.mxu0 %v2391_v53  ;;  %958 = vmatprep.subr.bf16.mxu1 %v2393_v54  ;;  %v479_v54 = vld [vmem:[%s3441_s2] sm:$0xf] }
  0x3d   : > { %v2725_v51 = vshrl.u32 %v481_v50, 7 }
  0x3f   : > { %846 = vmatpush2.bf16.msra.mxu0 %v2395_v55  ;;  %959 = vmatpush2.bf16.msra.mxu1 %v2396_v56  ;;  %3489 = vst [vmem:[#allocation4_spill] sm:$0xff] %v2725_v51  ;;  %v2728_v52 = vsub.s32 0, %v2725_v51  ;;  %v3449_v53 = vsub.s32 2, %v2725_v51  ;;  %v487_v55 = vsub.s32 1, %v2725_v51  ;;  %v495_v56 = vsub.s32 3, %v2725_v51 }
  0x40   : > { %847 = vmatprep.subr.bf16.mxu0 %v2397_v57  ;;  %960 = vmatprep.subr.bf16.mxu1 %v2399_v58 }
  0x41   : > { %3490 = vst [vmem:[#allocation5_spill] sm:$0xff] %v2728_v52  ;;  %v2737_v57 = vrot.slane %v479_v54, %v2728_v52  ;;  %v2741_v58 = vrot.slane %v479_v54, %v3449_v53 }
  0x43   : > { %848 = vmatpush2.bf16.msra.mxu0 %v2401_v59  ;;  %961 = vmatpush2.bf16.msra.mxu1 %v2402_v60  ;;  %v2743_v59 = vrot.slane %v479_v54, %v487_v55  ;;  %v2745_v60 = vrot.slane %v479_v54, %v495_v56 }
  0x44   : > { %849 = vmatprep.subr.bf16.mxu0 %v2403_v61  ;;  %962 = vmatprep.subr.bf16.mxu1 %v2405_v62 }
  0x47   : > { %850 = vmatpush2.bf16.msra.mxu0 %v2407_v63  ;;  %963 = vmatpush2.bf16.msra.mxu1 %v2408_v0  ;;  %v2750_v63 = vld [vmem:[%s3442_s3] sm:$0xf] }
  0x48   : > { %851 = vmatprep.subr.bf16.mxu0 %v2409_v1  ;;  %964 = vmatprep.subr.bf16.mxu1 %v2411_v2  ;;  %3491 = vst [vmem:[#allocation6_spill] sm:$0xff] %v2750_v63  ;;  %v1130_v2 = vrot.slane %v2750_v63, %v487_v55 }
  0x4b   : > { %852 = vmatpush2.bf16.msra.mxu0 %v2413_v3  ;;  %965 = vmatpush2.bf16.msra.mxu1 %v2414_v4  ;;  %v1138_v3 = vrot.slane %v2750_v63, %v495_v56 }
  0x4e   : > { %854 = vmatmul.mubr.bf16.vlgmr.msra.gmra.mxu0 %v399_v9  ;;  %967 = vmatmul.mubr.bf16.vlgmr.msra.gmra.mxu1 %v399_v9 }
  0x4f   : > { %863 = vmatprep.mubr.bf16.mxu0 %v402_v10  ;;  %976 = vmatprep.mubr.bf16.mxu1 %v402_v10 }
  0x56   : > { %864 = vmatmul.mubr.bf16.gmra.mxu0 %v401_v15  ;;  %977 = vmatmul.mubr.bf16.gmra.mxu1 %v401_v15 }
  0x57   : > { %873 = vmatprep.mubr.bf16.mxu0 %v404_v16  ;;  %986 = vmatprep.mubr.bf16.mxu1 %v404_v16 }
  0x5e   : > { %874 = vmatmul.mubr.bf16.gmra.mxu0 %v403_v21  ;;  %987 = vmatmul.mubr.bf16.gmra.mxu1 %v403_v21 }
  0x5f   : > { %883 = vmatprep.mubr.bf16.mxu0 %v406_v22  ;;  %996 = vmatprep.mubr.bf16.mxu1 %v406_v22 }
  0x66   : > { %884 = vmatmul.mubr.bf16.gmra.mxu0 %v405_v27  ;;  %997 = vmatmul.mubr.bf16.gmra.mxu1 %v405_v27 }
  0x67   : > { %893 = vmatprep.mubr.bf16.mxu0 %v408_v28  ;;  %1006 = vmatprep.mubr.bf16.mxu1 %v408_v28 }
  0x6e   : > { %894 = vmatmul.mubr.bf16.gmra.mxu0 %v407_v33  ;;  %1007 = vmatmul.mubr.bf16.gmra.mxu1 %v407_v33 }
  0x6f   : > { %903 = vmatprep.mubr.bf16.mxu0 %v410_v34  ;;  %1016 = vmatprep.mubr.bf16.mxu1 %v410_v34 }
  0x76   : > { %904 = vmatmul.mubr.bf16.gmra.mxu0 %v409_v39  ;;  %1017 = vmatmul.mubr.bf16.gmra.mxu1 %v409_v39 }
  0x77   : > { %913 = vmatprep.mubr.bf16.mxu0 %v412_v40  ;;  %1026 = vmatprep.mubr.bf16.mxu1 %v412_v40 }
  0x7e   : > { %914 = vmatmul.mubr.bf16.gmra.mxu0 %v411_v45  ;;  %1027 = vmatmul.mubr.bf16.gmra.mxu1 %v411_v45 }
  0x7f   : > { %923 = vmatprep.mubr.bf16.mxu0 %v414_v46  ;;  %1036 = vmatprep.mubr.bf16.mxu1 %v414_v46 }
  0x86   : > { %924 = vmatmul.mubr.bf16.gmra.mxu0 %v413_v49  ;;  %1037 = vmatmul.mubr.bf16.gmra.mxu1 %v413_v49 }
  0x87   : > { %1207 = vmatprep.mubr.f32.mxu0 %v1130_v2  ;;  %1277 = vmatprep.mubr.f32.mxu1 %v1138_v3 }
 0x10e   : > { %v855_v61 = vpop.f32.mrf.mxu0  ;;  %v968_v62 = vpop.f32.mrf.mxu1 }
 0x10f   : > { %v856_v0 = vadd.f32 %v855_v61, %v2737_v57  ;;  %v969_v1 = vadd.f32 %v968_v62, %v2741_v58 }
 0x110   : > { %v857_v4 = vpop.f32.mrf.mxu0  ;;  %v970_v5 = vpop.f32.mrf.mxu1 }
 0x111   : > { %v2756_v6 = vmax.f32 %v969_v1, 0.0  ;;  %v858_v7 = vadd.f32 %v857_v4, %v2743_v59  ;;  %v971_v8 = vadd.f32 %v970_v5, %v2745_v60  ;;  %v2760_v11 = vmax.f32 %v856_v0, 0.0 }
 0x112   : > { %v859_v9 = vpop.f32.mrf.mxu0  ;;  %v972_v10 = vpop.f32.mrf.mxu1 }
 0x113   : > { %3492 = vst [vmem:[#allocation7_spill] sm:$0xff] %v2756_v6  ;;  %3493 = vst [vmem:[#allocation8_spill] sm:$0xff] %v2760_v11  ;;  %v2762_v12 = vmax.f32 %v858_v7, 0.0  ;;  %v2764_v13 = vmax.f32 %v971_v8, 0.0  ;;  %v860_v14 = vadd.f32 %v859_v9, %v2737_v57  ;;  %v973_v15 = vadd.f32 %v972_v10, %v2741_v58 }
 0x114   : > { %v861_v16 = vpop.f32.mrf.mxu0  ;;  %v974_v17 = vpop.f32.mrf.mxu1 }
 0x115   : > { %3494 = vst [vmem:[#allocation9_spill] sm:$0xff] %v2762_v12  ;;  %3495 = vst [vmem:[#allocation10_spill] sm:$0xff] %v2764_v13  ;;  %v2117_v18 = vpack.c.bf16 %v2762_v12, %v2760_v11  ;;  %v2118_v19 = vpack.c.bf16 %v2764_v13, %v2756_v6  ;;  %v862_v20 = vadd.f32 %v861_v16, %v2743_v59  ;;  %v2785_v26 = vmax.f32 %v860_v14, 0.0 }
 0x116   : > { %v975_v21 = vadd.f32 %v974_v17, %v2745_v60  ;;  %v865_v22 = vpop.f32.mrf.mxu0  ;;  %v978_v23 = vpop.f32.mrf.mxu1  ;;  %v2787_v27 = vmax.f32 %v973_v15, 0.0 }
 0x117   : > { %1836 = vst [vmem:[%s2771_s12] sm:$0xff] %v2117_v18  ;;  %1837 = vst [vmem:[%s2771_s12 + $0x8] sm:$0xff] %v2118_v19  ;;  %v866_v24 = vadd.f32 %v865_v22, %v2737_v57  ;;  %v979_v25 = vadd.f32 %v978_v23, %v2741_v58  ;;  %v2789_v28 = vmax.f32 %v862_v20, 0.0 }
 0x118   : > { %3496 = vst [vmem:[#allocation11_spill] sm:$0xff] %v2785_v26  ;;  %3497 = vst [vmem:[#allocation12_spill] sm:$0xff] %v2787_v27  ;;  %v2791_v29 = vmax.f32 %v975_v21, 0.0  ;;  %v867_v30 = vpop.f32.mrf.mxu0  ;;  %v980_v31 = vpop.f32.mrf.mxu1 }
 0x119   : > { %3498 = vst [vmem:[#allocation13_spill] sm:$0xff] %v2789_v28  ;;  %v2793_v32 = vmax.f32 %v979_v25, 0.0  ;;  %v868_v33 = vadd.f32 %v867_v30, %v2743_v59  ;;  %v981_v34 = vadd.f32 %v980_v31, %v2745_v60  ;;  %v2119_v35 = vpack.c.bf16 %v2789_v28, %v2785_v26 }
 0x11a   : > { %3499 = vst [vmem:[#allocation14_spill] sm:$0xff] %v2791_v29  ;;  %v2120_v36 = vpack.c.bf16 %v2791_v29, %v2787_v27  ;;  %v869_v37 = vpop.f32.mrf.mxu0  ;;  %v982_v38 = vpop.f32.mrf.mxu1  ;;  %v2801_v39 = vmax.f32 %v866_v24, 0.0 }
 0x11b   : > { %3500 = vst [vmem:[#allocation15_spill] sm:$0xff] %v2793_v32  ;;  %v2803_v40 = vmax.f32 %v868_v33, 0.0  ;;  %v2805_v41 = vmax.f32 %v981_v34, 0.0  ;;  %1838 = vst [vmem:[%s2771_s12 + $0x10] sm:$0xff] %v2119_v35  ;;  %v870_v42 = vadd.f32 %v869_v37, %v2737_v57  ;;  %v983_v43 = vadd.f32 %v982_v38, %v2741_v58 }
 0x11c   : > { %3501 = vst [vmem:[#allocation16_spill] sm:$0xff] %v2801_v39  ;;  %1839 = vst [vmem:[%s2771_s12 + $0x18] sm:$0xff] %v2120_v36  ;;  %v871_v44 = vpop.f32.mrf.mxu0  ;;  %v984_v45 = vpop.f32.mrf.mxu1 }
 0x11d   : > { %3502 = vst [vmem:[#allocation17_spill] sm:$0xff] %v2803_v40  ;;  %3503 = vst [vmem:[#allocation18_spill] sm:$0xff] %v2805_v41  ;;  %v2121_v46 = vpack.c.bf16 %v2803_v40, %v2801_v39  ;;  %v2122_v47 = vpack.c.bf16 %v2805_v41, %v2793_v32  ;;  %v872_v48 = vadd.f32 %v871_v44, %v2743_v59  ;;  %v2821_v61 = vmax.f32 %v870_v42, 0.0 }
 0x11e   : > { %v985_v49 = vadd.f32 %v984_v45, %v2745_v60  ;;  %v875_v50 = vpop.f32.mrf.mxu0  ;;  %v988_v54 = vpop.f32.mrf.mxu1  ;;  %v2823_v62 = vmax.f32 %v983_v43, 0.0 }
 0x11f   : > { %1840 = vst [vmem:[%s2771_s12 + $0x20] sm:$0xff] %v2121_v46  ;;  %1841 = vst [vmem:[%s2771_s12 + $0x28] sm:$0xff] %v2122_v47  ;;  %v876_v55 = vadd.f32 %v875_v50, %v2737_v57  ;;  %v989_v56 = vadd.f32 %v988_v54, %v2741_v58  ;;  %v2825_v0 = vmax.f32 %v872_v48, 0.0 }
 0x120   : > { %v2827_v1 = vmax.f32 %v985_v49, 0.0  ;;  %v877_v2 = vpop.f32.mrf.mxu0  ;;  %v990_v3 = vpop.f32.mrf.mxu1 }
 0x121   : > { %v2829_v4 = vmax.f32 %v989_v56, 0.0  ;;  %v878_v5 = vadd.f32 %v877_v2, %v2743_v59  ;;  %v991_v7 = vadd.f32 %v990_v3, %v2745_v60  ;;  %v2123_v8 = vpack.c.bf16 %v2825_v0, %v2821_v61 }
 0x122   : > { %v2124_v9 = vpack.c.bf16 %v2827_v1, %v2823_v62  ;;  %v879_v10 = vpop.f32.mrf.mxu0  ;;  %v992_v14 = vpop.f32.mrf.mxu1  ;;  %v2837_v15 = vmax.f32 %v876_v55, 0.0 }
 0x123   : > { %v2839_v16 = vmax.f32 %v878_v5, 0.0  ;;  %v2841_v17 = vmax.f32 %v991_v7, 0.0  ;;  %1842 = vst [vmem:[%s2771_s12 + $0x30] sm:$0xff] %v2123_v8  ;;  %v880_v18 = vadd.f32 %v879_v10, %v2737_v57  ;;  %v993_v19 = vadd.f32 %v992_v14, %v2741_v58 }
 0x124   : > { %1843 = vst [vmem:[%s2771_s12 + $0x38] sm:$0xff] %v2124_v9  ;;  %v881_v20 = vpop.f32.mrf.mxu0  ;;  %v994_v21 = vpop.f32.mrf.mxu1 }
 0x125   : > { %v2125_v22 = vpack.c.bf16 %v2839_v16, %v2837_v15  ;;  %v2126_v23 = vpack.c.bf16 %v2841_v17, %v2829_v4  ;;  %v882_v24 = vadd.f32 %v881_v20, %v2743_v59  ;;  %v995_v25 = vadd.f32 %v994_v21, %v2745_v60 }
 0x126   : > { %v885_v30 = vpop.f32.mrf.mxu0  ;;  %v998_v31 = vpop.f32.mrf.mxu1  ;;  %v2857_v35 = vmax.f32 %v880_v18, 0.0  ;;  %v2859_v36 = vmax.f32 %v993_v19, 0.0 }
 0x127   : > { %1844 = vst [vmem:[%s2771_s12 + $0x40] sm:$0xff] %v2125_v22  ;;  %1845 = vst [vmem:[%s2771_s12 + $0x48] sm:$0xff] %v2126_v23  ;;  %v886_v33 = vadd.f32 %v885_v30, %v2737_v57  ;;  %v999_v34 = vadd.f32 %v998_v31, %v2741_v58  ;;  %v2861_v37 = vmax.f32 %v882_v24, 0.0  ;;  %v2863_v38 = vmax.f32 %v995_v25, 0.0 }
 0x128   : > { %v887_v42 = vpop.f32.mrf.mxu0  ;;  %v1000_v43 = vpop.f32.mrf.mxu1 }
 0x129   : > { %v2865_v44 = vmax.f32 %v999_v34, 0.0  ;;  %v888_v45 = vadd.f32 %v887_v42, %v2743_v59  ;;  %v1001_v46 = vadd.f32 %v1000_v43, %v2745_v60  ;;  %v2127_v47 = vpack.c.bf16 %v2861_v37, %v2857_v35 }
 0x12a   : > { %v2128_v48 = vpack.c.bf16 %v2863_v38, %v2859_v36  ;;  %v889_v49 = vpop.f32.mrf.mxu0  ;;  %v1002_v50 = vpop.f32.mrf.mxu1  ;;  %v2873_v54 = vmax.f32 %v886_v33, 0.0 }
 0x12b   : > { %v2875_v55 = vmax.f32 %v888_v45, 0.0  ;;  %v2877_v56 = vmax.f32 %v1001_v46, 0.0  ;;  %1846 = vst [vmem:[%s2771_s12 + $0x50] sm:$0xff] %v2127_v47  ;;  %v890_v2 = vadd.f32 %v889_v49, %v2737_v57  ;;  %v1003_v3 = vadd.f32 %v1002_v50, %v2741_v58 }
 0x12c   : > { %1847 = vst [vmem:[%s2771_s12 + $0x58] sm:$0xff] %v2128_v48  ;;  %v891_v5 = vpop.f32.mrf.mxu0  ;;  %v1004_v7 = vpop.f32.mrf.mxu1 }
 0x12d   : > { %v2129_v8 = vpack.c.bf16 %v2875_v55, %v2873_v54  ;;  %v2130_v9 = vpack.c.bf16 %v2877_v56, %v2865_v44  ;;  %v892_v10 = vadd.f32 %v891_v5, %v2743_v59  ;;  %v1005_v14 = vadd.f32 %v1004_v7, %v2745_v60 }
 0x12e   : > { %v895_v18 = vpop.f32.mrf.mxu0  ;;  %v1008_v19 = vpop.f32.mrf.mxu1  ;;  %v2893_v22 = vmax.f32 %v890_v2, 0.0  ;;  %v2895_v23 = vmax.f32 %v1003_v3, 0.0 }
 0x12f   : > { %1848 = vst [vmem:[%s2771_s12 + $0x60] sm:$0xff] %v2129_v8  ;;  %1849 = vst [vmem:[%s2771_s12 + $0x68] sm:$0xff] %v2130_v9  ;;  %v896_v20 = vadd.f32 %v895_v18, %v2737_v57  ;;  %v1009_v21 = vadd.f32 %v1008_v19, %v2741_v58  ;;  %v2897_v24 = vmax.f32 %v892_v10, 0.0  ;;  %v2899_v25 = vmax.f32 %v1005_v14, 0.0 }
 0x130   : > { %v897_v30 = vpop.f32.mrf.mxu0  ;;  %v1010_v31 = vpop.f32.mrf.mxu1 }
 0x131   : > { %v2901_v33 = vmax.f32 %v1009_v21, 0.0  ;;  %v898_v34 = vadd.f32 %v897_v30, %v2743_v59  ;;  %v1011_v42 = vadd.f32 %v1010_v31, %v2745_v60  ;;  %v2131_v43 = vpack.c.bf16 %v2897_v24, %v2893_v22 }
 0x132   : > { %v2132_v45 = vpack.c.bf16 %v2899_v25, %v2895_v23  ;;  %v899_v46 = vpop.f32.mrf.mxu0  ;;  %v1012_v47 = vpop.f32.mrf.mxu1  ;;  %v2909_v48 = vmax.f32 %v896_v20, 0.0 }
 0x133   : > { %v2911_v49 = vmax.f32 %v898_v34, 0.0  ;;  %v2913_v50 = vmax.f32 %v1011_v42, 0.0  ;;  %1850 = vst [vmem:[%s2771_s12 + $0x70] sm:$0xff] %v2131_v43  ;;  %v900_v2 = vadd.f32 %v899_v46, %v2737_v57  ;;  %v1013_v3 = vadd.f32 %v1012_v47, %v2741_v58 }
 0x134   : > { %1851 = vst [vmem:[%s2771_s12 + $0x78] sm:$0xff] %v2132_v45  ;;  %v901_v5 = vpop.f32.mrf.mxu0  ;;  %v1014_v7 = vpop.f32.mrf.mxu1 }
 0x135   : > { %v2133_v8 = vpack.c.bf16 %v2911_v49, %v2909_v48  ;;  %v2134_v9 = vpack.c.bf16 %v2913_v50, %v2901_v33  ;;  %v902_v10 = vadd.f32 %v901_v5, %v2743_v59  ;;  %v1015_v14 = vadd.f32 %v1014_v7, %v2745_v60 }
 0x136   : > { %v905_v18 = vpop.f32.mrf.mxu0  ;;  %v1018_v19 = vpop.f32.mrf.mxu1  ;;  %v2929_v30 = vmax.f32 %v900_v2, 0.0  ;;  %v2931_v31 = vmax.f32 %v1013_v3, 0.0 }
 0x137   : > { %1852 = vst [vmem:[%s2771_s12 + $0x80] sm:$0xff] %v2133_v8  ;;  %1853 = vst [vmem:[%s2771_s12 + $0x88] sm:$0xff] %v2134_v9  ;;  %v906_v20 = vadd.f32 %v905_v18, %v2737_v57  ;;  %v1019_v21 = vadd.f32 %v1018_v19, %v2741_v58  ;;  %v2933_v34 = vmax.f32 %v902_v10, 0.0  ;;  %v2935_v42 = vmax.f32 %v1015_v14, 0.0 }
 0x138   : > { %v907_v43 = vpop.f32.mrf.mxu0  ;;  %v1020_v45 = vpop.f32.mrf.mxu1 }
 0x139   : > { %v2937_v46 = vmax.f32 %v1019_v21, 0.0  ;;  %v908_v47 = vadd.f32 %v907_v43, %v2743_v59  ;;  %v1021_v5 = vadd.f32 %v1020_v45, %v2745_v60  ;;  %v2135_v2 = vpack.c.bf16 %v2933_v34, %v2929_v30 }
 0x13a   : > { %v2136_v3 = vpack.c.bf16 %v2935_v42, %v2931_v31  ;;  %v909_v7 = vpop.f32.mrf.mxu0  ;;  %v1022_v8 = vpop.f32.mrf.mxu1  ;;  %v2945_v9 = vmax.f32 %v906_v20, 0.0 }
 0x13b   : > { %v2947_v10 = vmax.f32 %v908_v47, 0.0  ;;  %v2949_v14 = vmax.f32 %v1021_v5, 0.0  ;;  %1854 = vst [vmem:[%s2771_s12 + $0x90] sm:$0xff] %v2135_v2  ;;  %v910_v18 = vadd.f32 %v909_v7, %v2737_v57  ;;  %v1023_v19 = vadd.f32 %v1022_v8, %v2741_v58 }
 0x13c   : > { %1855 = vst [vmem:[%s2771_s12 + $0x98] sm:$0xff] %v2136_v3  ;;  %v911_v21 = vpop.f32.mrf.mxu0  ;;  %v1024_v43 = vpop.f32.mrf.mxu1 }
 0x13d   : > { %v2137_v45 = vpack.c.bf16 %v2947_v10, %v2945_v9  ;;  %v2138_v20 = vpack.c.bf16 %v2949_v14, %v2937_v46  ;;  %v912_v53 = vadd.f32 %v911_v21, %v2743_v59  ;;  %v1025_v47 = vadd.f32 %v1024_v43, %v2745_v60 }
 0x13e   : > { %v915_v5 = vpop.f32.mrf.mxu0  ;;  %v1028_v6 = vpop.f32.mrf.mxu1  ;;  %v2965_v7 = vmax.f32 %v910_v18, 0.0  ;;  %v2967_v8 = vmax.f32 %v1023_v19, 0.0 }
 0x13f   : > { %1856 = vst [vmem:[%s2771_s12 + $0xa0] sm:$0xff] %v2137_v45  ;;  %1857 = vst [vmem:[%s2771_s12 + $0xa8] sm:$0xff] %v2138_v20  ;;  %v916_v2 = vadd.f32 %v915_v5, %v2737_v57  ;;  %v1029_v3 = vadd.f32 %v1028_v6, %v2741_v58  ;;  %v2969_v11 = vmax.f32 %v912_v53, 0.0  ;;  %v2971_v51 = vmax.f32 %v1025_v47, 0.0 }
 0x140   : > { %v917_v21 = vpop.f32.mrf.mxu0  ;;  %v1030_v43 = vpop.f32.mrf.mxu1 }
 0x141   : > { %v2973_v63 = vmax.f32 %v1029_v3, 0.0  ;;  %v918_v45 = vadd.f32 %v917_v21, %v2743_v59  ;;  %v1031_v20 = vadd.f32 %v1030_v43, %v2745_v60  ;;  %v2139_v6 = vpack.c.bf16 %v2969_v11, %v2965_v7 }
 0x142   : > { %v2140_v18 = vpack.c.bf16 %v2971_v51, %v2967_v8  ;;  %v919_v19 = vpop.f32.mrf.mxu0  ;;  %v1032_v5 = vpop.f32.mrf.mxu1  ;;  %v2981_v53 = vmax.f32 %v916_v2, 0.0 }
 0x143   : > { %v2983_v47 = vmax.f32 %v918_v45, 0.0  ;;  %v2985_v3 = vmax.f32 %v1031_v20, 0.0  ;;  %1858 = vst [vmem:[%s2771_s12 + $0xb0] sm:$0xff] %v2139_v6  ;;  %v920_v21 = vadd.f32 %v919_v19, %v2737_v57  ;;  %v1033_v43 = vadd.f32 %v1032_v5, %v2741_v58 }
 0x144   : > { %1859 = vst [vmem:[%s2771_s12 + $0xb8] sm:$0xff] %v2140_v18  ;;  %v921_v52 = vpop.f32.mrf.mxu0  ;;  %v1034_v13 = vpop.f32.mrf.mxu1 }
 0x145   : > { %v2141_v12 = vpack.c.bf16 %v2983_v47, %v2981_v53  ;;  %v2142_v2 = vpack.c.bf16 %v2985_v3, %v2973_v63  ;;  %v922_v27 = vadd.f32 %v921_v52, %v2743_v59  ;;  %v1035_v45 = vadd.f32 %v1034_v13, %v2745_v60 }
 0x146   : > { %v925_v20 = vpop.f32.mrf.mxu0  ;;  %v1038_v26 = vpop.f32.mrf.mxu1  ;;  %v3001_v19 = vmax.f32 %v920_v21, 0.0  ;;  %v3003_v5 = vmax.f32 %v1033_v43, 0.0 }
 0x147   : > { %1860 = vst [vmem:[%s2771_s12 + $0xc0] sm:$0xff] %v2141_v12  ;;  %1861 = vst [vmem:[%s2771_s12 + $0xc8] sm:$0xff] %v2142_v2  ;;  %v926_v6 = vadd.f32 %v925_v20, %v2737_v57  ;;  %v1039_v18 = vadd.f32 %v1038_v26, %v2741_v58  ;;  %v3005_v29 = vmax.f32 %v922_v27, 0.0  ;;  %v3007_v28 = vmax.f32 %v1035_v45, 0.0 }
 0x148   : > { %3504 = vst [vmem:[#allocation19_spill] sm:$0xff] %v3001_v19  ;;  %3505 = vst [vmem:[#allocation20_spill] sm:$0xff] %v3003_v5  ;;  %v927_v52 = vpop.f32.mrf.mxu0  ;;  %v1040_v13 = vpop.f32.mrf.mxu1 }
 0x149   : > { %v3009_v32 = vmax.f32 %v1039_v18, 0.0  ;;  %v928_v12 = vadd.f32 %v927_v52, %v2743_v59  ;;  %v1041_v2 = vadd.f32 %v1040_v13, %v2745_v60  ;;  %v2143_v26 = vpack.c.bf16 %v3005_v29, %v3001_v19 }
 0x14a   : > { %v2144_v21 = vpack.c.bf16 %v3007_v28, %v3003_v5  ;;  %v929_v43 = vpop.f32.mrf.mxu0  ;;  %v1042_v27 = vpop.f32.mrf.mxu1  ;;  %v3017_v45 = vmax.f32 %v926_v6, 0.0 }
 0x14b   : > { %3506 = vst [vmem:[#allocation21_spill] sm:$0xff] %v3009_v32  ;;  %v3019_v20 = vmax.f32 %v928_v12, 0.0  ;;  %v3021_v18 = vmax.f32 %v1041_v2, 0.0  ;;  %1862 = vst [vmem:[%s2771_s12 + $0xd0] sm:$0xff] %v2143_v26  ;;  %v930_v52 = vadd.f32 %v929_v43, %v2737_v57  ;;  %v1043_v13 = vadd.f32 %v1042_v27, %v2741_v58 }
 0x14c   : > { %3507 = vst [vmem:[#allocation22_spill] sm:$0xff] %v3017_v45  ;;  %1863 = vst [vmem:[%s2771_s12 + $0xd8] sm:$0xff] %v2144_v21  ;;  %v931_v39 = vpop.f32.mrf.mxu0  ;;  %v1044_v41 = vpop.f32.mrf.mxu1 }
 0x14d   : > { %3508 = vst [vmem:[#allocation23_spill] sm:$0xff] %v3019_v20  ;;  %3509 = vst [vmem:[#allocation24_spill] sm:$0xff] %v3021_v18  ;;  %v2145_v40 = vpack.c.bf16 %v3019_v20, %v3017_v45  ;;  %v2146_v6 = vpack.c.bf16 %v3021_v18, %v3009_v32  ;;  %v932_v12 = vadd.f32 %v931_v39, %v2743_v59  ;;  %v3035_v26 = vmax.f32 %v930_v52, 0.0  ;;  %v1112_v59 = vld [vmem:[#allocation2] sm:$0x1]  ;;  %v3514_v39 = vld [vmem:[#allocation17_spill] sm:$0xff] }
 0x14e   : > { %v1045_v2 = vadd.f32 %v1044_v41, %v2745_v60  ;;  %v3037_v57 = vmax.f32 %v1043_v13, 0.0  ;;  %v2423_v60 = vmov 0   ;;  %v3516_v41 = vld [vmem:[#allocation16_spill] sm:$0xff]  ;;  %v3517_v52 = vld [vmem:[#allocation15_spill] sm:$0xff]  ;;  %v3518_v13 = vld [vmem:[#allocation13_spill] sm:$0xff] }
 0x14f   : > { %1864 = vst [vmem:[%s2771_s12 + $0xe0] sm:$0xff] %v2145_v40  ;;  %1865 = vst [vmem:[%s2771_s12 + $0xe8] sm:$0xff] %v2146_v6  ;;  %v3039_v58 = vmax.f32 %v932_v12, 0.0  ;;  %2318 = vset.pattern.permute.xlu0 %v2423_v60  ;;  %v3515_v40 = vld [vmem:[#allocation18_spill] sm:$0xff]  ;;  %v3520_v12 = vld [vmem:[#allocation11_spill] sm:$0xff] }
 0x150   : > { %3510 = vst [vmem:[#allocation25_spill] sm:$0xff] %v3035_v26  ;;  %3511 = vst [vmem:[#allocation26_spill] sm:$0xff] %v3037_v57  ;;  %v3041_v21 = vmax.f32 %v1045_v2, 0.0  ;;  %1115 = vperm.xlu0 %2318, %v1112_v59   ;;  %v3519_v6 = vld [vmem:[#allocation14_spill] sm:$0xff]  ;;  %v3521_v2 = vld [vmem:[#allocation12_spill] sm:$0xff] }
 0x151   : > { %3512 = vst [vmem:[#allocation27_spill] sm:$0xff] %v3039_v58  ;;  %v2147_v43 = vpack.c.bf16 %v3039_v58, %v3035_v26  ;;  %1143 = vmatprep.subr.mxu0 %v3039_v58  ;;  %v1314_v59 = vld [vmem:[%s3444_s5 + $0xf8] sm:$0xff]  ;;  %v3526_v58 = vld [vmem:[#allocation4_spill] sm:$0xff] }
 0x152   : > { %3513 = vst [vmem:[#allocation28_spill] sm:$0xff] %v3041_v21  ;;  %v2148_v27 = vpack.c.bf16 %v3041_v21, %v3037_v57  ;;  %1213 = vmatprep.subr.mxu1 %v3041_v21  ;;  %1144 = vmatpush1.xpose.msra.mxu0 %v3035_v26  ;;  %v1346_v60 = vld [vmem:[%s3444_s5 + $0x1f8] sm:$0xff] }
 0x153   : > { %1214 = vmatpush1.xpose.msra.mxu1 %v3037_v57  ;;  %1866 = vst [vmem:[%s2771_s12 + $0xf0] sm:$0xff] %v2147_v43  ;;  %1145 = vmatprep.subr.mxu0 %v3019_v20  ;;  %v3522_v43 = vld [vmem:[#allocation9_spill] sm:$0xff]  ;;  %v3525_v26 = vld [vmem:[#allocation6_spill] sm:$0xff]  ;;  %v3529_v20 = vld [vmem:[#allocation7_spill] sm:$0xff] }
 0x154   : > { %1867 = vst [vmem:[%s2771_s12 + $0xf8] sm:$0xff] %v2148_v27  ;;  %1215 = vmatprep.subr.mxu1 %v3021_v18  ;;  %v3523_v27 = vld [vmem:[#allocation10_spill] sm:$0xff]  ;;  %v3524_v57 = vld [vmem:[#allocation5_spill] sm:$0xff]  ;;  %v3528_v18 = vld [vmem:[#allocation8_spill] sm:$0xff] }
 0x155   : > { %v1126_v21 = vrot.slane %v3525_v26, %v3524_v57 }
 0x156   : > { %1146 = vmatpush1.xpose.msra.mxu0 %v3017_v45 }
 0x157   : > { %1216 = vmatpush1.xpose.msra.mxu1 %v3009_v32  ;;  %1147 = vmatprep.subr.mxu0 %v3005_v29  ;;  %v3527_v32 = vsub.s32 2, %v3526_v58  ;;  %v1297_v58 = vld [vmem:[%s3444_s5 + $0x70] sm:$0xff] }
 0x158   : > { %1217 = vmatprep.subr.mxu1 %v3007_v28 }
 0x159   : > { %v1134_v45 = vrot.slane %v3525_v26, %v3527_v32  ;;  %v1313_v32 = vld [vmem:[%s3444_s5 + $0xf0] sm:$0xff] }
 0x15a   : > { %1148 = vmatpush1.xpose.msra.mxu0 %v3001_v19  ;;  %v1330_v19 = vld [vmem:[%s3444_s5 + $0x178] sm:$0xff]  ;;  %v1345_v26 = vld [vmem:[%s3444_s5 + $0x1f0] sm:$0xff] }
 0x15b   : > { %1218 = vmatpush1.xpose.msra.mxu1 %v3003_v5  ;;  %1149 = vmatprep.subr.mxu0 %v2983_v47  ;;  %v1298_v5 = vld [vmem:[%s3444_s5 + $0x78] sm:$0xff] }
 0x15c   : > { %1219 = vmatprep.subr.mxu1 %v2985_v3 }
 0x15e   : > { %1150 = vmatpush1.xpose.msra.mxu0 %v2981_v53 }
 0x15f   : > { %1220 = vmatpush1.xpose.msra.mxu1 %v2973_v63  ;;  %1151 = vmatprep.subr.mxu0 %v2969_v11 }
 0x160   : > { %1221 = vmatprep.subr.mxu1 %v2971_v51 }
 0x162   : > { %1152 = vmatpush1.xpose.msra.mxu0 %v2965_v7 }
 0x163   : > { %1222 = vmatpush1.xpose.msra.mxu1 %v2967_v8  ;;  %1153 = vmatprep.subr.mxu0 %v2947_v10 }
 0x164   : > { %1223 = vmatprep.subr.mxu1 %v2949_v14 }
 0x166   : > { %1154 = vmatpush1.xpose.msra.mxu0 %v2945_v9 }
 0x167   : > { %1224 = vmatpush1.xpose.msra.mxu1 %v2937_v46  ;;  %1155 = vmatprep.subr.mxu0 %v2933_v34 }
 0x168   : > { %1225 = vmatprep.subr.mxu1 %v2935_v42 }
 0x16a   : > { %1156 = vmatpush1.xpose.msra.mxu0 %v2929_v30 }
 0x16b   : > { %1226 = vmatpush1.xpose.msra.mxu1 %v2931_v31  ;;  %1157 = vmatprep.subr.mxu0 %v2911_v49 }
 0x16c   : > { %1227 = vmatprep.subr.mxu1 %v2913_v50 }
 0x16e   : > { %1158 = vmatpush1.xpose.msra.mxu0 %v2909_v48 }
 0x16f   : > { %1228 = vmatpush1.xpose.msra.mxu1 %v2901_v33  ;;  %1159 = vmatprep.subr.mxu0 %v2897_v24 }
 0x170   : > { %1229 = vmatprep.subr.mxu1 %v2899_v25 }
 0x172   : > { %1160 = vmatpush1.xpose.msra.mxu0 %v2893_v22 }
 0x173   : > { %1230 = vmatpush1.xpose.msra.mxu1 %v2895_v23  ;;  %1161 = vmatprep.subr.mxu0 %v2875_v55 }
 0x174   : > { %1231 = vmatprep.subr.mxu1 %v2877_v56 }
 0x176   : > { %1162 = vmatpush1.xpose.msra.mxu0 %v2873_v54 }
 0x177   : > { %1232 = vmatpush1.xpose.msra.mxu1 %v2865_v44  ;;  %1163 = vmatprep.subr.mxu0 %v2861_v37 }
 0x178   : > { %1233 = vmatprep.subr.mxu1 %v2863_v38 }
 0x17a   : > { %1164 = vmatpush1.xpose.msra.mxu0 %v2857_v35 }
 0x17b   : > { %1234 = vmatpush1.xpose.msra.mxu1 %v2859_v36  ;;  %1165 = vmatprep.subr.mxu0 %v2839_v16 }
 0x17c   : > { %1235 = vmatprep.subr.mxu1 %v2841_v17 }
 0x17e   : > { %1166 = vmatpush1.xpose.msra.mxu0 %v2837_v15 }
 0x17f   : > { %1236 = vmatpush1.xpose.msra.mxu1 %v2829_v4  ;;  %1167 = vmatprep.subr.mxu0 %v2825_v0 }
 0x180   : > { %1237 = vmatprep.subr.mxu1 %v2827_v1 }
 0x182   : > { %1168 = vmatpush1.xpose.msra.mxu0 %v2821_v61 }
 0x183   : > { %1238 = vmatpush1.xpose.msra.mxu1 %v2823_v62  ;;  %1169 = vmatprep.subr.mxu0 %v3514_v39 }
 0x184   : > { %1239 = vmatprep.subr.mxu1 %v3515_v40 }
 0x186   : > { %1170 = vmatpush1.xpose.msra.mxu0 %v3516_v41 }
 0x187   : > { %1240 = vmatpush1.xpose.msra.mxu1 %v3517_v52  ;;  %1171 = vmatprep.subr.mxu0 %v3518_v13 }
 0x188   : > { %1241 = vmatprep.subr.mxu1 %v3519_v6 }
 0x18a   : > { %1172 = vmatpush1.xpose.msra.mxu0 %v3520_v12 }
 0x18b   : > { %1242 = vmatpush1.xpose.msra.mxu1 %v3521_v2  ;;  %1173 = vmatprep.subr.mxu0 %v3522_v43 }
 0x18c   : > { %1243 = vmatprep.subr.mxu1 %v3523_v27 }
 0x18e   : > { %1174 = vmatpush1.xpose.msra.mxu0 %v3528_v18 }
 0x18f   : > { %1244 = vmatpush1.xpose.msra.mxu1 %v3529_v20  ;;  %2149 = vmatprep.subr.mxu0 %v1314_v59  ;;  %v1343_v59 = vld [vmem:[%s3444_s5 + $0x1e0] sm:$0xff] }
 0x190   : > { %2229 = vmatprep.subr.mxu1 %v1346_v60  ;;  %v1295_v60 = vld [vmem:[%s3444_s5 + $0x60] sm:$0xff] }
 0x191   : > { %1208 = vmatmul.mubr.f32.vlgmr.msra.gmra.mxu0 %v1126_v21  ;;  %v1329_v21 = vld [vmem:[%s3444_s5 + $0x170] sm:$0xff] }
 0x192   : > { %1278 = vmatmul.mubr.f32.vlgmr.msra.gmra.mxu1 %v1134_v45  ;;  %2150 = vmatpush3.msra.mxu0 %v1298_v5  ;;  %v1312_v45 = vld [vmem:[%s3444_s5 + $0xe8] sm:$0xff] }
 0x193   : > { %1418 = vmatprep.mubr.f32.mxu0 %v3522_v43  ;;  %2230 = vmatpush3.msra.mxu1 %v1330_v19  ;;  %v1344_v5 = vld [vmem:[%s3444_s5 + $0x1e8] sm:$0xff] }
 0x194   : > { %1563 = vmatprep.mubr.f32.mxu1 %v3523_v27  ;;  %2151 = vmatprep.subr.mxu0 %v1313_v32  ;;  %v1296_v43 = vld [vmem:[%s3444_s5 + $0x68] sm:$0xff]  ;;  %v1311_v27 = vld [vmem:[%s3444_s5 + $0xe0] sm:$0xff] }
 0x195   : > { %2231 = vmatprep.subr.mxu1 %v1345_v26  ;;  %v1328_v19 = vld [vmem:[%s3444_s5 + $0x168] sm:$0xff]  ;;  %2152 = vmatpush3.msra.mxu0 %v1297_v58  ;;  %v1327_v32 = vld [vmem:[%s3444_s5 + $0x160] sm:$0xff]  ;;  %v1310_v26 = vld [vmem:[%s3444_s5 + $0xd8] sm:$0xff] }
 0x196   : > { %2232 = vmatpush3.msra.mxu1 %v1329_v21  ;;  %2153 = vmatprep.subr.mxu0 %v1312_v45  ;;  %v1342_v58 = vld [vmem:[%s3444_s5 + $0x1d8] sm:$0xff] }
 0x197   : > { %2233 = vmatprep.subr.mxu1 %v1344_v5  ;;  %2154 = vmatpush3.msra.mxu0 %v1296_v43  ;;  %v1294_v21 = vld [vmem:[%s3444_s5 + $0x58] sm:$0xff]  ;;  %v1309_v5 = vld [vmem:[%s3444_s5 + $0xd0] sm:$0xff] }
 0x198   : > { %2234 = vmatpush3.msra.mxu1 %v1328_v19  ;;  %2155 = vmatprep.subr.mxu0 %v1311_v27  ;;  %v1326_v45 = vld [vmem:[%s3444_s5 + $0x158] sm:$0xff]  ;;  %v1341_v43 = vld [vmem:[%s3444_s5 + $0x1d0] sm:$0xff] }
 0x199   : > { %2235 = vmatprep.subr.mxu1 %v1343_v59  ;;  %2156 = vmatpush3.msra.mxu0 %v1295_v60  ;;  %v1293_v19 = vld [vmem:[%s3444_s5 + $0x50] sm:$0xff]  ;;  %v1308_v59 = vld [vmem:[%s3444_s5 + $0xc8] sm:$0xff] }
 0x19a   : > { %2236 = vmatpush3.msra.mxu1 %v1327_v32  ;;  %2157 = vmatprep.subr.mxu0 %v1310_v26  ;;  %v1325_v27 = vld [vmem:[%s3444_s5 + $0x150] sm:$0xff]  ;;  %v1340_v60 = vld [vmem:[%s3444_s5 + $0x1c8] sm:$0xff] }
 0x19b   : > { %2237 = vmatprep.subr.mxu1 %v1342_v58  ;;  %2158 = vmatpush3.msra.mxu0 %v1294_v21  ;;  %v1292_v32 = vld [vmem:[%s3444_s5 + $0x48] sm:$0xff]  ;;  %v1307_v58 = vld [vmem:[%s3444_s5 + $0xc0] sm:$0xff] }
 0x19c   : > { %2238 = vmatpush3.msra.mxu1 %v1326_v45  ;;  %2159 = vmatprep.subr.mxu0 %v1309_v5  ;;  %v1324_v26 = vld [vmem:[%s3444_s5 + $0x148] sm:$0xff]  ;;  %v1339_v21 = vld [vmem:[%s3444_s5 + $0x1c0] sm:$0xff] }
 0x19d   : > { %2239 = vmatprep.subr.mxu1 %v1341_v43  ;;  %2160 = vmatpush3.msra.mxu0 %v1293_v19  ;;  %v1291_v45 = vld [vmem:[%s3444_s5 + $0x40] sm:$0xff]  ;;  %v1306_v43 = vld [vmem:[%s3444_s5 + $0xb8] sm:$0xff] }
 0x19e   : > { %2240 = vmatpush3.msra.mxu1 %v1325_v27  ;;  %2161 = vmatprep.subr.mxu0 %v1308_v59  ;;  %v1323_v5 = vld [vmem:[%s3444_s5 + $0x140] sm:$0xff]  ;;  %v1338_v19 = vld [vmem:[%s3444_s5 + $0x1b8] sm:$0xff] }
 0x19f   : > { %2241 = vmatprep.subr.mxu1 %v1340_v60  ;;  %2162 = vmatpush3.msra.mxu0 %v1292_v32  ;;  %v1290_v27 = vld [vmem:[%s3444_s5 + $0x38] sm:$0xff]  ;;  %v1305_v60 = vld [vmem:[%s3444_s5 + $0xb0] sm:$0xff] }
 0x1a0   : > { %2242 = vmatpush3.msra.mxu1 %v1324_v26  ;;  %2163 = vmatprep.subr.mxu0 %v1307_v58  ;;  %v1322_v59 = vld [vmem:[%s3444_s5 + $0x138] sm:$0xff]  ;;  %v1337_v32 = vld [vmem:[%s3444_s5 + $0x1b0] sm:$0xff] }
 0x1a1   : > { %2243 = vmatprep.subr.mxu1 %v1339_v21  ;;  %2164 = vmatpush3.msra.mxu0 %v1291_v45  ;;  %v1289_v26 = vld [vmem:[%s3444_s5 + $0x30] sm:$0xff]  ;;  %v1304_v21 = vld [vmem:[%s3444_s5 + $0xa8] sm:$0xff] }
 0x1a2   : > { %2244 = vmatpush3.msra.mxu1 %v1323_v5  ;;  %2165 = vmatprep.subr.mxu0 %v1306_v43  ;;  %v1321_v58 = vld [vmem:[%s3444_s5 + $0x130] sm:$0xff]  ;;  %v1336_v45 = vld [vmem:[%s3444_s5 + $0x1a8] sm:$0xff] }
 0x1a3   : > { %2245 = vmatprep.subr.mxu1 %v1338_v19  ;;  %2166 = vmatpush3.msra.mxu0 %v1290_v27  ;;  %v1288_v5 = vld [vmem:[%s3444_s5 + $0x28] sm:$0xff]  ;;  %v1303_v19 = vld [vmem:[%s3444_s5 + $0xa0] sm:$0xff] }
 0x1a4   : > { %2246 = vmatpush3.msra.mxu1 %v1322_v59  ;;  %2167 = vmatprep.subr.mxu0 %v1305_v60  ;;  %v1320_v43 = vld [vmem:[%s3444_s5 + $0x128] sm:$0xff]  ;;  %v1335_v27 = vld [vmem:[%s3444_s5 + $0x1a0] sm:$0xff] }
 0x1a5   : > { %2247 = vmatprep.subr.mxu1 %v1337_v32  ;;  %2168 = vmatpush3.msra.mxu0 %v1289_v26  ;;  %v1287_v59 = vld [vmem:[%s3444_s5 + $0x20] sm:$0xff]  ;;  %v1302_v32 = vld [vmem:[%s3444_s5 + $0x98] sm:$0xff] }
 0x1a6   : > { %2248 = vmatpush3.msra.mxu1 %v1321_v58  ;;  %2169 = vmatprep.subr.mxu0 %v1304_v21  ;;  %v1319_v60 = vld [vmem:[%s3444_s5 + $0x120] sm:$0xff]  ;;  %v1334_v26 = vld [vmem:[%s3444_s5 + $0x198] sm:$0xff] }
 0x1a7   : > { %2249 = vmatprep.subr.mxu1 %v1336_v45  ;;  %2170 = vmatpush3.msra.mxu0 %v1288_v5  ;;  %v1286_v58 = vld [vmem:[%s3444_s5 + $0x18] sm:$0xff]  ;;  %v1301_v45 = vld [vmem:[%s3444_s5 + $0x90] sm:$0xff] }
 0x1a8   : > { %2250 = vmatpush3.msra.mxu1 %v1320_v43  ;;  %2171 = vmatprep.subr.mxu0 %v1303_v19  ;;  %v1318_v21 = vld [vmem:[%s3444_s5 + $0x118] sm:$0xff]  ;;  %v1333_v5 = vld [vmem:[%s3444_s5 + $0x190] sm:$0xff] }
 0x1a9   : > { %2251 = vmatprep.subr.mxu1 %v1335_v27  ;;  %2172 = vmatpush3.msra.mxu0 %v1287_v59  ;;  %v1285_v43 = vld [vmem:[%s3444_s5 + $0x10] sm:$0xff]  ;;  %v1300_v27 = vld [vmem:[%s3444_s5 + $0x88] sm:$0xff] }
 0x1aa   : > { %2252 = vmatpush3.msra.mxu1 %v1319_v60  ;;  %2173 = vmatprep.subr.mxu0 %v1302_v32  ;;  %v1317_v19 = vld [vmem:[%s3444_s5 + $0x110] sm:$0xff]  ;;  %v1332_v59 = vld [vmem:[%s3444_s5 + $0x188] sm:$0xff] }
 0x1ab   : > { %2253 = vmatprep.subr.mxu1 %v1334_v26  ;;  %2174 = vmatpush3.msra.mxu0 %v1286_v58  ;;  %v1284_v60 = vld [vmem:[%s3444_s5 + $0x8] sm:$0xff]  ;;  %v1299_v26 = vld [vmem:[%s3444_s5 + $0x80] sm:$0xff] }
 0x1ac   : > { %2254 = vmatpush3.msra.mxu1 %v1318_v21  ;;  %2175 = vmatprep.subr.mxu0 %v1301_v45  ;;  %v1316_v32 = vld [vmem:[%s3444_s5 + $0x108] sm:$0xff]  ;;  %v1331_v58 = vld [vmem:[%s3444_s5 + $0x180] sm:$0xff] }
 0x1ad   : > { %2255 = vmatprep.subr.mxu1 %v1333_v5  ;;  %2176 = vmatpush3.msra.mxu0 %v1285_v43  ;;  %v1283_v21 = vld [vmem:[%s3444_s5] sm:$0xff] }
 0x1ae   : > { %2256 = vmatpush3.msra.mxu1 %v1317_v19  ;;  %2177 = vmatprep.subr.mxu0 %v1300_v27  ;;  %v1315_v45 = vld [vmem:[%s3444_s5 + $0x100] sm:$0xff] }
 0x1af   : > { %2257 = vmatprep.subr.mxu1 %v1332_v59  ;;  %2178 = vmatpush3.msra.mxu0 %v1284_v60 }
 0x1b0   : > { %2258 = vmatpush3.msra.mxu1 %v1316_v32  ;;  %2179 = vmatprep.subr.mxu0 %v1299_v26 }
 0x1b1   : > { %2259 = vmatprep.subr.mxu1 %v1331_v58  ;;  %2180 = vmatpush3.msra.mxu0 %v1283_v21 }
 0x1b2   : > { %2260 = vmatpush3.msra.mxu1 %v1315_v45  ;;  %1419 = vmatmul.mubr.f32.vlgmr.msra.gmra.mxu0 %v3528_v18 }
 0x1b3   : > { %1564 = vmatmul.mubr.f32.vlgmr.msra.gmra.mxu1 %v3529_v20  ;;  %1423 = vmatprep.mubr.f32.mxu0 %v3518_v13 }
 0x1b4   : > { %1568 = vmatprep.mubr.f32.mxu1 %v3519_v6 }
 0x1b6   : > { %1424 = vmatmul.mubr.f32.gmra.mxu0 %v3520_v12 }
 0x1b7   : > { %1569 = vmatmul.mubr.f32.gmra.mxu1 %v3521_v2  ;;  %1428 = vmatprep.mubr.f32.mxu0 %v3514_v39 }
 0x1b8   : > { %1573 = vmatprep.mubr.f32.mxu1 %v3515_v40 }
 0x1ba   : > { %1429 = vmatmul.mubr.f32.gmra.mxu0 %v3516_v41 }
 0x1bb   : > { %1574 = vmatmul.mubr.f32.gmra.mxu1 %v3517_v52  ;;  %1433 = vmatprep.mubr.f32.mxu0 %v2825_v0  ;;  %v3534_v0 = vld [vmem:[#allocation22_spill] sm:$0xff] }
 0x1bc   : > { %1578 = vmatprep.mubr.f32.mxu1 %v2827_v1  ;;  %v3535_v1 = vld [vmem:[#allocation21_spill] sm:$0xff] }
 0x1be   : > { %1434 = vmatmul.mubr.f32.gmra.mxu0 %v2821_v61  ;;  %v3532_v61 = vld [vmem:[#allocation23_spill] sm:$0xff] }
 0x1bf   : > { %1579 = vmatmul.mubr.f32.gmra.mxu1 %v2823_v62  ;;  %1438 = vmatprep.mubr.f32.mxu0 %v2839_v16  ;;  %v3533_v62 = vld [vmem:[#allocation24_spill] sm:$0xff] }
 0x1c0   : > { %1583 = vmatprep.mubr.f32.mxu1 %v2841_v17 }
 0x1c2   : > { %1439 = vmatmul.mubr.f32.gmra.mxu0 %v2837_v15  ;;  %v3538_v15 = vld [vmem:[#allocation25_spill] sm:$0xff] }
 0x1c3   : > { %1584 = vmatmul.mubr.f32.gmra.mxu1 %v2829_v4  ;;  %1443 = vmatprep.mubr.f32.mxu0 %v2861_v37  ;;  %v3536_v4 = vld [vmem:[#allocation27_spill] sm:$0xff] }
 0x1c4   : > { %1588 = vmatprep.mubr.f32.mxu1 %v2863_v38 }
 0x1c6   : > { %1444 = vmatmul.mubr.f32.gmra.mxu0 %v2857_v35 }
 0x1c7   : > { %1589 = vmatmul.mubr.f32.gmra.mxu1 %v2859_v36  ;;  %1448 = vmatprep.mubr.f32.mxu0 %v2875_v55 }
 0x1c8   : > { %1593 = vmatprep.mubr.f32.mxu1 %v2877_v56  ;;  %v3380_v56 = vld [vmem:[#allocation3] ss:$0 sm:$0xff] }
 0x1ca   : > { %1449 = vmatmul.mubr.f32.gmra.mxu0 %v2873_v54 }
 0x1cb   : > { %1594 = vmatmul.mubr.f32.gmra.mxu1 %v2865_v44  ;;  %1453 = vmatprep.mubr.f32.mxu0 %v2897_v24 }
 0x1cc   : > { %1598 = vmatprep.mubr.f32.mxu1 %v2899_v25 }
 0x1ce   : > { %1454 = vmatmul.mubr.f32.gmra.mxu0 %v2893_v22 }
 0x1cf   : > { %1599 = vmatmul.mubr.f32.gmra.mxu1 %v2895_v23  ;;  %1458 = vmatprep.mubr.f32.mxu0 %v2911_v49 }
 0x1d0   : > { %1603 = vmatprep.mubr.f32.mxu1 %v2913_v50 }
 0x1d2   : > { %1459 = vmatmul.mubr.f32.gmra.mxu0 %v2909_v48 }
 0x1d3   : > { %1604 = vmatmul.mubr.f32.gmra.mxu1 %v2901_v33  ;;  %1463 = vmatprep.mubr.f32.mxu0 %v2933_v34 }
 0x1d4   : > { %1608 = vmatprep.mubr.f32.mxu1 %v2935_v42 }
 0x1d6   : > { %1464 = vmatmul.mubr.f32.gmra.mxu0 %v2929_v30 }
 0x1d7   : > { %1609 = vmatmul.mubr.f32.gmra.mxu1 %v2931_v31  ;;  %1468 = vmatprep.mubr.f32.mxu0 %v2947_v10 }
 0x1d8   : > { %1613 = vmatprep.mubr.f32.mxu1 %v2949_v14 }
 0x1da   : > { %1469 = vmatmul.mubr.f32.gmra.mxu0 %v2945_v9 }
 0x1db   : > { %1614 = vmatmul.mubr.f32.gmra.mxu1 %v2937_v46  ;;  %1473 = vmatprep.mubr.f32.mxu0 %v2969_v11  ;;  %v3530_v11 = vld [vmem:[#allocation19_spill] sm:$0xff] }
 0x1dc   : > { %1618 = vmatprep.mubr.f32.mxu1 %v2971_v51  ;;  %v3531_v51 = vld [vmem:[#allocation20_spill] sm:$0xff] }
 0x1de   : > { %1474 = vmatmul.mubr.f32.gmra.mxu0 %v2965_v7 }
 0x1df   : > { %1619 = vmatmul.mubr.f32.gmra.mxu1 %v2967_v8  ;;  %1478 = vmatprep.mubr.f32.mxu0 %v2983_v47 }
 0x1e0   : > { %1623 = vmatprep.mubr.f32.mxu1 %v2985_v3 }
 0x1e2   : > { %1479 = vmatmul.mubr.f32.gmra.mxu0 %v2981_v53 }
 0x1e3   : > { %1624 = vmatmul.mubr.f32.gmra.mxu1 %v2973_v63  ;;  %1483 = vmatprep.mubr.f32.mxu0 %v3005_v29  ;;  %v3537_v63 = vld [vmem:[#allocation28_spill] sm:$0xff]  ;;  %v3539_v29 = vld [vmem:[#allocation26_spill] sm:$0xff] }
 0x1e4   : > { %1628 = vmatprep.mubr.f32.mxu1 %v3007_v28  ;;  %v1116_v28 = vpop.permute.xlu0 %1115 }
 0x1e5   : > { %v1121_v16 = vrot.slane %v1116_v28, %v3524_v57 }
 0x1e6   : > { %1484 = vmatmul.mubr.f32.gmra.mxu0 %v3530_v11 }
 0x1e7   : > { %1629 = vmatmul.mubr.f32.gmra.mxu1 %v3531_v51  ;;  %1488 = vmatprep.mubr.f32.mxu0 %v3532_v61 }
 0x1e8   : > { %1633 = vmatprep.mubr.f32.mxu1 %v3533_v62 }
 0x1ea   : > { %1489 = vmatmul.mubr.f32.gmra.mxu0 %v3534_v0 }
 0x1eb   : > { %1634 = vmatmul.mubr.f32.gmra.mxu1 %v3535_v1  ;;  %1493 = vmatprep.mubr.f32.mxu0 %v3536_v4 }
 0x1ec   : > { %1638 = vmatprep.mubr.f32.mxu1 %v3537_v63 }
 0x1ee   : > { %1494 = vmatmul.mubr.f32.gmra.mxu0 %v3538_v15 }
 0x1ef   : > { %1639 = vmatmul.mubr.f32.gmra.mxu1 %v3539_v29 }
 0x251   : > { %v1209_v17 = vpop.f32.mrf.mxu0 }
 0x252   : > { %v1279_v35 = vpop.f32.mrf.mxu1  ;;  %v1210_v36 = vadd.f32 %v1209_v17, %v1121_v16 }
 0x253   : > { %v1211_v37 = vpop.f32.mrf.mxu0 }
 0x254   : > { %v1281_v38 = vpop.f32.mrf.mxu1  ;;  %v1280_v44 = vadd.f32 %v1279_v35, %v1210_v36 }
 0x256   : > { %1868 = vst [vmem:[%s360_s24] sm:$0x1] %v1280_v44 }
 0x272   : > { %v2181_v54 = vpop.f32.mrf.mxu0 }
 0x273   : > { %v2261_v55 = vpop.f32.mrf.mxu1 }
 0x274   : > { %v2182_v22 = vpop.f32.mrf.mxu0 }
 0x275   : > { %v2262_v23 = vpop.f32.mrf.mxu1  ;;  %v2183_v24 = vadd.f32 %v2182_v22, %v2181_v54 }
 0x276   : > { %v2184_v25 = vpop.f32.mrf.mxu0  ;;  %v2263_v49 = vadd.f32 %v2262_v23, %v2261_v55 }
 0x277   : > { %v2264_v33 = vpop.f32.mrf.mxu1  ;;  %v1421_v48 = vadd.f32 %v2183_v24, %v3380_v56 }
 0x278   : > { %v2185_v50 = vpop.f32.mrf.mxu0 }
 0x279   : > { %v2265_v30 = vpop.f32.mrf.mxu1  ;;  %v1566_v31 = vadd.f32 %v2263_v49, %v1421_v48  ;;  %v2186_v34 = vadd.f32 %v2185_v50, %v2184_v25 }
 0x27a   : > { %v2187_v42 = vpop.f32.mrf.mxu0  ;;  %v2266_v10 = vadd.f32 %v2265_v30, %v2264_v33 }
 0x27b   : > { %v2267_v46 = vpop.f32.mrf.mxu1  ;;  %1870 = vst.msk [vmem:[%s3387_s14] sm:$0xff] %vm1869_vm0, %v1566_v31  ;;  %v1426_v9 = vadd.f32 %v2186_v34, %v3380_v56 }
 0x27c   : > { %v2188_v14 = vpop.f32.mrf.mxu0 }
 0x27d   : > { %v2268_v7 = vpop.f32.mrf.mxu1  ;;  %v1571_v8 = vadd.f32 %v2266_v10, %v1426_v9  ;;  %v2189_v53 = vadd.f32 %v2188_v14, %v2187_v42 }
 0x27e   : > { %v2190_v47 = vpop.f32.mrf.mxu0  ;;  %v2269_v18 = vadd.f32 %v2268_v7, %v2267_v46 }
 0x27f   : > { %v2270_v3 = vpop.f32.mrf.mxu1  ;;  %1871 = vst.msk [vmem:[%s3387_s14 + $0x8] sm:$0xff] %vm1869_vm0, %v1571_v8  ;;  %v1431_v20 = vadd.f32 %v2189_v53, %v3380_v56 }
 0x280   : > { %v2191_v57 = vpop.f32.mrf.mxu0 }
 0x281   : > { %v2271_v39 = vpop.f32.mrf.mxu1  ;;  %v1576_v40 = vadd.f32 %v2269_v18, %v1431_v20  ;;  %v2192_v41 = vadd.f32 %v2191_v57, %v2190_v47 }
 0x282   : > { %v2193_v52 = vpop.f32.mrf.mxu0  ;;  %v2272_v12 = vadd.f32 %v2271_v39, %v2270_v3 }
 0x283   : > { %v2273_v13 = vpop.f32.mrf.mxu1  ;;  %1872 = vst.msk [vmem:[%s3387_s14 + $0x10] sm:$0xff] %vm1869_vm0, %v1576_v40  ;;  %v1436_v6 = vadd.f32 %v2192_v41, %v3380_v56 }
 0x284   : > { %v2194_v2 = vpop.f32.mrf.mxu0 }
 0x285   : > { %v2274_v5 = vpop.f32.mrf.mxu1  ;;  %v1581_v43 = vadd.f32 %v2272_v12, %v1436_v6  ;;  %v2195_v19 = vadd.f32 %v2194_v2, %v2193_v52 }
 0x286   : > { %v2196_v27 = vpop.f32.mrf.mxu0  ;;  %v2275_v32 = vadd.f32 %v2274_v5, %v2273_v13 }
 0x287   : > { %v2276_v59 = vpop.f32.mrf.mxu1  ;;  %1873 = vst.msk [vmem:[%s3387_s14 + $0x18] sm:$0xff] %vm1869_vm0, %v1581_v43  ;;  %v1441_v60 = vadd.f32 %v2195_v19, %v3380_v56 }
 0x288   : > { %v2197_v26 = vpop.f32.mrf.mxu0 }
 0x289   : > { %v2277_v58 = vpop.f32.mrf.mxu1  ;;  %v1586_v21 = vadd.f32 %v2275_v32, %v1441_v60  ;;  %v2198_v45 = vadd.f32 %v2197_v26, %v2196_v27 }
 0x28a   : > { %v2199_v11 = vpop.f32.mrf.mxu0  ;;  %v2278_v62 = vadd.f32 %v2277_v58, %v2276_v59 }
 0x28b   : > { %v2279_v51 = vpop.f32.mrf.mxu1  ;;  %1874 = vst.msk [vmem:[%s3387_s14 + $0x20] sm:$0xff] %vm1869_vm0, %v1586_v21  ;;  %v1446_v61 = vadd.f32 %v2198_v45, %v3380_v56 }
 0x28c   : > { %v2200_v0 = vpop.f32.mrf.mxu0 }
 0x28d   : > { %v2280_v1 = vpop.f32.mrf.mxu1  ;;  %v1591_v4 = vadd.f32 %v2278_v62, %v1446_v61  ;;  %v2201_v63 = vadd.f32 %v2200_v0, %v2199_v11 }
 0x28e   : > { %v2202_v15 = vpop.f32.mrf.mxu0  ;;  %v2281_v16 = vadd.f32 %v2280_v1, %v2279_v51 }
 0x28f   : > { %v2282_v29 = vpop.f32.mrf.mxu1  ;;  %1875 = vst.msk [vmem:[%s3387_s14 + $0x28] sm:$0xff] %vm1869_vm0, %v1591_v4  ;;  %v1451_v28 = vadd.f32 %v2201_v63, %v3380_v56 }
 0x290   : > { %v2203_v17 = vpop.f32.mrf.mxu0 }
 0x291   : > { %v2283_v35 = vpop.f32.mrf.mxu1  ;;  %v1596_v36 = vadd.f32 %v2281_v16, %v1451_v28  ;;  %v2204_v37 = vadd.f32 %v2203_v17, %v2202_v15 }
 0x292   : > { %v2205_v38 = vpop.f32.mrf.mxu0  ;;  %v2284_v55 = vadd.f32 %v2283_v35, %v2282_v29 }
 0x293   : > { %v2285_v44 = vpop.f32.mrf.mxu1  ;;  %1876 = vst.msk [vmem:[%s3387_s14 + $0x30] sm:$0xff] %vm1869_vm0, %v1596_v36  ;;  %v1456_v54 = vadd.f32 %v2204_v37, %v3380_v56 }
 0x294   : > { %v2206_v22 = vpop.f32.mrf.mxu0 }
 0x295   : > { %v2286_v23 = vpop.f32.mrf.mxu1  ;;  %v1601_v24 = vadd.f32 %v2284_v55, %v1456_v54  ;;  %v2207_v25 = vadd.f32 %v2206_v22, %v2205_v38 }
 0x296   : > { %v2208_v33 = vpop.f32.mrf.mxu0  ;;  %v2287_v50 = vadd.f32 %v2286_v23, %v2285_v44 }
 0x297   : > { %v2288_v48 = vpop.f32.mrf.mxu1  ;;  %1877 = vst.msk [vmem:[%s3387_s14 + $0x38] sm:$0xff] %vm1869_vm0, %v1601_v24  ;;  %v1461_v49 = vadd.f32 %v2207_v25, %v3380_v56 }
 0x298   : > { %v2209_v30 = vpop.f32.mrf.mxu0 }
 0x299   : > { %v2289_v31 = vpop.f32.mrf.mxu1  ;;  %v1606_v34 = vadd.f32 %v2287_v50, %v1461_v49  ;;  %v2210_v42 = vadd.f32 %v2209_v30, %v2208_v33 }
 0x29a   : > { %v2211_v46 = vpop.f32.mrf.mxu0  ;;  %v2290_v14 = vadd.f32 %v2289_v31, %v2288_v48 }
 0x29b   : > { %v2291_v9 = vpop.f32.mrf.mxu1  ;;  %1878 = vst.msk [vmem:[%s3387_s14 + $0x40] sm:$0xff] %vm1869_vm0, %v1606_v34  ;;  %v1466_v10 = vadd.f32 %v2210_v42, %v3380_v56 }
 0x29c   : > { %v2212_v7 = vpop.f32.mrf.mxu0 }
 0x29d   : > { %v2292_v8 = vpop.f32.mrf.mxu1  ;;  %v1611_v53 = vadd.f32 %v2290_v14, %v1466_v10  ;;  %v2213_v47 = vadd.f32 %v2212_v7, %v2211_v46 }
 0x29e   : > { %v2214_v3 = vpop.f32.mrf.mxu0  ;;  %v2293_v57 = vadd.f32 %v2292_v8, %v2291_v9 }
 0x29f   : > { %v2294_v20 = vpop.f32.mrf.mxu1  ;;  %1879 = vst.msk [vmem:[%s3387_s14 + $0x48] sm:$0xff] %vm1869_vm0, %v1611_v53  ;;  %v1471_v18 = vadd.f32 %v2213_v47, %v3380_v56 }
 0x2a0   : > { %v2215_v39 = vpop.f32.mrf.mxu0 }
 0x2a1   : > { %v2295_v40 = vpop.f32.mrf.mxu1  ;;  %v1616_v41 = vadd.f32 %v2293_v57, %v1471_v18  ;;  %v2216_v52 = vadd.f32 %v2215_v39, %v2214_v3 }
 0x2a2   : > { %v2217_v13 = vpop.f32.mrf.mxu0  ;;  %v2296_v2 = vadd.f32 %v2295_v40, %v2294_v20 }
 0x2a3   : > { %v2297_v6 = vpop.f32.mrf.mxu1  ;;  %1880 = vst.msk [vmem:[%s3387_s14 + $0x50] sm:$0xff] %vm1869_vm0, %v1616_v41  ;;  %v1476_v12 = vadd.f32 %v2216_v52, %v3380_v56 }
 0x2a4   : > { %v2218_v5 = vpop.f32.mrf.mxu0 }
 0x2a5   : > { %v2298_v43 = vpop.f32.mrf.mxu1  ;;  %v1621_v19 = vadd.f32 %v2296_v2, %v1476_v12  ;;  %v2219_v27 = vadd.f32 %v2218_v5, %v2217_v13 }
 0x2a6   : > { %v2220_v59 = vpop.f32.mrf.mxu0  ;;  %v2299_v26 = vadd.f32 %v2298_v43, %v2297_v6 }
 0x2a7   : > { %v2300_v60 = vpop.f32.mrf.mxu1  ;;  %1881 = vst.msk [vmem:[%s3387_s14 + $0x58] sm:$0xff] %vm1869_vm0, %v1621_v19  ;;  %v1481_v32 = vadd.f32 %v2219_v27, %v3380_v56 }
 0x2a8   : > { %v2221_v58 = vpop.f32.mrf.mxu0 }
 0x2a9   : > { %v2301_v21 = vpop.f32.mrf.mxu1  ;;  %v1626_v45 = vadd.f32 %v2299_v26, %v1481_v32  ;;  %v2222_v11 = vadd.f32 %v2221_v58, %v2220_v59 }
 0x2aa   : > { %v2223_v51 = vpop.f32.mrf.mxu0  ;;  %v2302_v0 = vadd.f32 %v2301_v21, %v2300_v60 }
 0x2ab   : > { %v2303_v61 = vpop.f32.mrf.mxu1  ;;  %1882 = vst.msk [vmem:[%s3387_s14 + $0x60] sm:$0xff] %vm1869_vm0, %v1626_v45  ;;  %v1486_v62 = vadd.f32 %v2222_v11, %v3380_v56 }
 0x2ac   : > { %v2224_v1 = vpop.f32.mrf.mxu0 }
 0x2ad   : > { %v2304_v4 = vpop.f32.mrf.mxu1  ;;  %v1631_v63 = vadd.f32 %v2302_v0, %v1486_v62  ;;  %v2225_v15 = vadd.f32 %v2224_v1, %v2223_v51 }
 0x2ae   : > { %v2226_v29 = vpop.f32.mrf.mxu0  ;;  %v2305_v17 = vadd.f32 %v2304_v4, %v2303_v61 }
 0x2af   : > { %v2306_v28 = vpop.f32.mrf.mxu1  ;;  %1883 = vst.msk [vmem:[%s3387_s14 + $0x68] sm:$0xff] %vm1869_vm0, %v1631_v63  ;;  %v1491_v16 = vadd.f32 %v2225_v15, %v3380_v56 }
 0x2b0   : > { %v2227_v35 = vpop.f32.mrf.mxu0 }
 0x2b1   : > { %v2307_v36 = vpop.f32.mrf.mxu1  ;;  %v1636_v37 = vadd.f32 %v2305_v17, %v1491_v16  ;;  %v2228_v38 = vadd.f32 %v2227_v35, %v2226_v29 }
 0x2b2   : > { %v2308_v54 = vadd.f32 %v2307_v36, %v2306_v28 }
 0x2b3   : > { %1884 = vst.msk [vmem:[%s3387_s14 + $0x70] sm:$0xff] %vm1869_vm0, %v1636_v37  ;;  %v1496_v44 = vadd.f32 %v2228_v38, %v3380_v56 }
 0x2b5   : > { %v1641_v55 = vadd.f32 %v2308_v54, %v1496_v44 }
 0x2b7   : > { %1885 = vst.msk [vmem:[%s3387_s14 + $0x78] sm:$0xff] %vm1869_vm0, %v1641_v55 }
 0x2b8 PF: > { %s24_s13 = sadd.s32 1, %s2421_s13  }
 0x2b9   : > { %p21_p5 = scmp.ge.s32.totalorder %s24_s13, 4  }
 0x2bb   :  { %23 = sbr.rel (!%p21_p5) target bundleno = 3 (0x3), region = 102 }

// kernel: decoder_forward.9
= control target key start
LH: loop header
LB: loop body
LE: loop exit
PB: predicated region body
PF: predicated region fallthrough
CT: control target
= control target key end

     0   :  { %s3070_s0 = inlined_call_operand.vmem [shape: bf16[256,256], index: 0, kind: input, shape index: {}, may-alias: {0,1}]   ;;  %s3071_s1 = inlined_call_operand.vmem [shape: bf16[256,256], index: 1, kind: input, shape index: {}, may-alias: {0,1}]   ;;  %s3072_s2 = inlined_call_operand.vmem [shape: f32[1,256], index: 2, kind: input, shape index: {}]   ;;  %s3073_s3 = inlined_call_operand.vmem [shape: f32[256,1], index: 3, kind: input, shape index: {}]   ;;  %s3074_s4 = inlined_call_operand.vmem [shape: bf16[256,512], index: 4, kind: input, shape index: {}]   ;;  %s3075_s5 = inlined_call_operand.vmem [shape: f32[256,512], index: 5, kind: output, shape index: {}]  }
   0x1   :  { %3076 = sst [smem:[#allocation6_spill]] %s3070_s0 }
   0x2   :  { %s2624_s18 = smov 0   ;;  %s2626_s19 = smov 0  }
   0x3   :  { %s2628_s20 = smov 0   ;;  %s2630_s21 = smov 0  }
   0x4   :  { %s2632_s22 = smov 0   ;;  %s2634_s23 = smov 0  }
   0x5   :  { %s2636_s24 = smov 0  }
   0x6 LB: > { %s24_s25 = sadd.s32 1, %s2581_s22  ;;  %s27_s26 = sadd.s32 1, %s2585_s23  ;;  %s2589_s24 = sphi %s2636_s24, %s15_s24   ;;  %s2585_s23 = sphi %s2634_s23, %s3085_s23   ;;  %s2581_s22 = sphi %s2632_s22, %s3084_s22   ;;  %s2577_s21 = sphi %s2630_s21, %s3083_s21   ;;  %s2573_s20 = sphi %s2628_s20, %s3082_s20   ;;  %s2569_s19 = sphi %s2626_s19, %s3081_s19   ;;  %s2565_s18 = sphi %s2624_s18, %s3080_s18  }
   0x7   : > { %p25_p0 = scmp.ge.s32.totalorder %s24_s25, 2  ;;  %p43_p1 = scmp.ne.s32.totalorder %s2569_s19, %s2565_s18 }
   0x8   : > { %p44_p2 = scmp.eq.s32.totalorder %s2589_s24, 0  ;;  %s36_s6 = sadd.s32 1, %s2569_s19 }
   0x9   : > { %s3087_s25 = smov (%p25_p0, %s24_s25), 0  ;;  %s3089_s26 = smov (!%p25_p0, %s27_s26), %s2585_s23 }
   0xa   : > { %p2667_p3 = por %p44_p2, %p43_p1  ;;  %p29_p4 = scmp.ge.s32.totalorder %s3089_s26, 2 }
   0xb   : > { %s32_s28 = ssub.s32 %s2581_s22, %s3087_s25  ;;  %p2141_p6 = scmp.ge.s32.totalorder %s2589_s24, 4 }
   0xc   : > { %s3091_s26 = smov (%p29_p4, %s3089_s26), 0 }
   0xd   : > { %s31_s29 = ssub.s32 %s2585_s23, %s3091_s26  ;;  %201 = sbr.rel (%p2141_p6) target bundleno = 54 (0x36), region = 16 }
   0xe   : > { %s33_s30 = sor.u32 %s32_s28, %s31_s29 }
   0xf   : > { %p34_p5 = scmp.eq.s32.totalorder %s33_s30, 0 }
  0x11   : > { %s2679_s7 = scalar_select %p34_p5, %s2569_s19, %s36_s6  }
  0x12   : > { %204 = sbr.rel (!%p2667_p3) target bundleno = 38 (0x26), region = 20  ;;  %s206_s8 = sand.u32 (%p2667_p3), 1, %s2569_s19  }
  0x13   : > { %s2214_s9 = sshll.u32 (%p2667_p3), %s2585_s23, 5  ;;  %s2142_s10 = sshll.u32 (%p2667_p3), %s206_s8, 6 }
  0x14   : > { %s211_s11 = sadd.s32 (%p2667_p3), %s2581_s22, %s2214_s9  ;;  %s3078_s0 = sld [smem:[#allocation6_spill]] (%p2667_p3) }
  0x15   : > { %s2145_s12 = sshll.u32 (%p2667_p3), %s211_s11, 2  ;;  %s208_s16 = scalar_lea.vmem (%p2667_p3), [#allocation4], %s2142_s10 }
  0x1a   : > { %s2690_s15 = scalar_lea.vmem %s3078_s0, %s2145_s12 }
  0x1b   : > { %v230_v0 = vld [vmem:[%s2690_s15] sm:$0xf]  ;;  %v232_v1 = vld [vmem:[%s2690_s15 + $0x8] sm:$0xf]  ;;  %v234_v2 = vld [vmem:[%s2690_s15 + $0x10] sm:$0xf] }
  0x1c   : > { %231 = vst [vmem:[%s208_s16] sm:$0xf] %v230_v0  ;;  %233 = vst [vmem:[%s208_s16 + $0x4] sm:$0xf] %v232_v1  ;;  %v236_v3 = vld [vmem:[%s2690_s15 + $0x18] sm:$0xf] }
  0x1d   : > { %235 = vst [vmem:[%s208_s16 + $0x8] sm:$0xf] %v234_v2  ;;  %v238_v4 = vld [vmem:[%s2690_s15 + $0x20] sm:$0xf]  ;;  %v240_v5 = vld [vmem:[%s2690_s15 + $0x28] sm:$0xf] }
  0x1e   : > { %237 = vst [vmem:[%s208_s16 + $0xc] sm:$0xf] %v236_v3  ;;  %239 = vst [vmem:[%s208_s16 + $0x10] sm:$0xf] %v238_v4  ;;  %v242_v6 = vld [vmem:[%s2690_s15 + $0x30] sm:$0xf] }
  0x1f   : > { %241 = vst [vmem:[%s208_s16 + $0x14] sm:$0xf] %v240_v5  ;;  %v244_v7 = vld [vmem:[%s2690_s15 + $0x38] sm:$0xf]  ;;  %v246_v8 = vld [vmem:[%s2690_s15 + $0x40] sm:$0xf] }
  0x20   : > { %243 = vst [vmem:[%s208_s16 + $0x18] sm:$0xf] %v242_v6  ;;  %245 = vst [vmem:[%s208_s16 + $0x1c] sm:$0xf] %v244_v7  ;;  %v248_v9 = vld [vmem:[%s2690_s15 + $0x48] sm:$0xf] }
  0x21   : > { %247 = vst [vmem:[%s208_s16 + $0x20] sm:$0xf] %v246_v8  ;;  %v250_v10 = vld [vmem:[%s2690_s15 + $0x50] sm:$0xf]  ;;  %v252_v11 = vld [vmem:[%s2690_s15 + $0x58] sm:$0xf] }
  0x22   : > { %249 = vst [vmem:[%s208_s16 + $0x24] sm:$0xf] %v248_v9  ;;  %251 = vst [vmem:[%s208_s16 + $0x28] sm:$0xf] %v250_v10  ;;  %v254_v12 = vld [vmem:[%s2690_s15 + $0x60] sm:$0xf] }
  0x23   : > { %253 = vst [vmem:[%s208_s16 + $0x2c] sm:$0xf] %v252_v11  ;;  %v256_v13 = vld [vmem:[%s2690_s15 + $0x68] sm:$0xf]  ;;  %v258_v14 = vld [vmem:[%s2690_s15 + $0x70] sm:$0xf] }
  0x24   : > { %255 = vst [vmem:[%s208_s16 + $0x30] sm:$0xf] %v254_v12  ;;  %257 = vst [vmem:[%s208_s16 + $0x34] sm:$0xf] %v256_v13  ;;  %v260_v15 = vld [vmem:[%s2690_s15 + $0x78] sm:$0xf] }
  0x25   : > { %259 = vst [vmem:[%s208_s16 + $0x38] sm:$0xf] %v258_v14  ;;  %261 = vst [vmem:[%s208_s16 + $0x3c] sm:$0xf] %v260_v15 }
  0x26 PF: > { %317 = sbr.rel (!%p2667_p3) target bundleno = 54 (0x36), region = 61  ;;  %s319_s17 = sand.u32 (%p2667_p3), 1, %s2569_s19  }
  0x27   : > { %s2215_s28 = sshll.u32 (%p2667_p3), %s2581_s22, 5  ;;  %s2146_s29 = sshll.u32 (%p2667_p3), %s319_s17, 6 }
  0x28   : > { %s324_s30 = sadd.s32 (%p2667_p3), %s2585_s23, %s2215_s28  ;;  %s321_s27 = scalar_lea.vmem (%p2667_p3), [#allocation5], %s2146_s29 }
  0x29   : > { %s2149_s6 = sshll.u32 (%p2667_p3), %s324_s30, 2 }
  0x2a   : > { %s2716_s10 = scalar_lea.vmem (%p2667_p3), %s3071_s1, %s2149_s6 }
  0x2b   : > { %v343_v16 = vld [vmem:[%s2716_s10] sm:$0xf]  ;;  %v345_v17 = vld [vmem:[%s2716_s10 + $0x8] sm:$0xf]  ;;  %v347_v18 = vld [vmem:[%s2716_s10 + $0x10] sm:$0xf] }
  0x2c   : > { %344 = vst [vmem:[%s321_s27] sm:$0xf] %v343_v16  ;;  %346 = vst [vmem:[%s321_s27 + $0x4] sm:$0xf] %v345_v17  ;;  %v349_v19 = vld [vmem:[%s2716_s10 + $0x18] sm:$0xf] }
  0x2d   : > { %348 = vst [vmem:[%s321_s27 + $0x8] sm:$0xf] %v347_v18  ;;  %v351_v20 = vld [vmem:[%s2716_s10 + $0x20] sm:$0xf]  ;;  %v353_v21 = vld [vmem:[%s2716_s10 + $0x28] sm:$0xf] }
  0x2e   : > { %350 = vst [vmem:[%s321_s27 + $0xc] sm:$0xf] %v349_v19  ;;  %352 = vst [vmem:[%s321_s27 + $0x10] sm:$0xf] %v351_v20  ;;  %v355_v22 = vld [vmem:[%s2716_s10 + $0x30] sm:$0xf] }
  0x2f   : > { %354 = vst [vmem:[%s321_s27 + $0x14] sm:$0xf] %v353_v21  ;;  %v357_v23 = vld [vmem:[%s2716_s10 + $0x38] sm:$0xf]  ;;  %v359_v24 = vld [vmem:[%s2716_s10 + $0x40] sm:$0xf] }
  0x30   : > { %356 = vst [vmem:[%s321_s27 + $0x18] sm:$0xf] %v355_v22  ;;  %358 = vst [vmem:[%s321_s27 + $0x1c] sm:$0xf] %v357_v23  ;;  %v361_v25 = vld [vmem:[%s2716_s10 + $0x48] sm:$0xf] }
  0x31   : > { %360 = vst [vmem:[%s321_s27 + $0x20] sm:$0xf] %v359_v24  ;;  %v363_v26 = vld [vmem:[%s2716_s10 + $0x50] sm:$0xf]  ;;  %v365_v27 = vld [vmem:[%s2716_s10 + $0x58] sm:$0xf] }
  0x32   : > { %362 = vst [vmem:[%s321_s27 + $0x24] sm:$0xf] %v361_v25  ;;  %364 = vst [vmem:[%s321_s27 + $0x28] sm:$0xf] %v363_v26  ;;  %v367_v28 = vld [vmem:[%s2716_s10 + $0x60] sm:$0xf] }
  0x33   : > { %366 = vst [vmem:[%s321_s27 + $0x2c] sm:$0xf] %v365_v27  ;;  %v369_v29 = vld [vmem:[%s2716_s10 + $0x68] sm:$0xf]  ;;  %v371_v30 = vld [vmem:[%s2716_s10 + $0x70] sm:$0xf] }
  0x34   : > { %368 = vst [vmem:[%s321_s27 + $0x30] sm:$0xf] %v367_v28  ;;  %370 = vst [vmem:[%s321_s27 + $0x34] sm:$0xf] %v369_v29  ;;  %v373_v31 = vld [vmem:[%s2716_s10 + $0x78] sm:$0xf] }
  0x35   : > { %372 = vst [vmem:[%s321_s27 + $0x38] sm:$0xf] %v371_v30  ;;  %374 = vst [vmem:[%s321_s27 + $0x3c] sm:$0xf] %v373_v31 }
  0x36 PF: > { %p2150_p7 = scmp.ge.s32.totalorder %s2589_s24, 1  ;;  %p454_p8 = scmp.lt.s32.totalorder %s2589_s24, 5 }
  0x38   : > { %p455_p9 = pnand %p2150_p7, %p454_p8 }
  0x39   : > { %s461_s11 = sand.u32 (!%p455_p9), 1, %s2565_s18   ;;  %p516_p10 = scmp.lt.s32.totalorder (!%p455_p9), %s2573_s20, 1 }
  0x3a   : > { %458 = sbr.rel (%p455_p9) target bundleno = 774 (0x306), region = 114  ;;  %s2151_s12 = sshll.u32 (!%p455_p9), %s461_s11, 6 }
  0x3b   : > { %s2153_s13 = sshll.u32 (!%p455_p9), %s2577_s21, 4  ;;  %s2155_s15 = sshll.u32 (!%p455_p9), %s2573_s20, 4 }
  0x3c   : > { %p520_p11 = scmp.lt.s32.totalorder (!%p455_p9), %s2153_s13, 31  ;;  %p526_p12 = scmp.lt.s32.totalorder (!%p455_p9), %s2155_s15, 31 }
  0x3d   : > { %s2762_s17 = scalar_lea.vmem (!%p455_p9), [#allocation4], %s2151_s12  ;;  %s2764_s28 = scalar_lea.vmem (!%p455_p9), [#allocation5], %s2151_s12 }
  0x3e   : > { %p2161_p13 = scmp.ne.s32.totalorder (!%p455_p9), %s2573_s20, 0 }
  0x3f   : > { %s2740_s14 = scalar_select %p516_p10, %s2573_s20, 1 }
  0x40   : > { %s3093_s13 = smov (!%p520_p11, %s2153_s13), 31  ;;  %s3095_s15 = smov (!%p526_p12, %s2155_s15), 31 }
  0x41   : > { %s2154_s29 = sshll.u32 %s3093_s13, 3  ;;  %s2217_s30 = sshll.u32 %s3093_s13, 5 }
  0x42   : > { %s2750_s18 = scalar_lea.vmem %s3073_s3, %s2154_s29  ;;  %s2216_s21 = sshll.u32 %s3095_s15, 4 }
  0x43   : > { %s2755_s27 = scalar_lea.vmem %s3074_s4, %s2216_s21  ;;  %s2760_s16 = scalar_lea.vmem %s3075_s5, %s2217_s30 }
  0x44   : > { %543 = sbr.rel (%p2161_p13) target bundleno = 114 (0x72), region = 126 }
  0x49   : > { %vm608_vm0 = vcmask 7168   ;;  %v2591_v32 = vmov 0.0  }
  0x4a   : > { %544 = vst [vmem:[#allocation2 + $0xb0] sm:$0xff] %v2591_v32  ;;  %545 = vst [vmem:[#allocation2 + $0x1b0] sm:$0xff] %v2591_v32 }
  0x4b   : > { %546 = vst [vmem:[#allocation2 + $0xd8] sm:$0xff] %v2591_v32  ;;  %547 = vst [vmem:[#allocation2 + $0x18] sm:$0xff] %v2591_v32 }
  0x4c   : > { %548 = vst [vmem:[#allocation2 + $0x50] sm:$0xff] %v2591_v32  ;;  %549 = vst [vmem:[#allocation2 + $0x168] sm:$0xff] %v2591_v32 }
  0x4d   : > { %550 = vst [vmem:[#allocation2 + $0x130] sm:$0xff] %v2591_v32  ;;  %551 = vst [vmem:[#allocation2 + $0x48] sm:$0xff] %v2591_v32 }
  0x4e   : > { %552 = vst [vmem:[#allocation2 + $0x180] sm:$0xff] %v2591_v32  ;;  %553 = vst [vmem:[#allocation2 + $0x110] sm:$0xff] %v2591_v32 }
  0x4f   : > { %554 = vst [vmem:[#allocation2 + $0x118] sm:$0xff] %v2591_v32  ;;  %555 = vst [vmem:[#allocation2 + $0x98] sm:$0xff] %v2591_v32 }
  0x50   : > { %556 = vst [vmem:[#allocation2 + $0x120] sm:$0xff] %v2591_v32  ;;  %557 = vst [vmem:[#allocation2 + $0x150] sm:$0xff] %v2591_v32 }
  0x51   : > { %558 = vst [vmem:[#allocation2 + $0x108] sm:$0xff] %v2591_v32  ;;  %559 = vst [vmem:[#allocation2 + $0x60] sm:$0xff] %v2591_v32 }
  0x52   : > { %560 = vst [vmem:[#allocation2 + $0xe0] sm:$0xff] %v2591_v32  ;;  %561 = vst [vmem:[#allocation2 + $0x188] sm:$0xff] %v2591_v32 }
  0x53   : > { %562 = vst [vmem:[#allocation2 + $0x138] sm:$0xff] %v2591_v32  ;;  %563 = vst [vmem:[#allocation2 + $0x140] sm:$0xff] %v2591_v32 }
  0x54   : > { %564 = vst [vmem:[#allocation2 + $0x80] sm:$0xff] %v2591_v32  ;;  %565 = vst [vmem:[#allocation2 + $0x1a8] sm:$0xff] %v2591_v32 }
  0x55   : > { %566 = vst [vmem:[#allocation2 + $0x1b8] sm:$0xff] %v2591_v32  ;;  %567 = vst [vmem:[#allocation2 + $0x28] sm:$0xff] %v2591_v32 }
  0x56   : > { %568 = vst [vmem:[#allocation2 + $0x1e8] sm:$0xff] %v2591_v32  ;;  %569 = vst [vmem:[#allocation2 + $0xf8] sm:$0xff] %v2591_v32 }
  0x57   : > { %570 = vst [vmem:[#allocation2 + $0x160] sm:$0xff] %v2591_v32  ;;  %571 = vst [vmem:[#allocation2 + $0x30] sm:$0xff] %v2591_v32 }
  0x58   : > { %572 = vst [vmem:[#allocation2 + $0x1e0] sm:$0xff] %v2591_v32  ;;  %573 = vst [vmem:[#allocation2] sm:$0xff] %v2591_v32 }
  0x59   : > { %574 = vst [vmem:[#allocation2 + $0xf0] sm:$0xff] %v2591_v32  ;;  %575 = vst [vmem:[#allocation2 + $0x8] sm:$0xff] %v2591_v32 }
  0x5a   : > { %576 = vst [vmem:[#allocation2 + $0x148] sm:$0xff] %v2591_v32  ;;  %577 = vst [vmem:[#allocation2 + $0x1d0] sm:$0xff] %v2591_v32 }
  0x5b   : > { %578 = vst [vmem:[#allocation2 + $0x100] sm:$0xff] %v2591_v32  ;;  %579 = vst [vmem:[#allocation2 + $0xc8] sm:$0xff] %v2591_v32 }
  0x5c   : > { %580 = vst [vmem:[#allocation2 + $0x40] sm:$0xff] %v2591_v32  ;;  %581 = vst [vmem:[#allocation2 + $0x1f8] sm:$0xff] %v2591_v32 }
  0x5d   : > { %582 = vst [vmem:[#allocation2 + $0x20] sm:$0xff] %v2591_v32  ;;  %583 = vst [vmem:[#allocation2 + $0x128] sm:$0xff] %v2591_v32 }
  0x5e   : > { %584 = vst [vmem:[#allocation2 + $0x1a0] sm:$0xff] %v2591_v32  ;;  %585 = vst [vmem:[#allocation2 + $0x1f0] sm:$0xff] %v2591_v32 }
  0x5f   : > { %586 = vst [vmem:[#allocation2 + $0xe8] sm:$0xff] %v2591_v32  ;;  %587 = vst [vmem:[#allocation2 + $0x78] sm:$0xff] %v2591_v32 }
  0x60   : > { %588 = vst [vmem:[#allocation2 + $0x70] sm:$0xff] %v2591_v32  ;;  %589 = vst [vmem:[#allocation2 + $0x90] sm:$0xff] %v2591_v32 }
  0x61   : > { %590 = vst [vmem:[#allocation2 + $0x1d8] sm:$0xff] %v2591_v32  ;;  %591 = vst [vmem:[#allocation2 + $0xd0] sm:$0xff] %v2591_v32 }
  0x62   : > { %592 = vst [vmem:[#allocation2 + $0xb8] sm:$0xff] %v2591_v32  ;;  %593 = vst [vmem:[#allocation2 + $0x88] sm:$0xff] %v2591_v32 }
  0x63   : > { %594 = vst [vmem:[#allocation2 + $0xa8] sm:$0xff] %v2591_v32  ;;  %595 = vst [vmem:[#allocation2 + $0x1c8] sm:$0xff] %v2591_v32 }
  0x64   : > { %596 = vst [vmem:[#allocation2 + $0x170] sm:$0xff] %v2591_v32  ;;  %597 = vst [vmem:[#allocation2 + $0x178] sm:$0xff] %v2591_v32 }
  0x65   : > { %598 = vst [vmem:[#allocation2 + $0x68] sm:$0xff] %v2591_v32  ;;  %599 = vst [vmem:[#allocation2 + $0x190] sm:$0xff] %v2591_v32 }
  0x66   : > { %600 = vst [vmem:[#allocation2 + $0x198] sm:$0xff] %v2591_v32  ;;  %601 = vst [vmem:[#allocation2 + $0x38] sm:$0xff] %v2591_v32 }
  0x67   : > { %602 = vst [vmem:[#allocation2 + $0xc0] sm:$0xff] %v2591_v32  ;;  %603 = vst [vmem:[#allocation2 + $0x1c0] sm:$0xff] %v2591_v32 }
  0x68   : > { %604 = vst [vmem:[#allocation2 + $0x158] sm:$0xff] %v2591_v32  ;;  %605 = vst [vmem:[#allocation2 + $0x10] sm:$0xff] %v2591_v32 }
  0x69   : > { %606 = vst [vmem:[#allocation2 + $0x58] sm:$0xff] %v2591_v32  ;;  %607 = vst [vmem:[#allocation2 + $0xa0] sm:$0xff] %v2591_v32 }
  0x6a   : > { %609 = vst.msk [vmem:[#allocation3] sm:$0xff] %vm608_vm0, %v2591_v32  ;;  %610 = vst.msk [vmem:[#allocation3 + $0x8] sm:$0xff] %vm608_vm0, %v2591_v32 }
  0x6b   : > { %611 = vst.msk [vmem:[#allocation3 + $0x10] sm:$0xff] %vm608_vm0, %v2591_v32  ;;  %612 = vst.msk [vmem:[#allocation3 + $0x18] sm:$0xff] %vm608_vm0, %v2591_v32 }
  0x6c   : > { %613 = vst.msk [vmem:[#allocation3 + $0x20] sm:$0xff] %vm608_vm0, %v2591_v32  ;;  %614 = vst.msk [vmem:[#allocation3 + $0x28] sm:$0xff] %vm608_vm0, %v2591_v32 }
  0x6d   : > { %615 = vst.msk [vmem:[#allocation3 + $0x30] sm:$0xff] %vm608_vm0, %v2591_v32  ;;  %616 = vst.msk [vmem:[#allocation3 + $0x38] sm:$0xff] %vm608_vm0, %v2591_v32 }
  0x6e   : > { %617 = vst.msk [vmem:[#allocation3 + $0x40] sm:$0xff] %vm608_vm0, %v2591_v32  ;;  %618 = vst.msk [vmem:[#allocation3 + $0x48] sm:$0xff] %vm608_vm0, %v2591_v32 }
  0x6f   : > { %619 = vst.msk [vmem:[#allocation3 + $0x50] sm:$0xff] %vm608_vm0, %v2591_v32  ;;  %620 = vst.msk [vmem:[#allocation3 + $0x58] sm:$0xff] %vm608_vm0, %v2591_v32 }
  0x70   : > { %621 = vst.msk [vmem:[#allocation3 + $0x60] sm:$0xff] %vm608_vm0, %v2591_v32  ;;  %622 = vst.msk [vmem:[#allocation3 + $0x68] sm:$0xff] %vm608_vm0, %v2591_v32 }
  0x71   : > { %623 = vst.msk [vmem:[#allocation3 + $0x70] sm:$0xff] %vm608_vm0, %v2591_v32  ;;  %624 = vst.msk [vmem:[#allocation3 + $0x78] sm:$0xff] %vm608_vm0, %v2591_v32 }
  0x72 PF: > { %v744_v33 = vld [vmem:[%s2750_s18] sm:$0xff]  ;;  %v746_v34 = vld [vmem:[%s2750_s18 + $0x10] sm:$0xff]  ;;  %v2592_v35 = vmov 0   ;;  %v745_v36 = vld [vmem:[%s2750_s18 + $0x8] sm:$0xff]  ;;  %s3079_s13 = scalar_lea.vmem %s3072_s2, %s2740_s14  ;;  %vm1064_vm1 = vcmask 7168   ;;  %p2211_p0 = scmp.ne.s32.totalorder %s2573_s20, 1 }
  0x73   : > { %2355 = vset.pattern.permute.xlu0 %v2592_v35  ;;  %2356 = vset.pattern.permute.xlu1 %v2592_v35  ;;  %v747_v37 = vld [vmem:[%s2750_s18 + $0x18] sm:$0xff]  ;;  %v748_v38 = vld [vmem:[%s2750_s18 + $0x20] sm:$0xff]  ;;  %v749_v39 = vld [vmem:[%s2750_s18 + $0x28] sm:$0xff] }
  0x74   : > { %762 = vperm.xlu0 %2355, %v744_v33   ;;  %772 = vperm.xlu1 %2356, %v746_v34   ;;  %v750_v40 = vld [vmem:[%s2750_s18 + $0x30] sm:$0xff]  ;;  %v751_v41 = vld [vmem:[%s2750_s18 + $0x38] sm:$0xff]  ;;  %v752_v42 = vld [vmem:[%s2750_s18 + $0x40] sm:$0xff] }
  0x75   : > { %1377 = vmatprep.mubr.bf16.mxu0 %v2592_v35  ;;  %1490 = vmatprep.mubr.bf16.mxu1 %v2592_v35  ;;  %v753_v43 = vld [vmem:[%s2750_s18 + $0x48] sm:$0xff]  ;;  %v754_v44 = vld [vmem:[%s2750_s18 + $0x50] sm:$0xff]  ;;  %v755_v45 = vld [vmem:[%s2750_s18 + $0x58] sm:$0xff] }
  0x76   : > { %v756_v46 = vld [vmem:[%s2750_s18 + $0x60] sm:$0xff]  ;;  %v757_v47 = vld [vmem:[%s2750_s18 + $0x68] sm:$0xff]  ;;  %v758_v49 = vld [vmem:[%s2750_s18 + $0x70] sm:$0xff] }
  0x77   : > { %v2251_v48 = vld [vmem:[%s2764_s28] sm:$0xff]   ;;  %v759_v51 = vld [vmem:[%s2750_s18 + $0x78] sm:$0xff]  ;;  %v2289_v53 = vld [vmem:[%s2764_s28 + $0x8] sm:$0xff]  }
  0x78   : > { %767 = vperm.xlu0 %2355, %v745_v36   ;;  %777 = vperm.xlu1 %2356, %v747_v37   ;;  %v2252_v50 = vunpack.c.l.bf16 %v2251_v48  ;;  %v2253_v52 = vunpack.c.h.bf16 %v2251_v48  ;;  %v2256_v54 = vunpack.c.l.bf16 %v2289_v53  ;;  %v2257_v55 = vunpack.c.h.bf16 %v2289_v53  ;;  %v2290_v56 = vld [vmem:[%s2764_s28 + $0x10] sm:$0xff]   ;;  %v2291_v59 = vld [vmem:[%s2764_s28 + $0x18] sm:$0xff]   ;;  %v2292_v2 = vld [vmem:[%s2764_s28 + $0x20] sm:$0xff]  }
  0x79   : > { %v2260_v57 = vunpack.c.l.bf16 %v2290_v56  ;;  %v2261_v58 = vunpack.c.h.bf16 %v2290_v56  ;;  %v2264_v60 = vunpack.c.l.bf16 %v2291_v59  ;;  %v2357_v61 = vld [vmem:[%s2755_s27 + $0xe4] ss:$16 sps:$4 sm:$0xff]   ;;  %v2359_v62 = vld [vmem:[%s2755_s27 + $0xec] ss:$16 sps:$4 sm:$0xff]   ;;  %v2361_v63 = vld [vmem:[%s2755_s27 + $0xe0] ss:$16 sps:$4 sm:$0xff]   ;;  %v2265_v1 = vunpack.c.h.bf16 %v2291_v59 }
  0x7a   : > { %v2362_v0 = vld [vmem:[%s2755_s27 + $0xe8] ss:$16 sps:$4 sm:$0xff]   ;;  %1345 = vmatprep.subr.bf16.mxu0 %v2357_v61  ;;  %1458 = vmatprep.subr.bf16.mxu1 %v2359_v62  ;;  %v2363_v3 = vld [vmem:[%s2755_s27 + $0xc4] ss:$16 sps:$4 sm:$0xff]   ;;  %v2365_v4 = vld [vmem:[%s2755_s27 + $0xcc] ss:$16 sps:$4 sm:$0xff]   ;;  %v2268_v7 = vunpack.c.l.bf16 %v2292_v2  ;;  %v2269_v10 = vunpack.c.h.bf16 %v2292_v2 }
  0x7b   : > { %1346 = vmatpush1.bf16.msra.mxu0 %v2361_v63  ;;  %1459 = vmatpush1.bf16.msra.mxu1 %v2362_v0  ;;  %v2367_v5 = vld [vmem:[%s2755_s27 + $0xc0] ss:$16 sps:$4 sm:$0xff]   ;;  %v2368_v6 = vld [vmem:[%s2755_s27 + $0xc8] ss:$16 sps:$4 sm:$0xff]   ;;  %v2369_v8 = vld [vmem:[%s2755_s27 + $0xa4] ss:$16 sps:$4 sm:$0xff]  }
  0x7c   : > { %782 = vperm.xlu0 %2355, %v748_v38   ;;  %787 = vperm.xlu1 %2356, %v749_v39   ;;  %v2371_v9 = vld [vmem:[%s2755_s27 + $0xac] ss:$16 sps:$4 sm:$0xff]   ;;  %v2373_v11 = vld [vmem:[%s2755_s27 + $0xa0] ss:$16 sps:$4 sm:$0xff]   ;;  %v2374_v12 = vld [vmem:[%s2755_s27 + $0xa8] ss:$16 sps:$4 sm:$0xff]  }
  0x7d   : > { %1347 = vmatprep.subr.bf16.mxu0 %v2363_v3  ;;  %1460 = vmatprep.subr.bf16.mxu1 %v2365_v4  ;;  %v2293_v13 = vld [vmem:[%s2764_s28 + $0x28] sm:$0xff]   ;;  %v2375_v14 = vld [vmem:[%s2755_s27 + $0x84] ss:$16 sps:$4 sm:$0xff]   ;;  %v2379_v17 = vld [vmem:[%s2755_s27 + $0x80] ss:$16 sps:$4 sm:$0xff]  }
  0x7e   : > { %v2377_v15 = vld [vmem:[%s2755_s27 + $0x8c] ss:$16 sps:$4 sm:$0xff]   ;;  %v2272_v16 = vunpack.c.l.bf16 %v2293_v13  ;;  %v2380_v18 = vld [vmem:[%s2755_s27 + $0x88] ss:$16 sps:$4 sm:$0xff]   ;;  %v2381_v19 = vld [vmem:[%s2755_s27 + $0x64] ss:$16 sps:$4 sm:$0xff]   ;;  %v2273_v21 = vunpack.c.h.bf16 %v2293_v13 }
  0x7f   : > { %1348 = vmatpush1.bf16.msra.mxu0 %v2367_v5  ;;  %1461 = vmatpush1.bf16.msra.mxu1 %v2368_v6  ;;  %v2383_v20 = vld [vmem:[%s2755_s27 + $0x6c] ss:$16 sps:$4 sm:$0xff]   ;;  %v2385_v22 = vld [vmem:[%s2755_s27 + $0x60] ss:$16 sps:$4 sm:$0xff]   ;;  %v2386_v23 = vld [vmem:[%s2755_s27 + $0x68] ss:$16 sps:$4 sm:$0xff]  }
  0x80   : > { %792 = vperm.xlu0 %2355, %v750_v40   ;;  %797 = vperm.xlu1 %2356, %v751_v41   ;;  %v2294_v24 = vld [vmem:[%s2764_s28 + $0x30] sm:$0xff]   ;;  %v2389_v26 = vld [vmem:[%s2755_s27 + $0x4c] ss:$16 sps:$4 sm:$0xff]   ;;  %v2392_v29 = vld [vmem:[%s2755_s27 + $0x48] ss:$16 sps:$4 sm:$0xff]  }
  0x81   : > { %1349 = vmatprep.subr.bf16.mxu0 %v2369_v8  ;;  %1462 = vmatprep.subr.bf16.mxu1 %v2371_v9  ;;  %v2387_v25 = vld [vmem:[%s2755_s27 + $0x44] ss:$16 sps:$4 sm:$0xff]   ;;  %v2276_v27 = vunpack.c.l.bf16 %v2294_v24  ;;  %v2391_v28 = vld [vmem:[%s2755_s27 + $0x40] ss:$16 sps:$4 sm:$0xff]   ;;  %v2395_v31 = vld [vmem:[%s2755_s27 + $0x2c] ss:$16 sps:$4 sm:$0xff]   ;;  %v2277_v32 = vunpack.c.h.bf16 %v2294_v24 }
  0x82   : > { %v2393_v30 = vld [vmem:[%s2755_s27 + $0x24] ss:$16 sps:$4 sm:$0xff]   ;;  %v2397_v33 = vld [vmem:[%s2755_s27 + $0x20] ss:$16 sps:$4 sm:$0xff]   ;;  %v2398_v34 = vld [vmem:[%s2755_s27 + $0x28] ss:$16 sps:$4 sm:$0xff]  }
  0x83   : > { %1350 = vmatpush1.bf16.msra.mxu0 %v2373_v11  ;;  %1463 = vmatpush1.bf16.msra.mxu1 %v2374_v12  ;;  %v2295_v36 = vld [vmem:[%s2764_s28 + $0x38] sm:$0xff]   ;;  %v2399_v37 = vld [vmem:[%s2755_s27 + $0x4] ss:$16 sps:$4 sm:$0xff]   ;;  %v2403_v40 = vld [vmem:[%s2755_s27] ss:$16 sps:$4 sm:$0xff]  }
  0x84   : > { %802 = vperm.xlu1 %2356, %v752_v42   ;;  %1351 = vmatprep.subr.bf16.mxu0 %v2375_v14  ;;  %v2401_v38 = vld [vmem:[%s2755_s27 + $0xc] ss:$16 sps:$4 sm:$0xff]   ;;  %v2280_v39 = vunpack.c.l.bf16 %v2295_v36  ;;  %v2404_v41 = vld [vmem:[%s2755_s27 + $0x8] ss:$16 sps:$4 sm:$0xff]   ;;  %v2281_v42 = vunpack.c.h.bf16 %v2295_v36  ;;  %v2283_v4 = vld [vmem:[%s2762_s17 + $0x10] sm:$0xff]  }
  0x85   : > { %1464 = vmatprep.subr.bf16.mxu1 %v2377_v15  ;;  %v2228_v9 = vunpack.c.l.bf16 %v2283_v4 }
  0x87   : > { %1352 = vmatpush1.bf16.msra.mxu0 %v2379_v17  ;;  %1465 = vmatpush1.bf16.msra.mxu1 %v2380_v18  ;;  %v2284_v18 = vld [vmem:[%s2762_s17 + $0x18] sm:$0xff]  }
  0x88   : > { %807 = vperm.xlu1 %2356, %v753_v43   ;;  %1353 = vmatprep.subr.bf16.mxu0 %v2381_v19  ;;  %v2232_v24 = vunpack.c.l.bf16 %v2284_v18 }
  0x89   : > { %1466 = vmatprep.subr.bf16.mxu1 %v2383_v20 }
  0x8b   : > { %1354 = vmatpush1.bf16.msra.mxu0 %v2385_v22  ;;  %1467 = vmatpush1.bf16.msra.mxu1 %v2386_v23 }
  0x8c   : > { %812 = vperm.xlu1 %2356, %v754_v44   ;;  %1355 = vmatprep.subr.bf16.mxu0 %v2387_v25 }
  0x8d   : > { %1468 = vmatprep.subr.bf16.mxu1 %v2389_v26 }
  0x8f   : > { %1356 = vmatpush1.bf16.msra.mxu0 %v2391_v28  ;;  %1469 = vmatpush1.bf16.msra.mxu1 %v2392_v29 }
  0x90   : > { %817 = vperm.xlu1 %2356, %v755_v45   ;;  %1357 = vmatprep.subr.bf16.mxu0 %v2393_v30 }
  0x91   : > { %1470 = vmatprep.subr.bf16.mxu1 %v2395_v31 }
  0x93   : > { %1358 = vmatpush1.bf16.msra.mxu0 %v2397_v33  ;;  %1471 = vmatpush1.bf16.msra.mxu1 %v2398_v34 }
  0x94   : > { %822 = vperm.xlu1 %2356, %v756_v46   ;;  %1359 = vmatprep.subr.bf16.mxu0 %v2399_v37  ;;  %v2219_v46 = vld [vmem:[%s2762_s17] sm:$0xff]  }
  0x95   : > { %1472 = vmatprep.subr.bf16.mxu1 %v2401_v38  ;;  %v2220_v48 = vunpack.c.l.bf16 %v2219_v46  ;;  %v2285_v37 = vld [vmem:[%s2762_s17 + $0x20] sm:$0xff]  }
  0x97   : > { %1360 = vmatpush1.bf16.msra.mxu0 %v2403_v40  ;;  %1473 = vmatpush1.bf16.msra.mxu1 %v2404_v41 }
  0x98   : > { %827 = vperm.xlu1 %2356, %v757_v47  }
  0x9c   : > { %832 = vperm.xlu1 %2356, %v758_v49  }
  0x9e   : > { %689 = vxpose.xlu0.b32.start [1/16] %v2252_v50, 128  ;;  %v2929_v50 = vld [vmem:[%s3079_s13] ss:$0 sm:$0xff] }
  0x9f   : > { %v732_v15 = vmul.f32 %v2228_v9, %v2929_v50  ;;  %v734_v31 = vmul.f32 %v2232_v24, %v2929_v50 }
  0xa0   : > { %837 = vperm.xlu1 %2356, %v759_v51   ;;  %v728_v51 = vmul.f32 %v2220_v48, %v2929_v50 }
  0xa2   : > { %690 = vxpose.xlu0.b32.cont [2/16] %v2253_v52, 128  ;;  %v2221_v52 = vunpack.c.h.bf16 %v2219_v46 }
  0xa6   : > { %691 = vxpose.xlu0.b32.cont [3/16] %v2256_v54, 128 }
  0xaa   : > { %692 = vxpose.xlu0.b32.cont [4/16] %v2257_v55, 128  ;;  %v2282_v55 = vld [vmem:[%s2762_s17 + $0x8] sm:$0xff]  }
  0xab   : > { %v2224_v59 = vunpack.c.l.bf16 %v2282_v55  ;;  %v2225_v2 = vunpack.c.h.bf16 %v2282_v55 }
  0xad   : > { %v731_v8 = vmul.f32 %v2225_v2, %v2929_v50 }
  0xae   : > { %693 = vxpose.xlu0.b32.cont [5/16] %v2260_v57, 128 }
  0xb2   : > { %694 = vxpose.xlu0.b32.cont [6/16] %v2261_v58, 128  ;;  %v729_v58 = vmul.f32 %v2221_v52, %v2929_v50 }
  0xb6   : > { %695 = vxpose.xlu0.b32.cont [7/16] %v2264_v60, 128 }
  0xba   : > { %696 = vxpose.xlu0.b32.cont [8/16] %v2265_v1, 128  ;;  %v730_v1 = vmul.f32 %v2224_v59, %v2929_v50 }
  0xbe   : > { %697 = vxpose.xlu0.b32.cont [9/16] %v2268_v7, 128 }
  0xc2   : > { %698 = vxpose.xlu0.b32.cont [10/16] %v2269_v10, 128 }
  0xc6   : > { %699 = vxpose.xlu0.b32.cont [11/16] %v2272_v16, 128  ;;  %v2229_v16 = vunpack.c.h.bf16 %v2283_v4 }
  0xc8   : > { %v733_v23 = vmul.f32 %v2229_v16, %v2929_v50 }
  0xca   : > { %700 = vxpose.xlu0.b32.cont [12/16] %v2273_v21, 128 }
  0xce   : > { %701 = vxpose.xlu0.b32.cont [13/16] %v2276_v27, 128 }
  0xd2   : > { %702 = vxpose.xlu0.b32.cont [14/16] %v2277_v32, 128  ;;  %v2233_v32 = vunpack.c.h.bf16 %v2284_v18 }
  0xd6   : > { %703 = vxpose.xlu0.b32.cont [15/16] %v2280_v39, 128 }
  0xda   : > { %704 = vxpose.xlu0.b32.end [16/16] %v2281_v42, 128  ;;  %v735_v42 = vmul.f32 %v2233_v32, %v2929_v50  ;;  %v2288_v32 = vld [vmem:[%s2762_s17 + $0x38] sm:$0xff]  }
  0xef   : > { %v763_v43 = vpop.permute.xlu0 %762  ;;  %v773_v47 = vpop.permute.xlu1 %772 }
  0xf3   : > { %v768_v44 = vpop.permute.xlu0 %767  ;;  %v778_v53 = vpop.permute.xlu1 %777 }
  0xf7   : > { %v783_v45 = vpop.permute.xlu0 %782  ;;  %v788_v63 = vpop.permute.xlu1 %787 }
  0xfb   : > { %v793_v49 = vpop.permute.xlu0 %792  ;;  %v798_v10 = vpop.permute.xlu1 %797 }
  0xff   : > { %v803_v21 = vpop.permute.xlu1 %802 }
 0x103   : > { %v808_v34 = vpop.permute.xlu1 %807 }
 0x11a   : > { %v705_v54 = vpop.trf.xlu0 }
 0x11b   : > { %v840_v56 = vmul.f32 %v763_v43, %v705_v54  ;;  %v2236_v43 = vunpack.c.l.bf16 %v2285_v37  ;;  %v2237_v54 = vunpack.c.h.bf16 %v2285_v37 }
 0x11d   : > { %v856_v57 = vadd.f32 %v840_v56, %v728_v51  ;;  %v813_v51 = vpop.permute.xlu1 %812  ;;  %v2286_v56 = vld [vmem:[%s2762_s17 + $0x28] sm:$0xff]  }
 0x11e   : > { %v706_v60 = vpop.trf.xlu0  ;;  %v2241_v9 = vunpack.c.h.bf16 %v2286_v56 }
 0x11f   : > { %v2163_v61 = vmul.f32 -1.442695, %v856_v57  ;;  %v841_v62 = vmul.f32 %v768_v44, %v706_v60 }
 0x121   : > { %2405 = vpow2.f32 %v2163_v61  ;;  %v857_v0 = vadd.f32 %v841_v62, %v729_v58  ;;  %v737_v61 = vmul.f32 %v2237_v54, %v2929_v50  ;;  %v2240_v62 = vunpack.c.l.bf16 %v2286_v56 }
 0x122   : > { %v707_v3 = vpop.trf.xlu0 }
 0x123   : > { %v2164_v5 = vmul.f32 -1.442695, %v857_v0  ;;  %v842_v6 = vmul.f32 %v773_v47, %v707_v3  ;;  %v818_v0 = vpop.permute.xlu1 %817 }
 0x125   : > { %2407 = vpow2.f32 %v2164_v5  ;;  %v858_v7 = vadd.f32 %v842_v6, %v730_v1 }
 0x126   : > { %v708_v11 = vpop.trf.xlu0 }
 0x127   : > { %v2165_v12 = vmul.f32 -1.442695, %v858_v7  ;;  %v843_v13 = vmul.f32 %v778_v53, %v708_v11  ;;  %v736_v53 = vmul.f32 %v2236_v43, %v2929_v50 }
 0x129   : > { %2409 = vpow2.f32 %v2165_v12  ;;  %v859_v14 = vadd.f32 %v843_v13, %v731_v8  ;;  %v738_v8 = vmul.f32 %v2240_v62, %v2929_v50  ;;  %v2287_v12 = vld [vmem:[%s2762_s17 + $0x30] sm:$0xff]  }
 0x12a   : > { %v709_v17 = vpop.trf.xlu0 }
 0x12b   : > { %v2166_v19 = vmul.f32 -1.442695, %v859_v14  ;;  %v844_v20 = vmul.f32 %v783_v45, %v709_v17  ;;  %v823_v17 = vpop.permute.xlu1 %822 }
 0x12d   : > { %2411 = vpow2.f32 %v2166_v19  ;;  %v860_v22 = vadd.f32 %v844_v20, %v732_v15  ;;  %v739_v20 = vmul.f32 %v2241_v9, %v2929_v50 }
 0x12e   : > { %v2406_v25 = vpop.eup %2405  ;;  %v710_v26 = vpop.trf.xlu0 }
 0x12f   : > { %v920_v27 = vadd.f32 1.0, %v2406_v25  ;;  %v2167_v28 = vmul.f32 -1.442695, %v860_v22  ;;  %v845_v29 = vmul.f32 %v788_v63, %v710_v26 }
 0x131   : > { %2413 = vrcp.f32 %v920_v27  ;;  %v861_v30 = vadd.f32 %v845_v29, %v733_v23 }
 0x132   : > { %v2408_v33 = vpop.eup %2407  ;;  %2415 = vpow2.f32 %v2167_v28  ;;  %v711_v36 = vpop.trf.xlu0 }
 0x133   : > { %v921_v38 = vadd.f32 1.0, %v2408_v33  ;;  %v2168_v39 = vmul.f32 -1.442695, %v861_v30  ;;  %v846_v40 = vmul.f32 %v793_v49, %v711_v36 }
 0x135   : > { %2417 = vrcp.f32 %v921_v38  ;;  %v862_v41 = vadd.f32 %v846_v40, %v734_v31  ;;  %v2245_v31 = vunpack.c.h.bf16 %v2287_v12 }
 0x136   : > { %v2410_v44 = vpop.eup %2409  ;;  %2419 = vpow2.f32 %v2168_v39  ;;  %v712_v45 = vpop.trf.xlu0 }
 0x137   : > { %v922_v46 = vadd.f32 1.0, %v2410_v44  ;;  %v2169_v47 = vmul.f32 -1.442695, %v862_v41  ;;  %v847_v48 = vmul.f32 %v798_v10, %v712_v45  ;;  %v741_v44 = vmul.f32 %v2245_v31, %v2929_v50 }
 0x139   : > { %2421 = vrcp.f32 %v922_v46  ;;  %v863_v52 = vadd.f32 %v847_v48, %v735_v42  ;;  %v2248_v42 = vunpack.c.l.bf16 %v2288_v32 }
 0x13a   : > { %v2412_v55 = vpop.eup %2411  ;;  %2423 = vpow2.f32 %v2169_v47  ;;  %v713_v49 = vpop.trf.xlu0 }
 0x13b   : > { %v923_v57 = vadd.f32 1.0, %v2412_v55  ;;  %v2170_v58 = vmul.f32 -1.442695, %v863_v52  ;;  %v848_v59 = vmul.f32 %v803_v21, %v713_v49  ;;  %v2244_v21 = vunpack.c.l.bf16 %v2287_v12 }
 0x13c   : > { %v742_v55 = vmul.f32 %v2248_v42, %v2929_v50 }
 0x13d   : > { %2425 = vrcp.f32 %v923_v57  ;;  %v864_v60 = vadd.f32 %v848_v59, %v736_v53  ;;  %v740_v30 = vmul.f32 %v2244_v21, %v2929_v50  ;;  %v2249_v57 = vunpack.c.h.bf16 %v2288_v32 }
 0x13e   : > { %v2414_v63 = vpop.eup %2413  ;;  %2427 = vpow2.f32 %v2170_v58  ;;  %v714_v1 = vpop.trf.xlu0 }
 0x13f   : > { %v2416_v2 = vpop.eup %2415  ;;  %v968_v3 = vmul.f32 1.442695, %v2414_v63  ;;  %v2171_v4 = vmul.f32 -1.442695, %v864_v60  ;;  %v849_v5 = vmul.f32 %v808_v34, %v714_v1  ;;  %v828_v34 = vpop.permute.xlu1 %827 }
 0x140   : > { %v924_v6 = vadd.f32 1.0, %v2416_v2 }
 0x141   : > { %2429 = vpow2.f32 %v968_v3  ;;  %v865_v7 = vadd.f32 %v849_v5, %v737_v61 }
 0x142   : > { %v2418_v10 = vpop.eup %2417  ;;  %2431 = vrcp.f32 %v924_v6  ;;  %v715_v11 = vpop.trf.xlu0 }
 0x143   : > { %v2420_v13 = vpop.eup %2419  ;;  %v970_v14 = vmul.f32 1.442695, %v2418_v10  ;;  %2433 = vpow2.f32 %v2171_v4  ;;  %v2172_v15 = vmul.f32 -1.442695, %v865_v7  ;;  %v850_v16 = vmul.f32 %v813_v51, %v715_v11  ;;  %v833_v53 = vpop.permute.xlu1 %832 }
 0x144   : > { %v925_v18 = vadd.f32 1.0, %v2420_v13  ;;  %v743_v4 = vmul.f32 %v2249_v57, %v2929_v50 }
 0x145   : > { %2435 = vpow2.f32 %v970_v14  ;;  %v866_v19 = vadd.f32 %v850_v16, %v738_v8 }
 0x146   : > { %v2422_v22 = vpop.eup %2421  ;;  %2437 = vrcp.f32 %v925_v18  ;;  %v716_v23 = vpop.trf.xlu0 }
 0x147   : > { %v2424_v24 = vpop.eup %2423  ;;  %v972_v25 = vmul.f32 1.442695, %v2422_v22  ;;  %2439 = vpow2.f32 %v2172_v15  ;;  %v2173_v26 = vmul.f32 -1.442695, %v866_v19  ;;  %v851_v27 = vmul.f32 %v818_v0, %v716_v23  ;;  %v838_v6 = vpop.permute.xlu1 %837 }
 0x148   : > { %v926_v28 = vadd.f32 1.0, %v2424_v24 }
 0x149   : > { %2441 = vpow2.f32 %v972_v25  ;;  %v867_v29 = vadd.f32 %v851_v27, %v739_v20 }
 0x14a   : > { %v2426_v33 = vpop.eup %2425  ;;  %2443 = vrcp.f32 %v926_v28  ;;  %v717_v36 = vpop.trf.xlu0 }
 0x14b   : > { %v2428_v37 = vpop.eup %2427  ;;  %v974_v38 = vmul.f32 1.442695, %v2426_v33  ;;  %2445 = vpow2.f32 %v2173_v26  ;;  %v2174_v39 = vmul.f32 -1.442695, %v867_v29  ;;  %v852_v40 = vmul.f32 %v823_v17, %v717_v36 }
 0x14c   : > { %v927_v41 = vadd.f32 1.0, %v2428_v37 }
 0x14d   : > { %2447 = vpow2.f32 %v974_v38  ;;  %v868_v43 = vadd.f32 %v852_v40, %v740_v30 }
 0x14e   : > { %v2430_v45 = vpop.eup %2429  ;;  %2449 = vrcp.f32 %v927_v41  ;;  %v718_v46 = vpop.trf.xlu0 }
 0x14f   : > { %v2432_v47 = vpop.eup %2431  ;;  %2451 = vpow2.f32 %v2174_v39  ;;  %v2175_v48 = vmul.f32 -1.442695, %v868_v43  ;;  %v853_v51 = vmul.f32 %v828_v34, %v718_v46  ;;  %1016 = vadd.xlane.f32.xlu1 %v2430_v45 }
 0x150   : > { %v2434_v52 = vpop.eup %2433  ;;  %v976_v54 = vmul.f32 1.442695, %v2432_v47 }
 0x151   : > { %v928_v49 = vadd.f32 1.0, %v2434_v52  ;;  %2453 = vpow2.f32 %v2175_v48  ;;  %v869_v56 = vadd.f32 %v853_v51, %v741_v44 }
 0x152   : > { %v2436_v58 = vpop.eup %2435  ;;  %2455 = vpow2.f32 %v976_v54  ;;  %v719_v59 = vpop.trf.xlu0 }
 0x153   : > { %v2438_v60 = vpop.eup %2437  ;;  %2457 = vrcp.f32 %v928_v49  ;;  %v2176_v61 = vmul.f32 -1.442695, %v869_v56  ;;  %v854_v62 = vmul.f32 %v833_v53, %v719_v59  ;;  %1018 = vadd.xlane.f32.xlu1 %v2436_v58  ;;  %v1145_v63 = vpack.c.bf16 %v2436_v58, %v2430_v45 }
 0x154   : > { %v2440_v0 = vpop.eup %2439  ;;  %v978_v1 = vmul.f32 1.442695, %v2438_v60 }
 0x155   : > { %v929_v2 = vadd.f32 1.0, %v2440_v0  ;;  %2459 = vpow2.f32 %v2176_v61  ;;  %v870_v3 = vadd.f32 %v854_v62, %v742_v55  ;;  %1378 = vmatmul.mubr.bf16.vlgmr.msra.gmra.mxu0 %v1145_v63  ;;  %1491 = vmatmul.mubr.bf16.vlgmr.msra.gmra.mxu1 %v1145_v63 }
 0x156   : > { %v2442_v5 = vpop.eup %2441  ;;  %2461 = vpow2.f32 %v978_v1  ;;  %v720_v7 = vpop.trf.xlu0  ;;  %1387 = vmatprep.mubr.bf16.mxu0 %v2592_v35  ;;  %1500 = vmatprep.mubr.bf16.mxu1 %v2592_v35  ;;  %v1000_v1 = vld [vmem:[#allocation3] sm:$0xff] }
 0x157   : > { %v2444_v8 = vpop.eup %2443  ;;  %2463 = vrcp.f32 %v929_v2  ;;  %v2177_v9 = vmul.f32 -1.442695, %v870_v3  ;;  %v855_v10 = vmul.f32 %v838_v6, %v720_v7  ;;  %1020 = vadd.xlane.f32.xlu1 %v2442_v5  ;;  %v1002_v7 = vld [vmem:[#allocation3 + $0x10] sm:$0xff] }
 0x158   : > { %v2446_v11 = vpop.eup %2445  ;;  %v980_v12 = vmul.f32 1.442695, %v2444_v8 }
 0x159   : > { %v930_v13 = vadd.f32 1.0, %v2446_v11  ;;  %2465 = vpow2.f32 %v2177_v9  ;;  %v871_v14 = vadd.f32 %v855_v10, %v743_v4  ;;  %v1001_v4 = vld [vmem:[#allocation3 + $0x8] sm:$0xff]  ;;  %v1003_v9 = vld [vmem:[#allocation3 + $0x18] sm:$0xff] }
 0x15a   : > { %v2448_v15 = vpop.eup %2447  ;;  %2467 = vpow2.f32 %v980_v12  ;;  %v1004_v12 = vld [vmem:[#allocation3 + $0x20] sm:$0xff] }
 0x15b   : > { %v2450_v50 = vpop.eup %2449  ;;  %2469 = vrcp.f32 %v930_v13  ;;  %v2178_v16 = vmul.f32 -1.442695, %v871_v14  ;;  %1022 = vadd.xlane.f32.xlu1 %v2448_v15  ;;  %v1146_v17 = vpack.c.bf16 %v2448_v15, %v2442_v5  ;;  %v1005_v15 = vld [vmem:[#allocation3 + $0x28] sm:$0xff] }
 0x15c   : > { %v2452_v18 = vpop.eup %2451  ;;  %v982_v19 = vmul.f32 1.442695, %v2450_v50 }
 0x15d   : > { %v931_v20 = vadd.f32 1.0, %v2452_v18  ;;  %2471 = vpow2.f32 %v2178_v16  ;;  %1388 = vmatmul.mubr.bf16.gmra.mxu0 %v1146_v17  ;;  %1501 = vmatmul.mubr.bf16.gmra.mxu1 %v1146_v17  ;;  %v1006_v17 = vld [vmem:[#allocation3 + $0x30] sm:$0xff] }
 0x15e   : > { %v2454_v21 = vpop.eup %2453  ;;  %2473 = vpow2.f32 %v982_v19  ;;  %1397 = vmatprep.mubr.bf16.mxu0 %v2592_v35  ;;  %1510 = vmatprep.mubr.bf16.mxu1 %v2592_v35 }
 0x15f   : > { %v2456_v22 = vpop.eup %2455  ;;  %2475 = vrcp.f32 %v931_v20  ;;  %v932_v23 = vadd.f32 1.0, %v2454_v21  ;;  %v1007_v20 = vld [vmem:[#allocation3 + $0x38] sm:$0xff] }
 0x160   : > { %v2458_v24 = vpop.eup %2457  ;;  %1024 = vadd.xlane.f32.xlu1 %v2456_v22 }
 0x161   : > { %v984_v25 = vmul.f32 1.442695, %v2458_v24  ;;  %2477 = vrcp.f32 %v932_v23  ;;  %v1008_v23 = vld [vmem:[#allocation3 + $0x40] sm:$0xff] }
 0x162   : > { %v2460_v26 = vpop.eup %2459 }
 0x163   : > { %v2462_v27 = vpop.eup %2461  ;;  %2479 = vpow2.f32 %v984_v25  ;;  %v933_v28 = vadd.f32 1.0, %v2460_v26  ;;  %v1009_v26 = vld [vmem:[#allocation3 + $0x48] sm:$0xff] }
 0x164   : > { %v2464_v29 = vpop.eup %2463  ;;  %1026 = vadd.xlane.f32.xlu1 %v2462_v27  ;;  %v1147_v30 = vpack.c.bf16 %v2462_v27, %v2456_v22 }
 0x165   : > { %v986_v31 = vmul.f32 1.442695, %v2464_v29  ;;  %2481 = vrcp.f32 %v933_v28  ;;  %v1010_v29 = vld [vmem:[#allocation3 + $0x50] sm:$0xff] }
 0x166   : > { %v2466_v32 = vpop.eup %2465  ;;  %1398 = vmatmul.mubr.bf16.gmra.mxu0 %v1147_v30  ;;  %1511 = vmatmul.mubr.bf16.gmra.mxu1 %v1147_v30 }
 0x167   : > { %v2468_v33 = vpop.eup %2467  ;;  %2483 = vpow2.f32 %v986_v31  ;;  %v934_v34 = vadd.f32 1.0, %v2466_v32  ;;  %1407 = vmatprep.mubr.bf16.mxu0 %v2592_v35  ;;  %1520 = vmatprep.mubr.bf16.mxu1 %v2592_v35  ;;  %v1011_v32 = vld [vmem:[#allocation3 + $0x58] sm:$0xff] }
 0x168   : > { %v2470_v36 = vpop.eup %2469  ;;  %1028 = vadd.xlane.f32.xlu1 %v2468_v33 }
 0x169   : > { %v988_v37 = vmul.f32 1.442695, %v2470_v36  ;;  %2485 = vrcp.f32 %v934_v34  ;;  %v1012_v36 = vld [vmem:[#allocation3 + $0x60] sm:$0xff] }
 0x16a   : > { %v2472_v38 = vpop.eup %2471 }
 0x16b   : > { %v2474_v39 = vpop.eup %2473  ;;  %2487 = vpow2.f32 %v988_v37  ;;  %v935_v40 = vadd.f32 1.0, %v2472_v38 }
 0x16c   : > { %v2476_v41 = vpop.eup %2475  ;;  %1030 = vadd.xlane.f32.xlu0 %v2474_v39  ;;  %v1148_v42 = vpack.c.bf16 %v2474_v39, %v2468_v33  ;;  %v1013_v39 = vld [vmem:[#allocation3 + $0x68] sm:$0xff] }
 0x16d   : > { %v990_v43 = vmul.f32 1.442695, %v2476_v41  ;;  %2489 = vrcp.f32 %v935_v40 }
 0x16e   : > { %v2478_v44 = vpop.eup %2477  ;;  %1408 = vmatmul.mubr.bf16.gmra.mxu0 %v1148_v42  ;;  %1521 = vmatmul.mubr.bf16.gmra.mxu1 %v1148_v42  ;;  %v1014_v42 = vld [vmem:[#allocation3 + $0x70] sm:$0xff] }
 0x16f   : > { %2491 = vpow2.f32 %v990_v43  ;;  %v992_v45 = vmul.f32 1.442695, %v2478_v44  ;;  %1417 = vmatprep.mubr.bf16.mxu0 %v2592_v35  ;;  %1530 = vmatprep.mubr.bf16.mxu1 %v2592_v35 }
 0x170   : > { %v2480_v46 = vpop.eup %2479 }
 0x171   : > { %2493 = vpow2.f32 %v992_v45  ;;  %1032 = vadd.xlane.f32.xlu1 %v2480_v46  ;;  %v1081_v45 = vld [vmem:[#allocation2 + $0xb0] sm:$0xff] }
 0x172   : > { %v2482_v47 = vpop.eup %2481 }
 0x173   : > { %v994_v48 = vmul.f32 1.442695, %v2482_v47  ;;  %v1015_v47 = vld [vmem:[#allocation3 + $0x78] sm:$0xff] }
 0x174   : > { %v2484_v51 = vpop.eup %2483 }
 0x175   : > { %2495 = vpow2.f32 %v994_v48  ;;  %1034 = vadd.xlane.f32.xlu1 %v2484_v51  ;;  %v1149_v52 = vpack.c.bf16 %v2484_v51, %v2480_v46  ;;  %v1083_v46 = vld [vmem:[#allocation2 + $0xd8] sm:$0xff] }
 0x176   : > { %v2486_v53 = vpop.eup %2485 }
 0x177   : > { %v996_v54 = vmul.f32 1.442695, %v2486_v53  ;;  %1418 = vmatmul.mubr.bf16.gmra.mxu0 %v1149_v52  ;;  %1531 = vmatmul.mubr.bf16.gmra.mxu1 %v1149_v52  ;;  %v1082_v52 = vld [vmem:[#allocation2 + $0x1b0] sm:$0xff]  ;;  %v1084_v53 = vld [vmem:[#allocation2 + $0x18] sm:$0xff] }
 0x178   : > { %v2488_v55 = vpop.eup %2487  ;;  %1427 = vmatprep.mubr.bf16.mxu0 %v2592_v35  ;;  %1540 = vmatprep.mubr.bf16.mxu1 %v2592_v35 }
 0x179   : > { %2497 = vpow2.f32 %v996_v54  ;;  %1036 = vadd.xlane.f32.xlu1 %v2488_v55 }
 0x17a   : > { %v2490_v49 = vpop.eup %2489 }
 0x17b   : > { %v998_v56 = vmul.f32 1.442695, %v2490_v49 }
 0x17c   : > { %v2492_v57 = vpop.eup %2491 }
 0x17d   : > { %2499 = vpow2.f32 %v998_v56  ;;  %1038 = vadd.xlane.f32.xlu1 %v2492_v57  ;;  %v1150_v58 = vpack.c.bf16 %v2492_v57, %v2488_v55 }
 0x17e   : > { %v2494_v59 = vpop.eup %2493 }
 0x17f   : > { %1428 = vmatmul.mubr.bf16.gmra.mxu0 %v1150_v58  ;;  %1541 = vmatmul.mubr.bf16.gmra.mxu1 %v1150_v58 }
 0x180   : > { %1437 = vmatprep.mubr.bf16.mxu0 %v2592_v35  ;;  %1550 = vmatprep.mubr.bf16.mxu1 %v2592_v35 }
 0x181   : > { %1040 = vadd.xlane.f32.xlu1 %v2494_v59 }
 0x182   : > { %v2496_v60 = vpop.eup %2495 }
 0x183   : > { %v1151_v61 = vpack.c.bf16 %v2496_v60, %v2494_v59  ;;  %v1085_v59 = vld [vmem:[#allocation2 + $0x50] sm:$0xff] }
 0x185   : > { %1042 = vadd.xlane.f32.xlu1 %v2496_v60  ;;  %v1087_v60 = vld [vmem:[#allocation2 + $0x130] sm:$0xff] }
 0x186   : > { %v2498_v62 = vpop.eup %2497 }
 0x187   : > { %1438 = vmatmul.mubr.bf16.gmra.mxu0 %v1151_v61  ;;  %1551 = vmatmul.mubr.bf16.gmra.mxu1 %v1151_v61 }
 0x188   : > { %1447 = vmatprep.mubr.bf16.mxu0 %v2592_v35  ;;  %1560 = vmatprep.mubr.bf16.mxu1 %v2592_v35 }
 0x189   : > { %1044 = vadd.xlane.f32.xlu1 %v2498_v62 }
 0x18a   : > { %v2500_v63 = vpop.eup %2499 }
 0x18b   : > { %v1152_v0 = vpack.c.bf16 %v2500_v63, %v2498_v62 }
 0x18d   : > { %1046 = vadd.xlane.f32.xlu1 %v2500_v63 }
 0x18f   : > { %1448 = vmatmul.mubr.bf16.gmra.mxu0 %v1152_v0  ;;  %1561 = vmatmul.mubr.bf16.gmra.mxu1 %v1152_v0 }
 0x1d8   : > { %v1017_v2 = vpop.xlane.xlu1 %1016 }
 0x1d9   : > { %v1048_v3 = vadd.f32 %v1017_v2, %v1000_v1  ;;  %v1086_v1 = vld [vmem:[#allocation2 + $0x168] sm:$0xff] }
 0x1da   : > { %v1088_v2 = vld [vmem:[#allocation2 + $0x48] sm:$0xff] }
 0x1db   : > { %1065 = vst.msk [vmem:[#allocation3] sm:$0xff] %vm1064_vm1, %v1048_v3 }
 0x1dc   : > { %v1019_v5 = vpop.xlane.xlu1 %1018 }
 0x1dd   : > { %v1049_v6 = vadd.f32 %v1019_v5, %v1001_v4 }
 0x1df   : > { %1066 = vst.msk [vmem:[#allocation3 + $0x8] sm:$0xff] %vm1064_vm1, %v1049_v6 }
 0x1e0   : > { %v1021_v8 = vpop.xlane.xlu1 %1020 }
 0x1e1   : > { %v1050_v35 = vadd.f32 %v1021_v8, %v1002_v7  ;;  %v1089_v7 = vld [vmem:[#allocation2 + $0x180] sm:$0xff]  ;;  %v1091_v8 = vld [vmem:[#allocation2 + $0x118] sm:$0xff] }
 0x1e3   : > { %1067 = vst.msk [vmem:[#allocation3 + $0x10] sm:$0xff] %vm1064_vm1, %v1050_v35 }
 0x1e4   : > { %v1023_v10 = vpop.xlane.xlu1 %1022 }
 0x1e5   : > { %v1051_v11 = vadd.f32 %v1023_v10, %v1003_v9 }
 0x1e7   : > { %1068 = vst.msk [vmem:[#allocation3 + $0x18] sm:$0xff] %vm1064_vm1, %v1051_v11 }
 0x1e9   : > { %v1025_v13 = vpop.xlane.xlu1 %1024 }
 0x1ea   : > { %v1052_v14 = vadd.f32 %v1025_v13, %v1004_v12  ;;  %v1090_v12 = vld [vmem:[#allocation2 + $0x110] sm:$0xff]  ;;  %v1092_v13 = vld [vmem:[#allocation2 + $0x98] sm:$0xff] }
 0x1ec   : > { %1069 = vst.msk [vmem:[#allocation3 + $0x20] sm:$0xff] %vm1064_vm1, %v1052_v14 }
 0x1ed   : > { %v1027_v50 = vpop.xlane.xlu1 %1026 }
 0x1ee   : > { %v1053_v16 = vadd.f32 %v1027_v50, %v1005_v15 }
 0x1f0   : > { %1070 = vst.msk [vmem:[#allocation3 + $0x28] sm:$0xff] %vm1064_vm1, %v1053_v16 }
 0x1f1   : > { %v1029_v18 = vpop.xlane.xlu1 %1028 }
 0x1f2   : > { %v1054_v19 = vadd.f32 %v1029_v18, %v1006_v17  ;;  %v1093_v17 = vld [vmem:[#allocation2 + $0x120] sm:$0xff]  ;;  %v1095_v18 = vld [vmem:[#allocation2 + $0x108] sm:$0xff] }
 0x1f4   : > { %1071 = vst.msk [vmem:[#allocation3 + $0x30] sm:$0xff] %vm1064_vm1, %v1054_v19 }
 0x1f5   : > { %v1031_v21 = vpop.xlane.xlu0 %1030 }
 0x1f6   : > { %v1055_v22 = vadd.f32 %v1031_v21, %v1007_v20 }
 0x1f8   : > { %1072 = vst.msk [vmem:[#allocation3 + $0x38] sm:$0xff] %vm1064_vm1, %v1055_v22 }
 0x1fa   : > { %v1033_v24 = vpop.xlane.xlu1 %1032 }
 0x1fb   : > { %v1056_v25 = vadd.f32 %v1033_v24, %v1008_v23  ;;  %v1094_v23 = vld [vmem:[#allocation2 + $0x150] sm:$0xff]  ;;  %v1096_v24 = vld [vmem:[#allocation2 + $0x60] sm:$0xff] }
 0x1fd   : > { %1073 = vst.msk [vmem:[#allocation3 + $0x40] sm:$0xff] %vm1064_vm1, %v1056_v25 }
 0x1fe   : > { %v1035_v27 = vpop.xlane.xlu1 %1034 }
 0x1ff   : > { %v1057_v28 = vadd.f32 %v1035_v27, %v1009_v26 }
 0x201   : > { %1074 = vst.msk [vmem:[#allocation3 + $0x48] sm:$0xff] %vm1064_vm1, %v1057_v28 }
 0x202   : > { %v1037_v30 = vpop.xlane.xlu1 %1036 }
 0x203   : > { %v1058_v31 = vadd.f32 %v1037_v30, %v1010_v29 }
 0x205   : > { %1075 = vst.msk [vmem:[#allocation3 + $0x50] sm:$0xff] %vm1064_vm1, %v1058_v31  ;;  %v1097_v31 = vld [vmem:[#allocation2 + $0xe0] sm:$0xff] }
 0x206   : > { %v1039_v33 = vpop.xlane.xlu1 %1038 }
 0x207   : > { %v1059_v34 = vadd.f32 %v1039_v33, %v1011_v32  ;;  %v1099_v32 = vld [vmem:[#allocation2 + $0x138] sm:$0xff] }
 0x209   : > { %1076 = vst.msk [vmem:[#allocation3 + $0x58] sm:$0xff] %vm1064_vm1, %v1059_v34 }
 0x20a   : > { %v1041_v37 = vpop.xlane.xlu1 %1040 }
 0x20b   : > { %v1060_v38 = vadd.f32 %v1041_v37, %v1012_v36  ;;  %v1098_v36 = vld [vmem:[#allocation2 + $0x188] sm:$0xff]  ;;  %v1100_v37 = vld [vmem:[#allocation2 + $0x140] sm:$0xff] }
 0x20d   : > { %1077 = vst.msk [vmem:[#allocation3 + $0x60] sm:$0xff] %vm1064_vm1, %v1060_v38 }
 0x20e   : > { %v1043_v40 = vpop.xlane.xlu1 %1042 }
 0x20f   : > { %v1061_v41 = vadd.f32 %v1043_v40, %v1013_v39 }
 0x211   : > { %1078 = vst.msk [vmem:[#allocation3 + $0x68] sm:$0xff] %vm1064_vm1, %v1061_v41 }
 0x212   : > { %v1045_v43 = vpop.xlane.xlu1 %1044 }
 0x213   : > { %v1062_v44 = vadd.f32 %v1045_v43, %v1014_v42  ;;  %v1101_v42 = vld [vmem:[#allocation2 + $0x80] sm:$0xff]  ;;  %v1103_v43 = vld [vmem:[#allocation2 + $0x1b8] sm:$0xff] }
 0x215   : > { %1079 = vst.msk [vmem:[#allocation3 + $0x70] sm:$0xff] %vm1064_vm1, %v1062_v44  ;;  %v1379_v48 = vpop.f32.mrf.mxu0  ;;  %v1492_v51 = vpop.f32.mrf.mxu1 }
 0x216   : > { %v1047_v54 = vpop.xlane.xlu1 %1046  ;;  %v1571_v55 = vadd.f32 %v1379_v48, %v1081_v45  ;;  %v1573_v49 = vadd.f32 %v1492_v51, %v1083_v46  ;;  %v1102_v48 = vld [vmem:[#allocation2 + $0x1a8] sm:$0xff] }
 0x217   : > { %v1063_v56 = vadd.f32 %v1047_v54, %v1015_v47  ;;  %v1381_v57 = vpop.f32.mrf.mxu0  ;;  %v1494_v58 = vpop.f32.mrf.mxu1  ;;  %v1104_v51 = vld [vmem:[#allocation2 + $0x28] sm:$0xff] }
 0x218   : > { %1635 = vst [vmem:[#allocation2 + $0xb0] sm:$0xff] %v1571_v55  ;;  %1637 = vst [vmem:[#allocation2 + $0xd8] sm:$0xff] %v1573_v49  ;;  %v1572_v61 = vadd.f32 %v1381_v57, %v1082_v52  ;;  %v1574_v62 = vadd.f32 %v1494_v58, %v1084_v53  ;;  %v1105_v49 = vld [vmem:[#allocation2 + $0x1e8] sm:$0xff] }
 0x219   : > { %1080 = vst.msk [vmem:[#allocation3 + $0x78] sm:$0xff] %vm1064_vm1, %v1063_v56  ;;  %v1383_v63 = vpop.f32.mrf.mxu0  ;;  %v1496_v0 = vpop.f32.mrf.mxu1  ;;  %v1107_v56 = vld [vmem:[#allocation2 + $0x160] sm:$0xff] }
 0x21a   : > { %1636 = vst [vmem:[#allocation2 + $0x1b0] sm:$0xff] %v1572_v61  ;;  %1638 = vst [vmem:[#allocation2 + $0x18] sm:$0xff] %v1574_v62  ;;  %v1575_v3 = vadd.f32 %v1383_v63, %v1085_v59  ;;  %v1577_v4 = vadd.f32 %v1496_v0, %v1087_v60  ;;  %v1106_v61 = vld [vmem:[#allocation2 + $0xf8] sm:$0xff]  ;;  %v1108_v62 = vld [vmem:[#allocation2 + $0x30] sm:$0xff] }
 0x21b   : > { %v1385_v5 = vpop.f32.mrf.mxu0  ;;  %v1498_v6 = vpop.f32.mrf.mxu1 }
 0x21c   : > { %1639 = vst [vmem:[#allocation2 + $0x50] sm:$0xff] %v1575_v3  ;;  %1641 = vst [vmem:[#allocation2 + $0x130] sm:$0xff] %v1577_v4  ;;  %v1576_v35 = vadd.f32 %v1385_v5, %v1086_v1  ;;  %v1578_v9 = vadd.f32 %v1498_v6, %v1088_v2  ;;  %v1109_v3 = vld [vmem:[#allocation2 + $0x1e0] sm:$0xff]  ;;  %v1111_v4 = vld [vmem:[#allocation2 + $0xf0] sm:$0xff] }
 0x21d   : > { %v1389_v10 = vpop.f32.mrf.mxu0  ;;  %v1502_v11 = vpop.f32.mrf.mxu1 }
 0x21e   : > { %1640 = vst [vmem:[#allocation2 + $0x168] sm:$0xff] %v1576_v35  ;;  %1642 = vst [vmem:[#allocation2 + $0x48] sm:$0xff] %v1578_v9  ;;  %v1579_v14 = vadd.f32 %v1389_v10, %v1089_v7  ;;  %v1581_v15 = vadd.f32 %v1502_v11, %v1091_v8  ;;  %v1110_v35 = vld [vmem:[#allocation2] sm:$0xff]  ;;  %v1112_v9 = vld [vmem:[#allocation2 + $0x8] sm:$0xff] }
 0x21f   : > { %v1391_v50 = vpop.f32.mrf.mxu0  ;;  %v1504_v16 = vpop.f32.mrf.mxu1 }
 0x220   : > { %1643 = vst [vmem:[#allocation2 + $0x180] sm:$0xff] %v1579_v14  ;;  %1645 = vst [vmem:[#allocation2 + $0x118] sm:$0xff] %v1581_v15  ;;  %v1580_v19 = vadd.f32 %v1391_v50, %v1090_v12  ;;  %v1582_v20 = vadd.f32 %v1504_v16, %v1092_v13  ;;  %v1113_v50 = vld [vmem:[#allocation2 + $0x148] sm:$0xff]  ;;  %v1115_v16 = vld [vmem:[#allocation2 + $0x100] sm:$0xff] }
 0x221   : > { %v1393_v21 = vpop.f32.mrf.mxu0  ;;  %v1506_v22 = vpop.f32.mrf.mxu1 }
 0x222   : > { %1644 = vst [vmem:[#allocation2 + $0x110] sm:$0xff] %v1580_v19  ;;  %1646 = vst [vmem:[#allocation2 + $0x98] sm:$0xff] %v1582_v20  ;;  %v1583_v25 = vadd.f32 %v1393_v21, %v1093_v17  ;;  %v1585_v26 = vadd.f32 %v1506_v22, %v1095_v18  ;;  %v1114_v19 = vld [vmem:[#allocation2 + $0x1d0] sm:$0xff]  ;;  %v1116_v20 = vld [vmem:[#allocation2 + $0xc8] sm:$0xff] }
 0x223   : > { %v1395_v27 = vpop.f32.mrf.mxu0  ;;  %v1508_v28 = vpop.f32.mrf.mxu1 }
 0x224   : > { %1647 = vst [vmem:[#allocation2 + $0x120] sm:$0xff] %v1583_v25  ;;  %1649 = vst [vmem:[#allocation2 + $0x108] sm:$0xff] %v1585_v26  ;;  %v1584_v29 = vadd.f32 %v1395_v27, %v1094_v23  ;;  %v1586_v30 = vadd.f32 %v1508_v28, %v1096_v24  ;;  %v1117_v25 = vld [vmem:[#allocation2 + $0x40] sm:$0xff] }
 0x225   : > { %v1119_v26 = vld [vmem:[#allocation2 + $0x20] sm:$0xff] }
 0x226   : > { %1648 = vst [vmem:[#allocation2 + $0x150] sm:$0xff] %v1584_v29  ;;  %1650 = vst [vmem:[#allocation2 + $0x60] sm:$0xff] %v1586_v30  ;;  %v1399_v33 = vpop.f32.mrf.mxu0  ;;  %v1512_v34 = vpop.f32.mrf.mxu1 }
 0x227   : > { %v1587_v38 = vadd.f32 %v1399_v33, %v1097_v31  ;;  %v1589_v39 = vadd.f32 %v1512_v34, %v1099_v32  ;;  %v1118_v31 = vld [vmem:[#allocation2 + $0x1f8] sm:$0xff]  ;;  %v1120_v32 = vld [vmem:[#allocation2 + $0x128] sm:$0xff] }
 0x228   : > { %v1401_v40 = vpop.f32.mrf.mxu0  ;;  %v1514_v41 = vpop.f32.mrf.mxu1 }
 0x229   : > { %1651 = vst [vmem:[#allocation2 + $0xe0] sm:$0xff] %v1587_v38  ;;  %1653 = vst [vmem:[#allocation2 + $0x138] sm:$0xff] %v1589_v39  ;;  %v1588_v44 = vadd.f32 %v1401_v40, %v1098_v36  ;;  %v1590_v45 = vadd.f32 %v1514_v41, %v1100_v37  ;;  %v1121_v38 = vld [vmem:[#allocation2 + $0x1a0] sm:$0xff]  ;;  %v1123_v39 = vld [vmem:[#allocation2 + $0xe8] sm:$0xff] }
 0x22a   : > { %v1403_v46 = vpop.f32.mrf.mxu0  ;;  %v1516_v47 = vpop.f32.mrf.mxu1 }
 0x22b   : > { %1652 = vst [vmem:[#allocation2 + $0x188] sm:$0xff] %v1588_v44  ;;  %1654 = vst [vmem:[#allocation2 + $0x140] sm:$0xff] %v1590_v45  ;;  %v1591_v52 = vadd.f32 %v1403_v46, %v1101_v42  ;;  %v1593_v53 = vadd.f32 %v1516_v47, %v1103_v43  ;;  %v1122_v44 = vld [vmem:[#allocation2 + $0x1f0] sm:$0xff]  ;;  %v1124_v45 = vld [vmem:[#allocation2 + $0x78] sm:$0xff] }
 0x22c   : > { %v1405_v54 = vpop.f32.mrf.mxu0  ;;  %v1518_v55 = vpop.f32.mrf.mxu1 }
 0x22d   : > { %1655 = vst [vmem:[#allocation2 + $0x80] sm:$0xff] %v1591_v52  ;;  %1657 = vst [vmem:[#allocation2 + $0x1b8] sm:$0xff] %v1593_v53  ;;  %v1592_v57 = vadd.f32 %v1405_v54, %v1102_v48  ;;  %v1594_v58 = vadd.f32 %v1518_v55, %v1104_v51  ;;  %v1125_v52 = vld [vmem:[#allocation2 + $0x70] sm:$0xff]  ;;  %v1127_v53 = vld [vmem:[#allocation2 + $0x1d8] sm:$0xff] }
 0x22e   : > { %v1409_v59 = vpop.f32.mrf.mxu0  ;;  %v1522_v60 = vpop.f32.mrf.mxu1 }
 0x22f   : > { %1656 = vst [vmem:[#allocation2 + $0x1a8] sm:$0xff] %v1592_v57  ;;  %1658 = vst [vmem:[#allocation2 + $0x28] sm:$0xff] %v1594_v58  ;;  %v1595_v63 = vadd.f32 %v1409_v59, %v1105_v49  ;;  %v1597_v0 = vadd.f32 %v1522_v60, %v1107_v56  ;;  %v1126_v57 = vld [vmem:[#allocation2 + $0x90] sm:$0xff] }
 0x230   : > { %v1411_v1 = vpop.f32.mrf.mxu0  ;;  %v1524_v2 = vpop.f32.mrf.mxu1  ;;  %v1128_v58 = vld [vmem:[#allocation2 + $0xd0] sm:$0xff] }
 0x231   : > { %1659 = vst [vmem:[#allocation2 + $0x1e8] sm:$0xff] %v1595_v63  ;;  %1661 = vst [vmem:[#allocation2 + $0x160] sm:$0xff] %v1597_v0  ;;  %v1596_v5 = vadd.f32 %v1411_v1, %v1106_v61  ;;  %v1598_v6 = vadd.f32 %v1524_v2, %v1108_v62  ;;  %v1129_v63 = vld [vmem:[#allocation2 + $0xb8] sm:$0xff]  ;;  %v1131_v0 = vld [vmem:[#allocation2 + $0xa8] sm:$0xff] }
 0x232   : > { %v1413_v7 = vpop.f32.mrf.mxu0  ;;  %v1526_v8 = vpop.f32.mrf.mxu1 }
 0x233   : > { %1660 = vst [vmem:[#allocation2 + $0xf8] sm:$0xff] %v1596_v5  ;;  %1662 = vst [vmem:[#allocation2 + $0x30] sm:$0xff] %v1598_v6  ;;  %v1599_v10 = vadd.f32 %v1413_v7, %v1109_v3  ;;  %v1601_v11 = vadd.f32 %v1526_v8, %v1111_v4  ;;  %v1130_v5 = vld [vmem:[#allocation2 + $0x88] sm:$0xff] }
 0x234   : > { %v1415_v12 = vpop.f32.mrf.mxu0  ;;  %v1528_v13 = vpop.f32.mrf.mxu1  ;;  %v1132_v6 = vld [vmem:[#allocation2 + $0x1c8] sm:$0xff] }
 0x235   : > { %1663 = vst [vmem:[#allocation2 + $0x1e0] sm:$0xff] %v1599_v10  ;;  %1665 = vst [vmem:[#allocation2 + $0xf0] sm:$0xff] %v1601_v11  ;;  %v1600_v14 = vadd.f32 %v1415_v12, %v1110_v35  ;;  %v1602_v15 = vadd.f32 %v1528_v13, %v1112_v9  ;;  %v1133_v10 = vld [vmem:[#allocation2 + $0x170] sm:$0xff]  ;;  %v1135_v11 = vld [vmem:[#allocation2 + $0x68] sm:$0xff] }
 0x237   : > { %1664 = vst [vmem:[#allocation2] sm:$0xff] %v1600_v14  ;;  %1666 = vst [vmem:[#allocation2 + $0x8] sm:$0xff] %v1602_v15  ;;  %v1419_v17 = vpop.f32.mrf.mxu0  ;;  %v1532_v18 = vpop.f32.mrf.mxu1 }
 0x238   : > { %v1603_v21 = vadd.f32 %v1419_v17, %v1113_v50  ;;  %v1605_v22 = vadd.f32 %v1532_v18, %v1115_v16  ;;  %v1134_v50 = vld [vmem:[#allocation2 + $0x178] sm:$0xff]  ;;  %v1136_v16 = vld [vmem:[#allocation2 + $0x190] sm:$0xff] }
 0x239   : > { %v1421_v23 = vpop.f32.mrf.mxu0  ;;  %v1534_v24 = vpop.f32.mrf.mxu1 }
 0x23a   : > { %1667 = vst [vmem:[#allocation2 + $0x148] sm:$0xff] %v1603_v21  ;;  %1669 = vst [vmem:[#allocation2 + $0x100] sm:$0xff] %v1605_v22  ;;  %v1604_v27 = vadd.f32 %v1421_v23, %v1114_v19  ;;  %v1606_v28 = vadd.f32 %v1534_v24, %v1116_v20  ;;  %v1137_v21 = vld [vmem:[#allocation2 + $0x198] sm:$0xff]  ;;  %v1139_v22 = vld [vmem:[#allocation2 + $0xc0] sm:$0xff] }
 0x23b   : > { %v1423_v29 = vpop.f32.mrf.mxu0  ;;  %v1536_v30 = vpop.f32.mrf.mxu1 }
 0x23c   : > { %1668 = vst [vmem:[#allocation2 + $0x1d0] sm:$0xff] %v1604_v27  ;;  %1670 = vst [vmem:[#allocation2 + $0xc8] sm:$0xff] %v1606_v28  ;;  %v1607_v33 = vadd.f32 %v1423_v29, %v1117_v25  ;;  %v1609_v34 = vadd.f32 %v1536_v30, %v1119_v26  ;;  %v1138_v27 = vld [vmem:[#allocation2 + $0x38] sm:$0xff]  ;;  %v1140_v28 = vld [vmem:[#allocation2 + $0x1c0] sm:$0xff] }
 0x23d   : > { %v1425_v36 = vpop.f32.mrf.mxu0  ;;  %v1538_v37 = vpop.f32.mrf.mxu1 }
 0x23e   : > { %1671 = vst [vmem:[#allocation2 + $0x40] sm:$0xff] %v1607_v33  ;;  %1673 = vst [vmem:[#allocation2 + $0x20] sm:$0xff] %v1609_v34  ;;  %v1608_v40 = vadd.f32 %v1425_v36, %v1118_v31  ;;  %v1610_v41 = vadd.f32 %v1538_v37, %v1120_v32  ;;  %v1141_v33 = vld [vmem:[#allocation2 + $0x158] sm:$0xff] }
 0x23f   : > { %v1429_v42 = vpop.f32.mrf.mxu0  ;;  %v1542_v43 = vpop.f32.mrf.mxu1  ;;  %v1143_v34 = vld [vmem:[#allocation2 + $0x58] sm:$0xff] }
 0x240   : > { %1672 = vst [vmem:[#allocation2 + $0x1f8] sm:$0xff] %v1608_v40  ;;  %1674 = vst [vmem:[#allocation2 + $0x128] sm:$0xff] %v1610_v41  ;;  %v1611_v46 = vadd.f32 %v1429_v42, %v1121_v38  ;;  %v1613_v47 = vadd.f32 %v1542_v43, %v1123_v39  ;;  %v1142_v40 = vld [vmem:[#allocation2 + $0x10] sm:$0xff]  ;;  %v1144_v41 = vld [vmem:[#allocation2 + $0xa0] sm:$0xff] }
 0x241   : > { %v1431_v48 = vpop.f32.mrf.mxu0  ;;  %v1544_v51 = vpop.f32.mrf.mxu1 }
 0x242   : > { %1675 = vst [vmem:[#allocation2 + $0x1a0] sm:$0xff] %v1611_v46  ;;  %1677 = vst [vmem:[#allocation2 + $0xe8] sm:$0xff] %v1613_v47  ;;  %v1612_v54 = vadd.f32 %v1431_v48, %v1122_v44  ;;  %v1614_v55 = vadd.f32 %v1544_v51, %v1124_v45 }
 0x243   : > { %v1433_v49 = vpop.f32.mrf.mxu0  ;;  %v1546_v56 = vpop.f32.mrf.mxu1 }
 0x244   : > { %1676 = vst [vmem:[#allocation2 + $0x1f0] sm:$0xff] %v1612_v54  ;;  %1678 = vst [vmem:[#allocation2 + $0x78] sm:$0xff] %v1614_v55  ;;  %v1615_v59 = vadd.f32 %v1433_v49, %v1125_v52  ;;  %v1617_v60 = vadd.f32 %v1546_v56, %v1127_v53 }
 0x245   : > { %v1435_v61 = vpop.f32.mrf.mxu0  ;;  %v1548_v62 = vpop.f32.mrf.mxu1 }
 0x246   : > { %1679 = vst [vmem:[#allocation2 + $0x70] sm:$0xff] %v1615_v59  ;;  %1681 = vst [vmem:[#allocation2 + $0x1d8] sm:$0xff] %v1617_v60  ;;  %v1616_v1 = vadd.f32 %v1435_v61, %v1126_v57  ;;  %v1618_v2 = vadd.f32 %v1548_v62, %v1128_v58 }
 0x247   : > { %v1439_v3 = vpop.f32.mrf.mxu0  ;;  %v1552_v4 = vpop.f32.mrf.mxu1 }
 0x248   : > { %1680 = vst [vmem:[#allocation2 + $0x90] sm:$0xff] %v1616_v1  ;;  %1682 = vst [vmem:[#allocation2 + $0xd0] sm:$0xff] %v1618_v2  ;;  %v1619_v7 = vadd.f32 %v1439_v3, %v1129_v63  ;;  %v1621_v8 = vadd.f32 %v1552_v4, %v1131_v0 }
 0x249   : > { %v1441_v35 = vpop.f32.mrf.mxu0  ;;  %v1554_v9 = vpop.f32.mrf.mxu1 }
 0x24a   : > { %1683 = vst [vmem:[#allocation2 + $0xb8] sm:$0xff] %v1619_v7  ;;  %1685 = vst [vmem:[#allocation2 + $0xa8] sm:$0xff] %v1621_v8  ;;  %v1620_v12 = vadd.f32 %v1441_v35, %v1130_v5  ;;  %v1622_v13 = vadd.f32 %v1554_v9, %v1132_v6 }
 0x24b   : > { %v1443_v14 = vpop.f32.mrf.mxu0  ;;  %v1556_v15 = vpop.f32.mrf.mxu1 }
 0x24c   : > { %1684 = vst [vmem:[#allocation2 + $0x88] sm:$0xff] %v1620_v12  ;;  %1686 = vst [vmem:[#allocation2 + $0x1c8] sm:$0xff] %v1622_v13  ;;  %v1623_v17 = vadd.f32 %v1443_v14, %v1133_v10  ;;  %v1625_v18 = vadd.f32 %v1556_v15, %v1135_v11 }
 0x24d   : > { %v1445_v19 = vpop.f32.mrf.mxu0  ;;  %v1558_v20 = vpop.f32.mrf.mxu1 }
 0x24e   : > { %1687 = vst [vmem:[#allocation2 + $0x170] sm:$0xff] %v1623_v17  ;;  %1689 = vst [vmem:[#allocation2 + $0x68] sm:$0xff] %v1625_v18  ;;  %v1624_v23 = vadd.f32 %v1445_v19, %v1134_v50  ;;  %v1626_v24 = vadd.f32 %v1558_v20, %v1136_v16 }
 0x24f   : > { %v1449_v25 = vpop.f32.mrf.mxu0  ;;  %v1562_v26 = vpop.f32.mrf.mxu1 }
 0x250   : > { %1688 = vst [vmem:[#allocation2 + $0x178] sm:$0xff] %v1624_v23  ;;  %1690 = vst [vmem:[#allocation2 + $0x190] sm:$0xff] %v1626_v24  ;;  %v1627_v29 = vadd.f32 %v1449_v25, %v1137_v21  ;;  %v1629_v30 = vadd.f32 %v1562_v26, %v1139_v22 }
 0x251   : > { %v1451_v31 = vpop.f32.mrf.mxu0  ;;  %v1564_v32 = vpop.f32.mrf.mxu1 }
 0x252   : > { %1691 = vst [vmem:[#allocation2 + $0x198] sm:$0xff] %v1627_v29  ;;  %1693 = vst [vmem:[#allocation2 + $0xc0] sm:$0xff] %v1629_v30  ;;  %v1628_v36 = vadd.f32 %v1451_v31, %v1138_v27  ;;  %v1630_v37 = vadd.f32 %v1564_v32, %v1140_v28 }
 0x253   : > { %v1453_v38 = vpop.f32.mrf.mxu0  ;;  %v1566_v39 = vpop.f32.mrf.mxu1 }
 0x254   : > { %1692 = vst [vmem:[#allocation2 + $0x38] sm:$0xff] %v1628_v36  ;;  %1694 = vst [vmem:[#allocation2 + $0x1c0] sm:$0xff] %v1630_v37  ;;  %v1631_v42 = vadd.f32 %v1453_v38, %v1141_v33  ;;  %v1633_v43 = vadd.f32 %v1566_v39, %v1143_v34  ;;  %1702 = sbr.rel (%p2211_p0) target bundleno = 774 (0x306), region = 130 }
 0x255   : > { %v1455_v44 = vpop.f32.mrf.mxu0  ;;  %v1568_v45 = vpop.f32.mrf.mxu1 }
 0x256   : > { %1695 = vst [vmem:[#allocation2 + $0x158] sm:$0xff] %v1631_v42  ;;  %1697 = vst [vmem:[#allocation2 + $0x58] sm:$0xff] %v1633_v43  ;;  %v1632_v46 = vadd.f32 %v1455_v44, %v1142_v40  ;;  %v1634_v47 = vadd.f32 %v1568_v45, %v1144_v41 }
 0x258   : > { %1696 = vst [vmem:[#allocation2 + $0x10] sm:$0xff] %v1632_v46  ;;  %1698 = vst [vmem:[#allocation2 + $0xa0] sm:$0xff] %v1634_v47 }
 0x259   : > { %v1769_v48 = vld [vmem:[#allocation3 + $0x10] sm:$0xff]  ;;  %v1767_v51 = vld [vmem:[#allocation3] sm:$0xff]  ;;  %v1770_v52 = vld [vmem:[#allocation3 + $0x18] sm:$0xff]  ;;  %v2593_v53 = vmov 0  }
 0x25a   : > { %2502 = vset.pattern.permute.xlu1 %v2593_v53  ;;  %2501 = vset.pattern.permute.xlu0 %v2593_v53  ;;  %2503 = vrcp.f32 %v1769_v48  ;;  %v1768_v54 = vld [vmem:[#allocation3 + $0x8] sm:$0xff]  ;;  %v1771_v49 = vld [vmem:[#allocation3 + $0x20] sm:$0xff]  ;;  %v1774_v56 = vld [vmem:[#allocation3 + $0x38] sm:$0xff] }
 0x25b   : > { %2505 = vrcp.f32 %v1767_v51  ;;  %v1772_v55 = vld [vmem:[#allocation3 + $0x28] sm:$0xff]  ;;  %v1773_v57 = vld [vmem:[#allocation3 + $0x30] sm:$0xff]  ;;  %v1775_v59 = vld [vmem:[#allocation3 + $0x40] sm:$0xff] }
 0x25c   : > { %2507 = vrcp.f32 %v1770_v52  ;;  %v1776_v58 = vld [vmem:[#allocation3 + $0x48] sm:$0xff]  ;;  %v1778_v63 = vld [vmem:[#allocation3 + $0x58] sm:$0xff]  ;;  %v1777_v1 = vld [vmem:[#allocation3 + $0x50] sm:$0xff] }
 0x25d   : > { %2509 = vrcp.f32 %v1768_v54  ;;  %v1780_v3 = vld [vmem:[#allocation3 + $0x68] sm:$0xff]  ;;  %v1779_v5 = vld [vmem:[#allocation3 + $0x60] sm:$0xff]  ;;  %v1782_v7 = vld [vmem:[#allocation3 + $0x78] sm:$0xff] }
 0x25e   : > { %2511 = vrcp.f32 %v1772_v55  ;;  %v1781_v35 = vld [vmem:[#allocation3 + $0x70] sm:$0xff]  ;;  %v1711_v16 = vld [vmem:[#allocation2 + $0x180] sm:$0xff]  ;;  %v1713_v18 = vld [vmem:[#allocation2 + $0x118] sm:$0xff] }
 0x25f   : > { %2513 = vrcp.f32 %v1771_v49  ;;  %v1712_v17 = vld [vmem:[#allocation2 + $0x110] sm:$0xff]  ;;  %v1714_v19 = vld [vmem:[#allocation2 + $0x98] sm:$0xff]  ;;  %v1715_v30 = vld [vmem:[#allocation2 + $0x120] sm:$0xff] }
 0x260   : > { %2515 = vrcp.f32 %v1774_v56  ;;  %v1703_v20 = vld [vmem:[#allocation2 + $0xb0] sm:$0xff]  ;;  %v1705_v22 = vld [vmem:[#allocation2 + $0xd8] sm:$0xff]  ;;  %v1717_v37 = vld [vmem:[#allocation2 + $0x108] sm:$0xff] }
 0x261   : > { %2517 = vrcp.f32 %v1773_v57  ;;  %v1704_v21 = vld [vmem:[#allocation2 + $0x1b0] sm:$0xff]  ;;  %v1706_v23 = vld [vmem:[#allocation2 + $0x18] sm:$0xff]  ;;  %v1718_v38 = vld [vmem:[#allocation2 + $0x60] sm:$0xff] }
 0x262   : > { %2519 = vrcp.f32 %v1776_v58  ;;  %v1716_v31 = vld [vmem:[#allocation2 + $0x150] sm:$0xff]  ;;  %v1708_v40 = vld [vmem:[#allocation2 + $0x168] sm:$0xff]  ;;  %v1723_v51 = vld [vmem:[#allocation2 + $0x80] sm:$0xff] }
 0x263   : > { %2521 = vrcp.f32 %v1775_v59  ;;  %v1707_v39 = vld [vmem:[#allocation2 + $0x50] sm:$0xff]  ;;  %v1710_v42 = vld [vmem:[#allocation2 + $0x48] sm:$0xff]  ;;  %v1725_v56 = vld [vmem:[#allocation2 + $0x1b8] sm:$0xff] }
 0x264   : > { %2523 = vrcp.f32 %v1778_v63  ;;  %v1709_v41 = vld [vmem:[#allocation2 + $0x130] sm:$0xff]  ;;  %v1724_v52 = vld [vmem:[#allocation2 + $0x1a8] sm:$0xff]  ;;  %v1719_v58 = vld [vmem:[#allocation2 + $0xe0] sm:$0xff] }
 0x265   : > { %2525 = vrcp.f32 %v1777_v1  ;;  %v1726_v57 = vld [vmem:[#allocation2 + $0x28] sm:$0xff] }
 0x266   : > { %2527 = vrcp.f32 %v1780_v3  ;;  %v1720_v59 = vld [vmem:[#allocation2 + $0x188] sm:$0xff] }
 0x267   : > { %v2504_v60 = vpop.eup %2503  ;;  %2529 = vrcp.f32 %v1779_v5  ;;  %v1732_v5 = vld [vmem:[#allocation2] sm:$0xff] }
 0x268   : > { %v2506_v61 = vpop.eup %2505  ;;  %1811 = vperm.xlu1 %2502, %v2504_v60   ;;  %2531 = vrcp.f32 %v1782_v7  ;;  %v1721_v60 = vld [vmem:[#allocation2 + $0x138] sm:$0xff] }
 0x269   : > { %v2508_v62 = vpop.eup %2507  ;;  %1801 = vperm.xlu0 %2501, %v2506_v61   ;;  %2533 = vrcp.f32 %v1781_v35  ;;  %v1722_v61 = vld [vmem:[#allocation2 + $0x140] sm:$0xff] }
 0x26a   : > { %v2510_v0 = vpop.eup %2509 }
 0x26b   : > { %v2512_v2 = vpop.eup %2511 }
 0x26c   : > { %1816 = vperm.xlu1 %2502, %v2508_v62   ;;  %v2514_v4 = vpop.eup %2513 }
 0x26d   : > { %1806 = vperm.xlu0 %2501, %v2510_v0   ;;  %v2516_v6 = vpop.eup %2515 }
 0x26e   : > { %v2518_v8 = vpop.eup %2517 }
 0x26f   : > { %v2520_v9 = vpop.eup %2519 }
 0x270   : > { %1826 = vperm.xlu1 %2502, %v2512_v2   ;;  %v2522_v10 = vpop.eup %2521 }
 0x271   : > { %1821 = vperm.xlu0 %2501, %v2514_v4   ;;  %v2524_v11 = vpop.eup %2523  ;;  %v1731_v4 = vld [vmem:[#allocation2 + $0x1e0] sm:$0xff] }
 0x272   : > { %v2526_v12 = vpop.eup %2525 }
 0x273   : > { %v2528_v13 = vpop.eup %2527 }
 0x274   : > { %1836 = vperm.xlu1 %2502, %v2516_v6   ;;  %v2530_v14 = vpop.eup %2529 }
 0x275   : > { %1831 = vperm.xlu0 %2501, %v2518_v8   ;;  %v2532_v15 = vpop.eup %2531 }
 0x276   : > { %v2534_v50 = vpop.eup %2533 }
 0x278   : > { %1846 = vperm.xlu1 %2502, %v2520_v9   ;;  %v1733_v9 = vld [vmem:[#allocation2 + $0xf0] sm:$0xff] }
 0x279   : > { %1841 = vperm.xlu0 %2501, %v2522_v10   ;;  %v1734_v10 = vld [vmem:[#allocation2 + $0x8] sm:$0xff] }
 0x27c   : > { %1856 = vperm.xlu1 %2502, %v2524_v11   ;;  %v1727_v11 = vld [vmem:[#allocation2 + $0x1e8] sm:$0xff] }
 0x27d   : > { %1851 = vperm.xlu0 %2501, %v2526_v12   ;;  %v1728_v12 = vld [vmem:[#allocation2 + $0xf8] sm:$0xff] }
 0x280   : > { %1866 = vperm.xlu1 %2502, %v2528_v13   ;;  %v1729_v13 = vld [vmem:[#allocation2 + $0x160] sm:$0xff] }
 0x281   : > { %1861 = vperm.xlu0 %2501, %v2530_v14   ;;  %v1730_v14 = vld [vmem:[#allocation2 + $0x30] sm:$0xff] }
 0x284   : > { %1876 = vperm.xlu1 %2502, %v2532_v15  }
 0x285   : > { %1871 = vperm.xlu0 %2501, %v2534_v50  }
 0x2e3   : > { %v1812_v24 = vpop.permute.xlu1 %1811 }
 0x2e4   : > { %v1887_v25 = vmul.f32 %v1812_v24, %v1711_v16  ;;  %v1888_v26 = vmul.f32 %v1812_v24, %v1712_v17  ;;  %v1889_v27 = vmul.f32 %v1812_v24, %v1713_v18  ;;  %v1890_v28 = vmul.f32 %v1812_v24, %v1714_v19  ;;  %v1802_v29 = vpop.permute.xlu0 %1801 }
 0x2e5   : > { %v1879_v32 = vmul.f32 %v1802_v29, %v1703_v20  ;;  %v1880_v33 = vmul.f32 %v1802_v29, %v1704_v21  ;;  %v1881_v34 = vmul.f32 %v1802_v29, %v1705_v22  ;;  %v1882_v36 = vmul.f32 %v1802_v29, %v1706_v23  ;;  %v1739_v20 = vld [vmem:[#allocation2 + $0x40] sm:$0xff]  ;;  %v1740_v21 = vld [vmem:[#allocation2 + $0x1f8] sm:$0xff]  ;;  %v1736_v29 = vld [vmem:[#allocation2 + $0x1d0] sm:$0xff] }
 0x2e6   : > { %1951 = vst [vmem:[%s2760_s16 + $0x40] sm:$0xff] %v1887_v25  ;;  %1952 = vst [vmem:[%s2760_s16 + $0x48] sm:$0xff] %v1888_v26  ;;  %v1741_v26 = vld [vmem:[#allocation2 + $0x20] sm:$0xff] }
 0x2e7   : > { %1953 = vst [vmem:[%s2760_s16 + $0x50] sm:$0xff] %v1889_v27  ;;  %1954 = vst [vmem:[%s2760_s16 + $0x58] sm:$0xff] %v1890_v28  ;;  %v1817_v43 = vpop.permute.xlu1 %1816  ;;  %v1742_v27 = vld [vmem:[#allocation2 + $0x128] sm:$0xff] }
 0x2e8   : > { %1943 = vst [vmem:[%s2760_s16] sm:$0xff] %v1879_v32  ;;  %1944 = vst [vmem:[%s2760_s16 + $0x8] sm:$0xff] %v1880_v33  ;;  %v1891_v44 = vmul.f32 %v1817_v43, %v1715_v30  ;;  %v1892_v45 = vmul.f32 %v1817_v43, %v1716_v31  ;;  %v1893_v46 = vmul.f32 %v1817_v43, %v1717_v37  ;;  %v1807_v48 = vpop.permute.xlu0 %1806  ;;  %v1735_v28 = vld [vmem:[#allocation2 + $0x148] sm:$0xff]  ;;  %v1737_v30 = vld [vmem:[#allocation2 + $0x100] sm:$0xff] }
 0x2e9   : > { %1945 = vst [vmem:[%s2760_s16 + $0x10] sm:$0xff] %v1881_v34  ;;  %1946 = vst [vmem:[%s2760_s16 + $0x18] sm:$0xff] %v1882_v36  ;;  %v1894_v47 = vmul.f32 %v1817_v43, %v1718_v38  ;;  %v1883_v53 = vmul.f32 %v1807_v48, %v1707_v39  ;;  %v1884_v54 = vmul.f32 %v1807_v48, %v1708_v40  ;;  %v1738_v31 = vld [vmem:[#allocation2 + $0xc8] sm:$0xff]  ;;  %v1747_v39 = vld [vmem:[#allocation2 + $0x70] sm:$0xff] }
 0x2ea   : > { %v1885_v55 = vmul.f32 %v1807_v48, %v1709_v41  ;;  %v1886_v49 = vmul.f32 %v1807_v48, %v1710_v42  ;;  %1955 = vst [vmem:[%s2760_s16 + $0x60] sm:$0xff] %v1891_v44  ;;  %1956 = vst [vmem:[%s2760_s16 + $0x68] sm:$0xff] %v1892_v45  ;;  %v1748_v40 = vld [vmem:[#allocation2 + $0x90] sm:$0xff]  ;;  %v1749_v45 = vld [vmem:[#allocation2 + $0x1d8] sm:$0xff] }
 0x2eb   : > { %1957 = vst [vmem:[%s2760_s16 + $0x70] sm:$0xff] %v1893_v46  ;;  %1958 = vst [vmem:[%s2760_s16 + $0x78] sm:$0xff] %v1894_v47  ;;  %v1827_v62 = vpop.permute.xlu1 %1826  ;;  %v1750_v46 = vld [vmem:[#allocation2 + $0xd0] sm:$0xff]  ;;  %v1743_v47 = vld [vmem:[#allocation2 + $0x1a0] sm:$0xff] }
 0x2ec   : > { %1947 = vst [vmem:[%s2760_s16 + $0x20] sm:$0xff] %v1883_v53  ;;  %1948 = vst [vmem:[%s2760_s16 + $0x28] sm:$0xff] %v1884_v54  ;;  %v1899_v63 = vmul.f32 %v1827_v62, %v1723_v51  ;;  %v1900_v0 = vmul.f32 %v1827_v62, %v1724_v52  ;;  %v1901_v1 = vmul.f32 %v1827_v62, %v1725_v56  ;;  %v1822_v3 = vpop.permute.xlu0 %1821  ;;  %v1744_v48 = vld [vmem:[#allocation2 + $0x1f0] sm:$0xff]  ;;  %v1745_v51 = vld [vmem:[#allocation2 + $0xe8] sm:$0xff] }
 0x2ed   : > { %1949 = vst [vmem:[%s2760_s16 + $0x30] sm:$0xff] %v1885_v55  ;;  %1950 = vst [vmem:[%s2760_s16 + $0x38] sm:$0xff] %v1886_v49  ;;  %v1902_v2 = vmul.f32 %v1827_v62, %v1726_v57  ;;  %v1895_v6 = vmul.f32 %v1822_v3, %v1719_v58  ;;  %v1896_v7 = vmul.f32 %v1822_v3, %v1720_v59  ;;  %v1746_v52 = vld [vmem:[#allocation2 + $0x78] sm:$0xff]  ;;  %v1755_v58 = vld [vmem:[#allocation2 + $0x170] sm:$0xff] }
 0x2ee   : > { %v1897_v8 = vmul.f32 %v1822_v3, %v1721_v60  ;;  %v1898_v35 = vmul.f32 %v1822_v3, %v1722_v61  ;;  %1963 = vst [vmem:[%s2760_s16 + $0xa0] sm:$0xff] %v1899_v63  ;;  %1964 = vst [vmem:[%s2760_s16 + $0xa8] sm:$0xff] %v1900_v0  ;;  %v1756_v59 = vld [vmem:[#allocation2 + $0x178] sm:$0xff]  ;;  %v1757_v0 = vld [vmem:[#allocation2 + $0x68] sm:$0xff] }
 0x2ef   : > { %1965 = vst [vmem:[%s2760_s16 + $0xb0] sm:$0xff] %v1901_v1  ;;  %1966 = vst [vmem:[%s2760_s16 + $0xb8] sm:$0xff] %v1902_v2  ;;  %v1837_v15 = vpop.permute.xlu1 %1836  ;;  %v1758_v1 = vld [vmem:[#allocation2 + $0x190] sm:$0xff]  ;;  %v1751_v2 = vld [vmem:[#allocation2 + $0xb8] sm:$0xff] }
 0x2f0   : > { %1959 = vst [vmem:[%s2760_s16 + $0x80] sm:$0xff] %v1895_v6  ;;  %1960 = vst [vmem:[%s2760_s16 + $0x88] sm:$0xff] %v1896_v7  ;;  %v1907_v50 = vmul.f32 %v1837_v15, %v1731_v4  ;;  %v1908_v16 = vmul.f32 %v1837_v15, %v1732_v5  ;;  %v1909_v17 = vmul.f32 %v1837_v15, %v1733_v9  ;;  %v1832_v19 = vpop.permute.xlu0 %1831  ;;  %v1752_v3 = vld [vmem:[#allocation2 + $0x88] sm:$0xff] }
 0x2f1   : > { %1961 = vst [vmem:[%s2760_s16 + $0x90] sm:$0xff] %v1897_v8  ;;  %1962 = vst [vmem:[%s2760_s16 + $0x98] sm:$0xff] %v1898_v35  ;;  %v1910_v18 = vmul.f32 %v1837_v15, %v1734_v10  ;;  %v1903_v22 = vmul.f32 %v1832_v19, %v1727_v11  ;;  %v1904_v23 = vmul.f32 %v1832_v19, %v1728_v12  ;;  %v1753_v4 = vld [vmem:[#allocation2 + $0xa8] sm:$0xff]  ;;  %v1763_v11 = vld [vmem:[#allocation2 + $0x158] sm:$0xff] }
 0x2f2   : > { %v1905_v24 = vmul.f32 %v1832_v19, %v1729_v13  ;;  %v1906_v25 = vmul.f32 %v1832_v19, %v1730_v14  ;;  %1971 = vst [vmem:[%s2760_s16 + $0xe0] sm:$0xff] %v1907_v50  ;;  %1972 = vst [vmem:[%s2760_s16 + $0xe8] sm:$0xff] %v1908_v16  ;;  %v1754_v5 = vld [vmem:[#allocation2 + $0x1c8] sm:$0xff]  ;;  %v1764_v12 = vld [vmem:[#allocation2 + $0x10] sm:$0xff] }
 0x2f3   : > { %1973 = vst [vmem:[%s2760_s16 + $0xf0] sm:$0xff] %v1909_v17  ;;  %1974 = vst [vmem:[%s2760_s16 + $0xf8] sm:$0xff] %v1910_v18  ;;  %v1847_v32 = vpop.permute.xlu1 %1846  ;;  %v1765_v16 = vld [vmem:[#allocation2 + $0x58] sm:$0xff]  ;;  %v1766_v17 = vld [vmem:[#allocation2 + $0xa0] sm:$0xff] }
 0x2f4   : > { %1967 = vst [vmem:[%s2760_s16 + $0xc0] sm:$0xff] %v1903_v22  ;;  %1968 = vst [vmem:[%s2760_s16 + $0xc8] sm:$0xff] %v1904_v23  ;;  %v1915_v33 = vmul.f32 %v1847_v32, %v1739_v20  ;;  %v1916_v34 = vmul.f32 %v1847_v32, %v1740_v21  ;;  %v1917_v36 = vmul.f32 %v1847_v32, %v1741_v26  ;;  %v1842_v38 = vpop.permute.xlu0 %1841  ;;  %v1759_v18 = vld [vmem:[#allocation2 + $0x198] sm:$0xff]  ;;  %v1761_v20 = vld [vmem:[#allocation2 + $0xc0] sm:$0xff] }
 0x2f5   : > { %1969 = vst [vmem:[%s2760_s16 + $0xd0] sm:$0xff] %v1905_v24  ;;  %1970 = vst [vmem:[%s2760_s16 + $0xd8] sm:$0xff] %v1906_v25  ;;  %v1918_v37 = vmul.f32 %v1847_v32, %v1742_v27  ;;  %v1911_v41 = vmul.f32 %v1842_v38, %v1735_v28  ;;  %v1912_v42 = vmul.f32 %v1842_v38, %v1736_v29  ;;  %v1760_v19 = vld [vmem:[#allocation2 + $0x38] sm:$0xff]  ;;  %v1762_v21 = vld [vmem:[#allocation2 + $0x1c0] sm:$0xff] }
 0x2f6   : > { %v1913_v43 = vmul.f32 %v1842_v38, %v1737_v30  ;;  %v1914_v44 = vmul.f32 %v1842_v38, %v1738_v31  ;;  %1979 = vst [vmem:[%s2760_s16 + $0x120] sm:$0xff] %v1915_v33  ;;  %1980 = vst [vmem:[%s2760_s16 + $0x128] sm:$0xff] %v1916_v34 }
 0x2f7   : > { %1981 = vst [vmem:[%s2760_s16 + $0x130] sm:$0xff] %v1917_v36  ;;  %1982 = vst [vmem:[%s2760_s16 + $0x138] sm:$0xff] %v1918_v37  ;;  %v1857_v53 = vpop.permute.xlu1 %1856 }
 0x2f8   : > { %1975 = vst [vmem:[%s2760_s16 + $0x100] sm:$0xff] %v1911_v41  ;;  %1976 = vst [vmem:[%s2760_s16 + $0x108] sm:$0xff] %v1912_v42  ;;  %v1923_v54 = vmul.f32 %v1857_v53, %v1747_v39  ;;  %v1924_v55 = vmul.f32 %v1857_v53, %v1748_v40  ;;  %v1925_v49 = vmul.f32 %v1857_v53, %v1749_v45  ;;  %v1852_v57 = vpop.permute.xlu0 %1851 }
 0x2f9   : > { %1977 = vst [vmem:[%s2760_s16 + $0x110] sm:$0xff] %v1913_v43  ;;  %1978 = vst [vmem:[%s2760_s16 + $0x118] sm:$0xff] %v1914_v44  ;;  %v1926_v56 = vmul.f32 %v1857_v53, %v1750_v46  ;;  %v1919_v60 = vmul.f32 %v1852_v57, %v1743_v47  ;;  %v1920_v61 = vmul.f32 %v1852_v57, %v1744_v48 }
 0x2fa   : > { %v1921_v62 = vmul.f32 %v1852_v57, %v1745_v51  ;;  %v1922_v63 = vmul.f32 %v1852_v57, %v1746_v52  ;;  %1987 = vst [vmem:[%s2760_s16 + $0x160] sm:$0xff] %v1923_v54  ;;  %1988 = vst [vmem:[%s2760_s16 + $0x168] sm:$0xff] %v1924_v55 }
 0x2fb   : > { %1989 = vst [vmem:[%s2760_s16 + $0x170] sm:$0xff] %v1925_v49  ;;  %1990 = vst [vmem:[%s2760_s16 + $0x178] sm:$0xff] %v1926_v56  ;;  %v1867_v6 = vpop.permute.xlu1 %1866 }
 0x2fc   : > { %1983 = vst [vmem:[%s2760_s16 + $0x140] sm:$0xff] %v1919_v60  ;;  %1984 = vst [vmem:[%s2760_s16 + $0x148] sm:$0xff] %v1920_v61  ;;  %v1931_v7 = vmul.f32 %v1867_v6, %v1755_v58  ;;  %v1932_v8 = vmul.f32 %v1867_v6, %v1756_v59  ;;  %v1933_v35 = vmul.f32 %v1867_v6, %v1757_v0  ;;  %v1862_v10 = vpop.permute.xlu0 %1861 }
 0x2fd   : > { %1985 = vst [vmem:[%s2760_s16 + $0x150] sm:$0xff] %v1921_v62  ;;  %1986 = vst [vmem:[%s2760_s16 + $0x158] sm:$0xff] %v1922_v63  ;;  %v1934_v9 = vmul.f32 %v1867_v6, %v1758_v1  ;;  %v1927_v13 = vmul.f32 %v1862_v10, %v1751_v2  ;;  %v1928_v14 = vmul.f32 %v1862_v10, %v1752_v3 }
 0x2fe   : > { %v1929_v15 = vmul.f32 %v1862_v10, %v1753_v4  ;;  %v1930_v50 = vmul.f32 %v1862_v10, %v1754_v5  ;;  %1995 = vst [vmem:[%s2760_s16 + $0x1a0] sm:$0xff] %v1931_v7  ;;  %1996 = vst [vmem:[%s2760_s16 + $0x1a8] sm:$0xff] %v1932_v8 }
 0x2ff   : > { %1997 = vst [vmem:[%s2760_s16 + $0x1b0] sm:$0xff] %v1933_v35  ;;  %1998 = vst [vmem:[%s2760_s16 + $0x1b8] sm:$0xff] %v1934_v9  ;;  %v1877_v22 = vpop.permute.xlu1 %1876 }
 0x300   : > { %1991 = vst [vmem:[%s2760_s16 + $0x180] sm:$0xff] %v1927_v13  ;;  %1992 = vst [vmem:[%s2760_s16 + $0x188] sm:$0xff] %v1928_v14  ;;  %v1939_v23 = vmul.f32 %v1877_v22, %v1763_v11  ;;  %v1940_v24 = vmul.f32 %v1877_v22, %v1764_v12  ;;  %v1941_v25 = vmul.f32 %v1877_v22, %v1765_v16  ;;  %v1872_v27 = vpop.permute.xlu0 %1871 }
 0x301   : > { %1993 = vst [vmem:[%s2760_s16 + $0x190] sm:$0xff] %v1929_v15  ;;  %1994 = vst [vmem:[%s2760_s16 + $0x198] sm:$0xff] %v1930_v50  ;;  %v1942_v26 = vmul.f32 %v1877_v22, %v1766_v17  ;;  %v1935_v28 = vmul.f32 %v1872_v27, %v1759_v18  ;;  %v1936_v29 = vmul.f32 %v1872_v27, %v1760_v19 }
 0x302   : > { %v1937_v30 = vmul.f32 %v1872_v27, %v1761_v20  ;;  %v1938_v31 = vmul.f32 %v1872_v27, %v1762_v21  ;;  %2003 = vst [vmem:[%s2760_s16 + $0x1e0] sm:$0xff] %v1939_v23  ;;  %2004 = vst [vmem:[%s2760_s16 + $0x1e8] sm:$0xff] %v1940_v24 }
 0x303   : > { %2005 = vst [vmem:[%s2760_s16 + $0x1f0] sm:$0xff] %v1941_v25  ;;  %2006 = vst [vmem:[%s2760_s16 + $0x1f8] sm:$0xff] %v1942_v26 }
 0x304   : > { %1999 = vst [vmem:[%s2760_s16 + $0x1c0] sm:$0xff] %v1935_v28  ;;  %2000 = vst [vmem:[%s2760_s16 + $0x1c8] sm:$0xff] %v1936_v29 }
 0x305   : > { %2001 = vst [vmem:[%s2760_s16 + $0x1d0] sm:$0xff] %v1937_v30  ;;  %2002 = vst [vmem:[%s2760_s16 + $0x1d8] sm:$0xff] %v1938_v31 }
 0x306 PF: > { %s15_s24 = sadd.s32 1, %s2589_s24   ;;  %s3080_s18 = smov %s2569_s19 }
 0x307   : > { %p12_p1 = scmp.ge.s32.totalorder %s15_s24, 6   ;;  %s3081_s19 = smov %s2679_s7 }
 0x308   : > { %s3082_s20 = smov %s2581_s22  ;;  %s3083_s21 = smov %s2585_s23 }
 0x309   : > { %s3084_s22 = smov %s3087_s25  ;;  %s3085_s23 = smov %s3091_s26 }
 0x30a   :  { %14 = sbr.rel (!%p12_p1) target bundleno = 6 (0x6), region = 182 }

// kernel: decoder_forward.10
= control target key start
LH: loop header
LB: loop body
LE: loop exit
PB: predicated region body
PF: predicated region fallthrough
CT: control target
= control target key end

     0   :  { %s2037_s13 = smov 0   ;;  %s2796_s0 = inlined_call_operand.vmem [shape: f32[256,512], index: 0, kind: input, shape index: {}]   ;;  %s2797_s1 = inlined_call_operand.vmem [shape: bf16[512,256], index: 1, kind: input, shape index: {}]   ;;  %s2798_s2 = inlined_call_operand.vmem [shape: f32[1,256], index: 2, kind: input, shape index: {}]   ;;  %s2799_s3 = inlined_call_operand.vmem [shape: f32[1,256], index: 3, kind: input, shape index: {}]   ;;  %s2800_s4 = inlined_call_operand.<no memory space> [shape: f32[1,1], index: 4, kind: input, shape index: {}]   ;;  %s2801_s5 = inlined_call_operand.vmem [shape: f32[256,1], index: 5, kind: input, shape index: {}]   ;;  %s2802_s7 = inlined_call_operand.vmem [shape: bf16[256,256], index: 7, kind: output, shape index: {0}]   ;;  %s2803_s8 = inlined_call_operand.vmem [shape: f32[1,256], index: 8, kind: output, shape index: {1}]   ;;  %s2804_s9 = inlined_call_operand.vmem [shape: f32[256,1], index: 9, kind: output, shape index: {2}]   ;;  %s2805_s6 = inlined_call_operand.<no memory space> [shape: f32[1,1], index: 6, kind: input, shape index: {}]  }
   0x1   :  { %v15_v0 = vstv %s2800_s4  ;;  %v17_v1 = vstv %s2805_s6 }
   0x2   :  { %16 = vst [vmem:[#allocation2] sm:$0x1] %v15_v0  ;;  %18 = vst [vmem:[#allocation3] sm:$0x1] %v17_v1 }
   0x3 LB: > { %s2043_s14 = sadd.s32 4294967295, %s1978_s13   ;;  %p1644_p0 = scmp.ge.s32.totalorder %s1978_s13, 1  ;;  %s1978_s13 = sphi %s2037_s13, %s24_s13  }
   0x4   : > { %p298_p1 = scmp.lt.s32.totalorder %s1978_s13, 3 }
   0x6   : > { %p299_p2 = pnand %p1644_p0, %p298_p1 }
   0x8   : > { %302 = sbr.rel (%p299_p2) target bundleno = 647 (0x287), region = 48 }
   0xd   : > { %v1876_v2 = vld [vmem:[%s2797_s1 + $0x74] ss:$8 sps:$4 sm:$0xff]   ;;  %v1880_v4 = vld [vmem:[%s2797_s1 + $0x70] ss:$8 sps:$4 sm:$0xff]   ;;  %v1882_v6 = vld [vmem:[%s2797_s1 + $0x64] ss:$8 sps:$4 sm:$0xff]  }
   0xe   : > { %v1878_v3 = vld [vmem:[%s2797_s1 + $0x174] ss:$8 sps:$4 sm:$0xff]   ;;  %859 = vmatprep.subr.bf16.mxu0 %v1876_v2  ;;  %v1881_v5 = vld [vmem:[%s2797_s1 + $0x170] ss:$8 sps:$4 sm:$0xff]   ;;  %v1884_v7 = vld [vmem:[%s2797_s1 + $0x164] ss:$8 sps:$4 sm:$0xff]  }
   0xf   : > { %972 = vmatprep.subr.bf16.mxu1 %v1878_v3  ;;  %860 = vmatpush1.bf16.msra.mxu0 %v1880_v4  ;;  %v1886_v8 = vld [vmem:[%s2797_s1 + $0x60] ss:$8 sps:$4 sm:$0xff]   ;;  %v1888_v10 = vld [vmem:[%s2797_s1 + $0x54] ss:$8 sps:$4 sm:$0xff]   ;;  %v1892_v12 = vld [vmem:[%s2797_s1 + $0x50] ss:$8 sps:$4 sm:$0xff]  }
  0x10   : > { %973 = vmatpush1.bf16.msra.mxu1 %v1881_v5  ;;  %861 = vmatprep.subr.bf16.mxu0 %v1882_v6  ;;  %v1887_v9 = vld [vmem:[%s2797_s1 + $0x160] ss:$8 sps:$4 sm:$0xff]   ;;  %v1890_v11 = vld [vmem:[%s2797_s1 + $0x154] ss:$8 sps:$4 sm:$0xff]   ;;  %v1893_v13 = vld [vmem:[%s2797_s1 + $0x150] ss:$8 sps:$4 sm:$0xff]  }
  0x11   : > { %974 = vmatprep.subr.bf16.mxu1 %v1884_v7  ;;  %v1894_v14 = vld [vmem:[%s2797_s1 + $0x44] ss:$8 sps:$4 sm:$0xff]   ;;  %v1898_v16 = vld [vmem:[%s2797_s1 + $0x40] ss:$8 sps:$4 sm:$0xff]   ;;  %v1900_v18 = vld [vmem:[%s2797_s1 + $0x34] ss:$8 sps:$4 sm:$0xff]  }
  0x12   : > { %v1896_v15 = vld [vmem:[%s2797_s1 + $0x144] ss:$8 sps:$4 sm:$0xff]   ;;  %v1899_v17 = vld [vmem:[%s2797_s1 + $0x140] ss:$8 sps:$4 sm:$0xff]   ;;  %v1902_v19 = vld [vmem:[%s2797_s1 + $0x134] ss:$8 sps:$4 sm:$0xff]  }
  0x13   : > { %862 = vmatpush1.bf16.msra.mxu0 %v1886_v8  ;;  %v1904_v20 = vld [vmem:[%s2797_s1 + $0x30] ss:$8 sps:$4 sm:$0xff]   ;;  %v1906_v22 = vld [vmem:[%s2797_s1 + $0x24] ss:$8 sps:$4 sm:$0xff]   ;;  %v1910_v24 = vld [vmem:[%s2797_s1 + $0x20] ss:$8 sps:$4 sm:$0xff]  }
  0x14   : > { %975 = vmatpush1.bf16.msra.mxu1 %v1887_v9  ;;  %863 = vmatprep.subr.bf16.mxu0 %v1888_v10  ;;  %v1905_v21 = vld [vmem:[%s2797_s1 + $0x130] ss:$8 sps:$4 sm:$0xff]   ;;  %v1908_v23 = vld [vmem:[%s2797_s1 + $0x124] ss:$8 sps:$4 sm:$0xff]   ;;  %v1911_v25 = vld [vmem:[%s2797_s1 + $0x120] ss:$8 sps:$4 sm:$0xff]  }
  0x15   : > { %976 = vmatprep.subr.bf16.mxu1 %v1890_v11  ;;  %v1912_v26 = vld [vmem:[%s2797_s1 + $0x14] ss:$8 sps:$4 sm:$0xff]   ;;  %v1916_v28 = vld [vmem:[%s2797_s1 + $0x10] ss:$8 sps:$4 sm:$0xff]   ;;  %v1918_v30 = vld [vmem:[%s2797_s1 + $0x4] ss:$8 sps:$4 sm:$0xff]  }
  0x16   : > { %v1914_v27 = vld [vmem:[%s2797_s1 + $0x114] ss:$8 sps:$4 sm:$0xff]   ;;  %v1917_v29 = vld [vmem:[%s2797_s1 + $0x110] ss:$8 sps:$4 sm:$0xff]   ;;  %v1920_v31 = vld [vmem:[%s2797_s1 + $0x104] ss:$8 sps:$4 sm:$0xff]  }
  0x17   : > { %864 = vmatpush1.bf16.msra.mxu0 %v1892_v12  ;;  %s1645_s10 = sshll.u32 %s2043_s14, 4  ;;  %v1922_v32 = vld [vmem:[%s2797_s1] ss:$8 sps:$4 sm:$0xff]   ;;  %v1924_v34 = vld [vmem:[%s2797_s1 + $0xf4] ss:$8 sps:$4 sm:$0xff]   ;;  %vm1506_vm0 = vcmask 7168  }
  0x18   : > { %977 = vmatpush1.bf16.msra.mxu1 %v1893_v13  ;;  %865 = vmatprep.subr.bf16.mxu0 %v1894_v14  ;;  %v1923_v33 = vld [vmem:[%s2797_s1 + $0x100] ss:$8 sps:$4 sm:$0xff]   ;;  %p345_p3 = scmp.lt.s32.totalorder %s1645_s10, 31  ;;  %v1926_v35 = vld [vmem:[%s2797_s1 + $0x1f4] ss:$8 sps:$4 sm:$0xff]   ;;  %p358_p4 = scmp.lt.s32.totalorder %s2043_s14, 1 }
  0x19   : > { %978 = vmatprep.subr.bf16.mxu1 %v1896_v15  ;;  %v1928_v36 = vld [vmem:[%s2797_s1 + $0xf0] ss:$8 sps:$4 sm:$0xff]   ;;  %v1930_v38 = vld [vmem:[%s2797_s1 + $0xe4] ss:$8 sps:$4 sm:$0xff]   ;;  %v1934_v40 = vld [vmem:[%s2797_s1 + $0xe0] ss:$8 sps:$4 sm:$0xff]  }
  0x1a   : > { %v1929_v37 = vld [vmem:[%s2797_s1 + $0x1f0] ss:$8 sps:$4 sm:$0xff]   ;;  %s2858_s10 = smov (!%p345_p3, %s1645_s10), 31  ;;  %v1932_v39 = vld [vmem:[%s2797_s1 + $0x1e4] ss:$8 sps:$4 sm:$0xff]   ;;  %s2860_s14 = smov (!%p358_p4, %s2043_s14), 1 }
  0x1b   : > { %866 = vmatpush1.bf16.msra.mxu0 %v1898_v16  ;;  %v1935_v41 = vld [vmem:[%s2797_s1 + $0x1e0] ss:$8 sps:$4 sm:$0xff]   ;;  %v1936_v42 = vld [vmem:[%s2797_s1 + $0xd4] ss:$8 sps:$4 sm:$0xff]   ;;  %s1736_s4 = sshll.u32 %s2858_s10, 5  ;;  %s360_s21 = scalar_lea.vmem %s2803_s8, %s2860_s14 }
  0x1c   : > { %979 = vmatpush1.bf16.msra.mxu1 %v1899_v17  ;;  %867 = vmatprep.subr.bf16.mxu0 %v1900_v18  ;;  %v1938_v43 = vld [vmem:[%s2797_s1 + $0x1d4] ss:$8 sps:$4 sm:$0xff]   ;;  %v1940_v44 = vld [vmem:[%s2797_s1 + $0xd0] ss:$8 sps:$4 sm:$0xff]   ;;  %s2186_s22 = scalar_lea.vmem %s2796_s0, %s1736_s4  ;;  %v1942_v46 = vld [vmem:[%s2797_s1 + $0xc4] ss:$8 sps:$4 sm:$0xff]  }
  0x1d   : > { %980 = vmatprep.subr.bf16.mxu1 %v1902_v19  ;;  %v1941_v45 = vld [vmem:[%s2797_s1 + $0x1d0] ss:$8 sps:$4 sm:$0xff]   ;;  %v1944_v47 = vld [vmem:[%s2797_s1 + $0x1c4] ss:$8 sps:$4 sm:$0xff]   ;;  %v1946_v52 = vld [vmem:[%s2797_s1 + $0xc0] ss:$8 sps:$4 sm:$0xff]  }
  0x1e   : > { %v368_v48 = vld [vmem:[%s2186_s22 + $0x8] sm:$0xff]  ;;  %v370_v50 = vld [vmem:[%s2186_s22 + $0x18] sm:$0xff]  ;;  %v367_v8 = vld [vmem:[%s2186_s22] sm:$0xff]  ;;  %s1737_s4 = sshll.u32 %s2858_s10, 3 }
  0x1f   : > { %868 = vmatpush1.bf16.msra.mxu0 %v1904_v20  ;;  %v372_v49 = vld [vmem:[%s2186_s22 + $0x28] sm:$0xff]  ;;  %v374_v51 = vld [vmem:[%s2186_s22 + $0x38] sm:$0xff]  ;;  %v371_v9 = vld [vmem:[%s2186_s22 + $0x20] sm:$0xff]  ;;  %s2534_s16 = scalar_lea.vmem %s2802_s7, %s1737_s4  ;;  %s2737_s19 = scalar_lea.vmem %s2804_s9, %s1737_s4 }
  0x20   : > { %981 = vmatpush1.bf16.msra.mxu1 %v1905_v21  ;;  %869 = vmatprep.subr.bf16.mxu0 %v1906_v22  ;;  %v1947_v53 = vld [vmem:[%s2797_s1 + $0x1c0] ss:$8 sps:$4 sm:$0xff]   ;;  %v432_v54 = vpack.c.bf16 %v372_v49, %v368_v48  ;;  %v434_v55 = vpack.c.bf16 %v374_v51, %v370_v50  ;;  %v1948_v56 = vld [vmem:[%s2797_s1 + $0xb4] ss:$8 sps:$4 sm:$0xff]   ;;  %v1952_v58 = vld [vmem:[%s2797_s1 + $0xb0] ss:$8 sps:$4 sm:$0xff]   ;;  %v431_v16 = vpack.c.bf16 %v371_v9, %v367_v8 }
  0x21   : > { %982 = vmatprep.subr.bf16.mxu1 %v1908_v23  ;;  %v1950_v57 = vld [vmem:[%s2797_s1 + $0x1b4] ss:$8 sps:$4 sm:$0xff]   ;;  %v1953_v59 = vld [vmem:[%s2797_s1 + $0x1b0] ss:$8 sps:$4 sm:$0xff]   ;;  %v1954_v60 = vld [vmem:[%s2797_s1 + $0xa4] ss:$8 sps:$4 sm:$0xff]  }
  0x22   : > { %891 = vmatprep.mubr.bf16.mxu0 %v432_v54  ;;  %1004 = vmatprep.mubr.bf16.mxu1 %v434_v55  ;;  %v1956_v61 = vld [vmem:[%s2797_s1 + $0x1a4] ss:$8 sps:$4 sm:$0xff]   ;;  %v1958_v62 = vld [vmem:[%s2797_s1 + $0xa0] ss:$8 sps:$4 sm:$0xff]   ;;  %v1960_v0 = vld [vmem:[%s2797_s1 + $0x94] ss:$8 sps:$4 sm:$0xff]  }
  0x23   : > { %870 = vmatpush1.bf16.msra.mxu0 %v1910_v24  ;;  %v1959_v63 = vld [vmem:[%s2797_s1 + $0x1a0] ss:$8 sps:$4 sm:$0xff]   ;;  %v1962_v1 = vld [vmem:[%s2797_s1 + $0x194] ss:$8 sps:$4 sm:$0xff]   ;;  %v1964_v2 = vld [vmem:[%s2797_s1 + $0x90] ss:$8 sps:$4 sm:$0xff]  }
  0x24   : > { %983 = vmatpush1.bf16.msra.mxu1 %v1911_v25  ;;  %871 = vmatprep.subr.bf16.mxu0 %v1912_v26  ;;  %v1965_v3 = vld [vmem:[%s2797_s1 + $0x190] ss:$8 sps:$4 sm:$0xff]   ;;  %v1966_v4 = vld [vmem:[%s2797_s1 + $0x84] ss:$8 sps:$4 sm:$0xff]   ;;  %v1970_v6 = vld [vmem:[%s2797_s1 + $0x80] ss:$8 sps:$4 sm:$0xff]  }
  0x25   : > { %984 = vmatprep.subr.bf16.mxu1 %v1914_v27  ;;  %v1968_v5 = vld [vmem:[%s2797_s1 + $0x184] ss:$8 sps:$4 sm:$0xff]   ;;  %v1971_v7 = vld [vmem:[%s2797_s1 + $0x180] ss:$8 sps:$4 sm:$0xff]   ;;  %v369_v10 = vld [vmem:[%s2186_s22 + $0x10] sm:$0xff] }
  0x26   : > { %v373_v11 = vld [vmem:[%s2186_s22 + $0x30] sm:$0xff]  ;;  %v376_v12 = vld [vmem:[%s2186_s22 + $0x48] sm:$0xff]  ;;  %v378_v14 = vld [vmem:[%s2186_s22 + $0x58] sm:$0xff] }
  0x27   : > { %872 = vmatpush1.bf16.msra.mxu0 %v1916_v28  ;;  %v380_v13 = vld [vmem:[%s2186_s22 + $0x68] sm:$0xff]  ;;  %v382_v15 = vld [vmem:[%s2186_s22 + $0x78] sm:$0xff]  ;;  %v433_v17 = vpack.c.bf16 %v373_v11, %v369_v10  ;;  %v375_v21 = vld [vmem:[%s2186_s22 + $0x40] sm:$0xff] }
  0x28   : > { %985 = vmatpush1.bf16.msra.mxu1 %v1917_v29  ;;  %873 = vmatprep.subr.bf16.mxu0 %v1918_v30  ;;  %v436_v18 = vpack.c.bf16 %v380_v13, %v376_v12  ;;  %v438_v19 = vpack.c.bf16 %v382_v15, %v378_v14  ;;  %v2263_v20 = vld [vmem:[%s2801_s5 + $0xf8] sm:$0xff]  ;;  %v379_v22 = vld [vmem:[%s2186_s22 + $0x60] sm:$0xff]  ;;  %v377_v24 = vld [vmem:[%s2186_s22 + $0x50] sm:$0xff] }
  0x29   : > { %986 = vmatprep.subr.bf16.mxu1 %v1920_v31  ;;  %v2271_v23 = vld [vmem:[%s2801_s5 + $0x78] sm:$0xff]  ;;  %v381_v25 = vld [vmem:[%s2186_s22 + $0x70] sm:$0xff]  ;;  %v384_v27 = vld [vmem:[%s2186_s22 + $0x88] sm:$0xff] }
  0x2a   : > { %v2278_v26 = vld [vmem:[%s2801_s5 + $0xf0] sm:$0xff]  ;;  %v388_v28 = vld [vmem:[%s2186_s22 + $0xa8] sm:$0xff]  ;;  %v386_v30 = vld [vmem:[%s2186_s22 + $0x98] sm:$0xff] }
  0x2b   : > { %874 = vmatpush1.bf16.msra.mxu0 %v1922_v32  ;;  %v2285_v29 = vld [vmem:[%s2801_s5 + $0x70] sm:$0xff]  ;;  %v390_v31 = vld [vmem:[%s2186_s22 + $0xb8] sm:$0xff]  ;;  %v2293_v32 = vld [vmem:[%s2801_s5 + $0xe8] sm:$0xff] }
  0x2c   : > { %987 = vmatpush1.bf16.msra.mxu1 %v1923_v33  ;;  %875 = vmatprep.subr.bf16.mxu0 %v1924_v34  ;;  %v2299_v33 = vld [vmem:[%s2801_s5 + $0x68] sm:$0xff]  ;;  %v435_v34 = vpack.c.bf16 %v379_v22, %v375_v21  ;;  %v391_v50 = vld [vmem:[%s2186_s22 + $0xc0] sm:$0xff]  ;;  %v409_v12 = vld [vmem:[%s2186_s22 + $0x150] sm:$0xff] }
  0x2d   : > { %988 = vmatprep.subr.bf16.mxu1 %v1926_v35  ;;  %v437_v35 = vpack.c.bf16 %v381_v25, %v377_v24  ;;  %v395_v51 = vld [vmem:[%s2186_s22 + $0xe0] sm:$0xff]  ;;  %v400_v54 = vld [vmem:[%s2186_s22 + $0x108] sm:$0xff]  ;;  %v413_v13 = vld [vmem:[%s2186_s22 + $0x170] sm:$0xff] }
  0x2e   : > { %v404_v55 = vld [vmem:[%s2186_s22 + $0x128] sm:$0xff]  ;;  %v407_v10 = vld [vmem:[%s2186_s22 + $0x140] sm:$0xff] }
  0x2f   : > { %876 = vmatpush2.bf16.msra.mxu0 %v1928_v36  ;;  %v440_v36 = vpack.c.bf16 %v388_v28, %v384_v27  ;;  %v411_v11 = vld [vmem:[%s2186_s22 + $0x160] sm:$0xff]  ;;  %v416_v14 = vld [vmem:[%s2186_s22 + $0x188] sm:$0xff]  ;;  %v417_v27 = vld [vmem:[%s2186_s22 + $0x190] sm:$0xff] }
  0x30   : > { %989 = vmatpush2.bf16.msra.mxu1 %v1929_v37  ;;  %877 = vmatprep.subr.bf16.mxu0 %v1930_v38  ;;  %v442_v37 = vpack.c.bf16 %v390_v31, %v386_v30  ;;  %v383_v38 = vld [vmem:[%s2186_s22 + $0x80] sm:$0xff]  ;;  %v420_v15 = vld [vmem:[%s2186_s22 + $0x1a8] sm:$0xff]  ;;  %v421_v28 = vld [vmem:[%s2186_s22 + $0x1b0] sm:$0xff] }
  0x31   : > { %990 = vmatprep.subr.bf16.mxu1 %v1932_v39  ;;  %v387_v39 = vld [vmem:[%s2186_s22 + $0xa0] sm:$0xff]  ;;  %v456_v21 = vpack.c.bf16 %v420_v15, %v416_v14  ;;  %v424_v30 = vld [vmem:[%s2186_s22 + $0x1c8] sm:$0xff] }
  0x32   : > { %v415_v24 = vld [vmem:[%s2186_s22 + $0x180] sm:$0xff]  ;;  %v428_v31 = vld [vmem:[%s2186_s22 + $0x1e8] sm:$0xff] }
  0x33   : > { %878 = vmatpush2.bf16.msra.mxu0 %v1934_v40  ;;  %v385_v40 = vld [vmem:[%s2186_s22 + $0x90] sm:$0xff]  ;;  %v419_v25 = vld [vmem:[%s2186_s22 + $0x1a0] sm:$0xff] }
  0x34   : > { %991 = vmatpush2.bf16.msra.mxu1 %v1935_v41  ;;  %879 = vmatprep.subr.bf16.mxu0 %v1936_v42  ;;  %v389_v41 = vld [vmem:[%s2186_s22 + $0xb0] sm:$0xff]  ;;  %v392_v42 = vld [vmem:[%s2186_s22 + $0xc8] sm:$0xff] }
  0x35   : > { %992 = vmatprep.subr.bf16.mxu1 %v1938_v43  ;;  %v396_v43 = vld [vmem:[%s2186_s22 + $0xe8] sm:$0xff] }
  0x36   : > { %v444_v48 = vpack.c.bf16 %v396_v43, %v392_v42  ;;  %v425_v42 = vld [vmem:[%s2186_s22 + $0x1d0] sm:$0xff] }
  0x37   : > { %880 = vmatpush2.bf16.msra.mxu0 %v1940_v44  ;;  %v394_v44 = vld [vmem:[%s2186_s22 + $0xd8] sm:$0xff]  ;;  %v429_v43 = vld [vmem:[%s2186_s22 + $0x1f0] sm:$0xff] }
  0x38   : > { %993 = vmatpush2.bf16.msra.mxu1 %v1941_v45  ;;  %881 = vmatprep.subr.bf16.mxu0 %v1942_v46  ;;  %v398_v45 = vld [vmem:[%s2186_s22 + $0xf8] sm:$0xff]  ;;  %v439_v46 = vpack.c.bf16 %v387_v39, %v383_v38  ;;  %v460_v38 = vpack.c.bf16 %v428_v31, %v424_v30 }
  0x39   : > { %994 = vmatprep.subr.bf16.mxu1 %v1944_v47  ;;  %v441_v47 = vpack.c.bf16 %v389_v41, %v385_v40  ;;  %v446_v49 = vpack.c.bf16 %v398_v45, %v394_v44  ;;  %v423_v40 = vld [vmem:[%s2186_s22 + $0x1c0] sm:$0xff]  ;;  %v461_v45 = vpack.c.bf16 %v429_v43, %v425_v42 }
  0x3a   : > { %v427_v41 = vld [vmem:[%s2186_s22 + $0x1e0] sm:$0xff] }
  0x3b   : > { %882 = vmatpush2.bf16.msra.mxu0 %v1946_v52  ;;  %v393_v52 = vld [vmem:[%s2186_s22 + $0xd0] sm:$0xff]  ;;  %v459_v44 = vpack.c.bf16 %v427_v41, %v423_v40 }
  0x3c   : > { %995 = vmatpush2.bf16.msra.mxu1 %v1947_v53  ;;  %883 = vmatprep.subr.bf16.mxu0 %v1948_v56  ;;  %v397_v53 = vld [vmem:[%s2186_s22 + $0xf0] sm:$0xff]  ;;  %v402_v56 = vld [vmem:[%s2186_s22 + $0x118] sm:$0xff] }
  0x3d   : > { %996 = vmatprep.subr.bf16.mxu1 %v1950_v57  ;;  %v406_v57 = vld [vmem:[%s2186_s22 + $0x138] sm:$0xff] }
  0x3f   : > { %884 = vmatpush2.bf16.msra.mxu0 %v1952_v58  ;;  %v443_v58 = vpack.c.bf16 %v395_v51, %v391_v50  ;;  %v2375_v50 = vld [vmem:[%s2801_s5 + $0xd0] sm:$0xff] }
  0x40   : > { %997 = vmatpush2.bf16.msra.mxu1 %v1953_v59  ;;  %885 = vmatprep.subr.bf16.mxu0 %v1954_v60  ;;  %v445_v59 = vpack.c.bf16 %v397_v53, %v393_v52  ;;  %v448_v60 = vpack.c.bf16 %v404_v55, %v400_v54  ;;  %v2381_v51 = vld [vmem:[%s2801_s5 + $0x50] sm:$0xff]  ;;  %v2387_v52 = vld [vmem:[%s2801_s5 + $0xc8] sm:$0xff]  ;;  %v2399_v54 = vld [vmem:[%s2801_s5 + $0xc0] sm:$0xff] }
  0x41   : > { %998 = vmatprep.subr.bf16.mxu1 %v1956_v61  ;;  %v450_v61 = vpack.c.bf16 %v406_v57, %v402_v56  ;;  %v2393_v53 = vld [vmem:[%s2801_s5 + $0x48] sm:$0xff]  ;;  %v2405_v55 = vld [vmem:[%s2801_s5 + $0x40] sm:$0xff]  ;;  %v2411_v56 = vld [vmem:[%s2801_s5 + $0xb8] sm:$0xff] }
  0x42   : > { %2823 = vst [vmem:[#allocation4_spill] sm:$0xff] %v2405_v55  ;;  %2824 = vst [vmem:[#allocation5_spill] sm:$0xff] %v2411_v56  ;;  %v2417_v57 = vld [vmem:[%s2801_s5 + $0x38] sm:$0xff] }
  0x43   : > { %886 = vmatpush2.bf16.msra.mxu0 %v1958_v62  ;;  %v399_v62 = vld [vmem:[%s2186_s22 + $0x100] sm:$0xff]  ;;  %2825 = vst [vmem:[#allocation6_spill] sm:$0xff] %v2417_v57 }
  0x44   : > { %999 = vmatpush2.bf16.msra.mxu1 %v1959_v63  ;;  %887 = vmatprep.subr.bf16.mxu0 %v1960_v0  ;;  %v403_v63 = vld [vmem:[%s2186_s22 + $0x120] sm:$0xff]  ;;  %v401_v0 = vld [vmem:[%s2186_s22 + $0x110] sm:$0xff] }
  0x45   : > { %1000 = vmatprep.subr.bf16.mxu1 %v1962_v1  ;;  %v405_v1 = vld [vmem:[%s2186_s22 + $0x130] sm:$0xff] }
  0x47   : > { %888 = vmatpush2.bf16.msra.mxu0 %v1964_v2  ;;  %v408_v2 = vld [vmem:[%s2186_s22 + $0x148] sm:$0xff] }
  0x48   : > { %1001 = vmatpush2.bf16.msra.mxu1 %v1965_v3  ;;  %889 = vmatprep.subr.bf16.mxu0 %v1966_v4  ;;  %v412_v3 = vld [vmem:[%s2186_s22 + $0x168] sm:$0xff]  ;;  %v410_v4 = vld [vmem:[%s2186_s22 + $0x158] sm:$0xff] }
  0x49   : > { %1002 = vmatprep.subr.bf16.mxu1 %v1968_v5  ;;  %v414_v5 = vld [vmem:[%s2186_s22 + $0x178] sm:$0xff]  ;;  %v452_v8 = vpack.c.bf16 %v412_v3, %v408_v2  ;;  %v2471_v2 = vld [vmem:[%s2801_s5 + $0x90] sm:$0xff] }
  0x4a   : > { %v454_v9 = vpack.c.bf16 %v414_v5, %v410_v4  ;;  %2834 = vst [vmem:[#allocation15_spill] sm:$0xff] %v2471_v2  ;;  %v2477_v3 = vld [vmem:[%s2801_s5 + $0x10] sm:$0xff]  ;;  %v2483_v4 = vld [vmem:[%s2801_s5 + $0x88] sm:$0xff] }
  0x4b   : > { %890 = vmatpush2.bf16.msra.mxu0 %v1970_v6  ;;  %v447_v6 = vpack.c.bf16 %v403_v63, %v399_v62  ;;  %v2447_v62 = vld [vmem:[%s2801_s5 + $0xa0] sm:$0xff]  ;;  %2835 = vst [vmem:[#allocation16_spill] sm:$0xff] %v2477_v3  ;;  %2836 = vst [vmem:[#allocation17_spill] sm:$0xff] %v2483_v4  ;;  %v2489_v5 = vld [vmem:[%s2801_s5 + $0x8] sm:$0xff] }
  0x4c   : > { %1003 = vmatpush2.bf16.msra.mxu1 %v1971_v7  ;;  %v449_v7 = vpack.c.bf16 %v405_v1, %v401_v0  ;;  %2830 = vst [vmem:[#allocation11_spill] sm:$0xff] %v2447_v62  ;;  %v2453_v63 = vld [vmem:[%s2801_s5 + $0x20] sm:$0xff]  ;;  %v2459_v0 = vld [vmem:[%s2801_s5 + $0x98] sm:$0xff]  ;;  %2837 = vst [vmem:[#allocation18_spill] sm:$0xff] %v2489_v5 }
  0x4d   : > { %1834 = vmatprep.subr.mxu1 %v2263_v20  ;;  %2831 = vst [vmem:[#allocation12_spill] sm:$0xff] %v2453_v63  ;;  %2832 = vst [vmem:[#allocation13_spill] sm:$0xff] %v2459_v0  ;;  %v2465_v1 = vld [vmem:[%s2801_s5 + $0x18] sm:$0xff] }
  0x4e   : > { %892 = vmatmul.mubr.bf16.vlgmr.msra.gmra.mxu0 %v431_v16  ;;  %v418_v16 = vld [vmem:[%s2186_s22 + $0x198] sm:$0xff]  ;;  %2833 = vst [vmem:[#allocation14_spill] sm:$0xff] %v2465_v1 }
  0x4f   : > { %1005 = vmatmul.mubr.bf16.vlgmr.msra.gmra.mxu1 %v433_v17  ;;  %901 = vmatprep.mubr.bf16.mxu0 %v436_v18  ;;  %v422_v17 = vld [vmem:[%s2186_s22 + $0x1b8] sm:$0xff]  ;;  %v451_v18 = vpack.c.bf16 %v411_v11, %v407_v10  ;;  %v527_v11 = vld [vmem:[%s2798_s2] sm:$0x3] }
  0x50   : > { %1014 = vmatprep.mubr.bf16.mxu1 %v438_v19  ;;  %1850 = vmatpush3.msra.mxu1 %v2271_v23  ;;  %v453_v19 = vpack.c.bf16 %v413_v13, %v409_v12  ;;  %v458_v22 = vpack.c.bf16 %v422_v17, %v418_v16 }
  0x51   : > { %1835 = vmatprep.subr.mxu1 %v2278_v26 }
  0x52   : > { %1851 = vmatpush3.msra.mxu1 %v2285_v29 }
  0x53   : > { %1836 = vmatprep.subr.mxu1 %v2293_v32 }
  0x54   : > { %1852 = vmatpush3.msra.mxu1 %v2299_v33 }
  0x56   : > { %902 = vmatmul.mubr.bf16.gmra.mxu0 %v435_v34  ;;  %v426_v34 = vld [vmem:[%s2186_s22 + $0x1d8] sm:$0xff] }
  0x57   : > { %1015 = vmatmul.mubr.bf16.gmra.mxu1 %v437_v35  ;;  %911 = vmatprep.mubr.bf16.mxu0 %v440_v36  ;;  %v430_v35 = vld [vmem:[%s2186_s22 + $0x1f8] sm:$0xff]  ;;  %v455_v36 = vpack.c.bf16 %v419_v25, %v415_v24 }
  0x58   : > { %1024 = vmatprep.mubr.bf16.mxu1 %v442_v37  ;;  %v457_v37 = vpack.c.bf16 %v421_v28, %v417_v27  ;;  %v462_v39 = vpack.c.bf16 %v430_v35, %v426_v34 }
  0x5e   : > { %912 = vmatmul.mubr.bf16.gmra.mxu0 %v439_v46  ;;  %v2351_v46 = vld [vmem:[%s2801_s5 + $0xe0] sm:$0xff] }
  0x5f   : > { %1025 = vmatmul.mubr.bf16.gmra.mxu1 %v441_v47  ;;  %921 = vmatprep.mubr.bf16.mxu0 %v444_v48  ;;  %v2357_v47 = vld [vmem:[%s2801_s5 + $0x60] sm:$0xff]  ;;  %v2363_v48 = vld [vmem:[%s2801_s5 + $0xd8] sm:$0xff] }
  0x60   : > { %1034 = vmatprep.mubr.bf16.mxu1 %v446_v49  ;;  %1837 = vmatprep.subr.mxu1 %v2351_v46  ;;  %v2369_v49 = vld [vmem:[%s2801_s5 + $0x58] sm:$0xff] }
  0x61   : > { %1853 = vmatpush3.msra.mxu1 %v2357_v47 }
  0x62   : > { %1838 = vmatprep.subr.mxu1 %v2363_v48 }
  0x63   : > { %1854 = vmatpush3.msra.mxu1 %v2369_v49 }
  0x64   : > { %1839 = vmatprep.subr.mxu1 %v2375_v50 }
  0x65   : > { %1855 = vmatpush3.msra.mxu1 %v2381_v51 }
  0x66   : > { %922 = vmatmul.mubr.bf16.gmra.mxu0 %v443_v58  ;;  %1840 = vmatprep.subr.mxu1 %v2387_v52  ;;  %v2423_v58 = vld [vmem:[%s2801_s5 + $0xb0] sm:$0xff] }
  0x67   : > { %1035 = vmatmul.mubr.bf16.gmra.mxu1 %v445_v59  ;;  %931 = vmatprep.mubr.bf16.mxu0 %v448_v60  ;;  %2826 = vst [vmem:[#allocation7_spill] sm:$0xff] %v2423_v58  ;;  %v2429_v59 = vld [vmem:[%s2801_s5 + $0x30] sm:$0xff]  ;;  %v2435_v60 = vld [vmem:[%s2801_s5 + $0xa8] sm:$0xff] }
  0x68   : > { %1044 = vmatprep.mubr.bf16.mxu1 %v450_v61  ;;  %1856 = vmatpush3.msra.mxu1 %v2393_v53  ;;  %2827 = vst [vmem:[#allocation8_spill] sm:$0xff] %v2429_v59  ;;  %2828 = vst [vmem:[#allocation9_spill] sm:$0xff] %v2435_v60  ;;  %v2441_v61 = vld [vmem:[%s2801_s5 + $0x28] sm:$0xff] }
  0x69   : > { %1841 = vmatprep.subr.mxu1 %v2399_v54  ;;  %2829 = vst [vmem:[#allocation10_spill] sm:$0xff] %v2441_v61 }
  0x6a   : > { %1857 = vmatpush3.msra.mxu1 %v2405_v55 }
  0x6b   : > { %1842 = vmatprep.subr.mxu1 %v2411_v56 }
  0x6c   : > { %1858 = vmatpush3.msra.mxu1 %v2417_v57 }
  0x6d   : > { %1843 = vmatprep.subr.mxu1 %v2423_v58 }
  0x6e   : > { %932 = vmatmul.mubr.bf16.gmra.mxu0 %v447_v6  ;;  %1859 = vmatpush3.msra.mxu1 %v2429_v59  ;;  %v2495_v6 = vld [vmem:[%s2801_s5 + $0x80] sm:$0xff] }
  0x6f   : > { %1045 = vmatmul.mubr.bf16.gmra.mxu1 %v449_v7  ;;  %941 = vmatprep.mubr.bf16.mxu0 %v452_v8  ;;  %2838 = vst [vmem:[#allocation19_spill] sm:$0xff] %v2495_v6  ;;  %v2501_v7 = vld [vmem:[%s2801_s5] sm:$0xff]  ;;  %v529_v8 = vlaneseq }
  0x70   : > { %1054 = vmatprep.mubr.bf16.mxu1 %v454_v9  ;;  %1844 = vmatprep.subr.mxu1 %v2435_v60  ;;  %2839 = vst [vmem:[#allocation20_spill] sm:$0xff] %v2501_v7 }
  0x71   : > { %1860 = vmatpush3.msra.mxu1 %v2441_v61  ;;  %v530_v9 = vshrl.u32 %v529_v8, 7 }
  0x72   : > { %1845 = vmatprep.subr.mxu1 %v2447_v62 }
  0x73   : > { %1861 = vmatpush3.msra.mxu1 %v2453_v63  ;;  %v2504_v10 = vsub.s32 0, %v530_v9  ;;  %v535_v12 = vsub.s32 1, %v530_v9  ;;  %v1118_v63 = vld [vmem:[#allocation2] sm:$0x1] }
  0x74   : > { %1846 = vmatprep.subr.mxu1 %v2459_v0 }
  0x75   : > { %1862 = vmatpush3.msra.mxu1 %v2465_v1  ;;  %v2510_v13 = vrot.slane %v527_v11, %v2504_v10  ;;  %v2512_v14 = vrot.slane %v527_v11, %v535_v12 }
  0x76   : > { %942 = vmatmul.mubr.bf16.gmra.mxu0 %v451_v18  ;;  %1847 = vmatprep.subr.mxu1 %v2471_v2  ;;  %v2518_v18 = vld [vmem:[%s2799_s3] sm:$0x3] }
  0x77   : > { %1055 = vmatmul.mubr.bf16.gmra.mxu1 %v453_v19  ;;  %951 = vmatprep.mubr.bf16.mxu0 %v456_v21 }
  0x78   : > { %1064 = vmatprep.mubr.bf16.mxu1 %v458_v22  ;;  %1863 = vmatpush3.msra.mxu1 %v2477_v3  ;;  %v1136_v22 = vrot.slane %v2518_v18, %v535_v12 }
  0x79   : > { %1848 = vmatprep.subr.mxu1 %v2483_v4 }
  0x7a   : > { %1864 = vmatpush3.msra.mxu1 %v2489_v5 }
  0x7b   : > { %1849 = vmatprep.subr.mxu1 %v2495_v6 }
  0x7c   : > { %1865 = vmatpush3.msra.mxu1 %v2501_v7 }
  0x7e   : > { %952 = vmatmul.mubr.bf16.gmra.mxu0 %v455_v36 }
  0x7f   : > { %1065 = vmatmul.mubr.bf16.gmra.mxu1 %v457_v37  ;;  %961 = vmatprep.mubr.bf16.mxu0 %v460_v38 }
  0x80   : > { %1074 = vmatprep.mubr.bf16.mxu1 %v462_v39 }
  0x86   : > { %962 = vmatmul.mubr.bf16.gmra.mxu0 %v459_v44 }
  0x87   : > { %1075 = vmatmul.mubr.bf16.gmra.mxu1 %v461_v45  ;;  %1203 = vmatprep.mubr.f32.mxu0 %v1136_v22 }
 0x10e   : > { %v893_v15 = vpop.f32.mrf.mxu0 }
 0x10f   : > { %v1006_v16 = vpop.f32.mrf.mxu1  ;;  %v894_v17 = vadd.f32 %v893_v15, %v2510_v13 }
 0x110   : > { %v895_v19 = vpop.f32.mrf.mxu0 }
 0x111   : > { %v1008_v21 = vpop.f32.mrf.mxu1  ;;  %v1007_v24 = vadd.f32 %v1006_v16, %v894_v17  ;;  %v896_v25 = vadd.f32 %v895_v19, %v2512_v14 }
 0x112   : > { %v897_v27 = vpop.f32.mrf.mxu0 }
 0x113   : > { %v1010_v28 = vpop.f32.mrf.mxu1  ;;  %v1009_v30 = vadd.f32 %v1008_v21, %v896_v25  ;;  %v898_v31 = vadd.f32 %v897_v27, %v2510_v13  ;;  %v2524_v36 = vmax.f32 %v1007_v24, 0.0 }
 0x114   : > { %v899_v34 = vpop.f32.mrf.mxu0 }
 0x115   : > { %v1012_v35 = vpop.f32.mrf.mxu1  ;;  %v2526_v37 = vmax.f32 %v1009_v30, 0.0  ;;  %v1011_v38 = vadd.f32 %v1010_v28, %v898_v31  ;;  %v900_v39 = vadd.f32 %v899_v34, %v2512_v14 }
 0x116   : > { %v903_v40 = vpop.f32.mrf.mxu0 }
 0x117   : > { %v1016_v41 = vpop.f32.mrf.mxu1  ;;  %v1738_v42 = vpack.c.bf16 %v2526_v37, %v2524_v36  ;;  %v1013_v43 = vadd.f32 %v1012_v35, %v900_v39  ;;  %v904_v44 = vadd.f32 %v903_v40, %v2510_v13  ;;  %v2540_v9 = vmax.f32 %v1011_v38, 0.0 }
 0x118   : > { %v905_v45 = vpop.f32.mrf.mxu0 }
 0x119   : > { %v1018_v8 = vpop.f32.mrf.mxu1  ;;  %1489 = vst [vmem:[%s2534_s16] sm:$0xff] %v1738_v42  ;;  %v2542_v11 = vmax.f32 %v1013_v43, 0.0  ;;  %v1017_v12 = vadd.f32 %v1016_v41, %v904_v44  ;;  %v906_v15 = vadd.f32 %v905_v45, %v2512_v14 }
 0x11a   : > { %v907_v16 = vpop.f32.mrf.mxu0 }
 0x11b   : > { %v1020_v17 = vpop.f32.mrf.mxu1  ;;  %v1739_v19 = vpack.c.bf16 %v2542_v11, %v2540_v9  ;;  %v1019_v21 = vadd.f32 %v1018_v8, %v906_v15  ;;  %v908_v22 = vadd.f32 %v907_v16, %v2510_v13  ;;  %v2549_v27 = vmax.f32 %v1017_v12, 0.0 }
 0x11c   : > { %v909_v24 = vpop.f32.mrf.mxu0 }
 0x11d   : > { %v1022_v25 = vpop.f32.mrf.mxu1  ;;  %1490 = vst [vmem:[%s2534_s16 + $0x8] sm:$0xff] %v1739_v19  ;;  %v2551_v28 = vmax.f32 %v1019_v21, 0.0  ;;  %v1021_v30 = vadd.f32 %v1020_v17, %v908_v22  ;;  %v910_v31 = vadd.f32 %v909_v24, %v2512_v14 }
 0x11e   : > { %v913_v34 = vpop.f32.mrf.mxu0 }
 0x11f   : > { %v1026_v35 = vpop.f32.mrf.mxu1  ;;  %v1740_v38 = vpack.c.bf16 %v2551_v28, %v2549_v27  ;;  %v1023_v39 = vadd.f32 %v1022_v25, %v910_v31  ;;  %v914_v40 = vadd.f32 %v913_v34, %v2510_v13  ;;  %v2558_v43 = vmax.f32 %v1021_v30, 0.0 }
 0x120   : > { %v915_v41 = vpop.f32.mrf.mxu0 }
 0x121   : > { %v1028_v42 = vpop.f32.mrf.mxu1  ;;  %1491 = vst [vmem:[%s2534_s16 + $0x10] sm:$0xff] %v1740_v38  ;;  %v2560_v44 = vmax.f32 %v1023_v39, 0.0  ;;  %v1027_v45 = vadd.f32 %v1026_v35, %v914_v40  ;;  %v916_v8 = vadd.f32 %v915_v41, %v2512_v14 }
 0x122   : > { %v917_v12 = vpop.f32.mrf.mxu0 }
 0x123   : > { %v1030_v15 = vpop.f32.mrf.mxu1  ;;  %v1741_v16 = vpack.c.bf16 %v2560_v44, %v2558_v43  ;;  %v1029_v17 = vadd.f32 %v1028_v42, %v916_v8  ;;  %v918_v19 = vadd.f32 %v917_v12, %v2510_v13  ;;  %v2567_v24 = vmax.f32 %v1027_v45, 0.0 }
 0x124   : > { %v919_v21 = vpop.f32.mrf.mxu0 }
 0x125   : > { %v1032_v22 = vpop.f32.mrf.mxu1  ;;  %1492 = vst [vmem:[%s2534_s16 + $0x18] sm:$0xff] %v1741_v16  ;;  %v2569_v25 = vmax.f32 %v1029_v17, 0.0  ;;  %v1031_v30 = vadd.f32 %v1030_v15, %v918_v19  ;;  %v920_v31 = vadd.f32 %v919_v21, %v2512_v14 }
 0x126   : > { %v923_v34 = vpop.f32.mrf.mxu0 }
 0x127   : > { %v1036_v35 = vpop.f32.mrf.mxu1  ;;  %v1742_v38 = vpack.c.bf16 %v2569_v25, %v2567_v24  ;;  %v1033_v39 = vadd.f32 %v1032_v22, %v920_v31  ;;  %v924_v40 = vadd.f32 %v923_v34, %v2510_v13  ;;  %1332 = vmatprep.mubr.f32.mxu1 %v2569_v25  ;;  %v2578_v45 = vmax.f32 %v1031_v30, 0.0 }
 0x128   : > { %v925_v41 = vpop.f32.mrf.mxu0  ;;  %1333 = vmatmul.mubr.f32.vlgmr.msra.gmra.mxu1 %v2567_v24 }
 0x129   : > { %v1038_v42 = vpop.f32.mrf.mxu1  ;;  %1493 = vst [vmem:[%s2534_s16 + $0x20] sm:$0xff] %v1742_v38  ;;  %v2580_v8 = vmax.f32 %v1033_v39, 0.0  ;;  %v1037_v12 = vadd.f32 %v1036_v35, %v924_v40  ;;  %v926_v15 = vadd.f32 %v925_v41, %v2512_v14 }
 0x12a   : > { %v927_v16 = vpop.f32.mrf.mxu0 }
 0x12b   : > { %v1040_v17 = vpop.f32.mrf.mxu1  ;;  %v1743_v19 = vpack.c.bf16 %v2580_v8, %v2578_v45  ;;  %v1039_v21 = vadd.f32 %v1038_v42, %v926_v15  ;;  %v928_v22 = vadd.f32 %v927_v16, %v2510_v13  ;;  %1337 = vmatprep.mubr.f32.mxu1 %v2580_v8  ;;  %v2589_v30 = vmax.f32 %v1037_v12, 0.0 }
 0x12c   : > { %v929_v31 = vpop.f32.mrf.mxu0  ;;  %1338 = vmatmul.mubr.f32.gmra.mxu1 %v2578_v45 }
 0x12d   : > { %v1042_v34 = vpop.f32.mrf.mxu1  ;;  %1494 = vst [vmem:[%s2534_s16 + $0x28] sm:$0xff] %v1743_v19  ;;  %v2591_v35 = vmax.f32 %v1039_v21, 0.0  ;;  %v1041_v38 = vadd.f32 %v1040_v17, %v928_v22  ;;  %v930_v39 = vadd.f32 %v929_v31, %v2512_v14 }
 0x12e   : > { %v933_v40 = vpop.f32.mrf.mxu0 }
 0x12f   : > { %v1046_v41 = vpop.f32.mrf.mxu1  ;;  %v1744_v42 = vpack.c.bf16 %v2591_v35, %v2589_v30  ;;  %v1043_v15 = vadd.f32 %v1042_v34, %v930_v39  ;;  %v934_v16 = vadd.f32 %v933_v40, %v2510_v13  ;;  %1342 = vmatprep.mubr.f32.mxu1 %v2591_v35  ;;  %v2600_v12 = vmax.f32 %v1041_v38, 0.0 }
 0x130   : > { %v935_v7 = vpop.f32.mrf.mxu0  ;;  %1343 = vmatmul.mubr.f32.gmra.mxu1 %v2589_v30 }
 0x131   : > { %v1048_v6 = vpop.f32.mrf.mxu1  ;;  %1495 = vst [vmem:[%s2534_s16 + $0x30] sm:$0xff] %v1744_v42  ;;  %v2602_v17 = vmax.f32 %v1043_v15, 0.0  ;;  %v1047_v19 = vadd.f32 %v1046_v41, %v934_v16  ;;  %v936_v21 = vadd.f32 %v935_v7, %v2512_v14 }
 0x132   : > { %v937_v22 = vpop.f32.mrf.mxu0 }
 0x133   : > { %v1050_v31 = vpop.f32.mrf.mxu1  ;;  %v1745_v34 = vpack.c.bf16 %v2602_v17, %v2600_v12  ;;  %v1049_v39 = vadd.f32 %v1048_v6, %v936_v21  ;;  %v938_v40 = vadd.f32 %v937_v22, %v2510_v13  ;;  %1347 = vmatprep.mubr.f32.mxu1 %v2602_v17  ;;  %v2611_v38 = vmax.f32 %v1047_v19, 0.0 }
 0x134   : > { %v939_v5 = vpop.f32.mrf.mxu0  ;;  %1348 = vmatmul.mubr.f32.gmra.mxu1 %v2600_v12 }
 0x135   : > { %v1052_v4 = vpop.f32.mrf.mxu1  ;;  %1496 = vst [vmem:[%s2534_s16 + $0x38] sm:$0xff] %v1745_v34  ;;  %v2613_v41 = vmax.f32 %v1049_v39, 0.0  ;;  %v1051_v7 = vadd.f32 %v1050_v31, %v938_v40  ;;  %v940_v42 = vadd.f32 %v939_v5, %v2512_v14 }
 0x136   : > { %v943_v15 = vpop.f32.mrf.mxu0 }
 0x137   : > { %v1056_v16 = vpop.f32.mrf.mxu1  ;;  %v1746_v6 = vpack.c.bf16 %v2613_v41, %v2611_v38  ;;  %v1053_v21 = vadd.f32 %v1052_v4, %v940_v42  ;;  %v944_v22 = vadd.f32 %v943_v15, %v2510_v13  ;;  %1352 = vmatprep.mubr.f32.mxu1 %v2613_v41  ;;  %v2622_v19 = vmax.f32 %v1051_v7, 0.0 }
 0x138   : > { %v945_v3 = vpop.f32.mrf.mxu0  ;;  %1353 = vmatmul.mubr.f32.gmra.mxu1 %v2611_v38 }
 0x139   : > { %v1058_v2 = vpop.f32.mrf.mxu1  ;;  %1497 = vst [vmem:[%s2534_s16 + $0x40] sm:$0xff] %v1746_v6  ;;  %v2624_v31 = vmax.f32 %v1053_v21, 0.0  ;;  %v1057_v5 = vadd.f32 %v1056_v16, %v944_v22  ;;  %v946_v34 = vadd.f32 %v945_v3, %v2512_v14 }
 0x13a   : > { %v947_v39 = vpop.f32.mrf.mxu0 }
 0x13b   : > { %v1060_v40 = vpop.f32.mrf.mxu1  ;;  %v1747_v4 = vpack.c.bf16 %v2624_v31, %v2622_v19  ;;  %v1059_v42 = vadd.f32 %v1058_v2, %v946_v34  ;;  %v948_v15 = vadd.f32 %v947_v39, %v2510_v13  ;;  %1357 = vmatprep.mubr.f32.mxu1 %v2624_v31  ;;  %v2633_v7 = vmax.f32 %v1057_v5, 0.0 }
 0x13c   : > { %v949_v1 = vpop.f32.mrf.mxu0  ;;  %1358 = vmatmul.mubr.f32.gmra.mxu1 %v2622_v19 }
 0x13d   : > { %v1062_v0 = vpop.f32.mrf.mxu1  ;;  %1498 = vst [vmem:[%s2534_s16 + $0x48] sm:$0xff] %v1747_v4  ;;  %v2635_v16 = vmax.f32 %v1059_v42, 0.0  ;;  %v1061_v3 = vadd.f32 %v1060_v40, %v948_v15  ;;  %v950_v6 = vadd.f32 %v949_v1, %v2512_v14  ;;  %v1980_v15 = vmov 0  }
 0x13e   : > { %v953_v21 = vpop.f32.mrf.mxu0  ;;  %1875 = vset.pattern.permute.xlu0 %v1980_v15 }
 0x13f   : > { %v1066_v22 = vpop.f32.mrf.mxu1  ;;  %v1748_v2 = vpack.c.bf16 %v2635_v16, %v2633_v7  ;;  %v1063_v34 = vadd.f32 %v1062_v0, %v950_v6  ;;  %v954_v39 = vadd.f32 %v953_v21, %v2510_v13  ;;  %1362 = vmatprep.mubr.f32.mxu1 %v2635_v16  ;;  %v2644_v5 = vmax.f32 %v1061_v3, 0.0  ;;  %1121 = vperm.xlu0 %1875, %v1118_v63  }
 0x140   : > { %v955_v62 = vpop.f32.mrf.mxu0  ;;  %1363 = vmatmul.mubr.f32.gmra.mxu1 %v2633_v7 }
 0x141   : > { %v1068_v4 = vpop.f32.mrf.mxu1  ;;  %1499 = vst [vmem:[%s2534_s16 + $0x50] sm:$0xff] %v1748_v2  ;;  %v2646_v1 = vmax.f32 %v1063_v34, 0.0  ;;  %v1067_v40 = vadd.f32 %v1066_v22, %v954_v39  ;;  %v956_v42 = vadd.f32 %v955_v62, %v2512_v14 }
 0x142   : > { %v957_v0 = vpop.f32.mrf.mxu0 }
 0x143   : > { %v1070_v6 = vpop.f32.mrf.mxu1  ;;  %v1749_v21 = vpack.c.bf16 %v2646_v1, %v2644_v5  ;;  %v1069_v61 = vadd.f32 %v1068_v4, %v956_v42  ;;  %v958_v60 = vadd.f32 %v957_v0, %v2510_v13  ;;  %1367 = vmatprep.mubr.f32.mxu1 %v2646_v1  ;;  %v1109_v62 = vmax.f32 %v1067_v40, 0.0 }
 0x144   : > { %v959_v3 = vpop.f32.mrf.mxu0  ;;  %1368 = vmatmul.mubr.f32.gmra.mxu1 %v2644_v5 }
 0x145   : > { %v1072_v2 = vpop.f32.mrf.mxu1  ;;  %1500 = vst [vmem:[%s2534_s16 + $0x58] sm:$0xff] %v1749_v21  ;;  %v1110_v22 = vmax.f32 %v1069_v61, 0.0  ;;  %v1071_v34 = vadd.f32 %v1070_v6, %v958_v60  ;;  %v960_v39 = vadd.f32 %v959_v3, %v2512_v14 }
 0x146   : > { %v963_v63 = vpop.f32.mrf.mxu0 }
 0x147   : > { %v1076_v15 = vpop.f32.mrf.mxu1  ;;  %v1750_v59 = vpack.c.bf16 %v1110_v22, %v1109_v62  ;;  %v1073_v58 = vadd.f32 %v1072_v2, %v960_v39  ;;  %v964_v4 = vadd.f32 %v963_v63, %v2510_v13  ;;  %1372 = vmatprep.mubr.f32.mxu1 %v1110_v22  ;;  %v1111_v57 = vmax.f32 %v1071_v34, 0.0 }
 0x148   : > { %v965_v42 = vpop.f32.mrf.mxu0  ;;  %1373 = vmatmul.mubr.f32.gmra.mxu1 %v1109_v62 }
 0x149   : > { %v1078_v0 = vpop.f32.mrf.mxu1  ;;  %1501 = vst [vmem:[%s2534_s16 + $0x60] sm:$0xff] %v1750_v59  ;;  %v1112_v56 = vmax.f32 %v1073_v58, 0.0  ;;  %v1077_v21 = vadd.f32 %v1076_v15, %v964_v4  ;;  %v966_v61 = vadd.f32 %v965_v42, %v2512_v14 }
 0x14a   : > { %v967_v60 = vpop.f32.mrf.mxu0 }
 0x14b   : > { %v1080_v40 = vpop.f32.mrf.mxu1  ;;  %v1751_v6 = vpack.c.bf16 %v1112_v56, %v1111_v57  ;;  %v1079_v3 = vadd.f32 %v1078_v0, %v966_v61  ;;  %v968_v2 = vadd.f32 %v967_v60, %v2510_v13  ;;  %1377 = vmatprep.mubr.f32.mxu1 %v1112_v56  ;;  %v1113_v63 = vmax.f32 %v1077_v21, 0.0 }
 0x14c   : > { %v969_v39 = vpop.f32.mrf.mxu0  ;;  %1378 = vmatmul.mubr.f32.gmra.mxu1 %v1111_v57 }
 0x14d   : > { %1502 = vst [vmem:[%s2534_s16 + $0x68] sm:$0xff] %v1751_v6  ;;  %v1114_v55 = vmax.f32 %v1079_v3, 0.0  ;;  %v1081_v59 = vadd.f32 %v1080_v40, %v968_v2  ;;  %v970_v58 = vadd.f32 %v969_v39, %v2512_v14  ;;  %v1082_v34 = vpop.f32.mrf.mxu1  ;;  %v2730_v14 = vld [vmem:[#allocation3] ss:$0 sm:$0xff] }
 0x14f   : > { %v1752_v15 = vpack.c.bf16 %v1114_v55, %v1113_v63  ;;  %v1083_v4 = vadd.f32 %v1082_v34, %v970_v58  ;;  %1382 = vmatprep.mubr.f32.mxu1 %v1114_v55  ;;  %v1115_v42 = vmax.f32 %v1081_v59, 0.0 }
 0x150   : > { %1383 = vmatmul.mubr.f32.gmra.mxu1 %v1113_v63 }
 0x151   : > { %1503 = vst [vmem:[%s2534_s16 + $0x70] sm:$0xff] %v1752_v15  ;;  %v1116_v0 = vmax.f32 %v1083_v4, 0.0 }
 0x153   : > { %v1753_v61 = vpack.c.bf16 %v1116_v0, %v1115_v42  ;;  %1139 = vmatprep.subr.mxu0 %v1116_v0  ;;  %1387 = vmatprep.mubr.f32.mxu1 %v1116_v0 }
 0x154   : > { %1140 = vmatpush1.xpose.msra.mxu0 %v1115_v42  ;;  %1388 = vmatmul.mubr.f32.gmra.mxu1 %v1115_v42 }
 0x155   : > { %1504 = vst [vmem:[%s2534_s16 + $0x78] sm:$0xff] %v1753_v61  ;;  %1141 = vmatprep.subr.mxu0 %v1114_v55  ;;  %v1132_v55 = vrot.slane %v2518_v18, %v2504_v10 }
 0x158   : > { %1142 = vmatpush1.xpose.msra.mxu0 %v1113_v63 }
 0x159   : > { %1143 = vmatprep.subr.mxu0 %v1112_v56  ;;  %v2855_v56 = vld [vmem:[#allocation19_spill] sm:$0xff] }
 0x15c   : > { %1144 = vmatpush1.xpose.msra.mxu0 %v1111_v57  ;;  %v2856_v57 = vld [vmem:[#allocation20_spill] sm:$0xff] }
 0x15d   : > { %1145 = vmatprep.subr.mxu0 %v1110_v22 }
 0x160   : > { %1146 = vmatpush1.xpose.msra.mxu0 %v1109_v62 }
 0x161   : > { %1147 = vmatprep.subr.mxu0 %v2646_v1 }
 0x164   : > { %1148 = vmatpush1.xpose.msra.mxu0 %v2644_v5 }
 0x165   : > { %1149 = vmatprep.subr.mxu0 %v2635_v16 }
 0x168   : > { %1150 = vmatpush1.xpose.msra.mxu0 %v2633_v7 }
 0x169   : > { %1151 = vmatprep.subr.mxu0 %v2624_v31 }
 0x16c   : > { %1152 = vmatpush1.xpose.msra.mxu0 %v2622_v19 }
 0x16d   : > { %1153 = vmatprep.subr.mxu0 %v2613_v41 }
 0x170   : > { %1154 = vmatpush1.xpose.msra.mxu0 %v2611_v38 }
 0x171   : > { %1155 = vmatprep.subr.mxu0 %v2602_v17 }
 0x174   : > { %1156 = vmatpush1.xpose.msra.mxu0 %v2600_v12 }
 0x175   : > { %1157 = vmatprep.subr.mxu0 %v2591_v35 }
 0x178   : > { %1158 = vmatpush1.xpose.msra.mxu0 %v2589_v30 }
 0x179   : > { %1159 = vmatprep.subr.mxu0 %v2580_v8 }
 0x17c   : > { %1160 = vmatpush1.xpose.msra.mxu0 %v2578_v45 }
 0x17d   : > { %1161 = vmatprep.subr.mxu0 %v2569_v25 }
 0x180   : > { %1162 = vmatpush1.xpose.msra.mxu0 %v2567_v24 }
 0x181   : > { %1163 = vmatprep.subr.mxu0 %v2560_v44 }
 0x184   : > { %1164 = vmatpush1.xpose.msra.mxu0 %v2558_v43 }
 0x185   : > { %1165 = vmatprep.subr.mxu0 %v2551_v28 }
 0x188   : > { %1166 = vmatpush1.xpose.msra.mxu0 %v2549_v27 }
 0x189   : > { %1167 = vmatprep.subr.mxu0 %v2542_v11 }
 0x18c   : > { %1168 = vmatpush1.xpose.msra.mxu0 %v2540_v9 }
 0x18d   : > { %1169 = vmatprep.subr.mxu0 %v2526_v37 }
 0x190   : > { %1170 = vmatpush1.xpose.msra.mxu0 %v2524_v36 }
 0x191   : > { %1754 = vmatprep.subr.mxu0 %v2263_v20  ;;  %v2840_v20 = vld [vmem:[#allocation4_spill] sm:$0xff] }
 0x193   : > { %1204 = vmatmul.mubr.f32.vlgmr.msra.gmra.mxu0 %v1132_v55 }
 0x194   : > { %1755 = vmatpush3.msra.mxu0 %v2271_v23  ;;  %1312 = vmatprep.mubr.f32.mxu0 %v2526_v37  ;;  %v2841_v23 = vld [vmem:[#allocation5_spill] sm:$0xff] }
 0x195   : > { %1756 = vmatprep.subr.mxu0 %v2278_v26  ;;  %v2842_v26 = vld [vmem:[#allocation6_spill] sm:$0xff] }
 0x196   : > { %1757 = vmatpush3.msra.mxu0 %v2285_v29  ;;  %v2843_v29 = vld [vmem:[#allocation7_spill] sm:$0xff] }
 0x197   : > { %1758 = vmatprep.subr.mxu0 %v2293_v32  ;;  %v2844_v32 = vld [vmem:[#allocation8_spill] sm:$0xff] }
 0x198   : > { %1759 = vmatpush3.msra.mxu0 %v2299_v33  ;;  %v2845_v33 = vld [vmem:[#allocation9_spill] sm:$0xff] }
 0x199   : > { %1760 = vmatprep.subr.mxu0 %v2351_v46  ;;  %v2846_v46 = vld [vmem:[#allocation10_spill] sm:$0xff] }
 0x19a   : > { %1761 = vmatpush3.msra.mxu0 %v2357_v47  ;;  %v2847_v47 = vld [vmem:[#allocation11_spill] sm:$0xff] }
 0x19b   : > { %1762 = vmatprep.subr.mxu0 %v2363_v48  ;;  %v2848_v48 = vld [vmem:[#allocation12_spill] sm:$0xff] }
 0x19c   : > { %1763 = vmatpush3.msra.mxu0 %v2369_v49  ;;  %v2849_v49 = vld [vmem:[#allocation13_spill] sm:$0xff] }
 0x19d   : > { %1764 = vmatprep.subr.mxu0 %v2375_v50  ;;  %v2850_v50 = vld [vmem:[#allocation14_spill] sm:$0xff] }
 0x19e   : > { %1765 = vmatpush3.msra.mxu0 %v2381_v51  ;;  %v2851_v51 = vld [vmem:[#allocation15_spill] sm:$0xff] }
 0x19f   : > { %1766 = vmatprep.subr.mxu0 %v2387_v52  ;;  %v2852_v52 = vld [vmem:[#allocation16_spill] sm:$0xff] }
 0x1a0   : > { %1767 = vmatpush3.msra.mxu0 %v2393_v53  ;;  %v2853_v53 = vld [vmem:[#allocation17_spill] sm:$0xff] }
 0x1a1   : > { %1768 = vmatprep.subr.mxu0 %v2399_v54  ;;  %v2854_v54 = vld [vmem:[#allocation18_spill] sm:$0xff] }
 0x1a2   : > { %1769 = vmatpush3.msra.mxu0 %v2840_v20 }
 0x1a3   : > { %1770 = vmatprep.subr.mxu0 %v2841_v23 }
 0x1a4   : > { %1771 = vmatpush3.msra.mxu0 %v2842_v26 }
 0x1a5   : > { %1772 = vmatprep.subr.mxu0 %v2843_v29 }
 0x1a6   : > { %1773 = vmatpush3.msra.mxu0 %v2844_v32 }
 0x1a7   : > { %1774 = vmatprep.subr.mxu0 %v2845_v33 }
 0x1a8   : > { %1775 = vmatpush3.msra.mxu0 %v2846_v46 }
 0x1a9   : > { %1776 = vmatprep.subr.mxu0 %v2847_v47 }
 0x1aa   : > { %1777 = vmatpush3.msra.mxu0 %v2848_v48 }
 0x1ab   : > { %1778 = vmatprep.subr.mxu0 %v2849_v49 }
 0x1ac   : > { %1779 = vmatpush3.msra.mxu0 %v2850_v50 }
 0x1ad   : > { %1780 = vmatprep.subr.mxu0 %v2851_v51 }
 0x1ae   : > { %1781 = vmatpush3.msra.mxu0 %v2852_v52 }
 0x1af   : > { %1782 = vmatprep.subr.mxu0 %v2853_v53 }
 0x1b0   : > { %1783 = vmatpush3.msra.mxu0 %v2854_v54 }
 0x1b1   : > { %1784 = vmatprep.subr.mxu0 %v2855_v56 }
 0x1b2   : > { %1785 = vmatpush3.msra.mxu0 %v2856_v57 }
 0x1b3   : > { %1313 = vmatmul.mubr.f32.vlgmr.msra.gmra.mxu0 %v2524_v36 }
 0x1b4   : > { %1317 = vmatprep.mubr.f32.mxu0 %v2542_v11 }
 0x1b7   : > { %1318 = vmatmul.mubr.f32.gmra.mxu0 %v2540_v9 }
 0x1b8   : > { %1322 = vmatprep.mubr.f32.mxu0 %v2551_v28 }
 0x1ba   : > { %v1122_v29 = vpop.permute.xlu0 %1121 }
 0x1bb   : > { %1323 = vmatmul.mubr.f32.gmra.mxu0 %v2549_v27  ;;  %v1127_v32 = vrot.slane %v1122_v29, %v2504_v10 }
 0x1bc   : > { %1327 = vmatprep.mubr.f32.mxu0 %v2560_v44 }
 0x1bf   : > { %1328 = vmatmul.mubr.f32.gmra.mxu0 %v2558_v43 }
 0x1e8   : > { %v1798_v13 = vpop.f32.mrf.mxu1 }
 0x1ea   : > { %v1799_v18 = vpop.f32.mrf.mxu1 }
 0x1eb   : > { %v1800_v37 = vadd.f32 %v1799_v18, %v1798_v13 }
 0x1ec   : > { %v1801_v36 = vpop.f32.mrf.mxu1 }
 0x1ed   : > { %v1335_v9 = vadd.f32 %v1800_v37, %v2730_v14 }
 0x1ee   : > { %v1802_v11 = vpop.f32.mrf.mxu1 }
 0x1ef   : > { %1511 = vst.msk [vmem:[%s2737_s19 + $0x20] sm:$0xff] %vm1506_vm0, %v1335_v9  ;;  %v1803_v27 = vadd.f32 %v1802_v11, %v1801_v36 }
 0x1f0   : > { %v1804_v28 = vpop.f32.mrf.mxu1 }
 0x1f1   : > { %v1340_v43 = vadd.f32 %v1803_v27, %v2730_v14 }
 0x1f2   : > { %v1805_v44 = vpop.f32.mrf.mxu1 }
 0x1f3   : > { %1512 = vst.msk [vmem:[%s2737_s19 + $0x28] sm:$0xff] %vm1506_vm0, %v1340_v43  ;;  %v1806_v24 = vadd.f32 %v1805_v44, %v1804_v28 }
 0x1f4   : > { %v1807_v25 = vpop.f32.mrf.mxu1 }
 0x1f5   : > { %v1345_v45 = vadd.f32 %v1806_v24, %v2730_v14 }
 0x1f6   : > { %v1808_v8 = vpop.f32.mrf.mxu1 }
 0x1f7   : > { %1513 = vst.msk [vmem:[%s2737_s19 + $0x30] sm:$0xff] %vm1506_vm0, %v1345_v45  ;;  %v1809_v30 = vadd.f32 %v1808_v8, %v1807_v25 }
 0x1f8   : > { %v1810_v35 = vpop.f32.mrf.mxu1 }
 0x1f9   : > { %v1350_v12 = vadd.f32 %v1809_v30, %v2730_v14 }
 0x1fa   : > { %v1811_v17 = vpop.f32.mrf.mxu1 }
 0x1fb   : > { %1514 = vst.msk [vmem:[%s2737_s19 + $0x38] sm:$0xff] %vm1506_vm0, %v1350_v12  ;;  %v1812_v38 = vadd.f32 %v1811_v17, %v1810_v35 }
 0x1fc   : > { %v1813_v41 = vpop.f32.mrf.mxu1 }
 0x1fd   : > { %v1355_v19 = vadd.f32 %v1812_v38, %v2730_v14 }
 0x1fe   : > { %v1814_v31 = vpop.f32.mrf.mxu1 }
 0x1ff   : > { %1515 = vst.msk [vmem:[%s2737_s19 + $0x40] sm:$0xff] %vm1506_vm0, %v1355_v19  ;;  %v1815_v7 = vadd.f32 %v1814_v31, %v1813_v41 }
 0x200   : > { %v1816_v16 = vpop.f32.mrf.mxu1 }
 0x201   : > { %v1360_v5 = vadd.f32 %v1815_v7, %v2730_v14 }
 0x202   : > { %v1817_v1 = vpop.f32.mrf.mxu1 }
 0x203   : > { %1516 = vst.msk [vmem:[%s2737_s19 + $0x48] sm:$0xff] %vm1506_vm0, %v1360_v5  ;;  %v1818_v62 = vadd.f32 %v1817_v1, %v1816_v16 }
 0x204   : > { %v1819_v22 = vpop.f32.mrf.mxu1 }
 0x205   : > { %v1365_v21 = vadd.f32 %v1818_v62, %v2730_v14 }
 0x206   : > { %v1820_v60 = vpop.f32.mrf.mxu1 }
 0x207   : > { %1517 = vst.msk [vmem:[%s2737_s19 + $0x50] sm:$0xff] %vm1506_vm0, %v1365_v21  ;;  %v1821_v40 = vadd.f32 %v1820_v60, %v1819_v22 }
 0x208   : > { %v1822_v6 = vpop.f32.mrf.mxu1 }
 0x209   : > { %v1370_v3 = vadd.f32 %v1821_v40, %v2730_v14 }
 0x20a   : > { %v1823_v2 = vpop.f32.mrf.mxu1 }
 0x20b   : > { %1518 = vst.msk [vmem:[%s2737_s19 + $0x58] sm:$0xff] %vm1506_vm0, %v1370_v3  ;;  %v1824_v39 = vadd.f32 %v1823_v2, %v1822_v6 }
 0x20c   : > { %v1825_v63 = vpop.f32.mrf.mxu1 }
 0x20d   : > { %v1375_v59 = vadd.f32 %v1824_v39, %v2730_v14 }
 0x20e   : > { %v1826_v58 = vpop.f32.mrf.mxu1 }
 0x20f   : > { %1519 = vst.msk [vmem:[%s2737_s19 + $0x60] sm:$0xff] %vm1506_vm0, %v1375_v59  ;;  %v1827_v34 = vadd.f32 %v1826_v58, %v1825_v63 }
 0x210   : > { %v1828_v15 = vpop.f32.mrf.mxu1 }
 0x211   : > { %v1380_v4 = vadd.f32 %v1827_v34, %v2730_v14 }
 0x212   : > { %v1829_v42 = vpop.f32.mrf.mxu1 }
 0x213   : > { %1520 = vst.msk [vmem:[%s2737_s19 + $0x68] sm:$0xff] %vm1506_vm0, %v1380_v4  ;;  %v1830_v0 = vadd.f32 %v1829_v42, %v1828_v15 }
 0x214   : > { %v1831_v61 = vpop.f32.mrf.mxu1 }
 0x215   : > { %v1385_v55 = vadd.f32 %v1830_v0, %v2730_v14 }
 0x216   : > { %v1832_v20 = vpop.f32.mrf.mxu1 }
 0x217   : > { %1521 = vst.msk [vmem:[%s2737_s19 + $0x70] sm:$0xff] %vm1506_vm0, %v1385_v55  ;;  %v1833_v23 = vadd.f32 %v1832_v20, %v1831_v61 }
 0x219   : > { %v1390_v26 = vadd.f32 %v1833_v23, %v2730_v14 }
 0x21b   : > { %1522 = vst.msk [vmem:[%s2737_s19 + $0x78] sm:$0xff] %vm1506_vm0, %v1390_v26 }
 0x253   : > { %v1205_v33 = vpop.f32.mrf.mxu0 }
 0x254   : > { %v1206_v46 = vadd.f32 %v1205_v33, %v1127_v32 }
 0x255   : > { %v1207_v47 = vpop.f32.mrf.mxu0 }
 0x256   : > { %1505 = vst [vmem:[%s360_s21] sm:$0x1] %v1206_v46 }
 0x273   : > { %v1786_v48 = vpop.f32.mrf.mxu0 }
 0x275   : > { %v1787_v49 = vpop.f32.mrf.mxu0 }
 0x276   : > { %v1788_v50 = vadd.f32 %v1787_v49, %v1786_v48 }
 0x277   : > { %v1789_v51 = vpop.f32.mrf.mxu0 }
 0x278   : > { %v1315_v52 = vadd.f32 %v1788_v50, %v2730_v14 }
 0x279   : > { %v1790_v53 = vpop.f32.mrf.mxu0 }
 0x27a   : > { %1507 = vst.msk [vmem:[%s2737_s19] sm:$0xff] %vm1506_vm0, %v1315_v52  ;;  %v1791_v10 = vadd.f32 %v1790_v53, %v1789_v51 }
 0x27b   : > { %v1792_v54 = vpop.f32.mrf.mxu0 }
 0x27c   : > { %v1320_v56 = vadd.f32 %v1791_v10, %v2730_v14 }
 0x27d   : > { %v1793_v57 = vpop.f32.mrf.mxu0 }
 0x27e   : > { %1508 = vst.msk [vmem:[%s2737_s19 + $0x8] sm:$0xff] %vm1506_vm0, %v1320_v56  ;;  %v1794_v13 = vadd.f32 %v1793_v57, %v1792_v54 }
 0x27f   : > { %v1795_v18 = vpop.f32.mrf.mxu0 }
 0x280   : > { %v1325_v37 = vadd.f32 %v1794_v13, %v2730_v14 }
 0x281   : > { %v1796_v36 = vpop.f32.mrf.mxu0 }
 0x282   : > { %1509 = vst.msk [vmem:[%s2737_s19 + $0x10] sm:$0xff] %vm1506_vm0, %v1325_v37  ;;  %v1797_v9 = vadd.f32 %v1796_v36, %v1795_v18 }
 0x284   : > { %v1330_v11 = vadd.f32 %v1797_v9, %v2730_v14 }
 0x286   : > { %1510 = vst.msk [vmem:[%s2737_s19 + $0x18] sm:$0xff] %vm1506_vm0, %v1330_v11 }
 0x287 PF: > { %s24_s13 = sadd.s32 1, %s1978_s13  }
 0x288   : > { %p21_p5 = scmp.ge.s32.totalorder %s24_s13, 4  }
 0x28a   :  { %23 = sbr.rel (!%p21_p5) target bundleno = 3 (0x3), region = 102 }

// kernel: decoder_forward.11
= control target key start
LH: loop header
LB: loop body
LE: loop exit
PB: predicated region body
PF: predicated region fallthrough
CT: control target
= control target key end

     0   :  { %s2682_s0 = inlined_call_operand.vmem [shape: bf16[256,256], index: 0, kind: input, shape index: {}, may-alias: {0,1}]   ;;  %s2683_s1 = inlined_call_operand.vmem [shape: bf16[256,256], index: 1, kind: input, shape index: {}, may-alias: {0,1}]   ;;  %s2684_s2 = inlined_call_operand.vmem [shape: f32[1,256], index: 2, kind: input, shape index: {}]   ;;  %s2685_s3 = inlined_call_operand.vmem [shape: f32[256,1], index: 3, kind: input, shape index: {}]   ;;  %s2686_s4 = inlined_call_operand.vmem [shape: bf16[256,256], index: 4, kind: input, shape index: {}]   ;;  %s2687_s5 = inlined_call_operand.hbm [shape: f32[256,256], index: 5, kind: output, shape index: {}]  }
   0x1   :  { %2694 = sst [smem:[#allocation15_spill]] %s2682_s0 }
   0x2   :  { %2695 = sst [smem:[#allocation16_spill]] %s2683_s1 }
   0x3   :  { %10 = vsyncpa [#allocation7], 0 }
   0x4   :  { %12 = vsyncpa [#allocation7 + $0x1], 0  ;;  %s2274_s18 = smov 0   ;;  %s2276_s19 = smov 0  }
   0x5   :  { %s2278_s20 = smov 0   ;;  %s2280_s21 = smov 0  }
   0x6   :  { %s2282_s22 = smov 0   ;;  %s2284_s23 = smov 0  }
   0x7   :  { %s2286_s24 = smov 0   ;;  %s2288_s25 = smov 0  }
   0x8   :  { %s2290_s26 = smov 0   ;;  %s2292_s27 = smov 0  }
   0x9 LB: > { %2696 = sst [smem:[#allocation9_spill]] %s2216_s22  ;;  %s1719_s28 = sadd.s32 4294967295, %s2236_s27   ;;  %s2236_s27 = sphi %s2292_s27, %s18_s27   ;;  %s2232_s26 = sphi %s2290_s26, %s2713_s26   ;;  %s2228_s25 = sphi %s2288_s25, %s2712_s25   ;;  %s2224_s24 = sphi %s2286_s24, %s2711_s24   ;;  %s2220_s23 = sphi %s2284_s23, %s2710_s23   ;;  %s2216_s22 = sphi %s2282_s22, %s2709_s22   ;;  %s2212_s21 = sphi %s2280_s21, %s2708_s21   ;;  %s2208_s20 = sphi %s2278_s20, %s2716_s20   ;;  %s2204_s19 = sphi %s2276_s19, %s2715_s19   ;;  %s2200_s18 = sphi %s2274_s18, %s2714_s18  }
   0xa   : > { %2697 = sst [smem:[#allocation10_spill]] %s2228_s25  ;;  %s1720_s29 = sadd.s32 4294967294, %s2236_s27  }
   0xb   : > { %2698 = sst [smem:[#allocation11_spill]] %s2232_s26  ;;  %s27_s30 = sadd.s32 1, %s2228_s25 }
   0xc   : > { %s30_s6 = sadd.s32 1, %s2232_s26  ;;  %p28_p0 = scmp.ge.s32.totalorder %s27_s30, 2 }
   0xd   : > { %s39_s7 = sadd.s32 1, %s2216_s22  ;;  %p46_p1 = scmp.ne.s32.totalorder %s2216_s22, %s2212_s21 }
   0xe   : > { %p47_p2 = scmp.eq.s32.totalorder %s2236_s27, 0  ;;  %s2718_s30 = smov (%p28_p0, %s27_s30), 0 }
   0xf   : > { %2699 = sst [smem:[#allocation12_spill]] %s2718_s30  ;;  %s2720_s6 = smov (!%p28_p0, %s30_s6), %s2232_s26 }
  0x10   : > { %s35_s8 = ssub.s32 %s2228_s25, %s2718_s30  ;;  %p2337_p3 = por %p47_p2, %p46_p1 }
  0x11   : > { %p32_p4 = scmp.ge.s32.totalorder %s2720_s6, 2  ;;  %s171_s10 = sadd.s32 1, %s2208_s20 }
  0x12   : > { %p181_p5 = scmp.ne.s32.totalorder %s2208_s20, %s2204_s19  ;;  %p182_p6 = scmp.eq.s32.totalorder %s1719_s28, 3 }
  0x13   : > { %s2722_s6 = smov (%p32_p4, %s2720_s6), 0  ;;  %p187_p8 = scmp.ne.s32.totalorder %s2204_s19, %s2200_s18 }
  0x14   : > { %2701 = sst [smem:[#allocation13_spill]] %s2722_s6  ;;  %p2346_p7 = por %p182_p6, %p181_p5 }
  0x15   : > { %s34_s12 = ssub.s32 %s2232_s26, %s2722_s6  ;;  %p188_p9 = scmp.eq.s32.totalorder %s1720_s29, 3 }
  0x16   : > { %s36_s13 = sor.u32 %s35_s8, %s34_s12  ;;  %p169_p10 = scmp.eq.s32.totalorder %s34_s12, 0 }
  0x17   : > { %p37_p11 = scmp.eq.s32.totalorder %s36_s13, 0  ;;  %p2354_p12 = por %p188_p9, %p187_p8 }
  0x18   : > { %s2359_s15 = scalar_select %p169_p10, %s2208_s20, %s171_s10  }
  0x19   : > { %s2362_s16 = scalar_select %p37_p11, %s2216_s22, %s39_s7  }
  0x1a   : > { %p1722_p13 = scmp.ge.s32.totalorder %s2236_s27, 4 }
  0x1b   : > { %2704 = sst [smem:[#allocation14_spill]] %s2362_s16 }
  0x1c   : > { %204 = sbr.rel (%p1722_p13) target bundleno = 73 (0x49), region = 16 }
  0x21   : > { %207 = sbr.rel (!%p2337_p3) target bundleno = 53 (0x35), region = 20  ;;  %s209_s17 = sand.u32 (%p2337_p3), 1, %s2216_s22  }
  0x22   : > { %s1781_s28 = sshll.u32 (%p2337_p3), %s2232_s26, 5  ;;  %s1723_s29 = sshll.u32 (%p2337_p3), %s209_s17, 6 }
  0x23   : > { %s214_s8 = sadd.s32 (%p2337_p3), %s2228_s25, %s1781_s28  ;;  %s2705_s0 = sld [smem:[#allocation15_spill]] (%p2337_p3) }
  0x24   : > { %s1726_s12 = sshll.u32 (%p2337_p3), %s214_s8, 2  ;;  %s211_s7 = scalar_lea.vmem (%p2337_p3), [#allocation4], %s1723_s29 }
  0x29   : > { %s2373_s10 = scalar_lea.vmem %s2705_s0, %s1726_s12 }
  0x2a   : > { %v233_v0 = vld [vmem:[%s2373_s10] sm:$0xf]  ;;  %v235_v1 = vld [vmem:[%s2373_s10 + $0x8] sm:$0xf]  ;;  %v237_v2 = vld [vmem:[%s2373_s10 + $0x10] sm:$0xf] }
  0x2b   : > { %234 = vst [vmem:[%s211_s7] sm:$0xf] %v233_v0  ;;  %236 = vst [vmem:[%s211_s7 + $0x4] sm:$0xf] %v235_v1  ;;  %v239_v3 = vld [vmem:[%s2373_s10 + $0x18] sm:$0xf] }
  0x2c   : > { %238 = vst [vmem:[%s211_s7 + $0x8] sm:$0xf] %v237_v2  ;;  %v241_v4 = vld [vmem:[%s2373_s10 + $0x20] sm:$0xf]  ;;  %v243_v5 = vld [vmem:[%s2373_s10 + $0x28] sm:$0xf] }
  0x2d   : > { %240 = vst [vmem:[%s211_s7 + $0xc] sm:$0xf] %v239_v3  ;;  %242 = vst [vmem:[%s211_s7 + $0x10] sm:$0xf] %v241_v4  ;;  %v245_v6 = vld [vmem:[%s2373_s10 + $0x30] sm:$0xf] }
  0x2e   : > { %244 = vst [vmem:[%s211_s7 + $0x14] sm:$0xf] %v243_v5  ;;  %v247_v7 = vld [vmem:[%s2373_s10 + $0x38] sm:$0xf]  ;;  %v249_v8 = vld [vmem:[%s2373_s10 + $0x40] sm:$0xf] }
  0x2f   : > { %246 = vst [vmem:[%s211_s7 + $0x18] sm:$0xf] %v245_v6  ;;  %248 = vst [vmem:[%s211_s7 + $0x1c] sm:$0xf] %v247_v7  ;;  %v251_v9 = vld [vmem:[%s2373_s10 + $0x48] sm:$0xf] }
  0x30   : > { %250 = vst [vmem:[%s211_s7 + $0x20] sm:$0xf] %v249_v8  ;;  %v253_v10 = vld [vmem:[%s2373_s10 + $0x50] sm:$0xf]  ;;  %v255_v11 = vld [vmem:[%s2373_s10 + $0x58] sm:$0xf] }
  0x31   : > { %252 = vst [vmem:[%s211_s7 + $0x24] sm:$0xf] %v251_v9  ;;  %254 = vst [vmem:[%s211_s7 + $0x28] sm:$0xf] %v253_v10  ;;  %v257_v12 = vld [vmem:[%s2373_s10 + $0x60] sm:$0xf] }
  0x32   : > { %256 = vst [vmem:[%s211_s7 + $0x2c] sm:$0xf] %v255_v11  ;;  %v259_v13 = vld [vmem:[%s2373_s10 + $0x68] sm:$0xf]  ;;  %v261_v14 = vld [vmem:[%s2373_s10 + $0x70] sm:$0xf] }
  0x33   : > { %258 = vst [vmem:[%s211_s7 + $0x30] sm:$0xf] %v257_v12  ;;  %260 = vst [vmem:[%s211_s7 + $0x34] sm:$0xf] %v259_v13  ;;  %v263_v15 = vld [vmem:[%s2373_s10 + $0x78] sm:$0xf] }
  0x34   : > { %262 = vst [vmem:[%s211_s7 + $0x38] sm:$0xf] %v261_v14  ;;  %264 = vst [vmem:[%s211_s7 + $0x3c] sm:$0xf] %v263_v15 }
  0x35 PF: > { %320 = sbr.rel (!%p2337_p3) target bundleno = 73 (0x49), region = 61  ;;  %s322_s6 = sand.u32 (%p2337_p3), 1, %s2216_s22  }
  0x36   : > { %s1782_s17 = sshll.u32 (%p2337_p3), %s2228_s25, 5  ;;  %s1727_s28 = sshll.u32 (%p2337_p3), %s322_s6, 6 }
  0x37   : > { %s327_s29 = sadd.s32 (%p2337_p3), %s2232_s26, %s1782_s17  ;;  %s2706_s1 = sld [smem:[#allocation16_spill]] (%p2337_p3) }
  0x38   : > { %s1730_s8 = sshll.u32 (%p2337_p3), %s327_s29, 2  ;;  %s324_s9 = scalar_lea.vmem (%p2337_p3), [#allocation5], %s1727_s28 }
  0x3d   : > { %s2399_s0 = scalar_lea.vmem %s2706_s1, %s1730_s8 }
  0x3e   : > { %v346_v16 = vld [vmem:[%s2399_s0] sm:$0xf]  ;;  %v348_v17 = vld [vmem:[%s2399_s0 + $0x8] sm:$0xf]  ;;  %v350_v18 = vld [vmem:[%s2399_s0 + $0x10] sm:$0xf] }
  0x3f   : > { %347 = vst [vmem:[%s324_s9] sm:$0xf] %v346_v16  ;;  %349 = vst [vmem:[%s324_s9 + $0x4] sm:$0xf] %v348_v17  ;;  %v352_v19 = vld [vmem:[%s2399_s0 + $0x18] sm:$0xf] }
  0x40   : > { %351 = vst [vmem:[%s324_s9 + $0x8] sm:$0xf] %v350_v18  ;;  %v354_v20 = vld [vmem:[%s2399_s0 + $0x20] sm:$0xf]  ;;  %v356_v21 = vld [vmem:[%s2399_s0 + $0x28] sm:$0xf] }
  0x41   : > { %353 = vst [vmem:[%s324_s9 + $0xc] sm:$0xf] %v352_v19  ;;  %355 = vst [vmem:[%s324_s9 + $0x10] sm:$0xf] %v354_v20  ;;  %v358_v22 = vld [vmem:[%s2399_s0 + $0x30] sm:$0xf] }
  0x42   : > { %357 = vst [vmem:[%s324_s9 + $0x14] sm:$0xf] %v356_v21  ;;  %v360_v23 = vld [vmem:[%s2399_s0 + $0x38] sm:$0xf]  ;;  %v362_v24 = vld [vmem:[%s2399_s0 + $0x40] sm:$0xf] }
  0x43   : > { %359 = vst [vmem:[%s324_s9 + $0x18] sm:$0xf] %v358_v22  ;;  %361 = vst [vmem:[%s324_s9 + $0x1c] sm:$0xf] %v360_v23  ;;  %v364_v25 = vld [vmem:[%s2399_s0 + $0x48] sm:$0xf] }
  0x44   : > { %363 = vst [vmem:[%s324_s9 + $0x20] sm:$0xf] %v362_v24  ;;  %v366_v26 = vld [vmem:[%s2399_s0 + $0x50] sm:$0xf]  ;;  %v368_v27 = vld [vmem:[%s2399_s0 + $0x58] sm:$0xf] }
  0x45   : > { %365 = vst [vmem:[%s324_s9 + $0x24] sm:$0xf] %v364_v25  ;;  %367 = vst [vmem:[%s324_s9 + $0x28] sm:$0xf] %v366_v26  ;;  %v370_v28 = vld [vmem:[%s2399_s0 + $0x60] sm:$0xf] }
  0x46   : > { %369 = vst [vmem:[%s324_s9 + $0x2c] sm:$0xf] %v368_v27  ;;  %v372_v29 = vld [vmem:[%s2399_s0 + $0x68] sm:$0xf]  ;;  %v374_v30 = vld [vmem:[%s2399_s0 + $0x70] sm:$0xf] }
  0x47   : > { %371 = vst [vmem:[%s324_s9 + $0x30] sm:$0xf] %v370_v28  ;;  %373 = vst [vmem:[%s324_s9 + $0x34] sm:$0xf] %v372_v29  ;;  %v376_v31 = vld [vmem:[%s2399_s0 + $0x78] sm:$0xf] }
  0x48   : > { %375 = vst [vmem:[%s324_s9 + $0x38] sm:$0xf] %v374_v30  ;;  %377 = vst [vmem:[%s324_s9 + $0x3c] sm:$0xf] %v376_v31 }
  0x49 PF: > { %p1731_p0 = scmp.ge.s32.totalorder %s2236_s27, 1  ;;  %p457_p1 = scmp.lt.s32.totalorder %s2236_s27, 5 }
  0x4b   : > { %p458_p2 = pnand %p1731_p0, %p457_p1 }
  0x4c   : > { %s464_s10 = sand.u32 (!%p458_p2), 1, %s2212_s21   ;;  %s2689_s7 = sand.u32 (!%p458_p2), 1, %s2204_s19  }
  0x4d   : > { %461 = sbr.rel (%p458_p2) target bundleno = 802 (0x322), region = 114  ;;  %s1732_s6 = sshll.u32 (!%p458_p2), %s464_s10, 6 }
  0x4e   : > { %s1734_s0 = sshll.u32 (!%p458_p2), %s2689_s7, 8  ;;  %p518_p3 = scmp.lt.s32.totalorder (!%p458_p2), %s2220_s23, 1 }
  0x4f   : > { %s1735_s17 = sshll.u32 (!%p458_p2), %s2224_s24, 4  ;;  %s1737_s28 = sshll.u32 (!%p458_p2), %s2220_s23, 4 }
  0x50   : > { %p522_p4 = scmp.lt.s32.totalorder (!%p458_p2), %s1735_s17, 31  ;;  %p528_p5 = scmp.lt.s32.totalorder (!%p458_p2), %s1737_s28, 31 }
  0x51   : > { %s2443_s16 = scalar_lea.vmem (!%p458_p2), [#allocation4], %s1732_s6  ;;  %s2445_s22 = scalar_lea.vmem (!%p458_p2), [#allocation5], %s1732_s6 }
  0x52   : > { %s2427_s29 = scalar_select %p518_p3, %s2220_s23, 1 }
  0x53   : > { %s2724_s17 = smov (!%p522_p4, %s1735_s17), 31  ;;  %s2726_s28 = smov (!%p528_p5, %s1737_s28), 31 }
  0x54   : > { %s520_s13 = scalar_lea.vmem %s2684_s2, %s2427_s29  ;;  %s1736_s9 = sshll.u32 %s2724_s17, 3 }
  0x55   : > { %s2436_s10 = scalar_lea.vmem %s2685_s3, %s1736_s9  ;;  %s1783_s7 = sshll.u32 %s2726_s28, 3 }
  0x56   : > { %s2441_s25 = scalar_lea.vmem %s2686_s4, %s1783_s7  ;;  %s2447_s8 = scalar_lea.vmem [#allocation6], %s1734_s0 }
  0x57   : > { %p1740_p6 = scmp.ne.s32.totalorder %s2220_s23, 0 }
  0x59   : > { %539 = sbr.rel (%p1740_p6) target bundleno = 119 (0x77), region = 126 }
  0x5e   : > { %vm572_vm0 = vcmask 7168   ;;  %v2238_v32 = vmov 0.0  }
  0x5f   : > { %540 = vst [vmem:[#allocation2 + $0xb0] sm:$0xff] %v2238_v32  ;;  %541 = vst [vmem:[#allocation2] sm:$0xff] %v2238_v32 }
  0x60   : > { %542 = vst [vmem:[#allocation2 + $0xd8] sm:$0xff] %v2238_v32  ;;  %543 = vst [vmem:[#allocation2 + $0x18] sm:$0xff] %v2238_v32 }
  0x61   : > { %544 = vst [vmem:[#allocation2 + $0x50] sm:$0xff] %v2238_v32  ;;  %545 = vst [vmem:[#allocation2 + $0x68] sm:$0xff] %v2238_v32 }
  0x62   : > { %546 = vst [vmem:[#allocation2 + $0x30] sm:$0xff] %v2238_v32  ;;  %547 = vst [vmem:[#allocation2 + $0x48] sm:$0xff] %v2238_v32 }
  0x63   : > { %548 = vst [vmem:[#allocation2 + $0x80] sm:$0xff] %v2238_v32  ;;  %549 = vst [vmem:[#allocation2 + $0x88] sm:$0xff] %v2238_v32 }
  0x64   : > { %550 = vst [vmem:[#allocation2 + $0xe8] sm:$0xff] %v2238_v32  ;;  %551 = vst [vmem:[#allocation2 + $0xb8] sm:$0xff] %v2238_v32 }
  0x65   : > { %552 = vst [vmem:[#allocation2 + $0x60] sm:$0xff] %v2238_v32  ;;  %553 = vst [vmem:[#allocation2 + $0xf0] sm:$0xff] %v2238_v32 }
  0x66   : > { %554 = vst [vmem:[#allocation2 + $0x8] sm:$0xff] %v2238_v32  ;;  %555 = vst [vmem:[#allocation2 + $0x78] sm:$0xff] %v2238_v32 }
  0x67   : > { %556 = vst [vmem:[#allocation2 + $0x38] sm:$0xff] %v2238_v32  ;;  %557 = vst [vmem:[#allocation2 + $0x58] sm:$0xff] %v2238_v32 }
  0x68   : > { %558 = vst [vmem:[#allocation2 + $0x40] sm:$0xff] %v2238_v32  ;;  %559 = vst [vmem:[#allocation2 + $0xc8] sm:$0xff] %v2238_v32 }
  0x69   : > { %560 = vst [vmem:[#allocation2 + $0xe0] sm:$0xff] %v2238_v32  ;;  %561 = vst [vmem:[#allocation2 + $0x90] sm:$0xff] %v2238_v32 }
  0x6a   : > { %562 = vst [vmem:[#allocation2 + $0x70] sm:$0xff] %v2238_v32  ;;  %563 = vst [vmem:[#allocation2 + $0xc0] sm:$0xff] %v2238_v32 }
  0x6b   : > { %564 = vst [vmem:[#allocation2 + $0xa8] sm:$0xff] %v2238_v32  ;;  %565 = vst [vmem:[#allocation2 + $0xd0] sm:$0xff] %v2238_v32 }
  0x6c   : > { %566 = vst [vmem:[#allocation2 + $0x10] sm:$0xff] %v2238_v32  ;;  %567 = vst [vmem:[#allocation2 + $0x28] sm:$0xff] %v2238_v32 }
  0x6d   : > { %568 = vst [vmem:[#allocation2 + $0xa0] sm:$0xff] %v2238_v32  ;;  %569 = vst [vmem:[#allocation2 + $0xf8] sm:$0xff] %v2238_v32 }
  0x6e   : > { %570 = vst [vmem:[#allocation2 + $0x20] sm:$0xff] %v2238_v32  ;;  %571 = vst [vmem:[#allocation2 + $0x98] sm:$0xff] %v2238_v32 }
  0x6f   : > { %573 = vst.msk [vmem:[#allocation3] sm:$0xff] %vm572_vm0, %v2238_v32  ;;  %574 = vst.msk [vmem:[#allocation3 + $0x8] sm:$0xff] %vm572_vm0, %v2238_v32 }
  0x70   : > { %575 = vst.msk [vmem:[#allocation3 + $0x10] sm:$0xff] %vm572_vm0, %v2238_v32  ;;  %576 = vst.msk [vmem:[#allocation3 + $0x18] sm:$0xff] %vm572_vm0, %v2238_v32 }
  0x71   : > { %577 = vst.msk [vmem:[#allocation3 + $0x20] sm:$0xff] %vm572_vm0, %v2238_v32  ;;  %578 = vst.msk [vmem:[#allocation3 + $0x28] sm:$0xff] %vm572_vm0, %v2238_v32 }
  0x72   : > { %579 = vst.msk [vmem:[#allocation3 + $0x30] sm:$0xff] %vm572_vm0, %v2238_v32  ;;  %580 = vst.msk [vmem:[#allocation3 + $0x38] sm:$0xff] %vm572_vm0, %v2238_v32 }
  0x73   : > { %581 = vst.msk [vmem:[#allocation3 + $0x40] sm:$0xff] %vm572_vm0, %v2238_v32  ;;  %582 = vst.msk [vmem:[#allocation3 + $0x48] sm:$0xff] %vm572_vm0, %v2238_v32 }
  0x74   : > { %583 = vst.msk [vmem:[#allocation3 + $0x50] sm:$0xff] %vm572_vm0, %v2238_v32  ;;  %584 = vst.msk [vmem:[#allocation3 + $0x58] sm:$0xff] %vm572_vm0, %v2238_v32 }
  0x75   : > { %585 = vst.msk [vmem:[#allocation3 + $0x60] sm:$0xff] %vm572_vm0, %v2238_v32  ;;  %586 = vst.msk [vmem:[#allocation3 + $0x68] sm:$0xff] %vm572_vm0, %v2238_v32 }
  0x76   : > { %587 = vst.msk [vmem:[#allocation3 + $0x70] sm:$0xff] %vm572_vm0, %v2238_v32  ;;  %588 = vst.msk [vmem:[#allocation3 + $0x78] sm:$0xff] %vm572_vm0, %v2238_v32 }
  0x77 PF: > { %v708_v33 = vld [vmem:[%s2436_s10] sm:$0xff]  ;;  %v2239_v34 = vmov 0   ;;  %v709_v36 = vld [vmem:[%s2436_s10 + $0x8] sm:$0xff]  ;;  %v710_v38 = vld [vmem:[%s2436_s10 + $0x10] sm:$0xff]  ;;  %vm1028_vm1 = vcmask 7168   ;;  %p1774_p8 = scmp.ne.s32.totalorder %s2220_s23, 1 }
  0x78   : > { %1972 = vset.pattern.permute.xlu0 %v2239_v34  ;;  %1973 = vset.pattern.permute.xlu1 %v2239_v34  ;;  %v716_v35 = vld [vmem:[%s2436_s10 + $0x40] sm:$0xff]  ;;  %v717_v37 = vld [vmem:[%s2436_s10 + $0x48] sm:$0xff]  ;;  %v711_v39 = vld [vmem:[%s2436_s10 + $0x18] sm:$0xff] }
  0x79   : > { %726 = vperm.xlu0 %1972, %v708_v33   ;;  %766 = vperm.xlu1 %1973, %v716_v35   ;;  %v718_v40 = vld [vmem:[%s2436_s10 + $0x50] sm:$0xff]  ;;  %v719_v41 = vld [vmem:[%s2436_s10 + $0x58] sm:$0xff]  ;;  %v712_v42 = vld [vmem:[%s2436_s10 + $0x20] sm:$0xff] }
  0x7a   : > { %1213 = vmatprep.mubr.bf16.mxu0 %v2239_v34  ;;  %1253 = vmatprep.mubr.bf16.mxu1 %v2239_v34  ;;  %v713_v43 = vld [vmem:[%s2436_s10 + $0x28] sm:$0xff]  ;;  %v720_v44 = vld [vmem:[%s2436_s10 + $0x60] sm:$0xff]  ;;  %v714_v46 = vld [vmem:[%s2436_s10 + $0x30] sm:$0xff] }
  0x7b   : > { %v721_v45 = vld [vmem:[%s2436_s10 + $0x68] sm:$0xff]  ;;  %v715_v47 = vld [vmem:[%s2436_s10 + $0x38] sm:$0xff]  ;;  %v1819_v48 = vld [vmem:[%s2445_s22] sm:$0xff]  }
  0x7c   : > { %v722_v49 = vld [vmem:[%s2436_s10 + $0x70] sm:$0xff]  ;;  %v1820_v50 = vunpack.c.l.bf16 %v1819_v48  ;;  %v723_v51 = vld [vmem:[%s2436_s10 + $0x78] sm:$0xff]  ;;  %v1821_v52 = vunpack.c.h.bf16 %v1819_v48  ;;  %v1857_v53 = vld [vmem:[%s2445_s22 + $0x8] sm:$0xff]  }
  0x7d   : > { %731 = vperm.xlu0 %1972, %v709_v36   ;;  %771 = vperm.xlu1 %1973, %v717_v37   ;;  %v1824_v54 = vunpack.c.l.bf16 %v1857_v53  ;;  %v1825_v55 = vunpack.c.h.bf16 %v1857_v53  ;;  %v1858_v56 = vld [vmem:[%s2445_s22 + $0x10] sm:$0xff]   ;;  %v1859_v59 = vld [vmem:[%s2445_s22 + $0x18] sm:$0xff]   ;;  %v1860_v0 = vld [vmem:[%s2445_s22 + $0x20] sm:$0xff]  }
  0x7e   : > { %v1828_v57 = vunpack.c.l.bf16 %v1858_v56  ;;  %v1829_v58 = vunpack.c.h.bf16 %v1858_v56  ;;  %v1832_v60 = vunpack.c.l.bf16 %v1859_v59  ;;  %v1974_v61 = vld [vmem:[%s2441_s25 + $0x74] ss:$8 sps:$4 sm:$0xff]   ;;  %v1976_v62 = vld [vmem:[%s2441_s25 + $0x70] ss:$8 sps:$4 sm:$0xff]   ;;  %v1833_v63 = vunpack.c.h.bf16 %v1859_v59  ;;  %v1977_v1 = vld [vmem:[%s2441_s25 + $0x64] ss:$8 sps:$4 sm:$0xff]  }
  0x7f   : > { %1181 = vmatprep.subr.bf16.mxu0 %v1974_v61  ;;  %1864 = vmatprep.subr.bf16.mxu1 %v1974_v61  ;;  %v1979_v2 = vld [vmem:[%s2441_s25 + $0x60] ss:$8 sps:$4 sm:$0xff]   ;;  %v1836_v3 = vunpack.c.l.bf16 %v1860_v0  ;;  %v1980_v4 = vld [vmem:[%s2441_s25 + $0x54] ss:$8 sps:$4 sm:$0xff]   ;;  %v1837_v5 = vunpack.c.h.bf16 %v1860_v0  ;;  %v1982_v6 = vld [vmem:[%s2441_s25 + $0x50] ss:$8 sps:$4 sm:$0xff]  }
  0x80   : > { %1182 = vmatpush1.bf16.msra.mxu0 %v1976_v62  ;;  %1872 = vmatpush1.bf16.msra.mxu1 %v1976_v62  ;;  %v1861_v7 = vld [vmem:[%s2445_s22 + $0x28] sm:$0xff]   ;;  %v1986_v11 = vld [vmem:[%s2441_s25 + $0x34] ss:$8 sps:$4 sm:$0xff]   ;;  %v1988_v13 = vld [vmem:[%s2441_s25 + $0x30] ss:$8 sps:$4 sm:$0xff]  }
  0x81   : > { %736 = vperm.xlu0 %1972, %v710_v38   ;;  %741 = vperm.xlu1 %1973, %v711_v39   ;;  %v1983_v8 = vld [vmem:[%s2441_s25 + $0x44] ss:$8 sps:$4 sm:$0xff]   ;;  %v1840_v9 = vunpack.c.l.bf16 %v1861_v7  ;;  %v1985_v10 = vld [vmem:[%s2441_s25 + $0x40] ss:$8 sps:$4 sm:$0xff]   ;;  %v1841_v12 = vunpack.c.h.bf16 %v1861_v7  ;;  %v1862_v14 = vld [vmem:[%s2445_s22 + $0x30] sm:$0xff]  }
  0x82   : > { %1183 = vmatprep.subr.bf16.mxu0 %v1977_v1  ;;  %1865 = vmatprep.subr.bf16.mxu1 %v1977_v1  ;;  %v1989_v15 = vld [vmem:[%s2441_s25 + $0x24] ss:$8 sps:$4 sm:$0xff]   ;;  %v1844_v16 = vunpack.c.l.bf16 %v1862_v14  ;;  %v1991_v17 = vld [vmem:[%s2441_s25 + $0x20] ss:$8 sps:$4 sm:$0xff]   ;;  %v1992_v18 = vld [vmem:[%s2441_s25 + $0x14] ss:$8 sps:$4 sm:$0xff]   ;;  %v1845_v19 = vunpack.c.h.bf16 %v1862_v14 }
  0x83   : > { %v1994_v20 = vld [vmem:[%s2441_s25 + $0x10] ss:$8 sps:$4 sm:$0xff]   ;;  %v1995_v22 = vld [vmem:[%s2441_s25 + $0x4] ss:$8 sps:$4 sm:$0xff]   ;;  %v1997_v24 = vld [vmem:[%s2441_s25] ss:$8 sps:$4 sm:$0xff]  }
  0x84   : > { %1184 = vmatpush1.bf16.msra.mxu0 %v1979_v2  ;;  %1873 = vmatpush1.bf16.msra.mxu1 %v1979_v2  ;;  %v1863_v21 = vld [vmem:[%s2445_s22 + $0x38] sm:$0xff]   ;;  %v1787_v33 = vld [vmem:[%s2443_s16] sm:$0xff]  }
  0x85   : > { %776 = vperm.xlu0 %1972, %v718_v40   ;;  %781 = vperm.xlu1 %1973, %v719_v41   ;;  %v1848_v23 = vunpack.c.l.bf16 %v1863_v21  ;;  %v1849_v25 = vunpack.c.h.bf16 %v1863_v21  ;;  %v1788_v35 = vunpack.c.l.bf16 %v1787_v33  ;;  %v2524_v37 = vld [vmem:[%s520_s13] ss:$0 sm:$0xff]  ;;  %v1789_v40 = vunpack.c.h.bf16 %v1787_v33 }
  0x86   : > { %1185 = vmatprep.subr.bf16.mxu0 %v1980_v4  ;;  %1866 = vmatprep.subr.bf16.mxu1 %v1980_v4 }
  0x87   : > { %v692_v39 = vmul.f32 %v1788_v35, %v2524_v37 }
  0x88   : > { %1186 = vmatpush1.bf16.msra.mxu0 %v1982_v6  ;;  %1874 = vmatpush1.bf16.msra.mxu1 %v1982_v6  ;;  %v1852_v6 = vld [vmem:[%s2443_s16 + $0x18] sm:$0xff]  }
  0x89   : > { %746 = vperm.xlu1 %1973, %v712_v42   ;;  %1187 = vmatprep.subr.bf16.mxu0 %v1983_v8  ;;  %v1850_v42 = vld [vmem:[%s2443_s16 + $0x8] sm:$0xff]  }
  0x8a   : > { %1867 = vmatprep.subr.bf16.mxu1 %v1983_v8  ;;  %v1793_v53 = vunpack.c.h.bf16 %v1850_v42 }
  0x8c   : > { %1188 = vmatpush1.bf16.msra.mxu0 %v1985_v10  ;;  %1875 = vmatpush1.bf16.msra.mxu1 %v1985_v10 }
  0x8d   : > { %751 = vperm.xlu1 %1973, %v713_v43   ;;  %1189 = vmatprep.subr.bf16.mxu0 %v1986_v11 }
  0x8e   : > { %1868 = vmatprep.subr.bf16.mxu1 %v1986_v11  ;;  %v1800_v11 = vunpack.c.l.bf16 %v1852_v6 }
  0x90   : > { %1190 = vmatpush1.bf16.msra.mxu0 %v1988_v13  ;;  %1876 = vmatpush1.bf16.msra.mxu1 %v1988_v13 }
  0x91   : > { %786 = vperm.xlu1 %1973, %v720_v44   ;;  %1191 = vmatprep.subr.bf16.mxu0 %v1989_v15 }
  0x92   : > { %1869 = vmatprep.subr.bf16.mxu1 %v1989_v15 }
  0x94   : > { %1192 = vmatpush1.bf16.msra.mxu0 %v1991_v17  ;;  %1877 = vmatpush1.bf16.msra.mxu1 %v1991_v17 }
  0x95   : > { %791 = vperm.xlu1 %1973, %v721_v45   ;;  %1193 = vmatprep.subr.bf16.mxu0 %v1992_v18  ;;  %v693_v45 = vmul.f32 %v1789_v40, %v2524_v37 }
  0x96   : > { %1870 = vmatprep.subr.bf16.mxu1 %v1992_v18 }
  0x98   : > { %1194 = vmatpush1.bf16.msra.mxu0 %v1994_v20  ;;  %1878 = vmatpush1.bf16.msra.mxu1 %v1994_v20  ;;  %v1801_v20 = vunpack.c.h.bf16 %v1852_v6 }
  0x99   : > { %756 = vperm.xlu1 %1973, %v714_v46   ;;  %1195 = vmatprep.subr.bf16.mxu0 %v1995_v22  ;;  %v1792_v46 = vunpack.c.l.bf16 %v1850_v42 }
  0x9a   : > { %1871 = vmatprep.subr.bf16.mxu1 %v1995_v22 }
  0x9c   : > { %1196 = vmatpush1.bf16.msra.mxu0 %v1997_v24  ;;  %1879 = vmatpush1.bf16.msra.mxu1 %v1997_v24 }
  0x9d   : > { %761 = vperm.xlu1 %1973, %v715_v47  }
  0xa1   : > { %796 = vperm.xlu1 %1973, %v722_v49  }
  0xa3   : > { %653 = vxpose.xlu0.b32.start [1/16] %v1820_v50, 128 }
  0xa5   : > { %801 = vperm.xlu1 %1973, %v723_v51  }
  0xa7   : > { %654 = vxpose.xlu0.b32.cont [2/16] %v1821_v52, 128  ;;  %v694_v52 = vmul.f32 %v1792_v46, %v2524_v37 }
  0xab   : > { %655 = vxpose.xlu0.b32.cont [3/16] %v1824_v54, 128 }
  0xaf   : > { %656 = vxpose.xlu0.b32.cont [4/16] %v1825_v55, 128  ;;  %v1851_v55 = vld [vmem:[%s2443_s16 + $0x10] sm:$0xff]  }
  0xb0   : > { %v1796_v61 = vunpack.c.l.bf16 %v1851_v55 }
  0xb2   : > { %v696_v2 = vmul.f32 %v1796_v61, %v2524_v37 }
  0xb3   : > { %657 = vxpose.xlu0.b32.cont [5/16] %v1828_v57, 128 }
  0xb7   : > { %658 = vxpose.xlu0.b32.cont [6/16] %v1829_v58, 128 }
  0xbb   : > { %659 = vxpose.xlu0.b32.cont [7/16] %v1832_v60, 128  ;;  %v695_v60 = vmul.f32 %v1793_v53, %v2524_v37 }
  0xbf   : > { %660 = vxpose.xlu0.b32.cont [8/16] %v1833_v63, 128 }
  0xc3   : > { %661 = vxpose.xlu0.b32.cont [9/16] %v1836_v3, 128  ;;  %v1797_v3 = vunpack.c.h.bf16 %v1851_v55 }
  0xc5   : > { %v697_v10 = vmul.f32 %v1797_v3, %v2524_v37 }
  0xc7   : > { %662 = vxpose.xlu0.b32.cont [10/16] %v1837_v5, 128 }
  0xcb   : > { %663 = vxpose.xlu0.b32.cont [11/16] %v1840_v9, 128 }
  0xcf   : > { %664 = vxpose.xlu0.b32.cont [12/16] %v1841_v12, 128 }
  0xd3   : > { %665 = vxpose.xlu0.b32.cont [13/16] %v1844_v16, 128 }
  0xd7   : > { %666 = vxpose.xlu0.b32.cont [14/16] %v1845_v19, 128  ;;  %v698_v19 = vmul.f32 %v1800_v11, %v2524_v37 }
  0xdb   : > { %667 = vxpose.xlu0.b32.cont [15/16] %v1848_v23, 128  ;;  %v1853_v23 = vld [vmem:[%s2443_s16 + $0x20] sm:$0xff]  }
  0xdf   : > { %668 = vxpose.xlu0.b32.end [16/16] %v1849_v25, 128 }
  0xf4   : > { %v2510_v26 = vpop.permute.xlu1 %766  ;;  %v727_v27 = vpop.permute.xlu0 %726 }
  0xf8   : > { %v2512_v28 = vpop.permute.xlu1 %771  ;;  %v732_v29 = vpop.permute.xlu0 %731 }
  0xfc   : > { %v742_v30 = vpop.permute.xlu1 %741  ;;  %v737_v31 = vpop.permute.xlu0 %736 }
 0x100   : > { %v2514_v32 = vpop.permute.xlu1 %781  ;;  %v2517_v36 = vpop.permute.xlu0 %776 }
 0x104   : > { %v747_v38 = vpop.permute.xlu1 %746 }
 0x108   : > { %v752_v47 = vpop.permute.xlu1 %751 }
 0x10c   : > { %v2531_v58 = vpop.permute.xlu1 %786 }
 0x110   : > { %v2535_v4 = vpop.permute.xlu1 %791 }
 0x114   : > { %v757_v17 = vpop.permute.xlu1 %756 }
 0x118   : > { %v762_v35 = vpop.permute.xlu1 %761 }
 0x11f   : > { %v669_v41 = vpop.trf.xlu0 }
 0x120   : > { %v804_v43 = vmul.f32 %v727_v27, %v669_v41 }
 0x122   : > { %v820_v44 = vadd.f32 %v804_v43, %v692_v39 }
 0x123   : > { %v670_v48 = vpop.trf.xlu0 }
 0x124   : > { %v1742_v49 = vmul.f32 -1.442695, %v820_v44  ;;  %v805_v50 = vmul.f32 %v732_v29, %v670_v48  ;;  %v1805_v44 = vunpack.c.h.bf16 %v1853_v23 }
 0x126   : > { %1998 = vpow2.f32 %v1742_v49  ;;  %v821_v51 = vadd.f32 %v805_v50, %v693_v45 }
 0x127   : > { %v671_v54 = vpop.trf.xlu0 }
 0x128   : > { %v1743_v56 = vmul.f32 -1.442695, %v821_v51  ;;  %v806_v57 = vmul.f32 %v737_v31, %v671_v54  ;;  %v1804_v31 = vunpack.c.l.bf16 %v1853_v23 }
 0x12a   : > { %2000 = vpow2.f32 %v1743_v56  ;;  %v822_v59 = vadd.f32 %v806_v57, %v694_v52  ;;  %v700_v43 = vmul.f32 %v1804_v31, %v2524_v37  ;;  %v701_v52 = vmul.f32 %v1805_v44, %v2524_v37 }
 0x12b   : > { %v672_v62 = vpop.trf.xlu0 }
 0x12c   : > { %v1744_v63 = vmul.f32 -1.442695, %v822_v59  ;;  %v807_v0 = vmul.f32 %v742_v30, %v672_v62  ;;  %v699_v30 = vmul.f32 %v1801_v20, %v2524_v37  ;;  %v1856_v20 = vld [vmem:[%s2443_s16 + $0x38] sm:$0xff]  }
 0x12e   : > { %2002 = vpow2.f32 %v1744_v63  ;;  %v823_v1 = vadd.f32 %v807_v0, %v695_v60 }
 0x12f   : > { %v673_v5 = vpop.trf.xlu0 }
 0x130   : > { %v1745_v7 = vmul.f32 -1.442695, %v823_v1  ;;  %v808_v8 = vmul.f32 %v747_v38, %v673_v5 }
 0x132   : > { %2004 = vpow2.f32 %v1745_v7  ;;  %v824_v9 = vadd.f32 %v808_v8, %v696_v2  ;;  %v1855_v2 = vld [vmem:[%s2443_s16 + $0x30] sm:$0xff]  }
 0x133   : > { %v1999_v12 = vpop.eup %1998  ;;  %v674_v13 = vpop.trf.xlu0 }
 0x134   : > { %v884_v14 = vadd.f32 1.0, %v1999_v12  ;;  %v1746_v15 = vmul.f32 -1.442695, %v824_v9  ;;  %v809_v16 = vmul.f32 %v752_v47, %v674_v13  ;;  %v1854_v47 = vld [vmem:[%s2443_s16 + $0x28] sm:$0xff]  }
 0x135   : > { %v1808_v53 = vunpack.c.l.bf16 %v1854_v47 }
 0x136   : > { %2006 = vrcp.f32 %v884_v14  ;;  %v825_v18 = vadd.f32 %v809_v16, %v697_v10  ;;  %v1812_v10 = vunpack.c.l.bf16 %v1855_v2 }
 0x137   : > { %v2001_v21 = vpop.eup %2000  ;;  %2008 = vpow2.f32 %v1746_v15  ;;  %v675_v22 = vpop.trf.xlu0  ;;  %v702_v63 = vmul.f32 %v1808_v53, %v2524_v37 }
 0x138   : > { %v885_v24 = vadd.f32 1.0, %v2001_v21  ;;  %v1747_v25 = vmul.f32 -1.442695, %v825_v18  ;;  %v810_v27 = vmul.f32 %v757_v17, %v675_v22 }
 0x13a   : > { %2010 = vrcp.f32 %v885_v24  ;;  %v826_v29 = vadd.f32 %v810_v27, %v698_v19  ;;  %v1813_v19 = vunpack.c.h.bf16 %v1855_v2 }
 0x13b   : > { %v2003_v33 = vpop.eup %2002  ;;  %2012 = vpow2.f32 %v1747_v25  ;;  %v676_v38 = vpop.trf.xlu0 }
 0x13c   : > { %v886_v39 = vadd.f32 1.0, %v2003_v33  ;;  %v1748_v40 = vmul.f32 -1.442695, %v826_v29  ;;  %v811_v41 = vmul.f32 %v762_v35, %v676_v38  ;;  %v705_v31 = vmul.f32 %v1813_v19, %v2524_v37 }
 0x13e   : > { %2014 = vrcp.f32 %v886_v39  ;;  %v827_v42 = vadd.f32 %v811_v41, %v699_v30  ;;  %v1816_v30 = vunpack.c.l.bf16 %v1856_v20 }
 0x13f   : > { %v2005_v45 = vpop.eup %2004  ;;  %2016 = vpow2.f32 %v1748_v40  ;;  %v677_v46 = vpop.trf.xlu0 }
 0x140   : > { %v887_v48 = vadd.f32 1.0, %v2005_v45  ;;  %v1749_v49 = vmul.f32 -1.442695, %v827_v42  ;;  %v812_v50 = vmul.f32 %v2510_v26, %v677_v46  ;;  %v1809_v26 = vunpack.c.h.bf16 %v1854_v47  ;;  %v797_v42 = vpop.permute.xlu1 %796 }
 0x141   : > { %v1817_v46 = vunpack.c.h.bf16 %v1856_v20 }
 0x142   : > { %2018 = vrcp.f32 %v887_v48  ;;  %v828_v51 = vadd.f32 %v812_v50, %v700_v43 }
 0x143   : > { %v2007_v54 = vpop.eup %2006  ;;  %2020 = vpow2.f32 %v1749_v49  ;;  %v678_v55 = vpop.trf.xlu0 }
 0x144   : > { %v2009_v56 = vpop.eup %2008  ;;  %v932_v57 = vmul.f32 1.442695, %v2007_v54  ;;  %v1750_v59 = vmul.f32 -1.442695, %v828_v51  ;;  %v813_v60 = vmul.f32 %v2512_v28, %v678_v55  ;;  %v703_v28 = vmul.f32 %v1809_v26, %v2524_v37 }
 0x145   : > { %v888_v61 = vadd.f32 1.0, %v2009_v56  ;;  %v707_v56 = vmul.f32 %v1817_v46, %v2524_v37 }
 0x146   : > { %2022 = vpow2.f32 %v932_v57  ;;  %v829_v62 = vadd.f32 %v813_v60, %v701_v52 }
 0x147   : > { %v2011_v0 = vpop.eup %2010  ;;  %2024 = vrcp.f32 %v888_v61  ;;  %v679_v1 = vpop.trf.xlu0 }
 0x148   : > { %v2013_v3 = vpop.eup %2012  ;;  %v934_v5 = vmul.f32 1.442695, %v2011_v0  ;;  %2026 = vpow2.f32 %v1750_v59  ;;  %v1751_v6 = vmul.f32 -1.442695, %v829_v62  ;;  %v814_v7 = vmul.f32 %v2517_v36, %v679_v1  ;;  %v802_v59 = vpop.permute.xlu1 %801 }
 0x149   : > { %v889_v8 = vadd.f32 1.0, %v2013_v3  ;;  %v704_v36 = vmul.f32 %v1812_v10, %v2524_v37 }
 0x14a   : > { %2028 = vpow2.f32 %v934_v5  ;;  %v830_v9 = vadd.f32 %v814_v7, %v702_v63 }
 0x14b   : > { %v2015_v11 = vpop.eup %2014  ;;  %2030 = vrcp.f32 %v889_v8  ;;  %v680_v12 = vpop.trf.xlu0 }
 0x14c   : > { %v2017_v13 = vpop.eup %2016  ;;  %v936_v14 = vmul.f32 1.442695, %v2015_v11  ;;  %2032 = vpow2.f32 %v1751_v6  ;;  %v1752_v15 = vmul.f32 -1.442695, %v830_v9  ;;  %v815_v16 = vmul.f32 %v2514_v32, %v680_v12 }
 0x14d   : > { %v890_v17 = vadd.f32 1.0, %v2017_v13 }
 0x14e   : > { %2034 = vpow2.f32 %v936_v14  ;;  %v831_v18 = vadd.f32 %v815_v16, %v703_v28 }
 0x14f   : > { %v2019_v21 = vpop.eup %2018  ;;  %2036 = vrcp.f32 %v890_v17  ;;  %v681_v22 = vpop.trf.xlu0 }
 0x150   : > { %v2021_v23 = vpop.eup %2020  ;;  %v938_v24 = vmul.f32 1.442695, %v2019_v21  ;;  %2038 = vpow2.f32 %v1752_v15  ;;  %v1753_v25 = vmul.f32 -1.442695, %v831_v18  ;;  %v816_v27 = vmul.f32 %v2531_v58, %v681_v22 }
 0x151   : > { %v891_v29 = vadd.f32 1.0, %v2021_v23  ;;  %v706_v58 = vmul.f32 %v1816_v30, %v2524_v37 }
 0x152   : > { %2040 = vpow2.f32 %v938_v24  ;;  %v832_v32 = vadd.f32 %v816_v27, %v704_v36 }
 0x153   : > { %v2023_v33 = vpop.eup %2022  ;;  %2042 = vrcp.f32 %v891_v29  ;;  %v682_v35 = vpop.trf.xlu0 }
 0x154   : > { %v2025_v38 = vpop.eup %2024  ;;  %2044 = vpow2.f32 %v1753_v25  ;;  %v1754_v39 = vmul.f32 -1.442695, %v832_v32  ;;  %v817_v40 = vmul.f32 %v2535_v4, %v682_v35  ;;  %980 = vadd.xlane.f32.xlu1 %v2023_v33 }
 0x155   : > { %v2027_v41 = vpop.eup %2026  ;;  %v940_v43 = vmul.f32 1.442695, %v2025_v38 }
 0x156   : > { %v892_v44 = vadd.f32 1.0, %v2027_v41  ;;  %2046 = vpow2.f32 %v1754_v39  ;;  %v833_v45 = vadd.f32 %v817_v40, %v705_v31 }
 0x157   : > { %v2029_v47 = vpop.eup %2028  ;;  %2048 = vpow2.f32 %v940_v43  ;;  %v683_v48 = vpop.trf.xlu0 }
 0x158   : > { %v2031_v49 = vpop.eup %2030  ;;  %2050 = vrcp.f32 %v892_v44  ;;  %v1755_v50 = vmul.f32 -1.442695, %v833_v45  ;;  %v818_v51 = vmul.f32 %v797_v42, %v683_v48  ;;  %982 = vadd.xlane.f32.xlu1 %v2029_v47  ;;  %v1077_v52 = vpack.c.bf16 %v2029_v47, %v2023_v33 }
 0x159   : > { %v2033_v4 = vpop.eup %2032  ;;  %v942_v53 = vmul.f32 1.442695, %v2031_v49 }
 0x15a   : > { %v893_v54 = vadd.f32 1.0, %v2033_v4  ;;  %2052 = vpow2.f32 %v1755_v50  ;;  %v834_v55 = vadd.f32 %v818_v51, %v706_v58  ;;  %1214 = vmatmul.mubr.bf16.vlgmr.msra.gmra.mxu0 %v1077_v52 }
 0x15b   : > { %v2035_v57 = vpop.eup %2034  ;;  %2054 = vpow2.f32 %v942_v53  ;;  %v684_v60 = vpop.trf.xlu0  ;;  %1223 = vmatprep.mubr.bf16.mxu0 %v2239_v34  ;;  %v964_v53 = vld [vmem:[#allocation3] sm:$0xff] }
 0x15c   : > { %v2037_v61 = vpop.eup %2036  ;;  %2056 = vrcp.f32 %v893_v54  ;;  %v1756_v62 = vmul.f32 -1.442695, %v834_v55  ;;  %v819_v63 = vmul.f32 %v802_v59, %v684_v60  ;;  %984 = vadd.xlane.f32.xlu1 %v2035_v57  ;;  %v966_v60 = vld [vmem:[#allocation3 + $0x10] sm:$0xff] }
 0x15d   : > { %v2039_v26 = vpop.eup %2038  ;;  %v944_v0 = vmul.f32 1.442695, %v2037_v61 }
 0x15e   : > { %v894_v1 = vadd.f32 1.0, %v2039_v26  ;;  %2058 = vpow2.f32 %v1756_v62  ;;  %v835_v2 = vadd.f32 %v819_v63, %v707_v56  ;;  %v965_v56 = vld [vmem:[#allocation3 + $0x8] sm:$0xff] }
 0x15f   : > { %v2041_v3 = vpop.eup %2040  ;;  %2060 = vpow2.f32 %v944_v0  ;;  %v968_v0 = vld [vmem:[#allocation3 + $0x20] sm:$0xff] }
 0x160   : > { %v2043_v5 = vpop.eup %2042  ;;  %2062 = vrcp.f32 %v894_v1  ;;  %v1757_v37 = vmul.f32 -1.442695, %v835_v2  ;;  %986 = vadd.xlane.f32.xlu1 %v2041_v3  ;;  %v1078_v6 = vpack.c.bf16 %v2041_v3, %v2035_v57  ;;  %v969_v3 = vld [vmem:[#allocation3 + $0x28] sm:$0xff] }
 0x161   : > { %v2045_v7 = vpop.eup %2044  ;;  %v946_v8 = vmul.f32 1.442695, %v2043_v5 }
 0x162   : > { %v895_v9 = vadd.f32 1.0, %v2045_v7  ;;  %2064 = vpow2.f32 %v1757_v37  ;;  %1224 = vmatmul.mubr.bf16.gmra.mxu0 %v1078_v6  ;;  %v970_v6 = vld [vmem:[#allocation3 + $0x30] sm:$0xff] }
 0x163   : > { %v2047_v28 = vpop.eup %2046  ;;  %2066 = vpow2.f32 %v946_v8  ;;  %1233 = vmatprep.mubr.bf16.mxu0 %v2239_v34 }
 0x164   : > { %v2049_v10 = vpop.eup %2048  ;;  %2068 = vrcp.f32 %v895_v9  ;;  %v896_v11 = vadd.f32 1.0, %v2047_v28  ;;  %v971_v9 = vld [vmem:[#allocation3 + $0x38] sm:$0xff] }
 0x165   : > { %v2051_v12 = vpop.eup %2050  ;;  %988 = vadd.xlane.f32.xlu1 %v2049_v10 }
 0x166   : > { %v948_v13 = vmul.f32 1.442695, %v2051_v12  ;;  %2070 = vrcp.f32 %v896_v11  ;;  %v972_v11 = vld [vmem:[#allocation3 + $0x40] sm:$0xff] }
 0x167   : > { %v2053_v14 = vpop.eup %2052 }
 0x168   : > { %v2055_v15 = vpop.eup %2054  ;;  %2072 = vpow2.f32 %v948_v13  ;;  %v897_v16 = vadd.f32 1.0, %v2053_v14  ;;  %v973_v14 = vld [vmem:[#allocation3 + $0x48] sm:$0xff] }
 0x169   : > { %v2057_v17 = vpop.eup %2056  ;;  %990 = vadd.xlane.f32.xlu1 %v2055_v15  ;;  %v1079_v18 = vpack.c.bf16 %v2055_v15, %v2049_v10 }
 0x16a   : > { %v950_v36 = vmul.f32 1.442695, %v2057_v17  ;;  %2074 = vrcp.f32 %v897_v16  ;;  %v974_v17 = vld [vmem:[#allocation3 + $0x50] sm:$0xff] }
 0x16b   : > { %v2059_v19 = vpop.eup %2058  ;;  %1234 = vmatmul.mubr.bf16.gmra.mxu0 %v1079_v18 }
 0x16c   : > { %v2061_v20 = vpop.eup %2060  ;;  %2076 = vpow2.f32 %v950_v36  ;;  %v898_v21 = vadd.f32 1.0, %v2059_v19  ;;  %1243 = vmatprep.mubr.bf16.mxu0 %v2239_v34  ;;  %v975_v19 = vld [vmem:[#allocation3 + $0x58] sm:$0xff] }
 0x16d   : > { %v2063_v22 = vpop.eup %2062  ;;  %992 = vadd.xlane.f32.xlu1 %v2061_v20 }
 0x16e   : > { %v952_v23 = vmul.f32 1.442695, %v2063_v22  ;;  %2078 = vrcp.f32 %v898_v21  ;;  %v976_v22 = vld [vmem:[#allocation3 + $0x60] sm:$0xff] }
 0x16f   : > { %v2065_v24 = vpop.eup %2064 }
 0x170   : > { %v2067_v25 = vpop.eup %2066  ;;  %2080 = vpow2.f32 %v952_v23  ;;  %v899_v27 = vadd.f32 1.0, %v2065_v24 }
 0x171   : > { %v2069_v29 = vpop.eup %2068  ;;  %994 = vadd.xlane.f32.xlu0 %v2067_v25  ;;  %v1080_v30 = vpack.c.bf16 %v2067_v25, %v2061_v20  ;;  %v977_v25 = vld [vmem:[#allocation3 + $0x68] sm:$0xff] }
 0x172   : > { %v954_v32 = vmul.f32 1.442695, %v2069_v29  ;;  %2082 = vrcp.f32 %v899_v27 }
 0x173   : > { %v2071_v31 = vpop.eup %2070  ;;  %1244 = vmatmul.mubr.bf16.gmra.mxu0 %v1080_v30  ;;  %v978_v30 = vld [vmem:[#allocation3 + $0x70] sm:$0xff] }
 0x174   : > { %2084 = vpow2.f32 %v954_v32  ;;  %v956_v33 = vmul.f32 1.442695, %v2071_v31 }
 0x175   : > { %v2073_v35 = vpop.eup %2072 }
 0x176   : > { %2086 = vpow2.f32 %v956_v33  ;;  %996 = vadd.xlane.f32.xlu1 %v2073_v35  ;;  %v1045_v33 = vld [vmem:[#allocation2 + $0xb0] sm:$0xff] }
 0x177   : > { %v2075_v38 = vpop.eup %2074 }
 0x178   : > { %v958_v39 = vmul.f32 1.442695, %v2075_v38 }
 0x179   : > { %v2077_v40 = vpop.eup %2076 }
 0x17a   : > { %2088 = vpow2.f32 %v958_v39  ;;  %998 = vadd.xlane.f32.xlu1 %v2077_v40  ;;  %v1081_v41 = vpack.c.bf16 %v2077_v40, %v2073_v35  ;;  %v979_v35 = vld [vmem:[#allocation3 + $0x78] sm:$0xff]  ;;  %v1046_v39 = vld [vmem:[#allocation2] sm:$0xff] }
 0x17b   : > { %v2079_v42 = vpop.eup %2078 }
 0x17c   : > { %v960_v43 = vmul.f32 1.442695, %v2079_v42  ;;  %1254 = vmatmul.mubr.bf16.vlgmr.msra.gmra.mxu1 %v1081_v41 }
 0x17d   : > { %v2081_v58 = vpop.eup %2080  ;;  %1263 = vmatprep.mubr.bf16.mxu1 %v2239_v34 }
 0x17e   : > { %2090 = vpow2.f32 %v960_v43  ;;  %1000 = vadd.xlane.f32.xlu1 %v2081_v58 }
 0x17f   : > { %v2083_v44 = vpop.eup %2082 }
 0x180   : > { %v962_v45 = vmul.f32 1.442695, %v2083_v44 }
 0x181   : > { %v2085_v46 = vpop.eup %2084 }
 0x182   : > { %2092 = vpow2.f32 %v962_v45  ;;  %1002 = vadd.xlane.f32.xlu1 %v2085_v46  ;;  %v1082_v47 = vpack.c.bf16 %v2085_v46, %v2081_v58  ;;  %v1047_v58 = vld [vmem:[#allocation2 + $0xd8] sm:$0xff] }
 0x183   : > { %v2087_v48 = vpop.eup %2086  ;;  %v1048_v46 = vld [vmem:[#allocation2 + $0x18] sm:$0xff] }
 0x184   : > { %1264 = vmatmul.mubr.bf16.gmra.mxu1 %v1082_v47 }
 0x185   : > { %1273 = vmatprep.mubr.bf16.mxu1 %v2239_v34 }
 0x186   : > { %1004 = vadd.xlane.f32.xlu1 %v2087_v48 }
 0x187   : > { %v2089_v49 = vpop.eup %2088 }
 0x188   : > { %v1083_v50 = vpack.c.bf16 %v2089_v49, %v2087_v48 }
 0x18a   : > { %1006 = vadd.xlane.f32.xlu1 %v2089_v49  ;;  %v1049_v49 = vld [vmem:[#allocation2 + $0x50] sm:$0xff] }
 0x18b   : > { %v2091_v51 = vpop.eup %2090 }
 0x18c   : > { %1274 = vmatmul.mubr.bf16.gmra.mxu1 %v1083_v50 }
 0x18d   : > { %1283 = vmatprep.mubr.bf16.mxu1 %v2239_v34  ;;  %v967_v34 = vld [vmem:[#allocation3 + $0x18] sm:$0xff] }
 0x18e   : > { %1008 = vadd.xlane.f32.xlu1 %v2091_v51 }
 0x18f   : > { %v2093_v52 = vpop.eup %2092 }
 0x190   : > { %v1084_v4 = vpack.c.bf16 %v2093_v52, %v2091_v51 }
 0x192   : > { %1010 = vadd.xlane.f32.xlu1 %v2093_v52  ;;  %v1050_v52 = vld [vmem:[#allocation2 + $0x68] sm:$0xff] }
 0x194   : > { %1284 = vmatmul.mubr.bf16.gmra.mxu1 %v1084_v4 }
 0x1dd   : > { %v981_v54 = vpop.xlane.xlu1 %980 }
 0x1de   : > { %v1012_v55 = vadd.f32 %v981_v54, %v964_v53  ;;  %v1051_v54 = vld [vmem:[#allocation2 + $0x30] sm:$0xff] }
 0x1e0   : > { %1029 = vst.msk [vmem:[#allocation3] sm:$0xff] %vm1028_vm1, %v1012_v55 }
 0x1e1   : > { %v983_v57 = vpop.xlane.xlu1 %982 }
 0x1e2   : > { %v1013_v59 = vadd.f32 %v983_v57, %v965_v56  ;;  %v1052_v57 = vld [vmem:[#allocation2 + $0x48] sm:$0xff] }
 0x1e4   : > { %1030 = vst.msk [vmem:[#allocation3 + $0x8] sm:$0xff] %vm1028_vm1, %v1013_v59 }
 0x1e5   : > { %v985_v61 = vpop.xlane.xlu1 %984 }
 0x1e6   : > { %v1014_v62 = vadd.f32 %v985_v61, %v966_v60 }
 0x1e8   : > { %1031 = vst.msk [vmem:[#allocation3 + $0x10] sm:$0xff] %vm1028_vm1, %v1014_v62  ;;  %v1053_v62 = vld [vmem:[#allocation2 + $0x80] sm:$0xff] }
 0x1e9   : > { %v987_v63 = vpop.xlane.xlu1 %986 }
 0x1ea   : > { %v1015_v26 = vadd.f32 %v987_v63, %v967_v34  ;;  %v1054_v63 = vld [vmem:[#allocation2 + $0x88] sm:$0xff] }
 0x1ec   : > { %1032 = vst.msk [vmem:[#allocation3 + $0x18] sm:$0xff] %vm1028_vm1, %v1015_v26 }
 0x1ee   : > { %v989_v1 = vpop.xlane.xlu1 %988 }
 0x1ef   : > { %v1016_v2 = vadd.f32 %v989_v1, %v968_v0  ;;  %v1055_v1 = vld [vmem:[#allocation2 + $0xe8] sm:$0xff] }
 0x1f1   : > { %1033 = vst.msk [vmem:[#allocation3 + $0x20] sm:$0xff] %vm1028_vm1, %v1016_v2 }
 0x1f2   : > { %v991_v5 = vpop.xlane.xlu1 %990 }
 0x1f3   : > { %v1017_v37 = vadd.f32 %v991_v5, %v969_v3  ;;  %v1056_v5 = vld [vmem:[#allocation2 + $0xb8] sm:$0xff] }
 0x1f5   : > { %1034 = vst.msk [vmem:[#allocation3 + $0x28] sm:$0xff] %vm1028_vm1, %v1017_v37 }
 0x1f6   : > { %v993_v7 = vpop.xlane.xlu1 %992 }
 0x1f7   : > { %v1018_v8 = vadd.f32 %v993_v7, %v970_v6  ;;  %v1057_v7 = vld [vmem:[#allocation2 + $0x60] sm:$0xff] }
 0x1f9   : > { %1035 = vst.msk [vmem:[#allocation3 + $0x30] sm:$0xff] %vm1028_vm1, %v1018_v8 }
 0x1fa   : > { %v995_v28 = vpop.xlane.xlu0 %994 }
 0x1fb   : > { %v1019_v10 = vadd.f32 %v995_v28, %v971_v9  ;;  %v1058_v28 = vld [vmem:[#allocation2 + $0xf0] sm:$0xff] }
 0x1fd   : > { %1036 = vst.msk [vmem:[#allocation3 + $0x38] sm:$0xff] %vm1028_vm1, %v1019_v10 }
 0x1ff   : > { %v997_v12 = vpop.xlane.xlu1 %996 }
 0x200   : > { %v1020_v13 = vadd.f32 %v997_v12, %v972_v11  ;;  %v1059_v12 = vld [vmem:[#allocation2 + $0x8] sm:$0xff] }
 0x202   : > { %1037 = vst.msk [vmem:[#allocation3 + $0x40] sm:$0xff] %vm1028_vm1, %v1020_v13 }
 0x203   : > { %v999_v15 = vpop.xlane.xlu1 %998 }
 0x204   : > { %v1021_v16 = vadd.f32 %v999_v15, %v973_v14  ;;  %v1060_v15 = vld [vmem:[#allocation2 + $0x78] sm:$0xff] }
 0x206   : > { %1038 = vst.msk [vmem:[#allocation3 + $0x48] sm:$0xff] %vm1028_vm1, %v1021_v16 }
 0x207   : > { %v1001_v18 = vpop.xlane.xlu1 %1000 }
 0x208   : > { %v1022_v36 = vadd.f32 %v1001_v18, %v974_v17 }
 0x20a   : > { %1039 = vst.msk [vmem:[#allocation3 + $0x50] sm:$0xff] %vm1028_vm1, %v1022_v36  ;;  %v1061_v36 = vld [vmem:[#allocation2 + $0x38] sm:$0xff] }
 0x20b   : > { %v1003_v20 = vpop.xlane.xlu1 %1002 }
 0x20c   : > { %v1023_v21 = vadd.f32 %v1003_v20, %v975_v19  ;;  %v1062_v20 = vld [vmem:[#allocation2 + $0x58] sm:$0xff] }
 0x20e   : > { %1040 = vst.msk [vmem:[#allocation3 + $0x58] sm:$0xff] %vm1028_vm1, %v1023_v21 }
 0x20f   : > { %v1005_v23 = vpop.xlane.xlu1 %1004 }
 0x210   : > { %v1024_v24 = vadd.f32 %v1005_v23, %v976_v22  ;;  %v1063_v23 = vld [vmem:[#allocation2 + $0x40] sm:$0xff] }
 0x212   : > { %1041 = vst.msk [vmem:[#allocation3 + $0x60] sm:$0xff] %vm1028_vm1, %v1024_v24 }
 0x213   : > { %v1007_v27 = vpop.xlane.xlu1 %1006 }
 0x214   : > { %v1025_v29 = vadd.f32 %v1007_v27, %v977_v25  ;;  %v1064_v27 = vld [vmem:[#allocation2 + $0xc8] sm:$0xff] }
 0x216   : > { %1042 = vst.msk [vmem:[#allocation3 + $0x68] sm:$0xff] %vm1028_vm1, %v1025_v29 }
 0x217   : > { %v1009_v32 = vpop.xlane.xlu1 %1008 }
 0x218   : > { %v1026_v31 = vadd.f32 %v1009_v32, %v978_v30  ;;  %v1065_v32 = vld [vmem:[#allocation2 + $0xe0] sm:$0xff] }
 0x21a   : > { %1043 = vst.msk [vmem:[#allocation3 + $0x70] sm:$0xff] %vm1028_vm1, %v1026_v31  ;;  %v1215_v38 = vpop.f32.mrf.mxu0 }
 0x21b   : > { %v1011_v40 = vpop.xlane.xlu1 %1010  ;;  %v1294_v41 = vadd.f32 %v1215_v38, %v1045_v33 }
 0x21c   : > { %v1027_v42 = vadd.f32 %v1011_v40, %v979_v35  ;;  %v1217_v43 = vpop.f32.mrf.mxu0  ;;  %v1066_v35 = vld [vmem:[#allocation2 + $0x90] sm:$0xff] }
 0x21d   : > { %1326 = vst [vmem:[#allocation2 + $0xb0] sm:$0xff] %v1294_v41  ;;  %v1295_v44 = vadd.f32 %v1217_v43, %v1046_v39  ;;  %v1067_v40 = vld [vmem:[#allocation2 + $0x70] sm:$0xff]  ;;  %v1068_v43 = vld [vmem:[#allocation2 + $0xc0] sm:$0xff] }
 0x21e   : > { %1044 = vst.msk [vmem:[#allocation3 + $0x78] sm:$0xff] %vm1028_vm1, %v1027_v42  ;;  %v1219_v45 = vpop.f32.mrf.mxu0 }
 0x21f   : > { %1327 = vst [vmem:[#allocation2] sm:$0xff] %v1295_v44  ;;  %v1296_v47 = vadd.f32 %v1219_v45, %v1047_v58  ;;  %v1069_v45 = vld [vmem:[#allocation2 + $0xa8] sm:$0xff] }
 0x220   : > { %v1221_v48 = vpop.f32.mrf.mxu0 }
 0x221   : > { %1328 = vst [vmem:[#allocation2 + $0xd8] sm:$0xff] %v1296_v47  ;;  %v1297_v50 = vadd.f32 %v1221_v48, %v1048_v46  ;;  %v1070_v48 = vld [vmem:[#allocation2 + $0xd0] sm:$0xff] }
 0x222   : > { %v1225_v51 = vpop.f32.mrf.mxu0 }
 0x223   : > { %1329 = vst [vmem:[#allocation2 + $0x18] sm:$0xff] %v1297_v50  ;;  %v1298_v4 = vadd.f32 %v1225_v51, %v1049_v49  ;;  %v1071_v51 = vld [vmem:[#allocation2 + $0x10] sm:$0xff] }
 0x224   : > { %v1227_v53 = vpop.f32.mrf.mxu0 }
 0x225   : > { %1330 = vst [vmem:[#allocation2 + $0x50] sm:$0xff] %v1298_v4  ;;  %v1299_v55 = vadd.f32 %v1227_v53, %v1050_v52  ;;  %v1072_v53 = vld [vmem:[#allocation2 + $0x28] sm:$0xff] }
 0x226   : > { %v1229_v56 = vpop.f32.mrf.mxu0 }
 0x227   : > { %1331 = vst [vmem:[#allocation2 + $0x68] sm:$0xff] %v1299_v55  ;;  %v1300_v59 = vadd.f32 %v1229_v56, %v1051_v54  ;;  %v1073_v56 = vld [vmem:[#allocation2 + $0xa0] sm:$0xff] }
 0x228   : > { %v1231_v60 = vpop.f32.mrf.mxu0 }
 0x229   : > { %1332 = vst [vmem:[#allocation2 + $0x30] sm:$0xff] %v1300_v59  ;;  %v1301_v61 = vadd.f32 %v1231_v60, %v1052_v57  ;;  %v1074_v60 = vld [vmem:[#allocation2 + $0xf8] sm:$0xff] }
 0x22b   : > { %1333 = vst [vmem:[#allocation2 + $0x48] sm:$0xff] %v1301_v61  ;;  %v1235_v34 = vpop.f32.mrf.mxu0 }
 0x22c   : > { %v1302_v26 = vadd.f32 %v1235_v34, %v1053_v62  ;;  %v1075_v34 = vld [vmem:[#allocation2 + $0x20] sm:$0xff] }
 0x22d   : > { %v1237_v0 = vpop.f32.mrf.mxu0 }
 0x22e   : > { %1334 = vst [vmem:[#allocation2 + $0x80] sm:$0xff] %v1302_v26  ;;  %v1303_v2 = vadd.f32 %v1237_v0, %v1054_v63  ;;  %v1076_v0 = vld [vmem:[#allocation2 + $0x98] sm:$0xff] }
 0x22f   : > { %v1239_v3 = vpop.f32.mrf.mxu0 }
 0x230   : > { %1335 = vst [vmem:[#allocation2 + $0x88] sm:$0xff] %v1303_v2  ;;  %v1304_v37 = vadd.f32 %v1239_v3, %v1055_v1 }
 0x231   : > { %v1241_v6 = vpop.f32.mrf.mxu0 }
 0x232   : > { %1336 = vst [vmem:[#allocation2 + $0xe8] sm:$0xff] %v1304_v37  ;;  %v1305_v8 = vadd.f32 %v1241_v6, %v1056_v5 }
 0x233   : > { %v1245_v9 = vpop.f32.mrf.mxu0 }
 0x234   : > { %1337 = vst [vmem:[#allocation2 + $0xb8] sm:$0xff] %v1305_v8  ;;  %v1306_v10 = vadd.f32 %v1245_v9, %v1057_v7 }
 0x235   : > { %v1247_v11 = vpop.f32.mrf.mxu0 }
 0x236   : > { %1338 = vst [vmem:[#allocation2 + $0x60] sm:$0xff] %v1306_v10  ;;  %v1307_v13 = vadd.f32 %v1247_v11, %v1058_v28 }
 0x237   : > { %v1249_v14 = vpop.f32.mrf.mxu0 }
 0x238   : > { %1339 = vst [vmem:[#allocation2 + $0xf0] sm:$0xff] %v1307_v13  ;;  %v1308_v16 = vadd.f32 %v1249_v14, %v1059_v12 }
 0x239   : > { %v1251_v17 = vpop.f32.mrf.mxu0 }
 0x23a   : > { %1340 = vst [vmem:[#allocation2 + $0x8] sm:$0xff] %v1308_v16  ;;  %v1309_v18 = vadd.f32 %v1251_v17, %v1060_v15 }
 0x23c   : > { %1341 = vst [vmem:[#allocation2 + $0x78] sm:$0xff] %v1309_v18  ;;  %v1255_v19 = vpop.f32.mrf.mxu1 }
 0x23d   : > { %v1310_v21 = vadd.f32 %v1255_v19, %v1061_v36 }
 0x23e   : > { %v1257_v22 = vpop.f32.mrf.mxu1 }
 0x23f   : > { %1342 = vst [vmem:[#allocation2 + $0x38] sm:$0xff] %v1310_v21  ;;  %v1311_v24 = vadd.f32 %v1257_v22, %v1062_v20 }
 0x240   : > { %v1259_v25 = vpop.f32.mrf.mxu1 }
 0x241   : > { %1343 = vst [vmem:[#allocation2 + $0x58] sm:$0xff] %v1311_v24  ;;  %v1312_v29 = vadd.f32 %v1259_v25, %v1063_v23 }
 0x242   : > { %v1261_v30 = vpop.f32.mrf.mxu1 }
 0x243   : > { %1344 = vst [vmem:[#allocation2 + $0x40] sm:$0xff] %v1312_v29  ;;  %v1313_v31 = vadd.f32 %v1261_v30, %v1064_v27 }
 0x244   : > { %v1265_v33 = vpop.f32.mrf.mxu1 }
 0x245   : > { %1345 = vst [vmem:[#allocation2 + $0xc8] sm:$0xff] %v1313_v31  ;;  %v1314_v38 = vadd.f32 %v1265_v33, %v1065_v32 }
 0x246   : > { %v1267_v39 = vpop.f32.mrf.mxu1 }
 0x247   : > { %1346 = vst [vmem:[#allocation2 + $0xe0] sm:$0xff] %v1314_v38  ;;  %v1315_v41 = vadd.f32 %v1267_v39, %v1066_v35 }
 0x248   : > { %v1269_v42 = vpop.f32.mrf.mxu1 }
 0x249   : > { %1347 = vst [vmem:[#allocation2 + $0x90] sm:$0xff] %v1315_v41  ;;  %v1316_v58 = vadd.f32 %v1269_v42, %v1067_v40 }
 0x24a   : > { %v1271_v44 = vpop.f32.mrf.mxu1 }
 0x24b   : > { %1348 = vst [vmem:[#allocation2 + $0x70] sm:$0xff] %v1316_v58  ;;  %v1317_v46 = vadd.f32 %v1271_v44, %v1068_v43 }
 0x24c   : > { %v1275_v47 = vpop.f32.mrf.mxu1 }
 0x24d   : > { %1349 = vst [vmem:[#allocation2 + $0xc0] sm:$0xff] %v1317_v46  ;;  %v1318_v49 = vadd.f32 %v1275_v47, %v1069_v45 }
 0x24e   : > { %v1277_v50 = vpop.f32.mrf.mxu1 }
 0x24f   : > { %1350 = vst [vmem:[#allocation2 + $0xa8] sm:$0xff] %v1318_v49  ;;  %v1319_v52 = vadd.f32 %v1277_v50, %v1070_v48 }
 0x250   : > { %v1279_v4 = vpop.f32.mrf.mxu1 }
 0x251   : > { %1351 = vst [vmem:[#allocation2 + $0xd0] sm:$0xff] %v1319_v52  ;;  %v1320_v54 = vadd.f32 %v1279_v4, %v1071_v51 }
 0x252   : > { %v1281_v55 = vpop.f32.mrf.mxu1 }
 0x253   : > { %1352 = vst [vmem:[#allocation2 + $0x10] sm:$0xff] %v1320_v54  ;;  %v1321_v57 = vadd.f32 %v1281_v55, %v1072_v53 }
 0x254   : > { %v1285_v59 = vpop.f32.mrf.mxu1 }
 0x255   : > { %1353 = vst [vmem:[#allocation2 + $0x28] sm:$0xff] %v1321_v57  ;;  %v1322_v61 = vadd.f32 %v1285_v59, %v1073_v56 }
 0x256   : > { %v1287_v62 = vpop.f32.mrf.mxu1 }
 0x257   : > { %1354 = vst [vmem:[#allocation2 + $0xa0] sm:$0xff] %v1322_v61  ;;  %v1323_v63 = vadd.f32 %v1287_v62, %v1074_v60 }
 0x258   : > { %v1289_v26 = vpop.f32.mrf.mxu1 }
 0x259   : > { %1355 = vst [vmem:[#allocation2 + $0xf8] sm:$0xff] %v1323_v63  ;;  %v1324_v1 = vadd.f32 %v1289_v26, %v1075_v34  ;;  %1361 = sbr.rel (%p1774_p8) target bundleno = 777 (0x309), region = 130 }
 0x25a   : > { %v1291_v2 = vpop.f32.mrf.mxu1 }
 0x25b   : > { %1356 = vst [vmem:[#allocation2 + $0x20] sm:$0xff] %v1324_v1  ;;  %v1325_v3 = vadd.f32 %v1291_v2, %v1076_v0 }
 0x25d   : > { %1357 = vst [vmem:[#allocation2 + $0x98] sm:$0xff] %v1325_v3 }
 0x25e   : > { %v1396_v5 = vld [vmem:[#allocation3 + $0x10] sm:$0xff]  ;;  %v1394_v37 = vld [vmem:[#allocation3] sm:$0xff]  ;;  %v1397_v6 = vld [vmem:[#allocation3 + $0x18] sm:$0xff]  ;;  %v2240_v7 = vmov 0  }
 0x25f   : > { %2095 = vset.pattern.permute.xlu1 %v2240_v7  ;;  %2094 = vset.pattern.permute.xlu0 %v2240_v7  ;;  %2096 = vrcp.f32 %v1396_v5  ;;  %v1395_v8 = vld [vmem:[#allocation3 + $0x8] sm:$0xff]  ;;  %v1398_v28 = vld [vmem:[#allocation3 + $0x20] sm:$0xff]  ;;  %v1401_v10 = vld [vmem:[#allocation3 + $0x38] sm:$0xff] }
 0x260   : > { %2098 = vrcp.f32 %v1394_v37  ;;  %v1399_v9 = vld [vmem:[#allocation3 + $0x28] sm:$0xff]  ;;  %v1400_v11 = vld [vmem:[#allocation3 + $0x30] sm:$0xff]  ;;  %v1402_v13 = vld [vmem:[#allocation3 + $0x40] sm:$0xff] }
 0x261   : > { %2100 = vrcp.f32 %v1397_v6  ;;  %v1403_v12 = vld [vmem:[#allocation3 + $0x48] sm:$0xff]  ;;  %v1405_v17 = vld [vmem:[#allocation3 + $0x58] sm:$0xff]  ;;  %v1404_v36 = vld [vmem:[#allocation3 + $0x50] sm:$0xff] }
 0x262   : > { %2102 = vrcp.f32 %v1395_v8  ;;  %v1407_v20 = vld [vmem:[#allocation3 + $0x68] sm:$0xff]  ;;  %v1406_v22 = vld [vmem:[#allocation3 + $0x60] sm:$0xff]  ;;  %v1409_v24 = vld [vmem:[#allocation3 + $0x78] sm:$0xff] }
 0x263   : > { %2104 = vrcp.f32 %v1399_v9  ;;  %v1408_v27 = vld [vmem:[#allocation3 + $0x70] sm:$0xff]  ;;  %v1367_v41 = vld [vmem:[#allocation2 + $0x68] sm:$0xff]  ;;  %v1363_v43 = vld [vmem:[#allocation2] sm:$0xff] }
 0x264   : > { %2106 = vrcp.f32 %v1398_v28  ;;  %v1366_v40 = vld [vmem:[#allocation2 + $0x50] sm:$0xff]  ;;  %v1369_v50 = vld [vmem:[#allocation2 + $0x48] sm:$0xff]  ;;  %v1364_v51 = vld [vmem:[#allocation2 + $0xd8] sm:$0xff] }
 0x265   : > { %2108 = vrcp.f32 %v1401_v10  ;;  %v1362_v42 = vld [vmem:[#allocation2 + $0xb0] sm:$0xff]  ;;  %v1365_v52 = vld [vmem:[#allocation2 + $0x18] sm:$0xff]  ;;  %v1372_v59 = vld [vmem:[#allocation2 + $0xe8] sm:$0xff] }
 0x266   : > { %2110 = vrcp.f32 %v1400_v11  ;;  %v1368_v49 = vld [vmem:[#allocation2 + $0x30] sm:$0xff]  ;;  %v1373_v60 = vld [vmem:[#allocation2 + $0xb8] sm:$0xff]  ;;  %v1370_v61 = vld [vmem:[#allocation2 + $0x80] sm:$0xff] }
 0x267   : > { %2112 = vrcp.f32 %v1403_v12  ;;  %v1371_v62 = vld [vmem:[#allocation2 + $0x88] sm:$0xff]  ;;  %v1377_v5 = vld [vmem:[#allocation2 + $0x78] sm:$0xff]  ;;  %v1374_v37 = vld [vmem:[#allocation2 + $0x60] sm:$0xff] }
 0x268   : > { %2114 = vrcp.f32 %v1402_v13  ;;  %v1376_v3 = vld [vmem:[#allocation2 + $0x8] sm:$0xff]  ;;  %v1375_v6 = vld [vmem:[#allocation2 + $0xf0] sm:$0xff]  ;;  %v1380_v12 = vld [vmem:[#allocation2 + $0x40] sm:$0xff] }
 0x269   : > { %2116 = vrcp.f32 %v1405_v17  ;;  %v1381_v13 = vld [vmem:[#allocation2 + $0xc8] sm:$0xff] }
 0x26a   : > { %2118 = vrcp.f32 %v1404_v36 }
 0x26b   : > { %2120 = vrcp.f32 %v1407_v20 }
 0x26c   : > { %v2097_v14 = vpop.eup %2096  ;;  %2122 = vrcp.f32 %v1406_v22  ;;  %v1385_v22 = vld [vmem:[#allocation2 + $0xc0] sm:$0xff] }
 0x26d   : > { %v2099_v15 = vpop.eup %2098  ;;  %1438 = vperm.xlu1 %2095, %v2097_v14   ;;  %2124 = vrcp.f32 %v1409_v24  ;;  %v1378_v14 = vld [vmem:[#allocation2 + $0x38] sm:$0xff]  ;;  %v1383_v24 = vld [vmem:[#allocation2 + $0x90] sm:$0xff] }
 0x26e   : > { %v2101_v16 = vpop.eup %2100  ;;  %1428 = vperm.xlu0 %2094, %v2099_v15   ;;  %2126 = vrcp.f32 %v1408_v27  ;;  %v1379_v15 = vld [vmem:[#allocation2 + $0x58] sm:$0xff] }
 0x26f   : > { %v2103_v18 = vpop.eup %2102 }
 0x270   : > { %v2105_v19 = vpop.eup %2104 }
 0x271   : > { %1443 = vperm.xlu1 %2095, %v2101_v16   ;;  %v2107_v21 = vpop.eup %2106 }
 0x272   : > { %1433 = vperm.xlu0 %2094, %v2103_v18   ;;  %v2109_v23 = vpop.eup %2108 }
 0x273   : > { %v2111_v25 = vpop.eup %2110 }
 0x274   : > { %v2113_v29 = vpop.eup %2112 }
 0x275   : > { %1453 = vperm.xlu1 %2095, %v2105_v19   ;;  %v2115_v30 = vpop.eup %2114 }
 0x276   : > { %1448 = vperm.xlu0 %2094, %v2107_v21   ;;  %v2117_v32 = vpop.eup %2116  ;;  %v1384_v21 = vld [vmem:[#allocation2 + $0x70] sm:$0xff] }
 0x277   : > { %v2119_v31 = vpop.eup %2118 }
 0x278   : > { %v2121_v33 = vpop.eup %2120 }
 0x279   : > { %1463 = vperm.xlu1 %2095, %v2109_v23   ;;  %v2123_v35 = vpop.eup %2122  ;;  %v1382_v23 = vld [vmem:[#allocation2 + $0xe0] sm:$0xff] }
 0x27a   : > { %1458 = vperm.xlu0 %2094, %v2111_v25   ;;  %v2125_v38 = vpop.eup %2124 }
 0x27b   : > { %v2127_v39 = vpop.eup %2126 }
 0x27d   : > { %1473 = vperm.xlu1 %2095, %v2113_v29  }
 0x27e   : > { %1468 = vperm.xlu0 %2094, %v2115_v30  }
 0x281   : > { %1483 = vperm.xlu1 %2095, %v2117_v32  }
 0x282   : > { %1478 = vperm.xlu0 %2094, %v2119_v31  }
 0x285   : > { %1493 = vperm.xlu1 %2095, %v2121_v33   ;;  %v1388_v33 = vld [vmem:[#allocation2 + $0x10] sm:$0xff] }
 0x286   : > { %1488 = vperm.xlu0 %2094, %v2123_v35   ;;  %v1389_v35 = vld [vmem:[#allocation2 + $0x28] sm:$0xff] }
 0x289   : > { %1503 = vperm.xlu1 %2095, %v2125_v38   ;;  %v1386_v38 = vld [vmem:[#allocation2 + $0xa8] sm:$0xff] }
 0x28a   : > { %1498 = vperm.xlu0 %2094, %v2127_v39   ;;  %v1387_v39 = vld [vmem:[#allocation2 + $0xd0] sm:$0xff] }
 0x2e8   : > { %v1439_v58 = vpop.permute.xlu1 %1438 }
 0x2e9   : > { %v1510_v44 = vmul.f32 %v1439_v58, %v1366_v40  ;;  %v1511_v45 = vmul.f32 %v1439_v58, %v1367_v41  ;;  %v1429_v46 = vpop.permute.xlu0 %1428 }
 0x2ea   : > { %v1506_v47 = vmul.f32 %v1429_v46, %v1362_v42  ;;  %v1507_v48 = vmul.f32 %v1429_v46, %v1363_v43  ;;  %v1393_v46 = vld [vmem:[#allocation2 + $0x98] sm:$0xff] }
 0x2eb   : > { %1542 = vst [vmem:[%s2447_s8 + $0x20] sm:$0xff] %v1510_v44  ;;  %1543 = vst [vmem:[%s2447_s8 + $0x28] sm:$0xff] %v1511_v45  ;;  %v1392_v45 = vld [vmem:[#allocation2 + $0x20] sm:$0xff] }
 0x2ec   : > { %1538 = vst [vmem:[%s2447_s8] sm:$0xff] %v1506_v47  ;;  %1539 = vst [vmem:[%s2447_s8 + $0x8] sm:$0xff] %v1507_v48  ;;  %v1444_v4 = vpop.permute.xlu1 %1443  ;;  %v1390_v47 = vld [vmem:[#allocation2 + $0xa0] sm:$0xff]  ;;  %v1391_v48 = vld [vmem:[#allocation2 + $0xf8] sm:$0xff] }
 0x2ed   : > { %v1512_v53 = vmul.f32 %v1444_v4, %v1368_v49  ;;  %v1513_v54 = vmul.f32 %v1444_v4, %v1369_v50  ;;  %v1434_v55 = vpop.permute.xlu0 %1433 }
 0x2ee   : > { %v1508_v56 = vmul.f32 %v1434_v55, %v1364_v51  ;;  %v1509_v57 = vmul.f32 %v1434_v55, %v1365_v52 }
 0x2ef   : > { %1544 = vst [vmem:[%s2447_s8 + $0x30] sm:$0xff] %v1512_v53  ;;  %1545 = vst [vmem:[%s2447_s8 + $0x38] sm:$0xff] %v1513_v54 }
 0x2f0   : > { %1540 = vst [vmem:[%s2447_s8 + $0x10] sm:$0xff] %v1508_v56  ;;  %1541 = vst [vmem:[%s2447_s8 + $0x18] sm:$0xff] %v1509_v57  ;;  %v1454_v34 = vpop.permute.xlu1 %1453 }
 0x2f1   : > { %v1516_v63 = vmul.f32 %v1454_v34, %v1372_v59  ;;  %v1517_v26 = vmul.f32 %v1454_v34, %v1373_v60  ;;  %v1449_v0 = vpop.permute.xlu0 %1448 }
 0x2f2   : > { %v1514_v1 = vmul.f32 %v1449_v0, %v1370_v61  ;;  %v1515_v2 = vmul.f32 %v1449_v0, %v1371_v62 }
 0x2f3   : > { %1548 = vst [vmem:[%s2447_s8 + $0x50] sm:$0xff] %v1516_v63  ;;  %1549 = vst [vmem:[%s2447_s8 + $0x58] sm:$0xff] %v1517_v26 }
 0x2f4   : > { %1546 = vst [vmem:[%s2447_s8 + $0x40] sm:$0xff] %v1514_v1  ;;  %1547 = vst [vmem:[%s2447_s8 + $0x48] sm:$0xff] %v1515_v2  ;;  %v1464_v7 = vpop.permute.xlu1 %1463 }
 0x2f5   : > { %v1520_v8 = vmul.f32 %v1464_v7, %v1376_v3  ;;  %v1521_v9 = vmul.f32 %v1464_v7, %v1377_v5  ;;  %v1459_v28 = vpop.permute.xlu0 %1458 }
 0x2f6   : > { %v1518_v10 = vmul.f32 %v1459_v28, %v1374_v37  ;;  %v1519_v11 = vmul.f32 %v1459_v28, %v1375_v6 }
 0x2f7   : > { %1552 = vst [vmem:[%s2447_s8 + $0x70] sm:$0xff] %v1520_v8  ;;  %1553 = vst [vmem:[%s2447_s8 + $0x78] sm:$0xff] %v1521_v9 }
 0x2f8   : > { %1550 = vst [vmem:[%s2447_s8 + $0x60] sm:$0xff] %v1518_v10  ;;  %1551 = vst [vmem:[%s2447_s8 + $0x68] sm:$0xff] %v1519_v11  ;;  %v1474_v16 = vpop.permute.xlu1 %1473 }
 0x2f9   : > { %v1524_v17 = vmul.f32 %v1474_v16, %v1380_v12  ;;  %v1525_v18 = vmul.f32 %v1474_v16, %v1381_v13  ;;  %v1469_v36 = vpop.permute.xlu0 %1468 }
 0x2fa   : > { %v1522_v19 = vmul.f32 %v1469_v36, %v1378_v14  ;;  %v1523_v20 = vmul.f32 %v1469_v36, %v1379_v15 }
 0x2fb   : > { %1556 = vst [vmem:[%s2447_s8 + $0x90] sm:$0xff] %v1524_v17  ;;  %1557 = vst [vmem:[%s2447_s8 + $0x98] sm:$0xff] %v1525_v18 }
 0x2fc   : > { %1554 = vst [vmem:[%s2447_s8 + $0x80] sm:$0xff] %v1522_v19  ;;  %1555 = vst [vmem:[%s2447_s8 + $0x88] sm:$0xff] %v1523_v20  ;;  %v1484_v25 = vpop.permute.xlu1 %1483 }
 0x2fd   : > { %v1528_v27 = vmul.f32 %v1484_v25, %v1384_v21  ;;  %v1529_v29 = vmul.f32 %v1484_v25, %v1385_v22  ;;  %v1479_v30 = vpop.permute.xlu0 %1478 }
 0x2fe   : > { %v1526_v32 = vmul.f32 %v1479_v30, %v1382_v23  ;;  %v1527_v31 = vmul.f32 %v1479_v30, %v1383_v24 }
 0x2ff   : > { %1560 = vst [vmem:[%s2447_s8 + $0xb0] sm:$0xff] %v1528_v27  ;;  %1561 = vst [vmem:[%s2447_s8 + $0xb8] sm:$0xff] %v1529_v29 }
 0x300   : > { %1558 = vst [vmem:[%s2447_s8 + $0xa0] sm:$0xff] %v1526_v32  ;;  %1559 = vst [vmem:[%s2447_s8 + $0xa8] sm:$0xff] %v1527_v31  ;;  %v1494_v40 = vpop.permute.xlu1 %1493 }
 0x301   : > { %v1532_v41 = vmul.f32 %v1494_v40, %v1388_v33  ;;  %v1533_v42 = vmul.f32 %v1494_v40, %v1389_v35  ;;  %v1489_v43 = vpop.permute.xlu0 %1488 }
 0x302   : > { %v1530_v58 = vmul.f32 %v1489_v43, %v1386_v38  ;;  %v1531_v44 = vmul.f32 %v1489_v43, %v1387_v39 }
 0x303   : > { %1564 = vst [vmem:[%s2447_s8 + $0xd0] sm:$0xff] %v1532_v41  ;;  %1565 = vst [vmem:[%s2447_s8 + $0xd8] sm:$0xff] %v1533_v42 }
 0x304   : > { %1562 = vst [vmem:[%s2447_s8 + $0xc0] sm:$0xff] %v1530_v58  ;;  %1563 = vst [vmem:[%s2447_s8 + $0xc8] sm:$0xff] %v1531_v44  ;;  %v1504_v49 = vpop.permute.xlu1 %1503 }
 0x305   : > { %v1536_v50 = vmul.f32 %v1504_v49, %v1392_v45  ;;  %v1537_v51 = vmul.f32 %v1504_v49, %v1393_v46  ;;  %v1499_v52 = vpop.permute.xlu0 %1498 }
 0x306   : > { %v1534_v4 = vmul.f32 %v1499_v52, %v1390_v47  ;;  %v1535_v53 = vmul.f32 %v1499_v52, %v1391_v48 }
 0x307   : > { %1568 = vst [vmem:[%s2447_s8 + $0xf0] sm:$0xff] %v1536_v50  ;;  %1569 = vst [vmem:[%s2447_s8 + $0xf8] sm:$0xff] %v1537_v51 }
 0x308   : > { %1566 = vst [vmem:[%s2447_s8 + $0xe0] sm:$0xff] %v1534_v4  ;;  %1567 = vst [vmem:[%s2447_s8 + $0xe8] sm:$0xff] %v1535_v53 }
 0x309 PF: > { %s1785_s23 = sshll.u32 %s2224_s24, 12  ;;  %s1585_s16 = sshll.u32 %s2447_s8, 4  ;;  %s2621_s16 = int_to_ptr.vmem [resolvable:$true] %s1585_s16 }
 0x30a   : > { %s2618_s30 = scalar_lea.hbm %s2687_s5, %s1785_s23  ;;  %s2707_s7 = sand.u32 1, %s2204_s19  }
 0x30b   : > { %s2625_s6 = scalar_lea.sflag [#allocation7], %s2707_s7  ;;  %s2128_s0 = scalar_lea.vmem %s2621_s16, 4096 }
 0x30c   : > { %p2129_p9 = scmp.ne.s32.totalorder %s2621_s16, %s2128_s0  ;;  %s2241_s24 = smov [#allocation6]  }
 0x30d   : > { %s2132_s17 = sshll.u32 %s2241_s24, 4  ;;  %s2133_s17 = int_to_ptr.vmem [resolvable:$false] %s2132_s17 }
 0x30e   : > { %p2130_p10 = pnand %p2129_p9, %p2346_p7  ;;  %s2134_s28 = scalar_lea.vmem %s2133_s17, 8192 }
 0x30f   : > { %p2135_p13 = scmp.lt.s32.totalorder %s2621_s16, %s2133_s17  ;;  %p2136_p0 = scmp.lt.s32.totalorder %s2134_s28, %s2128_s0 }
 0x310   : > { %p2131_p11 = pneg %p2130_p10 }
 0x311   : > { %p2137_p1 = por %p2136_p0, %p2135_p13 }
 0x313   : > { %p2138_p2 = pnand %p2137_p1, %p2131_p11 }
 0x315   : > { %2141 = shalt.err (!%p2138_p2)
}
 0x316   : > { %s2142_s29 = scalar_lea.hbm %s2618_s30, 4096  ;;  %s2146_s9 = scalar_lea.hbm %s2687_s5, 8192 }
 0x317   : > { %p2143_p3 = scmp.ne.s32.totalorder %s2618_s30, %s2142_s29  ;;  %p2147_p6 = scmp.lt.s32.totalorder %s2618_s30, %s2687_s5 }
 0x318   : > { %p2148_p8 = scmp.lt.s32.totalorder %s2146_s9, %s2142_s29 }
 0x319   : > { %p2144_p4 = pnand %p2143_p3, %p2346_p7 }
 0x31a   : > { %p2149_p9 = por %p2148_p8, %p2147_p6 }
 0x31b   : > { %p2145_p5 = pneg %p2144_p4 }
 0x31d   : > { %p2150_p10 = pnand %p2149_p9, %p2145_p5 }
 0x31f   : > { %2153 = shalt.err (!%p2150_p10)
}
 0x320   : > { %s2242_s8 = smov 256   ;;  %s2243_s1 = smov 16  }
 0x321   : > { %1880 = dma.vmem_to_hbm [thread:$0]  (%p2346_p7), %s2621_s16, 4096, %s2618_s30, %s2625_s6, %s2242_s8, %s2242_s8, %s2243_s1  }
 0x322 PF: > { %p1886_p11 = scmp.ge.s32.totalorder %s2236_s27, 2  ;;  %s1600_s22 = sand.u32 1, %s2200_s18  }
 0x323   : > { %s1601_s23 = scalar_lea.sflag [#allocation7], %s1600_s22 }
 0x324   : > { %p1883_p13 = pnand %p1886_p11, %p2354_p12 }
 0x326   : > { %p1884_p0 = pneg %p1883_p13 }
 0x328   : > { %2195 = dma.done.wait (%p1884_p0), %s1601_s23, 4096  }
 0x329   : > { %2197 = vsyncadd (%p1884_p0), %s1601_s23, 4294963200  ;;  %s18_s27 = sadd.s32 1, %s2236_s27   ;;  %s2708_s21 = sld [smem:[#allocation9_spill]] }
 0x32a   : > { %p15_p1 = scmp.ge.s32.totalorder %s18_s27, 6   ;;  %s2709_s22 = sld [smem:[#allocation14_spill]] }
 0x32b   : > { %s2710_s23 = sld [smem:[#allocation10_spill]]  ;;  %s2714_s18 = smov %s2204_s19 }
 0x32c   : > { %s2711_s24 = sld [smem:[#allocation11_spill]]  ;;  %s2715_s19 = smov %s2208_s20 }
 0x32d   : > { %s2712_s25 = sld [smem:[#allocation12_spill]]  ;;  %s2716_s20 = smov %s2359_s15 }
 0x32e   : > { %s2713_s26 = sld [smem:[#allocation13_spill]]  ;;  %17 = sbr.rel (!%p15_p1) target bundleno = 9 (0x9), region = 187 }
 0x333   :  { %1606 = vsyncpa [#allocation7], 1 }
 0x334   :  { %1608 = vsyncpa [#allocation7 + $0x1], 1 }

</bundles_post_ra>
